<compile_context>
chip_gen: v5e
topology: v5e:2x2
jax: 0.10.0
libtpu: 0.0.40
codegen_flags: <defaults>
</compile_context>

<pallas_src>
import functools

import numpy as np
import jax
import jax.numpy as jnp
from jax.experimental import pallas as pl
from jax.experimental.pallas import tpu as pltpu


_MS_WEIGHTS = (0.0448, 0.2856, 0.3001, 0.2363, 0.1333)
_LEVELS = len(_MS_WEIGHTS)


# ----------------------------------------------------------------------------
# Static helper matrices (built on host with numpy, become compile-time consts)
# ----------------------------------------------------------------------------
def _gauss_1d(window_size, sigma=1.5):
    xs = np.arange(window_size, dtype=np.float64)
    g = np.exp(-((xs - window_size // 2) ** 2) / (2.0 * sigma ** 2))
    return (g / g.sum()).astype(np.float32)


def _blur_band(h, ws):
    """(Ho, H) band matrix: row o holds the normalized 1-D Gaussian at offset o."""
    g = _gauss_1d(ws)
    ho = h - ws + 1
    m = np.zeros((ho, h), np.float32)
    for o in range(ho):
        m[o, o:o + ws] = g
    return m


def _pool_band(h):
    """(H//2, H) matrix: non-overlapping 2-tap 0.5/0.5 average along one axis."""
    hp = h // 2
    m = np.zeros((hp, h), np.float32)
    for i in range(hp):
        m[i, 2 * i] = 0.5
        m[i, 2 * i + 1] = 0.5
    return m


def _block_diag(m, reps):
    r, c = m.shape
    out = np.zeros((r * reps, c * reps), np.float32)
    for i in range(reps):
        out[i * r:(i + 1) * r, i * c:(i + 1) * c] = m
    return out


# ----------------------------------------------------------------------------
# Fused Pallas kernel: all MS-SSIM scales in one invocation
# ----------------------------------------------------------------------------
def _msssim_kernel(x1_ref, x2_ref, *rest, levels, inv_counts, out_rows):
    mat_refs = rest[:-1]
    stats_ref = rest[-1]

    x1 = x1_ref[...]            # (BC*H, W): all N*C channel images, rows stacked
    x2 = x2_ref[...]

    idx = 0
    ssim_means = []
    cs_means = []
    for lvl in range(levels):
        ah_bd = mat_refs[idx][...]      # (BC*Ho, BC*H) block-diag row blur
        awt = mat_refs[idx + 1][...]    # (W, Wo)       column blur (shared)
        idx += 2

        # Data-dependent dynamic range (reference: max/min of img1 per level),
        # computed on the resident image -- no extra HBM reduction pass.
        mx = jnp.max(x1)
        mn = jnp.min(x1)
        max_val = jnp.where(mx > 128.0, 255.0, 1.0)
        min_val = jnp.where(mn < -0.5, -1.0, 0.0)
        dyn = max_val - min_val
        c1 = (0.01 * dyn) ** 2
        c2 = (0.03 * dyn) ** 2

        def blur(t, ah_bd=ah_bd, awt=awt):
            # separable valid-padding Gaussian filter: one fat column matmul,
            # one block-diagonal (over channels) row matmul, both on the MXU.
            yc = jnp.dot(t, awt, preferred_element_type=jnp.float32)
            return jnp.dot(ah_bd, yc, preferred_element_type=jnp.float32)

        mu1 = blur(x1)
        mu2 = blur(x2)
        s11 = blur(x1 * x1) - mu1 * mu1
        s22 = blur(x2 * x2) - mu2 * mu2
        s12 = blur(x1 * x2) - mu1 * mu2

        v1 = 2.0 * s12 + c2
        v2 = s11 + s22 + c2
        cs_map = v1 / v2
        ssim_map = cs_map * (2.0 * mu1 * mu2 + c1) / (mu1 * mu1 + mu2 * mu2 + c1)

        ssim_means.append(jnp.sum(ssim_map) * inv_counts[lvl])
        cs_means.append(jnp.sum(cs_map) * inv_counts[lvl])

        if lvl < levels - 1:
            ph_bd = mat_refs[idx][...]      # (BC*Hp, BC*H) block-diag row pool
            pwt = mat_refs[idx + 1][...]    # (W, Wp)       column pool (shared)
            idx += 2

            def pool(t, ph_bd=ph_bd, pwt=pwt):
                yc = jnp.dot(t, pwt, preferred_element_type=jnp.float32)
                return jnp.dot(ph_bd, yc, preferred_element_type=jnp.float32)

            x1 = pool(x1)       # pooled images stay in VMEM, never hit HBM
            x2 = pool(x2)

    # Single lane-dense store of all per-level statistics:
    #   rows [0, levels)           -> ssim means
    #   rows [levels, 2*levels)    -> cs means
    row_ids = jax.lax.broadcasted_iota(jnp.int32, (out_rows, 128), 0)
    block = jnp.zeros((out_rows, 128), jnp.float32)
    for i, v in enumerate(ssim_means + cs_means):
        block = jnp.where(row_ids == i, v, block)
    stats_ref[...] = block


# ----------------------------------------------------------------------------
# MSSSIM.forward  ==  msssim(img1, img2, window_size=11, size_average=True,
#                            normalize=True)
# ----------------------------------------------------------------------------
def msssim_forward(img1, img2, *, window_size=11, size_average=True,
                   normalize=True):
    del size_average  # size_average=True (global mean) is what the kernel does
    n, c, h, w = img1.shape
    assert min(h, w) >= 2 ** (_LEVELS - 1), "image too small for 5 MS-SSIM scales"
    bc = n * c

    x1 = img1.astype(jnp.float32).reshape(bc * h, w)
    x2 = img2.astype(jnp.float32).reshape(bc * h, w)

    mats = []
    inv_counts = []
    cur_h, cur_w = h, w
    for lvl in range(_LEVELS):
        ws = min(window_size, cur_h, cur_w)
        ho, wo = cur_h - ws + 1, cur_w - ws + 1
        ah = _blur_band(cur_h, ws)                            # (Ho, H)
        mats.append(jnp.asarray(_block_diag(ah, bc)))         # (BC*Ho, BC*H)
        mats.append(jnp.asarray(_blur_band(cur_w, ws).T))     # (W, Wo)
        inv_counts.append(1.0 / float(bc * ho * wo))
        if lvl < _LEVELS - 1:
            ph = _pool_band(cur_h)                            # (Hp, H)
            mats.append(jnp.asarray(_block_diag(ph, bc)))     # (BC*Hp, BC*H)
            mats.append(jnp.asarray(_pool_band(cur_w).T))     # (W, Wp)
            cur_h, cur_w = cur_h // 2, cur_w // 2

    out_rows = 16
    kernel = functools.partial(_msssim_kernel, levels=_LEVELS,
                               inv_counts=tuple(inv_counts), out_rows=out_rows)

    stats = pl.pallas_call(
        kernel,
        out_shape=jax.ShapeDtypeStruct((out_rows, 128), jnp.float32),
        in_specs=[pl.BlockSpec(memory_space=pltpu.MemorySpace.VMEM)
                  for _ in range(2 + len(mats))],
        out_specs=pl.BlockSpec(memory_space=pltpu.MemorySpace.VMEM),
    )(x1, x2, *mats)

    mssim = stats[0:_LEVELS, 0]
    mcs = stats[_LEVELS:2 * _LEVELS, 0]
    weights = jnp.asarray(_MS_WEIGHTS, jnp.float32)
    if normalize:
        mssim = (mssim + 1.0) / 2.0
        mcs = (mcs + 1.0) / 2.0
    pow1 = mcs ** weights
    pow2 = mssim ** weights
    return jnp.prod(pow1[:-1] * pow2[-1])


# ----------------------------------------------------------------------------
# Pure-JAX reference (lax depthwise conv) for a numerical self-check
# ----------------------------------------------------------------------------
def _ref_ssim(img1, img2, window_size):
    _, c, h, w = img1.shape
    max_val = jnp.where(jnp.max(img1) > 128.0, 255.0, 1.0)
    min_val = jnp.where(jnp.min(img1) < -0.5, -1.0, 0.0)
    dyn_range = max_val - min_val
    ws = min(window_size, h, w)
    g = _gauss_1d(ws)
    w2d = np.outer(g, g).astype(np.float32)
    window = jnp.asarray(np.tile(w2d[None, None], (c, 1, 1, 1)))

    def conv(x):
        return jax.lax.conv_general_dilated(
            x, window, (1, 1), "VALID",
            dimension_numbers=("NCHW", "OIHW", "NCHW"),
            feature_group_count=c, precision=jax.lax.Precision.HIGHEST)

    mu1, mu2 = conv(img1), conv(img2)
    s11 = conv(img1 * img1) - mu1 * mu1
    s22 = conv(img2 * img2) - mu2 * mu2
    s12 = conv(img1 * img2) - mu1 * mu2
    c1 = (0.01 * dyn_range) ** 2
    c2 = (0.03 * dyn_range) ** 2
    v1 = 2.0 * s12 + c2
    v2 = s11 + s22 + c2
    cs = jnp.mean(v1 / v2)
    ssim_map = (2.0 * mu1 * mu2 + c1) * v1 / ((mu1 * mu1 + mu2 * mu2 + c1) * v2)
    return jnp.mean(ssim_map), cs


def _ref_msssim(img1, img2, window_size=11, normalize=True):
    weights = jnp.asarray(_MS_WEIGHTS, jnp.float32)
    x1 = img1.astype(jnp.float32)
    x2 = img2.astype(jnp.float32)
    mssim, mcs = [], []
    for lvl in range(_LEVELS):
        sim, cs = _ref_ssim(x1, x2, window_size)
        mssim.append(sim)
        mcs.append(cs)
        if lvl < _LEVELS - 1:
            n, c, h, w = x1.shape
            x1 = x1.reshape(n, c, h // 2, 2, w // 2, 2).mean(axis=(3, 5))
            x2 = x2.reshape(n, c, h // 2, 2, w // 2, 2).mean(axis=(3, 5))
    mssim = jnp.stack(mssim)
    mcs = jnp.stack(mcs)
    if normalize:
        mssim = (mssim + 1.0) / 2.0
        mcs = (mcs + 1.0) / 2.0
    pow1 = mcs ** weights
    pow2 = mssim ** weights
    return jnp.prod(pow1[:-1] * pow2[-1])


if __name__ == "__main__":
    key = jax.random.PRNGKey(0)
    k1, k2 = jax.random.split(key)
    # batch=2, channels=3 (module default), spatial=32 so that all 5 scales of
    # 2x2 average pooling are well defined (32 -> 16 -> 8 -> 4 -> 2).
    shape = (2, 3, 32, 32)
    img1 = jax.random.uniform(k1, shape, jnp.float32)
    img2 = jax.random.uniform(k2, shape, jnp.float32)

    fwd = jax.jit(functools.partial(msssim_forward, window_size=11,
                                    size_average=True, normalize=True))
    out = jax.block_until_ready(fwd(img1, img2))
    ref = jax.block_until_ready(_ref_msssim(img1, img2))

    assert out.shape == (), out.shape
    assert bool(jnp.isfinite(out)), float(out)
    assert abs(float(out) - float(ref)) < 3e-3, (float(out), float(ref))
    print("KERNEL_OK")
</pallas_src>

<mosaic_0001>
module attributes {stable_mosaic.version = 11 : i64} {
  func.func @_msssim_kernel(%arg0: memref<192x32xf32, #tpu.memory_space<vmem>>, %arg1: memref<192x32xf32, #tpu.memory_space<vmem>>, %arg2: memref<132x192xf32, #tpu.memory_space<vmem>>, %arg3: memref<32x22xf32, #tpu.memory_space<vmem>>, %arg4: memref<96x192xf32, #tpu.memory_space<vmem>>, %arg5: memref<32x16xf32, #tpu.memory_space<vmem>>, %arg6: memref<36x96xf32, #tpu.memory_space<vmem>>, %arg7: memref<16x6xf32, #tpu.memory_space<vmem>>, %arg8: memref<48x96xf32, #tpu.memory_space<vmem>>, %arg9: memref<16x8xf32, #tpu.memory_space<vmem>>, %arg10: memref<6x48xf32, #tpu.memory_space<vmem>>, %arg11: memref<8x1xf32, #tpu.memory_space<vmem>>, %arg12: memref<24x48xf32, #tpu.memory_space<vmem>>, %arg13: memref<8x4xf32, #tpu.memory_space<vmem>>, %arg14: memref<6x24xf32, #tpu.memory_space<vmem>>, %arg15: memref<4x1xf32, #tpu.memory_space<vmem>>, %arg16: memref<12x24xf32, #tpu.memory_space<vmem>>, %arg17: memref<4x2xf32, #tpu.memory_space<vmem>>, %arg18: memref<6x12xf32, #tpu.memory_space<vmem>>, %arg19: memref<2x1xf32, #tpu.memory_space<vmem>>, %arg20: memref<16x128xf32, #tpu.memory_space<vmem>>) attributes {dimension_semantics = [], scalar_prefetch = 0 : i64, scratch_operands = 0 : i64, tpu.core_type = #tpu.core_type<tc>} {
    %c0 = arith.constant 0 : index
    %c0_0 = arith.constant 0 : index
    %0 = vector.load %arg0[%c0, %c0_0] : memref<192x32xf32, #tpu.memory_space<vmem>>, vector<192x32xf32>
    %c0_1 = arith.constant 0 : index
    %c0_2 = arith.constant 0 : index
    %1 = vector.load %arg1[%c0_1, %c0_2] : memref<192x32xf32, #tpu.memory_space<vmem>>, vector<192x32xf32>
    %c0_3 = arith.constant 0 : index
    %c0_4 = arith.constant 0 : index
    %2 = vector.load %arg2[%c0_3, %c0_4] : memref<132x192xf32, #tpu.memory_space<vmem>>, vector<132x192xf32>
    %c0_5 = arith.constant 0 : index
    %c0_6 = arith.constant 0 : index
    %3 = vector.load %arg3[%c0_5, %c0_6] : memref<32x22xf32, #tpu.memory_space<vmem>>, vector<32x22xf32>
    %4 = vector.shape_cast %0 : vector<192x32xf32> to vector<1x192x32xf32>
    %cst = arith.constant dense<0xFF800000> : vector<1xf32>
    %5 = vector.multi_reduction <maximumf>, %4, %cst [1, 2] : vector<1x192x32xf32> to vector<1xf32>
    %6 = vector.shape_cast %5 : vector<1xf32> to vector<1x1x1xf32>
    %7 = vector.extract %6[0, 0, 0] : f32 from vector<1x1x1xf32>
    %8 = vector.shape_cast %0 : vector<192x32xf32> to vector<1x192x32xf32>
    %cst_7 = arith.constant dense<0x7F800000> : vector<1xf32>
    %9 = vector.multi_reduction <minimumf>, %8, %cst_7 [1, 2] : vector<1x192x32xf32> to vector<1xf32>
    %10 = vector.shape_cast %9 : vector<1xf32> to vector<1x1x1xf32>
    %11 = vector.extract %10[0, 0, 0] : f32 from vector<1x1x1xf32>
    %cst_8 = arith.constant 1.280000e+02 : f32
    %12 = arith.cmpf ogt, %7, %cst_8 : f32
    %cst_9 = arith.constant 2.550000e+02 : f32
    %cst_10 = arith.constant 1.000000e+00 : f32
    %13 = arith.select %12, %cst_9, %cst_10 : f32
    %cst_11 = arith.constant -5.000000e-01 : f32
    %14 = arith.cmpf olt, %11, %cst_11 : f32
    %cst_12 = arith.constant -1.000000e+00 : f32
    %cst_13 = arith.constant 0.000000e+00 : f32
    %15 = arith.select %14, %cst_12, %cst_13 : f32
    %16 = arith.subf %13, %15 : f32
    %cst_14 = arith.constant 0.00999999977 : f32
    %17 = arith.mulf %cst_14, %16 : f32
    %18 = arith.mulf %17, %17 : f32
    %cst_15 = arith.constant 3.000000e-02 : f32
    %19 = arith.mulf %cst_15, %16 : f32
    %20 = arith.mulf %19, %19 : f32
    %cst_16 = arith.constant dense<0.000000e+00> : vector<192x22xf32>
    %21 = tpu.matmul %0, %3, %cst_16 {dimension_numbers = #tpu.dot_dimension_numbers<[1], [0], [0], [1], [0, 0, 1, 1], [], []>} : vector<192x32xf32>, vector<32x22xf32>, vector<192x22xf32> -> vector<192x22xf32>
    %cst_17 = arith.constant dense<0.000000e+00> : vector<132x22xf32>
    %22 = tpu.matmul %2, %21, %cst_17 {dimension_numbers = #tpu.dot_dimension_numbers<[1], [0], [0], [1], [0, 0, 1, 1], [], []>} : vector<132x192xf32>, vector<192x22xf32>, vector<132x22xf32> -> vector<132x22xf32>
    %cst_18 = arith.constant dense<0.000000e+00> : vector<192x22xf32>
    %23 = tpu.matmul %1, %3, %cst_18 {dimension_numbers = #tpu.dot_dimension_numbers<[1], [0], [0], [1], [0, 0, 1, 1], [], []>} : vector<192x32xf32>, vector<32x22xf32>, vector<192x22xf32> -> vector<192x22xf32>
    %cst_19 = arith.constant dense<0.000000e+00> : vector<132x22xf32>
    %24 = tpu.matmul %2, %23, %cst_19 {dimension_numbers = #tpu.dot_dimension_numbers<[1], [0], [0], [1], [0, 0, 1, 1], [], []>} : vector<132x192xf32>, vector<192x22xf32>, vector<132x22xf32> -> vector<132x22xf32>
    %25 = arith.mulf %0, %0 : vector<192x32xf32>
    %cst_20 = arith.constant dense<0.000000e+00> : vector<192x22xf32>
    %26 = tpu.matmul %25, %3, %cst_20 {dimension_numbers = #tpu.dot_dimension_numbers<[1], [0], [0], [1], [0, 0, 1, 1], [], []>} : vector<192x32xf32>, vector<32x22xf32>, vector<192x22xf32> -> vector<192x22xf32>
    %cst_21 = arith.constant dense<0.000000e+00> : vector<132x22xf32>
    %27 = tpu.matmul %2, %26, %cst_21 {dimension_numbers = #tpu.dot_dimension_numbers<[1], [0], [0], [1], [0, 0, 1, 1], [], []>} : vector<132x192xf32>, vector<192x22xf32>, vector<132x22xf32> -> vector<132x22xf32>
    %28 = arith.mulf %22, %22 : vector<132x22xf32>
    %29 = arith.subf %27, %28 : vector<132x22xf32>
    %30 = arith.mulf %1, %1 : vector<192x32xf32>
    %cst_22 = arith.constant dense<0.000000e+00> : vector<192x22xf32>
    %31 = tpu.matmul %30, %3, %cst_22 {dimension_numbers = #tpu.dot_dimension_numbers<[1], [0], [0], [1], [0, 0, 1, 1], [], []>} : vector<192x32xf32>, vector<32x22xf32>, vector<192x22xf32> -> vector<192x22xf32>
    %cst_23 = arith.constant dense<0.000000e+00> : vector<132x22xf32>
    %32 = tpu.matmul %2, %31, %cst_23 {dimension_numbers = #tpu.dot_dimension_numbers<[1], [0], [0], [1], [0, 0, 1, 1], [], []>} : vector<132x192xf32>, vector<192x22xf32>, vector<132x22xf32> -> vector<132x22xf32>
    %33 = arith.mulf %24, %24 : vector<132x22xf32>
    %34 = arith.subf %32, %33 : vector<132x22xf32>
    %35 = arith.mulf %0, %1 : vector<192x32xf32>
    %cst_24 = arith.constant dense<0.000000e+00> : vector<192x22xf32>
    %36 = tpu.matmul %35, %3, %cst_24 {dimension_numbers = #tpu.dot_dimension_numbers<[1], [0], [0], [1], [0, 0, 1, 1], [], []>} : vector<192x32xf32>, vector<32x22xf32>, vector<192x22xf32> -> vector<192x22xf32>
    %cst_25 = arith.constant dense<0.000000e+00> : vector<132x22xf32>
    %37 = tpu.matmul %2, %36, %cst_25 {dimension_numbers = #tpu.dot_dimension_numbers<[1], [0], [0], [1], [0, 0, 1, 1], [], []>} : vector<132x192xf32>, vector<192x22xf32>, vector<132x22xf32> -> vector<132x22xf32>
    %38 = arith.mulf %22, %24 : vector<132x22xf32>
    %39 = arith.subf %37, %38 : vector<132x22xf32>
    %cst_26 = arith.constant 2.000000e+00 : f32
    %40 = vector.broadcast %cst_26 : f32 to vector<132x22xf32>
    %41 = arith.mulf %40, %39 : vector<132x22xf32>
    %42 = vector.broadcast %20 : f32 to vector<132x22xf32>
    %43 = arith.addf %41, %42 : vector<132x22xf32>
    %44 = arith.addf %29, %34 : vector<132x22xf32>
    %45 = vector.broadcast %20 : f32 to vector<132x22xf32>
    %46 = arith.addf %44, %45 : vector<132x22xf32>
    %47 = arith.divf %43, %46 : vector<132x22xf32>
    %cst_27 = arith.constant 2.000000e+00 : f32
    %48 = vector.broadcast %cst_27 : f32 to vector<132x22xf32>
    %49 = arith.mulf %48, %22 : vector<132x22xf32>
    %50 = arith.mulf %49, %24 : vector<132x22xf32>
    %51 = vector.broadcast %18 : f32 to vector<132x22xf32>
    %52 = arith.addf %50, %51 : vector<132x22xf32>
    %53 = arith.mulf %47, %52 : vector<132x22xf32>
    %54 = arith.mulf %22, %22 : vector<132x22xf32>
    %55 = arith.mulf %24, %24 : vector<132x22xf32>
    %56 = arith.addf %54, %55 : vector<132x22xf32>
    %57 = vector.broadcast %18 : f32 to vector<132x22xf32>
    %58 = arith.addf %56, %57 : vector<132x22xf32>
    %59 = arith.divf %53, %58 : vector<132x22xf32>
    %60 = vector.shape_cast %59 : vector<132x22xf32> to vector<1x132x22xf32>
    %cst_28 = arith.constant dense<0.000000e+00> : vector<1xf32>
    %61 = vector.multi_reduction <add>, %60, %cst_28 [1, 2] : vector<1x132x22xf32> to vector<1xf32>
    %62 = vector.shape_cast %61 : vector<1xf32> to vector<1x1x1xf32>
    %63 = vector.extract %62[0, 0, 0] : f32 from vector<1x1x1xf32>
    %cst_29 = arith.constant 3.44352622E-4 : f32
    %64 = arith.mulf %63, %cst_29 : f32
    %65 = vector.shape_cast %47 : vector<132x22xf32> to vector<1x132x22xf32>
    %cst_30 = arith.constant dense<0.000000e+00> : vector<1xf32>
    %66 = vector.multi_reduction <add>, %65, %cst_30 [1, 2] : vector<1x132x22xf32> to vector<1xf32>
    %67 = vector.shape_cast %66 : vector<1xf32> to vector<1x1x1xf32>
    %68 = vector.extract %67[0, 0, 0] : f32 from vector<1x1x1xf32>
    %cst_31 = arith.constant 3.44352622E-4 : f32
    %69 = arith.mulf %68, %cst_31 : f32
    %c0_32 = arith.constant 0 : index
    %c0_33 = arith.constant 0 : index
    %70 = vector.load %arg4[%c0_32, %c0_33] : memref<96x192xf32, #tpu.memory_space<vmem>>, vector<96x192xf32>
    %c0_34 = arith.constant 0 : index
    %c0_35 = arith.constant 0 : index
    %71 = vector.load %arg5[%c0_34, %c0_35] : memref<32x16xf32, #tpu.memory_space<vmem>>, vector<32x16xf32>
    %cst_36 = arith.constant dense<0.000000e+00> : vector<192x16xf32>
    %72 = tpu.matmul %0, %71, %cst_36 {dimension_numbers = #tpu.dot_dimension_numbers<[1], [0], [0], [1], [0, 0, 1, 1], [], []>} : vector<192x32xf32>, vector<32x16xf32>, vector<192x16xf32> -> vector<192x16xf32>
    %cst_37 = arith.constant dense<0.000000e+00> : vector<96x16xf32>
    %73 = tpu.matmul %70, %72, %cst_37 {dimension_numbers = #tpu.dot_dimension_numbers<[1], [0], [0], [1], [0, 0, 1, 1], [], []>} : vector<96x192xf32>, vector<192x16xf32>, vector<96x16xf32> -> vector<96x16xf32>
    %cst_38 = arith.constant dense<0.000000e+00> : vector<192x16xf32>
    %74 = tpu.matmul %1, %71, %cst_38 {dimension_numbers = #tpu.dot_dimension_numbers<[1], [0], [0], [1], [0, 0, 1, 1], [], []>} : vector<192x32xf32>, vector<32x16xf32>, vector<192x16xf32> -> vector<192x16xf32>
    %cst_39 = arith.constant dense<0.000000e+00> : vector<96x16xf32>
    %75 = tpu.matmul %70, %74, %cst_39 {dimension_numbers = #tpu.dot_dimension_numbers<[1], [0], [0], [1], [0, 0, 1, 1], [], []>} : vector<96x192xf32>, vector<192x16xf32>, vector<96x16xf32> -> vector<96x16xf32>
    %c0_40 = arith.constant 0 : index
    %c0_41 = arith.constant 0 : index
    %76 = vector.load %arg6[%c0_40, %c0_41] : memref<36x96xf32, #tpu.memory_space<vmem>>, vector<36x96xf32>
    %c0_42 = arith.constant 0 : index
    %c0_43 = arith.constant 0 : index
    %77 = vector.load %arg7[%c0_42, %c0_43] : memref<16x6xf32, #tpu.memory_space<vmem>>, vector<16x6xf32>
    %78 = vector.shape_cast %73 : vector<96x16xf32> to vector<1x96x16xf32>
    %cst_44 = arith.constant dense<0xFF800000> : vector<1xf32>
    %79 = vector.multi_reduction <maximumf>, %78, %cst_44 [1, 2] : vector<1x96x16xf32> to vector<1xf32>
    %80 = vector.shape_cast %79 : vector<1xf32> to vector<1x1x1xf32>
    %81 = vector.extract %80[0, 0, 0] : f32 from vector<1x1x1xf32>
    %82 = vector.shape_cast %73 : vector<96x16xf32> to vector<1x96x16xf32>
    %cst_45 = arith.constant dense<0x7F800000> : vector<1xf32>
    %83 = vector.multi_reduction <minimumf>, %82, %cst_45 [1, 2] : vector<1x96x16xf32> to vector<1xf32>
    %84 = vector.shape_cast %83 : vector<1xf32> to vector<1x1x1xf32>
    %85 = vector.extract %84[0, 0, 0] : f32 from vector<1x1x1xf32>
    %cst_46 = arith.constant 1.280000e+02 : f32
    %86 = arith.cmpf ogt, %81, %cst_46 : f32
    %cst_47 = arith.constant 2.550000e+02 : f32
    %cst_48 = arith.constant 1.000000e+00 : f32
    %87 = arith.select %86, %cst_47, %cst_48 : f32
    %cst_49 = arith.constant -5.000000e-01 : f32
    %88 = arith.cmpf olt, %85, %cst_49 : f32
    %cst_50 = arith.constant -1.000000e+00 : f32
    %cst_51 = arith.constant 0.000000e+00 : f32
    %89 = arith.select %88, %cst_50, %cst_51 : f32
    %90 = arith.subf %87, %89 : f32
    %cst_52 = arith.constant 0.00999999977 : f32
    %91 = arith.mulf %cst_52, %90 : f32
    %92 = arith.mulf %91, %91 : f32
    %cst_53 = arith.constant 3.000000e-02 : f32
    %93 = arith.mulf %cst_53, %90 : f32
    %94 = arith.mulf %93, %93 : f32
    %cst_54 = arith.constant dense<0.000000e+00> : vector<96x6xf32>
    %95 = tpu.matmul %73, %77, %cst_54 {dimension_numbers = #tpu.dot_dimension_numbers<[1], [0], [0], [1], [0, 0, 1, 1], [], []>} : vector<96x16xf32>, vector<16x6xf32>, vector<96x6xf32> -> vector<96x6xf32>
    %cst_55 = arith.constant dense<0.000000e+00> : vector<36x6xf32>
    %96 = tpu.matmul %76, %95, %cst_55 {dimension_numbers = #tpu.dot_dimension_numbers<[1], [0], [0], [1], [0, 0, 1, 1], [], []>} : vector<36x96xf32>, vector<96x6xf32>, vector<36x6xf32> -> vector<36x6xf32>
    %cst_56 = arith.constant dense<0.000000e+00> : vector<96x6xf32>
    %97 = tpu.matmul %75, %77, %cst_56 {dimension_numbers = #tpu.dot_dimension_numbers<[1], [0], [0], [1], [0, 0, 1, 1], [], []>} : vector<96x16xf32>, vector<16x6xf32>, vector<96x6xf32> -> vector<96x6xf32>
    %cst_57 = arith.constant dense<0.000000e+00> : vector<36x6xf32>
    %98 = tpu.matmul %76, %97, %cst_57 {dimension_numbers = #tpu.dot_dimension_numbers<[1], [0], [0], [1], [0, 0, 1, 1], [], []>} : vector<36x96xf32>, vector<96x6xf32>, vector<36x6xf32> -> vector<36x6xf32>
    %99 = arith.mulf %73, %73 : vector<96x16xf32>
    %cst_58 = arith.constant dense<0.000000e+00> : vector<96x6xf32>
    %100 = tpu.matmul %99, %77, %cst_58 {dimension_numbers = #tpu.dot_dimension_numbers<[1], [0], [0], [1], [0, 0, 1, 1], [], []>} : vector<96x16xf32>, vector<16x6xf32>, vector<96x6xf32> -> vector<96x6xf32>
    %cst_59 = arith.constant dense<0.000000e+00> : vector<36x6xf32>
    %101 = tpu.matmul %76, %100, %cst_59 {dimension_numbers = #tpu.dot_dimension_numbers<[1], [0], [0], [1], [0, 0, 1, 1], [], []>} : vector<36x96xf32>, vector<96x6xf32>, vector<36x6xf32> -> vector<36x6xf32>
    %102 = arith.mulf %96, %96 : vector<36x6xf32>
    %103 = arith.subf %101, %102 : vector<36x6xf32>
    %104 = arith.mulf %75, %75 : vector<96x16xf32>
    %cst_60 = arith.constant dense<0.000000e+00> : vector<96x6xf32>
    %105 = tpu.matmul %104, %77, %cst_60 {dimension_numbers = #tpu.dot_dimension_numbers<[1], [0], [0], [1], [0, 0, 1, 1], [], []>} : vector<96x16xf32>, vector<16x6xf32>, vector<96x6xf32> -> vector<96x6xf32>
    %cst_61 = arith.constant dense<0.000000e+00> : vector<36x6xf32>
    %106 = tpu.matmul %76, %105, %cst_61 {dimension_numbers = #tpu.dot_dimension_numbers<[1], [0], [0], [1], [0, 0, 1, 1], [], []>} : vector<36x96xf32>, vector<96x6xf32>, vector<36x6xf32> -> vector<36x6xf32>
    %107 = arith.mulf %98, %98 : vector<36x6xf32>
    %108 = arith.subf %106, %107 : vector<36x6xf32>
    %109 = arith.mulf %73, %75 : vector<96x16xf32>
    %cst_62 = arith.constant dense<0.000000e+00> : vector<96x6xf32>
    %110 = tpu.matmul %109, %77, %cst_62 {dimension_numbers = #tpu.dot_dimension_numbers<[1], [0], [0], [1], [0, 0, 1, 1], [], []>} : vector<96x16xf32>, vector<16x6xf32>, vector<96x6xf32> -> vector<96x6xf32>
    %cst_63 = arith.constant dense<0.000000e+00> : vector<36x6xf32>
    %111 = tpu.matmul %76, %110, %cst_63 {dimension_numbers = #tpu.dot_dimension_numbers<[1], [0], [0], [1], [0, 0, 1, 1], [], []>} : vector<36x96xf32>, vector<96x6xf32>, vector<36x6xf32> -> vector<36x6xf32>
    %112 = arith.mulf %96, %98 : vector<36x6xf32>
    %113 = arith.subf %111, %112 : vector<36x6xf32>
    %cst_64 = arith.constant 2.000000e+00 : f32
    %114 = vector.broadcast %cst_64 : f32 to vector<36x6xf32>
    %115 = arith.mulf %114, %113 : vector<36x6xf32>
    %116 = vector.broadcast %94 : f32 to vector<36x6xf32>
    %117 = arith.addf %115, %116 : vector<36x6xf32>
    %118 = arith.addf %103, %108 : vector<36x6xf32>
    %119 = vector.broadcast %94 : f32 to vector<36x6xf32>
    %120 = arith.addf %118, %119 : vector<36x6xf32>
    %121 = arith.divf %117, %120 : vector<36x6xf32>
    %cst_65 = arith.constant 2.000000e+00 : f32
    %122 = vector.broadcast %cst_65 : f32 to vector<36x6xf32>
    %123 = arith.mulf %122, %96 : vector<36x6xf32>
    %124 = arith.mulf %123, %98 : vector<36x6xf32>
    %125 = vector.broadcast %92 : f32 to vector<36x6xf32>
    %126 = arith.addf %124, %125 : vector<36x6xf32>
    %127 = arith.mulf %121, %126 : vector<36x6xf32>
    %128 = arith.mulf %96, %96 : vector<36x6xf32>
    %129 = arith.mulf %98, %98 : vector<36x6xf32>
    %130 = arith.addf %128, %129 : vector<36x6xf32>
    %131 = vector.broadcast %92 : f32 to vector<36x6xf32>
    %132 = arith.addf %130, %131 : vector<36x6xf32>
    %133 = arith.divf %127, %132 : vector<36x6xf32>
    %134 = vector.shape_cast %133 : vector<36x6xf32> to vector<1x36x6xf32>
    %cst_66 = arith.constant dense<0.000000e+00> : vector<1xf32>
    %135 = vector.multi_reduction <add>, %134, %cst_66 [1, 2] : vector<1x36x6xf32> to vector<1xf32>
    %136 = vector.shape_cast %135 : vector<1xf32> to vector<1x1x1xf32>
    %137 = vector.extract %136[0, 0, 0] : f32 from vector<1x1x1xf32>
    %cst_67 = arith.constant 0.00462962966 : f32
    %138 = arith.mulf %137, %cst_67 : f32
    %139 = vector.shape_cast %121 : vector<36x6xf32> to vector<1x36x6xf32>
    %cst_68 = arith.constant dense<0.000000e+00> : vector<1xf32>
    %140 = vector.multi_reduction <add>, %139, %cst_68 [1, 2] : vector<1x36x6xf32> to vector<1xf32>
    %141 = vector.shape_cast %140 : vector<1xf32> to vector<1x1x1xf32>
    %142 = vector.extract %141[0, 0, 0] : f32 from vector<1x1x1xf32>
    %cst_69 = arith.constant 0.00462962966 : f32
    %143 = arith.mulf %142, %cst_69 : f32
    %c0_70 = arith.constant 0 : index
    %c0_71 = arith.constant 0 : index
    %144 = vector.load %arg8[%c0_70, %c0_71] : memref<48x96xf32, #tpu.memory_space<vmem>>, vector<48x96xf32>
    %c0_72 = arith.constant 0 : index
    %c0_73 = arith.constant 0 : index
    %145 = vector.load %arg9[%c0_72, %c0_73] : memref<16x8xf32, #tpu.memory_space<vmem>>, vector<16x8xf32>
    %cst_74 = arith.constant dense<0.000000e+00> : vector<96x8xf32>
    %146 = tpu.matmul %73, %145, %cst_74 {dimension_numbers = #tpu.dot_dimension_numbers<[1], [0], [0], [1], [0, 0, 1, 1], [], []>} : vector<96x16xf32>, vector<16x8xf32>, vector<96x8xf32> -> vector<96x8xf32>
    %cst_75 = arith.constant dense<0.000000e+00> : vector<48x8xf32>
    %147 = tpu.matmul %144, %146, %cst_75 {dimension_numbers = #tpu.dot_dimension_numbers<[1], [0], [0], [1], [0, 0, 1, 1], [], []>} : vector<48x96xf32>, vector<96x8xf32>, vector<48x8xf32> -> vector<48x8xf32>
    %cst_76 = arith.constant dense<0.000000e+00> : vector<96x8xf32>
    %148 = tpu.matmul %75, %145, %cst_76 {dimension_numbers = #tpu.dot_dimension_numbers<[1], [0], [0], [1], [0, 0, 1, 1], [], []>} : vector<96x16xf32>, vector<16x8xf32>, vector<96x8xf32> -> vector<96x8xf32>
    %cst_77 = arith.constant dense<0.000000e+00> : vector<48x8xf32>
    %149 = tpu.matmul %144, %148, %cst_77 {dimension_numbers = #tpu.dot_dimension_numbers<[1], [0], [0], [1], [0, 0, 1, 1], [], []>} : vector<48x96xf32>, vector<96x8xf32>, vector<48x8xf32> -> vector<48x8xf32>
    %c0_78 = arith.constant 0 : index
    %c0_79 = arith.constant 0 : index
    %150 = vector.load %arg10[%c0_78, %c0_79] : memref<6x48xf32, #tpu.memory_space<vmem>>, vector<6x48xf32>
    %c0_80 = arith.constant 0 : index
    %c0_81 = arith.constant 0 : index
    %151 = vector.load %arg11[%c0_80, %c0_81] : memref<8x1xf32, #tpu.memory_space<vmem>>, vector<8x1xf32>
    %152 = vector.shape_cast %147 : vector<48x8xf32> to vector<1x48x8xf32>
    %cst_82 = arith.constant dense<0xFF800000> : vector<1xf32>
    %153 = vector.multi_reduction <maximumf>, %152, %cst_82 [1, 2] : vector<1x48x8xf32> to vector<1xf32>
    %154 = vector.shape_cast %153 : vector<1xf32> to vector<1x1x1xf32>
    %155 = vector.extract %154[0, 0, 0] : f32 from vector<1x1x1xf32>
    %156 = vector.shape_cast %147 : vector<48x8xf32> to vector<1x48x8xf32>
    %cst_83 = arith.constant dense<0x7F800000> : vector<1xf32>
    %157 = vector.multi_reduction <minimumf>, %156, %cst_83 [1, 2] : vector<1x48x8xf32> to vector<1xf32>
    %158 = vector.shape_cast %157 : vector<1xf32> to vector<1x1x1xf32>
    %159 = vector.extract %158[0, 0, 0] : f32 from vector<1x1x1xf32>
    %cst_84 = arith.constant 1.280000e+02 : f32
    %160 = arith.cmpf ogt, %155, %cst_84 : f32
    %cst_85 = arith.constant 2.550000e+02 : f32
    %cst_86 = arith.constant 1.000000e+00 : f32
    %161 = arith.select %160, %cst_85, %cst_86 : f32
    %cst_87 = arith.constant -5.000000e-01 : f32
    %162 = arith.cmpf olt, %159, %cst_87 : f32
    %cst_88 = arith.constant -1.000000e+00 : f32
    %cst_89 = arith.constant 0.000000e+00 : f32
    %163 = arith.select %162, %cst_88, %cst_89 : f32
    %164 = arith.subf %161, %163 : f32
    %cst_90 = arith.constant 0.00999999977 : f32
    %165 = arith.mulf %cst_90, %164 : f32
    %166 = arith.mulf %165, %165 : f32
    %cst_91 = arith.constant 3.000000e-02 : f32
    %167 = arith.mulf %cst_91, %164 : f32
    %168 = arith.mulf %167, %167 : f32
    %cst_92 = arith.constant dense<0.000000e+00> : vector<48x1xf32>
    %169 = tpu.matmul %147, %151, %cst_92 {dimension_numbers = #tpu.dot_dimension_numbers<[1], [0], [0], [1], [0, 0, 1, 1], [], []>} : vector<48x8xf32>, vector<8x1xf32>, vector<48x1xf32> -> vector<48x1xf32>
    %cst_93 = arith.constant dense<0.000000e+00> : vector<6x1xf32>
    %170 = tpu.matmul %150, %169, %cst_93 {dimension_numbers = #tpu.dot_dimension_numbers<[1], [0], [0], [1], [0, 0, 1, 1], [], []>} : vector<6x48xf32>, vector<48x1xf32>, vector<6x1xf32> -> vector<6x1xf32>
    %cst_94 = arith.constant dense<0.000000e+00> : vector<48x1xf32>
    %171 = tpu.matmul %149, %151, %cst_94 {dimension_numbers = #tpu.dot_dimension_numbers<[1], [0], [0], [1], [0, 0, 1, 1], [], []>} : vector<48x8xf32>, vector<8x1xf32>, vector<48x1xf32> -> vector<48x1xf32>
    %cst_95 = arith.constant dense<0.000000e+00> : vector<6x1xf32>
    %172 = tpu.matmul %150, %171, %cst_95 {dimension_numbers = #tpu.dot_dimension_numbers<[1], [0], [0], [1], [0, 0, 1, 1], [], []>} : vector<6x48xf32>, vector<48x1xf32>, vector<6x1xf32> -> vector<6x1xf32>
    %173 = arith.mulf %147, %147 : vector<48x8xf32>
    %cst_96 = arith.constant dense<0.000000e+00> : vector<48x1xf32>
    %174 = tpu.matmul %173, %151, %cst_96 {dimension_numbers = #tpu.dot_dimension_numbers<[1], [0], [0], [1], [0, 0, 1, 1], [], []>} : vector<48x8xf32>, vector<8x1xf32>, vector<48x1xf32> -> vector<48x1xf32>
    %cst_97 = arith.constant dense<0.000000e+00> : vector<6x1xf32>
    %175 = tpu.matmul %150, %174, %cst_97 {dimension_numbers = #tpu.dot_dimension_numbers<[1], [0], [0], [1], [0, 0, 1, 1], [], []>} : vector<6x48xf32>, vector<48x1xf32>, vector<6x1xf32> -> vector<6x1xf32>
    %176 = arith.mulf %170, %170 : vector<6x1xf32>
    %177 = arith.subf %175, %176 : vector<6x1xf32>
    %178 = arith.mulf %149, %149 : vector<48x8xf32>
    %cst_98 = arith.constant dense<0.000000e+00> : vector<48x1xf32>
    %179 = tpu.matmul %178, %151, %cst_98 {dimension_numbers = #tpu.dot_dimension_numbers<[1], [0], [0], [1], [0, 0, 1, 1], [], []>} : vector<48x8xf32>, vector<8x1xf32>, vector<48x1xf32> -> vector<48x1xf32>
    %cst_99 = arith.constant dense<0.000000e+00> : vector<6x1xf32>
    %180 = tpu.matmul %150, %179, %cst_99 {dimension_numbers = #tpu.dot_dimension_numbers<[1], [0], [0], [1], [0, 0, 1, 1], [], []>} : vector<6x48xf32>, vector<48x1xf32>, vector<6x1xf32> -> vector<6x1xf32>
    %181 = arith.mulf %172, %172 : vector<6x1xf32>
    %182 = arith.subf %180, %181 : vector<6x1xf32>
    %183 = arith.mulf %147, %149 : vector<48x8xf32>
    %cst_100 = arith.constant dense<0.000000e+00> : vector<48x1xf32>
    %184 = tpu.matmul %183, %151, %cst_100 {dimension_numbers = #tpu.dot_dimension_numbers<[1], [0], [0], [1], [0, 0, 1, 1], [], []>} : vector<48x8xf32>, vector<8x1xf32>, vector<48x1xf32> -> vector<48x1xf32>
    %cst_101 = arith.constant dense<0.000000e+00> : vector<6x1xf32>
    %185 = tpu.matmul %150, %184, %cst_101 {dimension_numbers = #tpu.dot_dimension_numbers<[1], [0], [0], [1], [0, 0, 1, 1], [], []>} : vector<6x48xf32>, vector<48x1xf32>, vector<6x1xf32> -> vector<6x1xf32>
    %186 = arith.mulf %170, %172 : vector<6x1xf32>
    %187 = arith.subf %185, %186 : vector<6x1xf32>
    %cst_102 = arith.constant 2.000000e+00 : f32
    %188 = vector.broadcast %cst_102 : f32 to vector<6x1xf32>
    %189 = arith.mulf %188, %187 : vector<6x1xf32>
    %190 = vector.broadcast %168 : f32 to vector<6x1xf32>
    %191 = arith.addf %189, %190 : vector<6x1xf32>
    %192 = arith.addf %177, %182 : vector<6x1xf32>
    %193 = vector.broadcast %168 : f32 to vector<6x1xf32>
    %194 = arith.addf %192, %193 : vector<6x1xf32>
    %195 = arith.divf %191, %194 : vector<6x1xf32>
    %cst_103 = arith.constant 2.000000e+00 : f32
    %196 = vector.broadcast %cst_103 : f32 to vector<6x1xf32>
    %197 = arith.mulf %196, %170 : vector<6x1xf32>
    %198 = arith.mulf %197, %172 : vector<6x1xf32>
    %199 = vector.broadcast %166 : f32 to vector<6x1xf32>
    %200 = arith.addf %198, %199 : vector<6x1xf32>
    %201 = arith.mulf %195, %200 : vector<6x1xf32>
    %202 = arith.mulf %170, %170 : vector<6x1xf32>
    %203 = arith.mulf %172, %172 : vector<6x1xf32>
    %204 = arith.addf %202, %203 : vector<6x1xf32>
    %205 = vector.broadcast %166 : f32 to vector<6x1xf32>
    %206 = arith.addf %204, %205 : vector<6x1xf32>
    %207 = arith.divf %201, %206 : vector<6x1xf32>
    %208 = vector.shape_cast %207 : vector<6x1xf32> to vector<1x6x1xf32>
    %cst_104 = arith.constant dense<0.000000e+00> : vector<1xf32>
    %209 = vector.multi_reduction <add>, %208, %cst_104 [1, 2] : vector<1x6x1xf32> to vector<1xf32>
    %210 = vector.shape_cast %209 : vector<1xf32> to vector<1x1x1xf32>
    %211 = vector.extract %210[0, 0, 0] : f32 from vector<1x1x1xf32>
    %cst_105 = arith.constant 0.166666672 : f32
    %212 = arith.mulf %211, %cst_105 : f32
    %213 = vector.shape_cast %195 : vector<6x1xf32> to vector<1x6x1xf32>
    %cst_106 = arith.constant dense<0.000000e+00> : vector<1xf32>
    %214 = vector.multi_reduction <add>, %213, %cst_106 [1, 2] : vector<1x6x1xf32> to vector<1xf32>
    %215 = vector.shape_cast %214 : vector<1xf32> to vector<1x1x1xf32>
    %216 = vector.extract %215[0, 0, 0] : f32 from vector<1x1x1xf32>
    %cst_107 = arith.constant 0.166666672 : f32
    %217 = arith.mulf %216, %cst_107 : f32
    %c0_108 = arith.constant 0 : index
    %c0_109 = arith.constant 0 : index
    %218 = vector.load %arg12[%c0_108, %c0_109] : memref<24x48xf32, #tpu.memory_space<vmem>>, vector<24x48xf32>
    %c0_110 = arith.constant 0 : index
    %c0_111 = arith.constant 0 : index
    %219 = vector.load %arg13[%c0_110, %c0_111] : memref<8x4xf32, #tpu.memory_space<vmem>>, vector<8x4xf32>
    %cst_112 = arith.constant dense<0.000000e+00> : vector<48x4xf32>
    %220 = tpu.matmul %147, %219, %cst_112 {dimension_numbers = #tpu.dot_dimension_numbers<[1], [0], [0], [1], [0, 0, 1, 1], [], []>} : vector<48x8xf32>, vector<8x4xf32>, vector<48x4xf32> -> vector<48x4xf32>
    %cst_113 = arith.constant dense<0.000000e+00> : vector<24x4xf32>
    %221 = tpu.matmul %218, %220, %cst_113 {dimension_numbers = #tpu.dot_dimension_numbers<[1], [0], [0], [1], [0, 0, 1, 1], [], []>} : vector<24x48xf32>, vector<48x4xf32>, vector<24x4xf32> -> vector<24x4xf32>
    %cst_114 = arith.constant dense<0.000000e+00> : vector<48x4xf32>
    %222 = tpu.matmul %149, %219, %cst_114 {dimension_numbers = #tpu.dot_dimension_numbers<[1], [0], [0], [1], [0, 0, 1, 1], [], []>} : vector<48x8xf32>, vector<8x4xf32>, vector<48x4xf32> -> vector<48x4xf32>
    %cst_115 = arith.constant dense<0.000000e+00> : vector<24x4xf32>
    %223 = tpu.matmul %218, %222, %cst_115 {dimension_numbers = #tpu.dot_dimension_numbers<[1], [0], [0], [1], [0, 0, 1, 1], [], []>} : vector<24x48xf32>, vector<48x4xf32>, vector<24x4xf32> -> vector<24x4xf32>
    %c0_116 = arith.constant 0 : index
    %c0_117 = arith.constant 0 : index
    %224 = vector.load %arg14[%c0_116, %c0_117] : memref<6x24xf32, #tpu.memory_space<vmem>>, vector<6x24xf32>
    %c0_118 = arith.constant 0 : index
    %c0_119 = arith.constant 0 : index
    %225 = vector.load %arg15[%c0_118, %c0_119] : memref<4x1xf32, #tpu.memory_space<vmem>>, vector<4x1xf32>
    %226 = vector.shape_cast %221 : vector<24x4xf32> to vector<1x24x4xf32>
    %cst_120 = arith.constant dense<0xFF800000> : vector<1xf32>
    %227 = vector.multi_reduction <maximumf>, %226, %cst_120 [1, 2] : vector<1x24x4xf32> to vector<1xf32>
    %228 = vector.shape_cast %227 : vector<1xf32> to vector<1x1x1xf32>
    %229 = vector.extract %228[0, 0, 0] : f32 from vector<1x1x1xf32>
    %230 = vector.shape_cast %221 : vector<24x4xf32> to vector<1x24x4xf32>
    %cst_121 = arith.constant dense<0x7F800000> : vector<1xf32>
    %231 = vector.multi_reduction <minimumf>, %230, %cst_121 [1, 2] : vector<1x24x4xf32> to vector<1xf32>
    %232 = vector.shape_cast %231 : vector<1xf32> to vector<1x1x1xf32>
    %233 = vector.extract %232[0, 0, 0] : f32 from vector<1x1x1xf32>
    %cst_122 = arith.constant 1.280000e+02 : f32
    %234 = arith.cmpf ogt, %229, %cst_122 : f32
    %cst_123 = arith.constant 2.550000e+02 : f32
    %cst_124 = arith.constant 1.000000e+00 : f32
    %235 = arith.select %234, %cst_123, %cst_124 : f32
    %cst_125 = arith.constant -5.000000e-01 : f32
    %236 = arith.cmpf olt, %233, %cst_125 : f32
    %cst_126 = arith.constant -1.000000e+00 : f32
    %cst_127 = arith.constant 0.000000e+00 : f32
    %237 = arith.select %236, %cst_126, %cst_127 : f32
    %238 = arith.subf %235, %237 : f32
    %cst_128 = arith.constant 0.00999999977 : f32
    %239 = arith.mulf %cst_128, %238 : f32
    %240 = arith.mulf %239, %239 : f32
    %cst_129 = arith.constant 3.000000e-02 : f32
    %241 = arith.mulf %cst_129, %238 : f32
    %242 = arith.mulf %241, %241 : f32
    %cst_130 = arith.constant dense<0.000000e+00> : vector<24x1xf32>
    %243 = tpu.matmul %221, %225, %cst_130 {dimension_numbers = #tpu.dot_dimension_numbers<[1], [0], [0], [1], [0, 0, 1, 1], [], []>} : vector<24x4xf32>, vector<4x1xf32>, vector<24x1xf32> -> vector<24x1xf32>
    %cst_131 = arith.constant dense<0.000000e+00> : vector<6x1xf32>
    %244 = tpu.matmul %224, %243, %cst_131 {dimension_numbers = #tpu.dot_dimension_numbers<[1], [0], [0], [1], [0, 0, 1, 1], [], []>} : vector<6x24xf32>, vector<24x1xf32>, vector<6x1xf32> -> vector<6x1xf32>
    %cst_132 = arith.constant dense<0.000000e+00> : vector<24x1xf32>
    %245 = tpu.matmul %223, %225, %cst_132 {dimension_numbers = #tpu.dot_dimension_numbers<[1], [0], [0], [1], [0, 0, 1, 1], [], []>} : vector<24x4xf32>, vector<4x1xf32>, vector<24x1xf32> -> vector<24x1xf32>
    %cst_133 = arith.constant dense<0.000000e+00> : vector<6x1xf32>
    %246 = tpu.matmul %224, %245, %cst_133 {dimension_numbers = #tpu.dot_dimension_numbers<[1], [0], [0], [1], [0, 0, 1, 1], [], []>} : vector<6x24xf32>, vector<24x1xf32>, vector<6x1xf32> -> vector<6x1xf32>
    %247 = arith.mulf %221, %221 : vector<24x4xf32>
    %cst_134 = arith.constant dense<0.000000e+00> : vector<24x1xf32>
    %248 = tpu.matmul %247, %225, %cst_134 {dimension_numbers = #tpu.dot_dimension_numbers<[1], [0], [0], [1], [0, 0, 1, 1], [], []>} : vector<24x4xf32>, vector<4x1xf32>, vector<24x1xf32> -> vector<24x1xf32>
    %cst_135 = arith.constant dense<0.000000e+00> : vector<6x1xf32>
    %249 = tpu.matmul %224, %248, %cst_135 {dimension_numbers = #tpu.dot_dimension_numbers<[1], [0], [0], [1], [0, 0, 1, 1], [], []>} : vector<6x24xf32>, vector<24x1xf32>, vector<6x1xf32> -> vector<6x1xf32>
    %250 = arith.mulf %244, %244 : vector<6x1xf32>
    %251 = arith.subf %249, %250 : vector<6x1xf32>
    %252 = arith.mulf %223, %223 : vector<24x4xf32>
    %cst_136 = arith.constant dense<0.000000e+00> : vector<24x1xf32>
    %253 = tpu.matmul %252, %225, %cst_136 {dimension_numbers = #tpu.dot_dimension_numbers<[1], [0], [0], [1], [0, 0, 1, 1], [], []>} : vector<24x4xf32>, vector<4x1xf32>, vector<24x1xf32> -> vector<24x1xf32>
    %cst_137 = arith.constant dense<0.000000e+00> : vector<6x1xf32>
    %254 = tpu.matmul %224, %253, %cst_137 {dimension_numbers = #tpu.dot_dimension_numbers<[1], [0], [0], [1], [0, 0, 1, 1], [], []>} : vector<6x24xf32>, vector<24x1xf32>, vector<6x1xf32> -> vector<6x1xf32>
    %255 = arith.mulf %246, %246 : vector<6x1xf32>
    %256 = arith.subf %254, %255 : vector<6x1xf32>
    %257 = arith.mulf %221, %223 : vector<24x4xf32>
    %cst_138 = arith.constant dense<0.000000e+00> : vector<24x1xf32>
    %258 = tpu.matmul %257, %225, %cst_138 {dimension_numbers = #tpu.dot_dimension_numbers<[1], [0], [0], [1], [0, 0, 1, 1], [], []>} : vector<24x4xf32>, vector<4x1xf32>, vector<24x1xf32> -> vector<24x1xf32>
    %cst_139 = arith.constant dense<0.000000e+00> : vector<6x1xf32>
    %259 = tpu.matmul %224, %258, %cst_139 {dimension_numbers = #tpu.dot_dimension_numbers<[1], [0], [0], [1], [0, 0, 1, 1], [], []>} : vector<6x24xf32>, vector<24x1xf32>, vector<6x1xf32> -> vector<6x1xf32>
    %260 = arith.mulf %244, %246 : vector<6x1xf32>
    %261 = arith.subf %259, %260 : vector<6x1xf32>
    %cst_140 = arith.constant 2.000000e+00 : f32
    %262 = vector.broadcast %cst_140 : f32 to vector<6x1xf32>
    %263 = arith.mulf %262, %261 : vector<6x1xf32>
    %264 = vector.broadcast %242 : f32 to vector<6x1xf32>
    %265 = arith.addf %263, %264 : vector<6x1xf32>
    %266 = arith.addf %251, %256 : vector<6x1xf32>
    %267 = vector.broadcast %242 : f32 to vector<6x1xf32>
    %268 = arith.addf %266, %267 : vector<6x1xf32>
    %269 = arith.divf %265, %268 : vector<6x1xf32>
    %cst_141 = arith.constant 2.000000e+00 : f32
    %270 = vector.broadcast %cst_141 : f32 to vector<6x1xf32>
    %271 = arith.mulf %270, %244 : vector<6x1xf32>
    %272 = arith.mulf %271, %246 : vector<6x1xf32>
    %273 = vector.broadcast %240 : f32 to vector<6x1xf32>
    %274 = arith.addf %272, %273 : vector<6x1xf32>
    %275 = arith.mulf %269, %274 : vector<6x1xf32>
    %276 = arith.mulf %244, %244 : vector<6x1xf32>
    %277 = arith.mulf %246, %246 : vector<6x1xf32>
    %278 = arith.addf %276, %277 : vector<6x1xf32>
    %279 = vector.broadcast %240 : f32 to vector<6x1xf32>
    %280 = arith.addf %278, %279 : vector<6x1xf32>
    %281 = arith.divf %275, %280 : vector<6x1xf32>
    %282 = vector.shape_cast %281 : vector<6x1xf32> to vector<1x6x1xf32>
    %cst_142 = arith.constant dense<0.000000e+00> : vector<1xf32>
    %283 = vector.multi_reduction <add>, %282, %cst_142 [1, 2] : vector<1x6x1xf32> to vector<1xf32>
    %284 = vector.shape_cast %283 : vector<1xf32> to vector<1x1x1xf32>
    %285 = vector.extract %284[0, 0, 0] : f32 from vector<1x1x1xf32>
    %cst_143 = arith.constant 0.166666672 : f32
    %286 = arith.mulf %285, %cst_143 : f32
    %287 = vector.shape_cast %269 : vector<6x1xf32> to vector<1x6x1xf32>
    %cst_144 = arith.constant dense<0.000000e+00> : vector<1xf32>
    %288 = vector.multi_reduction <add>, %287, %cst_144 [1, 2] : vector<1x6x1xf32> to vector<1xf32>
    %289 = vector.shape_cast %288 : vector<1xf32> to vector<1x1x1xf32>
    %290 = vector.extract %289[0, 0, 0] : f32 from vector<1x1x1xf32>
    %cst_145 = arith.constant 0.166666672 : f32
    %291 = arith.mulf %290, %cst_145 : f32
    %c0_146 = arith.constant 0 : index
    %c0_147 = arith.constant 0 : index
    %292 = vector.load %arg16[%c0_146, %c0_147] : memref<12x24xf32, #tpu.memory_space<vmem>>, vector<12x24xf32>
    %c0_148 = arith.constant 0 : index
    %c0_149 = arith.constant 0 : index
    %293 = vector.load %arg17[%c0_148, %c0_149] : memref<4x2xf32, #tpu.memory_space<vmem>>, vector<4x2xf32>
    %cst_150 = arith.constant dense<0.000000e+00> : vector<24x2xf32>
    %294 = tpu.matmul %221, %293, %cst_150 {dimension_numbers = #tpu.dot_dimension_numbers<[1], [0], [0], [1], [0, 0, 1, 1], [], []>} : vector<24x4xf32>, vector<4x2xf32>, vector<24x2xf32> -> vector<24x2xf32>
    %cst_151 = arith.constant dense<0.000000e+00> : vector<12x2xf32>
    %295 = tpu.matmul %292, %294, %cst_151 {dimension_numbers = #tpu.dot_dimension_numbers<[1], [0], [0], [1], [0, 0, 1, 1], [], []>} : vector<12x24xf32>, vector<24x2xf32>, vector<12x2xf32> -> vector<12x2xf32>
    %cst_152 = arith.constant dense<0.000000e+00> : vector<24x2xf32>
    %296 = tpu.matmul %223, %293, %cst_152 {dimension_numbers = #tpu.dot_dimension_numbers<[1], [0], [0], [1], [0, 0, 1, 1], [], []>} : vector<24x4xf32>, vector<4x2xf32>, vector<24x2xf32> -> vector<24x2xf32>
    %cst_153 = arith.constant dense<0.000000e+00> : vector<12x2xf32>
    %297 = tpu.matmul %292, %296, %cst_153 {dimension_numbers = #tpu.dot_dimension_numbers<[1], [0], [0], [1], [0, 0, 1, 1], [], []>} : vector<12x24xf32>, vector<24x2xf32>, vector<12x2xf32> -> vector<12x2xf32>
    %c0_154 = arith.constant 0 : index
    %c0_155 = arith.constant 0 : index
    %298 = vector.load %arg18[%c0_154, %c0_155] : memref<6x12xf32, #tpu.memory_space<vmem>>, vector<6x12xf32>
    %c0_156 = arith.constant 0 : index
    %c0_157 = arith.constant 0 : index
    %299 = vector.load %arg19[%c0_156, %c0_157] : memref<2x1xf32, #tpu.memory_space<vmem>>, vector<2x1xf32>
    %300 = vector.shape_cast %295 : vector<12x2xf32> to vector<1x12x2xf32>
    %cst_158 = arith.constant dense<0xFF800000> : vector<1xf32>
    %301 = vector.multi_reduction <maximumf>, %300, %cst_158 [1, 2] : vector<1x12x2xf32> to vector<1xf32>
    %302 = vector.shape_cast %301 : vector<1xf32> to vector<1x1x1xf32>
    %303 = vector.extract %302[0, 0, 0] : f32 from vector<1x1x1xf32>
    %304 = vector.shape_cast %295 : vector<12x2xf32> to vector<1x12x2xf32>
    %cst_159 = arith.constant dense<0x7F800000> : vector<1xf32>
    %305 = vector.multi_reduction <minimumf>, %304, %cst_159 [1, 2] : vector<1x12x2xf32> to vector<1xf32>
    %306 = vector.shape_cast %305 : vector<1xf32> to vector<1x1x1xf32>
    %307 = vector.extract %306[0, 0, 0] : f32 from vector<1x1x1xf32>
    %cst_160 = arith.constant 1.280000e+02 : f32
    %308 = arith.cmpf ogt, %303, %cst_160 : f32
    %cst_161 = arith.constant 2.550000e+02 : f32
    %cst_162 = arith.constant 1.000000e+00 : f32
    %309 = arith.select %308, %cst_161, %cst_162 : f32
    %cst_163 = arith.constant -5.000000e-01 : f32
    %310 = arith.cmpf olt, %307, %cst_163 : f32
    %cst_164 = arith.constant -1.000000e+00 : f32
    %cst_165 = arith.constant 0.000000e+00 : f32
    %311 = arith.select %310, %cst_164, %cst_165 : f32
    %312 = arith.subf %309, %311 : f32
    %cst_166 = arith.constant 0.00999999977 : f32
    %313 = arith.mulf %cst_166, %312 : f32
    %314 = arith.mulf %313, %313 : f32
    %cst_167 = arith.constant 3.000000e-02 : f32
    %315 = arith.mulf %cst_167, %312 : f32
    %316 = arith.mulf %315, %315 : f32
    %cst_168 = arith.constant dense<0.000000e+00> : vector<12x1xf32>
    %317 = tpu.matmul %295, %299, %cst_168 {dimension_numbers = #tpu.dot_dimension_numbers<[1], [0], [0], [1], [0, 0, 1, 1], [], []>} : vector<12x2xf32>, vector<2x1xf32>, vector<12x1xf32> -> vector<12x1xf32>
    %cst_169 = arith.constant dense<0.000000e+00> : vector<6x1xf32>
    %318 = tpu.matmul %298, %317, %cst_169 {dimension_numbers = #tpu.dot_dimension_numbers<[1], [0], [0], [1], [0, 0, 1, 1], [], []>} : vector<6x12xf32>, vector<12x1xf32>, vector<6x1xf32> -> vector<6x1xf32>
    %cst_170 = arith.constant dense<0.000000e+00> : vector<12x1xf32>
    %319 = tpu.matmul %297, %299, %cst_170 {dimension_numbers = #tpu.dot_dimension_numbers<[1], [0], [0], [1], [0, 0, 1, 1], [], []>} : vector<12x2xf32>, vector<2x1xf32>, vector<12x1xf32> -> vector<12x1xf32>
    %cst_171 = arith.constant dense<0.000000e+00> : vector<6x1xf32>
    %320 = tpu.matmul %298, %319, %cst_171 {dimension_numbers = #tpu.dot_dimension_numbers<[1], [0], [0], [1], [0, 0, 1, 1], [], []>} : vector<6x12xf32>, vector<12x1xf32>, vector<6x1xf32> -> vector<6x1xf32>
    %321 = arith.mulf %295, %295 : vector<12x2xf32>
    %cst_172 = arith.constant dense<0.000000e+00> : vector<12x1xf32>
    %322 = tpu.matmul %321, %299, %cst_172 {dimension_numbers = #tpu.dot_dimension_numbers<[1], [0], [0], [1], [0, 0, 1, 1], [], []>} : vector<12x2xf32>, vector<2x1xf32>, vector<12x1xf32> -> vector<12x1xf32>
    %cst_173 = arith.constant dense<0.000000e+00> : vector<6x1xf32>
    %323 = tpu.matmul %298, %322, %cst_173 {dimension_numbers = #tpu.dot_dimension_numbers<[1], [0], [0], [1], [0, 0, 1, 1], [], []>} : vector<6x12xf32>, vector<12x1xf32>, vector<6x1xf32> -> vector<6x1xf32>
    %324 = arith.mulf %318, %318 : vector<6x1xf32>
    %325 = arith.subf %323, %324 : vector<6x1xf32>
    %326 = arith.mulf %297, %297 : vector<12x2xf32>
    %cst_174 = arith.constant dense<0.000000e+00> : vector<12x1xf32>
    %327 = tpu.matmul %326, %299, %cst_174 {dimension_numbers = #tpu.dot_dimension_numbers<[1], [0], [0], [1], [0, 0, 1, 1], [], []>} : vector<12x2xf32>, vector<2x1xf32>, vector<12x1xf32> -> vector<12x1xf32>
    %cst_175 = arith.constant dense<0.000000e+00> : vector<6x1xf32>
    %328 = tpu.matmul %298, %327, %cst_175 {dimension_numbers = #tpu.dot_dimension_numbers<[1], [0], [0], [1], [0, 0, 1, 1], [], []>} : vector<6x12xf32>, vector<12x1xf32>, vector<6x1xf32> -> vector<6x1xf32>
    %329 = arith.mulf %320, %320 : vector<6x1xf32>
    %330 = arith.subf %328, %329 : vector<6x1xf32>
    %331 = arith.mulf %295, %297 : vector<12x2xf32>
    %cst_176 = arith.constant dense<0.000000e+00> : vector<12x1xf32>
    %332 = tpu.matmul %331, %299, %cst_176 {dimension_numbers = #tpu.dot_dimension_numbers<[1], [0], [0], [1], [0, 0, 1, 1], [], []>} : vector<12x2xf32>, vector<2x1xf32>, vector<12x1xf32> -> vector<12x1xf32>
    %cst_177 = arith.constant dense<0.000000e+00> : vector<6x1xf32>
    %333 = tpu.matmul %298, %332, %cst_177 {dimension_numbers = #tpu.dot_dimension_numbers<[1], [0], [0], [1], [0, 0, 1, 1], [], []>} : vector<6x12xf32>, vector<12x1xf32>, vector<6x1xf32> -> vector<6x1xf32>
    %334 = arith.mulf %318, %320 : vector<6x1xf32>
    %335 = arith.subf %333, %334 : vector<6x1xf32>
    %cst_178 = arith.constant 2.000000e+00 : f32
    %336 = vector.broadcast %cst_178 : f32 to vector<6x1xf32>
    %337 = arith.mulf %336, %335 : vector<6x1xf32>
    %338 = vector.broadcast %316 : f32 to vector<6x1xf32>
    %339 = arith.addf %337, %338 : vector<6x1xf32>
    %340 = arith.addf %325, %330 : vector<6x1xf32>
    %341 = vector.broadcast %316 : f32 to vector<6x1xf32>
    %342 = arith.addf %340, %341 : vector<6x1xf32>
    %343 = arith.divf %339, %342 : vector<6x1xf32>
    %cst_179 = arith.constant 2.000000e+00 : f32
    %344 = vector.broadcast %cst_179 : f32 to vector<6x1xf32>
    %345 = arith.mulf %344, %318 : vector<6x1xf32>
    %346 = arith.mulf %345, %320 : vector<6x1xf32>
    %347 = vector.broadcast %314 : f32 to vector<6x1xf32>
    %348 = arith.addf %346, %347 : vector<6x1xf32>
    %349 = arith.mulf %343, %348 : vector<6x1xf32>
    %350 = arith.mulf %318, %318 : vector<6x1xf32>
    %351 = arith.mulf %320, %320 : vector<6x1xf32>
    %352 = arith.addf %350, %351 : vector<6x1xf32>
    %353 = vector.broadcast %314 : f32 to vector<6x1xf32>
    %354 = arith.addf %352, %353 : vector<6x1xf32>
    %355 = arith.divf %349, %354 : vector<6x1xf32>
    %356 = vector.shape_cast %355 : vector<6x1xf32> to vector<1x6x1xf32>
    %cst_180 = arith.constant dense<0.000000e+00> : vector<1xf32>
    %357 = vector.multi_reduction <add>, %356, %cst_180 [1, 2] : vector<1x6x1xf32> to vector<1xf32>
    %358 = vector.shape_cast %357 : vector<1xf32> to vector<1x1x1xf32>
    %359 = vector.extract %358[0, 0, 0] : f32 from vector<1x1x1xf32>
    %cst_181 = arith.constant 0.166666672 : f32
    %360 = arith.mulf %359, %cst_181 : f32
    %361 = vector.shape_cast %343 : vector<6x1xf32> to vector<1x6x1xf32>
    %cst_182 = arith.constant dense<0.000000e+00> : vector<1xf32>
    %362 = vector.multi_reduction <add>, %361, %cst_182 [1, 2] : vector<1x6x1xf32> to vector<1xf32>
    %363 = vector.shape_cast %362 : vector<1xf32> to vector<1x1x1xf32>
    %364 = vector.extract %363[0, 0, 0] : f32 from vector<1x1x1xf32>
    %cst_183 = arith.constant 0.166666672 : f32
    %365 = arith.mulf %364, %cst_183 : f32
    %366 = tpu.iota {dimensions = array<i32: 0>} : vector<16x128xi32>
    %cst_184 = arith.constant 0.000000e+00 : f32
    %367 = vector.broadcast %cst_184 : f32 to vector<16x128xf32>
    %c0_i32 = arith.constant 0 : i32
    %368 = vector.broadcast %c0_i32 : i32 to vector<16x128xi32>
    %369 = arith.cmpi eq, %366, %368 : vector<16x128xi32>
    %370 = vector.broadcast %64 : f32 to vector<16x128xf32>
    %371 = arith.select %369, %370, %367 : vector<16x128xi1>, vector<16x128xf32>
    %c1_i32 = arith.constant 1 : i32
    %372 = vector.broadcast %c1_i32 : i32 to vector<16x128xi32>
    %373 = arith.cmpi eq, %366, %372 : vector<16x128xi32>
    %374 = vector.broadcast %138 : f32 to vector<16x128xf32>
    %375 = arith.select %373, %374, %371 : vector<16x128xi1>, vector<16x128xf32>
    %c2_i32 = arith.constant 2 : i32
    %376 = vector.broadcast %c2_i32 : i32 to vector<16x128xi32>
    %377 = arith.cmpi eq, %366, %376 : vector<16x128xi32>
    %378 = vector.broadcast %212 : f32 to vector<16x128xf32>
    %379 = arith.select %377, %378, %375 : vector<16x128xi1>, vector<16x128xf32>
    %c3_i32 = arith.constant 3 : i32
    %380 = vector.broadcast %c3_i32 : i32 to vector<16x128xi32>
    %381 = arith.cmpi eq, %366, %380 : vector<16x128xi32>
    %382 = vector.broadcast %286 : f32 to vector<16x128xf32>
    %383 = arith.select %381, %382, %379 : vector<16x128xi1>, vector<16x128xf32>
    %c4_i32 = arith.constant 4 : i32
    %384 = vector.broadcast %c4_i32 : i32 to vector<16x128xi32>
    %385 = arith.cmpi eq, %366, %384 : vector<16x128xi32>
    %386 = vector.broadcast %360 : f32 to vector<16x128xf32>
    %387 = arith.select %385, %386, %383 : vector<16x128xi1>, vector<16x128xf32>
    %c5_i32 = arith.constant 5 : i32
    %388 = vector.broadcast %c5_i32 : i32 to vector<16x128xi32>
    %389 = arith.cmpi eq, %366, %388 : vector<16x128xi32>
    %390 = vector.broadcast %69 : f32 to vector<16x128xf32>
    %391 = arith.select %389, %390, %387 : vector<16x128xi1>, vector<16x128xf32>
    %c6_i32 = arith.constant 6 : i32
    %392 = vector.broadcast %c6_i32 : i32 to vector<16x128xi32>
    %393 = arith.cmpi eq, %366, %392 : vector<16x128xi32>
    %394 = vector.broadcast %143 : f32 to vector<16x128xf32>
    %395 = arith.select %393, %394, %391 : vector<16x128xi1>, vector<16x128xf32>
    %c7_i32 = arith.constant 7 : i32
    %396 = vector.broadcast %c7_i32 : i32 to vector<16x128xi32>
    %397 = arith.cmpi eq, %366, %396 : vector<16x128xi32>
    %398 = vector.broadcast %217 : f32 to vector<16x128xf32>
    %399 = arith.select %397, %398, %395 : vector<16x128xi1>, vector<16x128xf32>
    %c8_i32 = arith.constant 8 : i32
    %400 = vector.broadcast %c8_i32 : i32 to vector<16x128xi32>
    %401 = arith.cmpi eq, %366, %400 : vector<16x128xi32>
    %402 = vector.broadcast %291 : f32 to vector<16x128xf32>
    %403 = arith.select %401, %402, %399 : vector<16x128xi1>, vector<16x128xf32>
    %c9_i32 = arith.constant 9 : i32
    %404 = vector.broadcast %c9_i32 : i32 to vector<16x128xi32>
    %405 = arith.cmpi eq, %366, %404 : vector<16x128xi32>
    %406 = vector.broadcast %365 : f32 to vector<16x128xf32>
    %407 = arith.select %405, %406, %403 : vector<16x128xi1>, vector<16x128xf32>
    %c0_185 = arith.constant 0 : index
    %c0_186 = arith.constant 0 : index
    %408 = vector.load %arg20[%c0_185, %c0_186] : memref<16x128xf32, #tpu.memory_space<vmem>>, vector<16x128xf32>
    tpu.vector_store %arg20[%c0_185, %c0_186], %407 {strides = array<i32>} : memref<16x128xf32, #tpu.memory_space<vmem>>, vector<16x128xf32>,
    return
  }
}

</mosaic_0001>

<bundles_post_ra>
// kernel: msssim_forward.1
= control target key start
LH: loop header
LB: loop body
LE: loop exit
PB: predicated region body
PF: predicated region fallthrough
CT: control target
= control target key end

     0   :  { %s12129_s0 = inlined_call_operand.hbm [shape: f32[192,32], index: 0, kind: input, shape index: {}]   ;;  %s12130_s1 = inlined_call_operand.hbm [shape: f32[192,32], index: 1, kind: input, shape index: {}]   ;;  %s12131_s2 = inlined_call_operand.hbm [shape: f32[132,192], index: 2, kind: input, shape index: {}]   ;;  %s12132_s3 = inlined_call_operand.hbm [shape: f32[32,22], index: 3, kind: input, shape index: {}]   ;;  %s12133_s4 = inlined_call_operand.hbm [shape: f32[96,192], index: 4, kind: input, shape index: {}]   ;;  %s12134_s5 = inlined_call_operand.hbm [shape: f32[32,16], index: 5, kind: input, shape index: {}]   ;;  %s12135_s6 = inlined_call_operand.hbm [shape: f32[36,96], index: 6, kind: input, shape index: {}]   ;;  %s12136_s7 = inlined_call_operand.hbm [shape: f32[16,6], index: 7, kind: input, shape index: {}]   ;;  %s12137_s8 = inlined_call_operand.hbm [shape: f32[48,96], index: 8, kind: input, shape index: {}]   ;;  %s12138_s9 = inlined_call_operand.hbm [shape: f32[16,8], index: 9, kind: input, shape index: {}]   ;;  %s12139_s10 = inlined_call_operand.hbm [shape: f32[6,48], index: 10, kind: input, shape index: {}]   ;;  %s12140_s11 = inlined_call_operand.hbm [shape: f32[8,1], index: 11, kind: input, shape index: {}]   ;;  %s12141_s12 = inlined_call_operand.hbm [shape: f32[24,48], index: 12, kind: input, shape index: {}]   ;;  %s12142_s13 = inlined_call_operand.hbm [shape: f32[8,4], index: 13, kind: input, shape index: {}]   ;;  %s12143_s14 = inlined_call_operand.hbm [shape: f32[6,24], index: 14, kind: input, shape index: {}]   ;;  %s12144_s15 = inlined_call_operand.hbm [shape: f32[4,1], index: 15, kind: input, shape index: {}]   ;;  %s12145_s16 = inlined_call_operand.vmem [shape: f32[12,24], index: 16, kind: input, shape index: {}]   ;;  %s12146_s17 = inlined_call_operand.hbm [shape: f32[4,2], index: 17, kind: input, shape index: {}]   ;;  %s12147_s18 = inlined_call_operand.hbm [shape: f32[6,12], index: 18, kind: input, shape index: {}]   ;;  %s12148_s19 = inlined_call_operand.vmem [shape: f32[2,1], index: 19, kind: input, shape index: {}]   ;;  %s12149_s20 = inlined_call_operand.vmem [shape: f32[16,128], index: 20, kind: output, shape index: {}]  }
   0x1   :  { %12243 = sst [smem:[#allocation162_spill]] %s12129_s0 }
   0x2   :  { %12244 = sst [smem:[#allocation163_spill]] %s12130_s1 }
   0x3   :  { %12245 = sst [smem:[#allocation164_spill]] %s12131_s2 }
   0x4   :  { %12246 = sst [smem:[#allocation165_spill]] %s12132_s3 }
   0x5   :  { %12247 = sst [smem:[#allocation166_spill]] %s12133_s4 }
   0x6   :  { %25 = vsyncpa [#allocation3], 0 }
   0x7   :  { %26 = vsyncpa [#allocation5], 0 }
   0x8   :  { %27 = vsyncpa [#allocation8], 0 }
   0x9   :  { %28 = vsyncpa [#allocation11], 0 }
   0xa   :  { %29 = vsyncpa [#allocation14], 0 }
   0xb   :  { %30 = vsyncpa [#allocation17], 0 }
   0xc   :  { %31 = vsyncpa [#allocation20], 0 }
   0xd   :  { %32 = vsyncpa [#allocation23], 0 }
   0xe   :  { %33 = vsyncpa [#allocation26], 0 }
   0xf   :  { %34 = vsyncpa [#allocation29], 0  ;;  %s12248_s23 = sld [smem:[#allocation163_spill]]  ;;  %s7530_s2 = smov [#allocation4]  }
  0x10   :  { %s54_s25 = sshll.u32 %s7530_s2, 4  ;;  %s12249_s27 = sld [smem:[#allocation165_spill]]  ;;  %s55_s25 = int_to_ptr.vmem [resolvable:$true] %s54_s25 }
  0x11   :  { %s7531_s4 = smov 128   ;;  %s7532_s29 = smov 8  }
  0x12   :  { %s7533_s30 = smov [#allocation7]   ;;  %s104_s22 = sshll.u32 %s12134_s5, 4  ;;  %s105_s22 = int_to_ptr.hbm [resolvable:$true] %s104_s22 }
  0x13   :  { %s80_s0 = sshll.u32 %s7533_s30, 4  ;;  %s130_s3 = sshll.u32 %s12136_s7, 4  ;;  %s81_s0 = int_to_ptr.vmem [resolvable:$true] %s80_s0  ;;  %s131_s3 = int_to_ptr.hbm [resolvable:$true] %s130_s3 }
  0x14   :  { %s7534_s26 = smov [#allocation10]   ;;  %s156_s21 = sshll.u32 %s12138_s9, 4  ;;  %s157_s21 = int_to_ptr.hbm [resolvable:$true] %s156_s21 }
  0x15   :  { %s52_s24 = sshll.u32 %s12248_s23, 4  ;;  %s7536_s1 = smov [#allocation16]   ;;  %s53_s24 = int_to_ptr.hbm [resolvable:$true] %s52_s24 }
  0x16   :  { %s78_s28 = sshll.u32 %s12249_s27, 4  ;;  %s106_s27 = sshll.u32 %s7534_s26, 4  ;;  %s79_s28 = int_to_ptr.hbm [resolvable:$true] %s78_s28  ;;  %s107_s27 = int_to_ptr.vmem [resolvable:$true] %s106_s27 }
  0x17   :  { %60 = dma.hbm_to_vmem [thread:$0]  %s53_s24, 3072, %s55_s25, [#allocation5], %s7531_s4, %s7531_s4, %s7532_s29  }
  0x18   :  { %86 = dma.hbm_to_vmem [thread:$0]  %s79_s28, 512, %s81_s0, [#allocation8], %s7531_s4, %s7531_s4, %s7532_s29  }
  0x19   :  { %112 = dma.hbm_to_vmem [thread:$0]  %s105_s22, 512, %s107_s27, [#allocation11], %s7531_s4, %s7531_s4, %s7532_s29  }
  0x1a   :  { %s7535_s24 = smov [#allocation13]   ;;  %s181_s0 = sshll.u32 %s12140_s11, 4  ;;  %s182_s0 = int_to_ptr.hbm [resolvable:$true] %s181_s0 }
  0x1b   :  { %s132_s5 = sshll.u32 %s7535_s24, 4  ;;  %s158_s23 = sshll.u32 %s7536_s1, 4  ;;  %s133_s5 = int_to_ptr.vmem [resolvable:$true] %s132_s5  ;;  %s159_s23 = int_to_ptr.vmem [resolvable:$true] %s158_s23 }
  0x1c   :  { %138 = dma.hbm_to_vmem [thread:$0]  %s131_s3, 256, %s133_s5, [#allocation14], %s7531_s4, %s7531_s4, %s7532_s29  }
  0x1d   :  { %164 = dma.hbm_to_vmem [thread:$0]  %s157_s21, 256, %s159_s23, [#allocation17], %s7531_s4, %s7531_s4, %s7532_s29  }
  0x1e   :  { %s7537_s22 = smov [#allocation19]   ;;  %s205_s27 = sshll.u32 %s12142_s13, 4  ;;  %s206_s27 = int_to_ptr.hbm [resolvable:$true] %s205_s27 }
  0x1f   :  { %s183_s9 = sshll.u32 %s7537_s22, 4  ;;  %s227_s11 = sshll.u32 %s12144_s15, 4  ;;  %s184_s9 = int_to_ptr.vmem [resolvable:$true] %s183_s9  ;;  %s228_s11 = int_to_ptr.hbm [resolvable:$true] %s227_s11 }
  0x20   :  { %186 = dma.hbm_to_vmem [thread:$0]  %s182_s0, 128, %s184_s9, [#allocation20]  }
  0x21   :  { %s7538_s5 = smov [#allocation22]   ;;  %s7539_s30 = smov [#allocation25]  }
  0x22   :  { %s207_s25 = sshll.u32 %s7538_s5, 4  ;;  %s229_s21 = sshll.u32 %s7539_s30, 4  ;;  %s208_s25 = int_to_ptr.vmem [resolvable:$true] %s207_s25  ;;  %s230_s21 = int_to_ptr.vmem [resolvable:$true] %s229_s21 }
  0x23   :  { %210 = dma.hbm_to_vmem [thread:$0]  %s206_s27, 128, %s208_s25, [#allocation23]  }
  0x24   :  { %s12250_s1 = sld [smem:[#allocation162_spill]]  ;;  %s7540_s2 = smov [#allocation2]  }
  0x25   :  { %232 = dma.hbm_to_vmem [thread:$0]  %s228_s11, 64, %s230_s21, [#allocation26]  }
  0x26   :  { %s12251_s22 = sld [smem:[#allocation164_spill]]  ;;  %s41_s15 = sshll.u32 %s7540_s2, 4  ;;  %s42_s15 = int_to_ptr.vmem [resolvable:$true] %s41_s15 }
  0x27   :  { %s7541_s26 = smov [#allocation6]   ;;  %s7542_s3 = smov 256  }
  0x28   :  { %s67_s27 = sshll.u32 %s7541_s26, 4  ;;  %s7543_s24 = smov 16   ;;  %s68_s27 = int_to_ptr.vmem [resolvable:$true] %s67_s27 }
  0x29   :  { %s12252_s25 = sld [smem:[#allocation166_spill]]  ;;  %s7544_s21 = smov [#allocation9]  }
  0x2a   :  { %s39_s23 = sshll.u32 %s12250_s1, 4  ;;  %s93_s7 = sshll.u32 %s7544_s21, 4  ;;  %s40_s23 = int_to_ptr.hbm [resolvable:$true] %s39_s23  ;;  %s94_s7 = int_to_ptr.vmem [resolvable:$true] %s93_s7 }
  0x2b   :  { %47 = dma.hbm_to_vmem [thread:$0]  %s40_s23, 3072, %s42_s15, [#allocation3], %s7531_s4, %s7531_s4, %s7532_s29  }
  0x2c   :  { %s65_s9 = sshll.u32 %s12251_s22, 4  ;;  %s117_s13 = sshll.u32 %s12135_s6, 4  ;;  %s66_s9 = int_to_ptr.hbm [resolvable:$true] %s65_s9  ;;  %s118_s13 = int_to_ptr.hbm [resolvable:$true] %s117_s13 }
  0x2d   :  { %73 = dma.hbm_to_vmem [thread:$0]  %s66_s9, 4352, %s68_s27, [#allocation5], %s7542_s3, %s7542_s3, %s7543_s24  }
  0x2e   :  { %s7545_s23 = smov [#allocation12]   ;;  %s143_s9 = sshll.u32 %s12137_s8, 4  ;;  %s144_s9 = int_to_ptr.hbm [resolvable:$true] %s143_s9 }
  0x2f   :  { %s91_s30 = sshll.u32 %s12252_s25, 4  ;;  %s119_s0 = sshll.u32 %s7545_s23, 4  ;;  %s92_s30 = int_to_ptr.hbm [resolvable:$true] %s91_s30  ;;  %s120_s0 = int_to_ptr.vmem [resolvable:$true] %s119_s0 }
  0x30   :  { %99 = dma.hbm_to_vmem [thread:$0]  %s92_s30, 3072, %s94_s7, [#allocation8], %s7542_s3, %s7542_s3, %s7543_s24  }
  0x31   :  { %125 = dma.hbm_to_vmem [thread:$0]  %s118_s13, 640, %s120_s0, [#allocation11], %s7531_s4, %s7531_s4, %s7532_s29  }
  0x32   :  { %s170_s27 = sshll.u32 %s12139_s10, 4  ;;  %s7546_s5 = smov [#allocation15]   ;;  %s171_s27 = int_to_ptr.hbm [resolvable:$true] %s170_s27 }
  0x33   :  { %s145_s6 = sshll.u32 %s7546_s5, 4  ;;  %s7547_s3 = smov [#allocation18]   ;;  %s146_s6 = int_to_ptr.vmem [resolvable:$true] %s145_s6 }
  0x34   :  { %151 = dma.hbm_to_vmem [thread:$0]  %s144_s9, 768, %s146_s6, [#allocation14], %s7531_s4, %s7531_s4, %s7532_s29  }
  0x35   :  { %s172_s8 = sshll.u32 %s7547_s3, 4  ;;  %s191_s25 = sshll.u32 %s12141_s12, 4  ;;  %s173_s8 = int_to_ptr.vmem [resolvable:$true] %s172_s8  ;;  %s192_s25 = int_to_ptr.hbm [resolvable:$true] %s191_s25 }
  0x36   :  { %175 = dma.hbm_to_vmem [thread:$0]  %s171_s27, 128, %s173_s8, [#allocation17]  }
  0x37   :  { %s216_s10 = sshll.u32 %s12143_s14, 4  ;;  %s7548_s7 = smov [#allocation21]   ;;  %s217_s10 = int_to_ptr.hbm [resolvable:$true] %s216_s10 }
  0x38   :  { %s193_s28 = sshll.u32 %s7548_s7, 4  ;;  %s7549_s1 = smov [#allocation24]   ;;  %s194_s28 = int_to_ptr.vmem [resolvable:$true] %s193_s28 }
  0x39   :  { %199 = dma.hbm_to_vmem [thread:$0]  %s192_s25, 384, %s194_s28, [#allocation20], %s7531_s4, %s7531_s4, %s7532_s29  }
  0x3a   :  { %s218_s13 = sshll.u32 %s7549_s1, 4  ;;  %s240_s12 = sshll.u32 %s12146_s17, 4  ;;  %s219_s13 = int_to_ptr.vmem [resolvable:$true] %s218_s13  ;;  %s241_s12 = int_to_ptr.hbm [resolvable:$true] %s240_s12 }
  0x3b   :  { %221 = dma.hbm_to_vmem [thread:$0]  %s217_s10, 128, %s219_s13, [#allocation23]  }
  0x3c   :  { %s251_s14 = sshll.u32 %s12147_s18, 4  ;;  %s7550_s9 = smov [#allocation27]   ;;  %s252_s14 = int_to_ptr.hbm [resolvable:$true] %s251_s14 }
  0x3d   :  { %s242_s15 = sshll.u32 %s7550_s9, 4  ;;  %s7551_s26 = smov [#allocation28]   ;;  %s243_s15 = int_to_ptr.vmem [resolvable:$true] %s242_s15 }
  0x3e   :  { %245 = dma.hbm_to_vmem [thread:$0]  %s241_s12, 64, %s243_s15, [#allocation26]  }
  0x3f   :  { %s253_s4 = sshll.u32 %s7551_s26, 4  ;;  %s254_s4 = int_to_ptr.vmem [resolvable:$true] %s253_s4 }
  0x40   :  { %256 = dma.hbm_to_vmem [thread:$0]  %s252_s14, 128, %s254_s4, [#allocation29]  }
  0x41   :  { %7510 = dma.done.wait [#allocation3], 3072  }
  0x42   :  { %7511 = vsyncadd [#allocation3], 4294964224 }
  0x43   :  { %7512 = dma.done.wait [#allocation5], 7424  }
  0x44   :  { %7513 = vsyncadd [#allocation5], 4294959872 }
  0x45   :  { %7514 = dma.done.wait [#allocation8], 3584  }
  0x46   :  { %7515 = vsyncadd [#allocation8], 4294963712 }
  0x47   :  { %7516 = dma.done.wait [#allocation11], 1152  }
  0x48   :  { %7517 = vsyncadd [#allocation11], 4294966144 }
  0x49   :  { %7518 = dma.done.wait [#allocation14], 1024  }
  0x4a   :  { %7519 = vsyncadd [#allocation14], 4294966272 }
  0x4b   :  { %7520 = dma.done.wait [#allocation17], 384  }
  0x4c   :  { %7521 = vsyncadd [#allocation17], 4294966912 }
  0x4d   :  { %7522 = dma.done.wait [#allocation20], 512  }
  0x4e   :  { %7523 = vsyncadd [#allocation20], 4294966784 }
  0x4f   :  { %7524 = dma.done.wait [#allocation23], 256  }
  0x50   :  { %7525 = vsyncadd [#allocation23], 4294967040 }
  0x51   :  { %7526 = dma.done.wait [#allocation26], 128  }
  0x52   :  { %7527 = vsyncadd [#allocation26], 4294967168 }
  0x53   :  { %7528 = dma.done.wait [#allocation29], 128  }
  0x54   :  { %7529 = vsyncadd [#allocation29], 4294967168  ;;  %v7738_v0 = vld [vmem:[#allocation7 + $0x18] sm:$0xff]  ;;  %v7740_v1 = vld [vmem:[#allocation7 + $0x10] sm:$0xff]  ;;  %vm417_vm0 = vcmask 261120   ;;  %vm700_vm1 = vcmask 523264  }
  0x55   :  { %623 = vmatpush.msra.mxu0 %v7738_v0  ;;  %972 = vmatpush.msra.mxu3 %v7738_v0  ;;  %v7744_v2 = vld [vmem:[#allocation7 + $0x8] sm:$0xff]  ;;  %v7748_v3 = vld [vmem:[#allocation7] sm:$0xff]  ;;  %v7751_v4 = vld [vmem:[#allocation2] sm:$0xff] }
  0x56   :  { %v7760_v5 = vld [vmem:[#allocation2 + $0x8] sm:$0xff]  ;;  %v7766_v6 = vld [vmem:[#allocation2 + $0x10] sm:$0xff]  ;;  %v7770_v7 = vld [vmem:[#allocation2 + $0x18] sm:$0xff]  ;;  %v1185_v56 = vmul.f32 %v7751_v4, %v7751_v4 }
  0x57   :  { %624 = vmatpush.msra.mxu0 %v7740_v1  ;;  %973 = vmatpush.msra.mxu3 %v7740_v1  ;;  %v7774_v8 = vld [vmem:[#allocation2 + $0x20] sm:$0xff]  ;;  %v7778_v9 = vld [vmem:[#allocation2 + $0x28] sm:$0xff]  ;;  %v7783_v11 = vld [vmem:[#allocation2 + $0x30] sm:$0xff]  ;;  %v1186_v60 = vmul.f32 %v7760_v5, %v7760_v5 }
  0x58   :  { %v355_v10 = vld [vmem:[#allocation4] sm:$0xff]  ;;  %v356_v12 = vld [vmem:[#allocation4 + $0x8] sm:$0xff]  ;;  %v7788_v13 = vld [vmem:[#allocation2 + $0x38] sm:$0xff] }
  0x59   :  { %625 = vmatpush.msra.mxu0 %v7744_v2  ;;  %974 = vmatpush.msra.mxu3 %v7744_v2  ;;  %v357_v14 = vld [vmem:[#allocation4 + $0x10] sm:$0xff]  ;;  %v7793_v15 = vld [vmem:[#allocation2 + $0x40] sm:$0xff]  ;;  %v358_v16 = vld [vmem:[#allocation4 + $0x18] sm:$0xff] }
  0x5a   :  { %v7798_v17 = vld [vmem:[#allocation2 + $0x48] sm:$0xff]  ;;  %v359_v18 = vld [vmem:[#allocation4 + $0x20] sm:$0xff]  ;;  %v7803_v19 = vld [vmem:[#allocation2 + $0x50] sm:$0xff] }
  0x5b   :  { %626 = vmatpush.msra.mxu0 %v7748_v3  ;;  %975 = vmatpush.msra.mxu3 %v7748_v3  ;;  %v360_v20 = vld [vmem:[#allocation4 + $0x28] sm:$0xff]  ;;  %v7808_v21 = vld [vmem:[#allocation2 + $0x58] sm:$0xff]  ;;  %v361_v22 = vld [vmem:[#allocation4 + $0x30] sm:$0xff] }
  0x5c   :  { %6293 = vmatmul.msk.f32.vlgmr.msra.gmra.mxu0 %vm417_vm0, %v7751_v4  ;;  %6334 = vmatmul.msk.f32.vlgmr.msra.gmra.mxu3 %vm417_vm0, %v355_v10  ;;  %v7813_v23 = vld [vmem:[#allocation2 + $0x60] sm:$0xff]  ;;  %v362_v24 = vld [vmem:[#allocation4 + $0x38] sm:$0xff]  ;;  %v7818_v25 = vld [vmem:[#allocation2 + $0x68] sm:$0xff]  ;;  %v1187_v10 = vmul.f32 %v7766_v6, %v7766_v6 }
  0x5d   :  { %1293 = vmatpush.msrb.mxu0 %v7738_v0  ;;  %v363_v26 = vld [vmem:[#allocation4 + $0x40] sm:$0xff]  ;;  %v7823_v27 = vld [vmem:[#allocation2 + $0x70] sm:$0xff]  ;;  %v364_v28 = vld [vmem:[#allocation4 + $0x48] sm:$0xff] }
  0x5e   :  { %v7828_v29 = vld [vmem:[#allocation2 + $0x78] sm:$0xff]  ;;  %v365_v30 = vld [vmem:[#allocation4 + $0x50] sm:$0xff]  ;;  %v7835_v32 = vld [vmem:[#allocation2 + $0x80] sm:$0xff] }
  0x5f   :  { %1294 = vmatpush.msrb.mxu0 %v7740_v1  ;;  %v366_v33 = vld [vmem:[#allocation4 + $0x58] sm:$0xff]  ;;  %v7842_v35 = vld [vmem:[#allocation2 + $0x88] sm:$0xff]  ;;  %v367_v36 = vld [vmem:[#allocation4 + $0x60] sm:$0xff] }
  0x60   :  { %v7849_v38 = vld [vmem:[#allocation2 + $0x90] sm:$0xff]  ;;  %v368_v39 = vld [vmem:[#allocation4 + $0x68] sm:$0xff]  ;;  %v7856_v41 = vld [vmem:[#allocation2 + $0x98] sm:$0xff] }
  0x61   :  { %1295 = vmatpush.msrb.mxu0 %v7744_v2  ;;  %v369_v42 = vld [vmem:[#allocation4 + $0x70] sm:$0xff]  ;;  %v7863_v44 = vld [vmem:[#allocation2 + $0xa0] sm:$0xff]  ;;  %v370_v45 = vld [vmem:[#allocation4 + $0x78] sm:$0xff] }
  0x62   :  { %v7870_v47 = vld [vmem:[#allocation2 + $0xa8] sm:$0xff]  ;;  %v7878_v50 = vld [vmem:[#allocation2 + $0xb0] sm:$0xff]  ;;  %v371_v51 = vld [vmem:[#allocation4 + $0x80] sm:$0xff] }
  0x63   :  { %1296 = vmatpush.msrb.mxu0 %v7748_v3  ;;  %v7887_v54 = vld [vmem:[#allocation2 + $0xb8] sm:$0xff]  ;;  %v372_v55 = vld [vmem:[#allocation4 + $0x88] sm:$0xff]  ;;  %v373_v59 = vld [vmem:[#allocation4 + $0x90] sm:$0xff] }
  0x64   :  { %6294 = vmatmul.msk.f32.gmra.mxu0 %vm417_vm0, %v7760_v5  ;;  %6335 = vmatmul.msk.f32.gmra.mxu3 %vm417_vm0, %v356_v12  ;;  %v374_v63 = vld [vmem:[#allocation4 + $0x98] sm:$0xff] }
  0x6c   :  { %6295 = vmatmul.msk.f32.gmra.mxu0 %vm417_vm0, %v7766_v6  ;;  %6336 = vmatmul.msk.f32.gmra.mxu3 %vm417_vm0, %v357_v14 }
  0x74   :  { %6296 = vmatmul.msk.f32.gmra.mxu0 %vm417_vm0, %v7770_v7  ;;  %6337 = vmatmul.msk.f32.gmra.mxu3 %vm417_vm0, %v358_v16  ;;  %v375_v16 = vld [vmem:[#allocation4 + $0xa0] sm:$0xff] }
  0x7c   :  { %6297 = vmatmul.msk.f32.gmra.mxu0 %vm417_vm0, %v7774_v8  ;;  %6338 = vmatmul.msk.f32.gmra.mxu3 %vm417_vm0, %v359_v18  ;;  %v1188_v18 = vmul.f32 %v7770_v7, %v7770_v7 }
  0x84   :  { %6298 = vmatmul.msk.f32.gmra.mxu0 %vm417_vm0, %v7778_v9  ;;  %6339 = vmatmul.msk.f32.gmra.mxu3 %vm417_vm0, %v360_v20 }
  0x8c   :  { %6299 = vmatmul.msk.f32.gmra.mxu0 %vm417_vm0, %v7783_v11  ;;  %6340 = vmatmul.msk.f32.gmra.mxu3 %vm417_vm0, %v361_v22 }
  0x94   :  { %6300 = vmatmul.msk.f32.gmra.mxu0 %vm417_vm0, %v7788_v13  ;;  %6341 = vmatmul.msk.f32.gmra.mxu3 %vm417_vm0, %v362_v24  ;;  %v376_v24 = vld [vmem:[#allocation4 + $0xa8] sm:$0xff] }
  0x9c   :  { %6301 = vmatmul.msk.f32.gmra.mxu0 %vm417_vm0, %v7793_v15  ;;  %6342 = vmatmul.msk.f32.gmra.mxu3 %vm417_vm0, %v363_v26  ;;  %v1189_v26 = vmul.f32 %v7774_v8, %v7774_v8 }
  0xa4   :  { %6302 = vmatmul.msk.f32.gmra.mxu0 %vm417_vm0, %v7798_v17  ;;  %6343 = vmatmul.msk.f32.gmra.mxu3 %vm417_vm0, %v364_v28 }
  0xac   :  { %6303 = vmatmul.msk.f32.gmra.mxu0 %vm417_vm0, %v7803_v19  ;;  %6344 = vmatmul.msk.f32.gmra.mxu3 %vm417_vm0, %v365_v30 }
  0xb4   :  { %6304 = vmatmul.msk.f32.gmra.mxu0 %vm417_vm0, %v7808_v21  ;;  %6345 = vmatmul.msk.f32.gmra.mxu3 %vm417_vm0, %v366_v33  ;;  %v377_v33 = vld [vmem:[#allocation4 + $0xb0] sm:$0xff] }
  0xbc   :  { %6305 = vmatmul.msk.f32.gmra.mxu0 %vm417_vm0, %v7813_v23  ;;  %6346 = vmatmul.msk.f32.gmra.mxu3 %vm417_vm0, %v367_v36  ;;  %v1190_v36 = vmul.f32 %v7778_v9, %v7778_v9 }
  0xc4   :  { %6306 = vmatmul.msk.f32.gmra.mxu0 %vm417_vm0, %v7818_v25  ;;  %6347 = vmatmul.msk.f32.gmra.mxu3 %vm417_vm0, %v368_v39 }
  0xcc   :  { %6307 = vmatmul.msk.f32.gmra.mxu0 %vm417_vm0, %v7823_v27  ;;  %6348 = vmatmul.msk.f32.gmra.mxu3 %vm417_vm0, %v369_v42 }
  0xd4   :  { %6308 = vmatmul.msk.f32.gmra.mxu0 %vm417_vm0, %v7828_v29  ;;  %6349 = vmatmul.msk.f32.gmra.mxu3 %vm417_vm0, %v370_v45  ;;  %v378_v45 = vld [vmem:[#allocation4 + $0xb8] sm:$0xff] }
  0xd9   :  { %v7833_v31 = vpop.f32.mrf.mxu0 }
  0xdc   :  { %6309 = vmatmul.msk.f32.gmra.mxu0 %vm417_vm0, %v7835_v32  ;;  %6350 = vmatmul.msk.f32.gmra.mxu3 %vm417_vm0, %v371_v51  ;;  %v1191_v51 = vmul.f32 %v7783_v11, %v7783_v11 }
  0xdf   :  { %v7874_v48 = vpop.f32.mrf.mxu3 }
  0xe1   :  { %v7840_v34 = vpop.f32.mrf.mxu0 }
  0xe4   :  { %6310 = vmatmul.msk.f32.gmra.mxu0 %vm417_vm0, %v7842_v35  ;;  %6351 = vmatmul.msk.f32.gmra.mxu3 %vm417_vm0, %v372_v55 }
  0xe7   :  { %v7883_v52 = vpop.f32.mrf.mxu3 }
  0xe9   :  { %v7847_v37 = vpop.f32.mrf.mxu0 }
  0xec   :  { %6311 = vmatmul.msk.f32.gmra.mxu0 %vm417_vm0, %v7849_v38  ;;  %6352 = vmatmul.msk.f32.gmra.mxu3 %vm417_vm0, %v373_v59  ;;  %v1192_v59 = vmul.f32 %v7788_v13, %v7788_v13 }
  0xef   :  { %v7894_v57 = vpop.f32.mrf.mxu3 }
  0xf1   :  { %v7854_v40 = vpop.f32.mrf.mxu0 }
  0xf4   :  { %6312 = vmatmul.msk.f32.gmra.mxu0 %vm417_vm0, %v7856_v41  ;;  %6353 = vmatmul.msk.f32.gmra.mxu3 %vm417_vm0, %v374_v63 }
  0xf7   :  { %v7900_v61 = vpop.f32.mrf.mxu3 }
  0xf9   :  { %v7861_v43 = vpop.f32.mrf.mxu0 }
  0xfc   :  { %6313 = vmatmul.msk.f32.gmra.mxu0 %vm417_vm0, %v7863_v44  ;;  %6354 = vmatmul.msk.f32.gmra.mxu3 %vm417_vm0, %v375_v16 }
  0xff   :  { %v7906_v12 = vpop.f32.mrf.mxu3 }
 0x101   :  { %v7868_v46 = vpop.f32.mrf.mxu0 }
 0x104   :  { %6314 = vmatmul.msk.f32.gmra.mxu0 %vm417_vm0, %v7870_v47  ;;  %6355 = vmatmul.msk.f32.gmra.mxu3 %vm417_vm0, %v376_v24  ;;  %v1194_v24 = vmul.f32 %v7798_v17, %v7798_v17 }
 0x107   :  { %v7912_v20 = vpop.f32.mrf.mxu3 }
 0x109   :  { %v7876_v49 = vpop.f32.mrf.mxu0 }
 0x10c   :  { %6315 = vmatmul.msk.f32.gmra.mxu0 %vm417_vm0, %v7878_v50  ;;  %6356 = vmatmul.msk.f32.gmra.mxu3 %vm417_vm0, %v377_v33 }
 0x10f   :  { %v7918_v28 = vpop.f32.mrf.mxu3 }
 0x111   :  { %v7885_v53 = vpop.f32.mrf.mxu0 }
 0x114   :  { %6316 = vmatmul.msk.f32.gmra.mxu0 %vm417_vm0, %v7887_v54  ;;  %6357 = vmatmul.msk.f32.gmra.mxu3 %vm417_vm0, %v378_v45  ;;  %v1199_v45 = vmul.f32 %v7823_v27, %v7823_v27 }
 0x117   :  { %v7924_v39 = vpop.f32.mrf.mxu3 }
 0x119   :  { %v652_v58 = vpop.f32.mrf.mxu0 }
 0x11c   :  { %6375 = vmatmul.msk.f32.vlgmr.msrb.gmra.mxu0 %vm417_vm0, %v1185_v56 }
 0x11f   :  { %v7930_v55 = vpop.f32.mrf.mxu3 }
 0x121   :  { %v655_v62 = vpop.f32.mrf.mxu0 }
 0x124   :  { %6376 = vmatmul.msk.f32.gmra.mxu0 %vm417_vm0, %v1186_v60 }
 0x127   :  { %v7935_v60 = vpop.f32.mrf.mxu3 }
 0x129   :  { %v658_v14 = vpop.f32.mrf.mxu0 }
 0x12c   :  { %6377 = vmatmul.msk.f32.gmra.mxu0 %vm417_vm0, %v1187_v10  ;;  %v1193_v10 = vmul.f32 %v7793_v15, %v7793_v15 }
 0x12f   :  { %v7940_v16 = vpop.f32.mrf.mxu3 }
 0x131   :  { %v661_v22 = vpop.f32.mrf.mxu0 }
 0x134   :  { %6378 = vmatmul.msk.f32.gmra.mxu0 %vm417_vm0, %v1188_v18 }
 0x137   :  { %v7947_v33 = vpop.f32.mrf.mxu3 }
 0x139   :  { %v664_v30 = vpop.f32.mrf.mxu0 }
 0x13c   :  { %6379 = vmatmul.msk.f32.gmra.mxu0 %vm417_vm0, %v1189_v26 }
 0x141   :  { %v667_v42 = vpop.f32.mrf.mxu0 }
 0x144   :  { %6380 = vmatmul.msk.f32.gmra.mxu0 %vm417_vm0, %v1190_v36 }
 0x149   :  { %v670_v56 = vpop.f32.mrf.mxu0 }
 0x14c   :  { %6381 = vmatmul.msk.f32.gmra.mxu0 %vm417_vm0, %v1191_v51 }
 0x151   :  { %v673_v63 = vpop.f32.mrf.mxu0 }
 0x152   :  { %752 = vmatpush.msra.mxu1 %v673_v63  ;;  %v1200_v63 = vmul.f32 %v7828_v29, %v7828_v29 }
 0x154   :  { %753 = vmatpush.msra.mxu1 %v670_v56  ;;  %6382 = vmatmul.msk.f32.gmra.mxu0 %vm417_vm0, %v1192_v59  ;;  %v7985_v59 = vld [vmem:[#allocation6 + $0x40] sm:$0xff] }
 0x155   :  { %12257 = vst [vmem:[#allocation44_spill] sm:$0xff] %v7985_v59 }
 0x156   :  { %754 = vmatpush.msra.mxu1 %v667_v42  ;;  %v7979_v42 = vld [vmem:[#allocation6 + $0x30] sm:$0xff] }
 0x157   :  { %12256 = vst [vmem:[#allocation43_spill] sm:$0xff] %v7979_v42 }
 0x158   :  { %755 = vmatpush.msra.mxu1 %v664_v30  ;;  %v1198_v30 = vmul.f32 %v7818_v25, %v7818_v25 }
 0x159   :  { %v7942_v18 = vpop.f32.mrf.mxu0 }
 0x15a   :  { %756 = vmatpush.msra.mxu1 %v661_v22 }
 0x15c   :  { %757 = vmatpush.msra.mxu1 %v658_v14  ;;  %6383 = vmatmul.msk.f32.gmra.mxu0 %vm417_vm0, %v1193_v10  ;;  %v1013_v14 = vpop.f32.mrf.mxu3 }
 0x15e   :  { %758 = vmatpush.msra.mxu1 %v655_v62  ;;  %v1195_v62 = vmul.f32 %v7803_v19, %v7803_v19 }
 0x160   :  { %759 = vmatpush.msra.mxu1 %v652_v58 }
 0x161   :  { %v679_v26 = vpop.f32.mrf.mxu0 }
 0x162   :  { %760 = vmatpush.msra.mxu1 %v7885_v53  ;;  %v7967_v53 = vld [vmem:[#allocation6 + $0x10] sm:$0xff] }
 0x163   :  { %12254 = vst [vmem:[#allocation41_spill] sm:$0xff] %v7967_v53 }
 0x164   :  { %761 = vmatpush.msra.mxu1 %v7876_v49  ;;  %6384 = vmatmul.msk.f32.gmra.mxu0 %vm417_vm0, %v1194_v24  ;;  %v7960_v49 = vld [vmem:[#allocation6] sm:$0xff] }
 0x165   :  { %12253 = vst [vmem:[#allocation40_spill] sm:$0xff] %v7960_v49 }
 0x166   :  { %762 = vmatpush.msra.mxu1 %v7868_v46 }
 0x168   :  { %763 = vmatpush.msra.mxu1 %v7861_v43  ;;  %v1196_v43 = vmul.f32 %v7808_v21, %v7808_v21 }
 0x169   :  { %v682_v58 = vpop.f32.mrf.mxu0 }
 0x16a   :  { %764 = vmatpush.msra.mxu1 %v7854_v40  ;;  %v1016_v40 = vpop.f32.mrf.mxu3 }
 0x16c   :  { %765 = vmatpush.msra.mxu1 %v7847_v37  ;;  %6385 = vmatmul.msk.f32.gmra.mxu0 %vm417_vm0, %v1195_v62  ;;  %v1197_v37 = vmul.f32 %v7813_v23, %v7813_v23  ;;  %v7993_v62 = vld [vmem:[#allocation6 + $0x50] sm:$0xff] }
 0x16d   :  { %12258 = vst [vmem:[#allocation45_spill] sm:$0xff] %v7993_v62 }
 0x16e   :  { %766 = vmatpush.msra.mxu1 %v7840_v34 }
 0x170   :  { %767 = vmatpush.msra.mxu1 %v7833_v31  ;;  %v7973_v31 = vld [vmem:[#allocation6 + $0x20] sm:$0xff] }
 0x171   :  { %v685_v46 = vpop.f32.mrf.mxu0  ;;  %768 = vmatmul.f32.vlgmr.msra.gmra.mxu1 %v7960_v49  ;;  %12255 = vst [vmem:[#allocation42_spill] sm:$0xff] %v7973_v31 }
 0x172   :  { %v1019_v34 = vpop.f32.mrf.mxu3 }
 0x174   :  { %6386 = vmatmul.msk.f32.gmra.mxu0 %vm417_vm0, %v1196_v43  ;;  %v1201_v43 = vmul.f32 %v7835_v32, %v7835_v32 }
 0x179   :  { %v688_v22 = vpop.f32.mrf.mxu0  ;;  %771 = vmatmul.f32.gmra.mxu1 %v7967_v53 }
 0x17a   :  { %v1022_v56 = vpop.f32.mrf.mxu3 }
 0x17c   :  { %6387 = vmatmul.msk.f32.gmra.mxu0 %vm417_vm0, %v1197_v37 }
 0x181   :  { %v691_v36 = vpop.f32.mrf.mxu0  ;;  %774 = vmatmul.f32.gmra.mxu1 %v7973_v31 }
 0x182   :  { %v7990_v24 = vpop.f32.mrf.mxu3 }
 0x184   :  { %6388 = vmatmul.msk.f32.gmra.mxu0 %vm417_vm0, %v1198_v30 }
 0x189   :  { %v694_v51 = vpop.f32.mrf.mxu0  ;;  %777 = vmatmul.f32.gmra.mxu1 %v7979_v42 }
 0x18a   :  { %v8000_v30 = vpop.f32.mrf.mxu3 }
 0x18c   :  { %6389 = vmatmul.msk.f32.gmra.mxu0 %vm417_vm0, %v1199_v45  ;;  %v8003_v45 = vld [vmem:[#allocation6 + $0x60] sm:$0xff] }
 0x18d   :  { %12260 = vst [vmem:[#allocation47_spill] sm:$0xff] %v8003_v45 }
 0x191   :  { %v697_v10 = vpop.f32.mrf.mxu0  ;;  %780 = vmatmul.f32.gmra.mxu1 %v7985_v59 }
 0x192   :  { %828 = vmatpush.msra.mxu2 %v697_v10  ;;  %v1205_v10 = vmul.f32 %v7863_v44, %v7863_v44 }
 0x194   :  { %829 = vmatpush.msra.mxu2 %v694_v51  ;;  %6390 = vmatmul.msk.f32.gmra.mxu0 %vm417_vm0, %v1200_v63  ;;  %v1203_v51 = vmul.f32 %v7849_v38, %v7849_v38 }
 0x196   :  { %830 = vmatpush.msra.mxu2 %v691_v36  ;;  %v8005_v36 = vld [vmem:[#allocation6 + $0x8] sm:$0xff] }
 0x198   :  { %831 = vmatpush.msra.mxu2 %v688_v22  ;;  %v1202_v22 = vmul.f32 %v7842_v35, %v7842_v35 }
 0x199   :  { %783 = vmatmul.f32.gmra.mxu1 %v7993_v62  ;;  %v7998_v37 = vpop.f32.mrf.mxu0 }
 0x19a   :  { %12259 = vst [vmem:[#allocation46_spill] sm:$0xff] %v7998_v37  ;;  %832 = vmatpush.msra.mxu2 %v685_v46  ;;  %v430_v37 = vsel %vm417_vm0, %v7793_v15, -inf }
 0x19c   :  { %833 = vmatpush.msra.mxu2 %v682_v58  ;;  %6391 = vmatmul.msk.f32.gmra.mxu0 %vm417_vm0, %v1201_v43  ;;  %v8015_v58 = vpop.f32.mrf.mxu3  ;;  %v8078_v43 = vmul.f32 %v7887_v54, %v7887_v54 }
 0x19e   :  { %834 = vmatpush.msra.mxu2 %v679_v26  ;;  %v8018_v26 = vld [vmem:[#allocation6 + $0x70] sm:$0xff] }
 0x19f   :  { %12262 = vst [vmem:[#allocation49_spill] sm:$0xff] %v8018_v26 }
 0x1a0   :  { %835 = vmatpush.msra.mxu2 %v7942_v18  ;;  %v8020_v18 = vld [vmem:[#allocation6 + $0x18] sm:$0xff] }
 0x1a1   :  { %786 = vmatmul.f32.gmra.mxu1 %v8003_v45  ;;  %6317 = vmatmul.msk.f32.vlgmr.msra.gmra.mxu2 %vm700_vm1, %v8005_v36  ;;  %v8013_v46 = vpop.f32.mrf.mxu0 }
 0x1a2   :  { %12261 = vst [vmem:[#allocation48_spill] sm:$0xff] %v8013_v46  ;;  %1049 = vmatpush.msrb.mxu2 %v1022_v56  ;;  %v432_v46 = vsel %vm417_vm0, %v7798_v17, -inf }
 0x1a4   :  { %1050 = vmatpush.msrb.mxu2 %v1019_v34  ;;  %6392 = vmatmul.msk.f32.gmra.mxu0 %vm417_vm0, %v1202_v22  ;;  %v8029_v56 = vpop.f32.mrf.mxu3  ;;  %v1204_v34 = vmul.f32 %v7856_v41, %v7856_v41  ;;  %v8081_v22 = vld [vmem:[#allocation6 + $0xa0] sm:$0xff] }
 0x1a5   :  { %12268 = vst [vmem:[#allocation55_spill] sm:$0xff] %v8081_v22 }
 0x1a6   :  { %1051 = vmatpush.msrb.mxu2 %v1016_v40  ;;  %v8037_v40 = vld [vmem:[#allocation6 + $0x28] sm:$0xff] }
 0x1a8   :  { %1052 = vmatpush.msrb.mxu2 %v1013_v14  ;;  %v8035_v14 = vld [vmem:[#allocation6 + $0x80] sm:$0xff] }
 0x1a9   :  { %789 = vmatmul.f32.gmra.mxu1 %v8018_v26  ;;  %6318 = vmatmul.msk.f32.gmra.mxu2 %vm700_vm1, %v8020_v18  ;;  %v8027_v63 = vpop.f32.mrf.mxu0  ;;  %12264 = vst [vmem:[#allocation51_spill] sm:$0xff] %v8035_v14  ;;  %v428_v26 = vsel %vm417_vm0, %v7788_v13, -inf }
 0x1aa   :  { %12263 = vst [vmem:[#allocation50_spill] sm:$0xff] %v8027_v63  ;;  %1053 = vmatpush.msrb.mxu2 %v7947_v33 }
 0x1ac   :  { %1054 = vmatpush.msrb.mxu2 %v7940_v16  ;;  %6393 = vmatmul.msk.f32.gmra.mxu0 %vm417_vm0, %v1203_v51  ;;  %v8047_v16 = vpop.f32.mrf.mxu3  ;;  %v419_v51 = vsel %vm417_vm0, %v7760_v5, -inf }
 0x1ae   :  { %1055 = vmatpush.msrb.mxu2 %v7935_v60  ;;  %v8055_v60 = vld [vmem:[#allocation6 + $0x38] sm:$0xff] }
 0x1b0   :  { %1056 = vmatpush.msrb.mxu2 %v7930_v55  ;;  %v8053_v55 = vld [vmem:[#allocation6 + $0x90] sm:$0xff] }
 0x1b1   :  { %792 = vmatmul.f32.gmra.mxu1 %v8035_v14  ;;  %6319 = vmatmul.msk.f32.gmra.mxu2 %vm700_vm1, %v8037_v40  ;;  %v8045_v33 = vpop.f32.mrf.mxu0  ;;  %12266 = vst [vmem:[#allocation53_spill] sm:$0xff] %v8053_v55  ;;  %v426_v14 = vsel %vm417_vm0, %v7783_v11, -inf }
 0x1b2   :  { %12265 = vst [vmem:[#allocation52_spill] sm:$0xff] %v8045_v33  ;;  %1057 = vmatpush.msrb.mxu2 %v7924_v39 }
 0x1b4   :  { %1058 = vmatpush.msrb.mxu2 %v7918_v28  ;;  %6394 = vmatmul.msk.f32.gmra.mxu0 %vm417_vm0, %v1204_v34  ;;  %v8065_v28 = vpop.f32.mrf.mxu3  ;;  %v420_v34 = vsel %vm417_vm0, %v7766_v6, -inf }
 0x1b5   :  { %v427_v59 = vmax.f32 %v420_v34, %v426_v14  ;;  %v438_v34 = vsel %vm417_vm0, %v7813_v23, -inf }
 0x1b6   :  { %1059 = vmatpush.msrb.mxu2 %v7912_v20  ;;  %v8074_v20 = vmul.f32 %v7878_v50, %v7878_v50 }
 0x1b8   :  { %1060 = vmatpush.msrb.mxu2 %v7906_v12  ;;  %v1206_v12 = vmul.f32 %v7870_v47, %v7870_v47 }
 0x1b9   :  { %795 = vmatmul.f32.gmra.mxu1 %v8053_v55  ;;  %6320 = vmatmul.msk.f32.gmra.mxu2 %vm700_vm1, %v8055_v60  ;;  %v8063_v39 = vpop.f32.mrf.mxu0  ;;  %v422_v55 = vsel %vm417_vm0, %v7774_v8, -inf }
 0x1ba   :  { %12267 = vst [vmem:[#allocation54_spill] sm:$0xff] %v8063_v39  ;;  %1061 = vmatpush.msrb.mxu2 %v7900_v61  ;;  %v8083_v61 = vld [vmem:[#allocation6 + $0x48] sm:$0xff] }
 0x1bc   :  { %1062 = vmatpush.msrb.mxu2 %v7894_v57  ;;  %6395 = vmatmul.msk.f32.gmra.mxu0 %vm417_vm0, %v1205_v10  ;;  %v418_v57 = vsel %vm417_vm0, %v7751_v4, -inf  ;;  %v421_v10 = vsel %vm417_vm0, %v7770_v7, -inf  ;;  %v1043_v53 = vpop.f32.mrf.mxu3 }
 0x1bd   :  { %v423_v45 = vmax.f32 %v418_v57, %v422_v55  ;;  %v429_v42 = vmax.f32 %v421_v10, %v428_v26  ;;  %v436_v26 = vsel %vm417_vm0, %v7808_v21, -inf  ;;  %v440_v10 = vsel %vm417_vm0, %v7818_v25, -inf }
 0x1be   :  { %1063 = vmatpush.msrb.mxu2 %v7883_v52  ;;  %v424_v52 = vsel %vm417_vm0, %v7778_v9, -inf }
 0x1bf   :  { %v425_v62 = vmax.f32 %v419_v51, %v424_v52  ;;  %v431_v14 = vmax.f32 %v423_v45, %v430_v37  ;;  %v437_v51 = vmax.f32 %v429_v42, %v436_v26  ;;  %v442_v52 = vsel %vm417_vm0, %v7823_v27, -inf  ;;  %v8134_v26 = vld [vmem:[#allocation6 + $0x58] sm:$0xff] }
 0x1c0   :  { %1064 = vmatpush.msrb.mxu2 %v7874_v48  ;;  %v434_v48 = vsel %vm417_vm0, %v7803_v19, -inf  ;;  %v446_v42 = vsel %vm417_vm0, %v7835_v32, -inf  ;;  %v450_v45 = vsel %vm417_vm0, %v7849_v38, -inf }
 0x1c1   :  { %798 = vmatmul.f32.gmra.mxu1 %v8081_v22  ;;  %6321 = vmatmul.msk.f32.gmra.mxu2 %vm700_vm1, %v8083_v61  ;;  %v8105_v31 = vpop.f32.mrf.mxu0  ;;  %v433_v55 = vmax.f32 %v425_v62, %v432_v46  ;;  %v435_v57 = vmax.f32 %v427_v59, %v434_v48  ;;  %v444_v22 = vsel %vm417_vm0, %v7828_v29, -inf  ;;  %v439_v63 = vmax.f32 %v431_v14, %v438_v34  ;;  %v8132_v48 = vld [vmem:[#allocation6 + $0xb0] sm:$0xff] }
 0x1c2   :  { %12269 = vst [vmem:[#allocation56_spill] sm:$0xff] %v8105_v31  ;;  %v445_v62 = vmax.f32 %v437_v51, %v444_v22  ;;  %v448_v59 = vsel %vm417_vm0, %v7842_v35, -inf  ;;  %v452_v46 = vsel %vm417_vm0, %v7856_v41, -inf  ;;  %v456_v51 = vsel %vm417_vm0, %v7870_v47, -inf }
 0x1c3   :  { %v441_v33 = vmax.f32 %v433_v55, %v440_v10  ;;  %v443_v37 = vmax.f32 %v435_v57, %v442_v52  ;;  %v454_v57 = vsel %vm417_vm0, %v7863_v44, -inf  ;;  %v458_v34 = vsel %vm417_vm0, %v7878_v50, -inf }
 0x1c4   :  { %6396 = vmatmul.msk.f32.gmra.mxu0 %vm417_vm0, %v1206_v12  ;;  %v447_v12 = vmax.f32 %v439_v63, %v446_v42  ;;  %v453_v22 = vmax.f32 %v445_v62, %v452_v46  ;;  %v460_v10 = vsel %vm417_vm0, %v7887_v54, -inf  ;;  %v475_v62 = vsel %vm417_vm0, %v7760_v5, inf }
 0x1c5   :  { %v449_v14 = vmax.f32 %v441_v33, %v448_v59  ;;  %v451_v55 = vmax.f32 %v443_v37, %v450_v45  ;;  %v1046_v33 = vpop.f32.mrf.mxu3  ;;  %v474_v37 = vsel %vm417_vm0, %v7751_v4, inf  ;;  %v476_v42 = vsel %vm417_vm0, %v7766_v6, inf }
 0x1c6   :  { %v455_v52 = vmax.f32 %v447_v12, %v454_v57  ;;  %v461_v31 = vmax.f32 %v453_v22, %v460_v10  ;;  %v477_v59 = vsel %vm417_vm0, %v7770_v7, inf  ;;  %1125 = vmatpush.msrb.mxu1 %v1046_v33  ;;  %v478_v12 = vsel %vm417_vm0, %v7774_v8, inf  ;;  %v8175_v22 = vld [vmem:[#allocation6 + $0xc0] sm:$0xff] }
 0x1c7   :  { %v457_v49 = vmax.f32 %v449_v14, %v456_v51  ;;  %v459_v39 = vmax.f32 %v451_v55, %v458_v34  ;;  %v480_v14 = vsel %vm417_vm0, %v7778_v9, inf  ;;  %v479_v55 = vmin.f32 %v474_v37, %v478_v12  ;;  %v8214_v12 = vld [vmem:[#allocation6 + $0xd0] sm:$0xff] }
 0x1c8   :  { %v481_v4 = vmin.f32 %v475_v62, %v480_v14  ;;  %v482_v5 = vsel %vm417_vm0, %v7783_v11, inf  ;;  %v484_v6 = vsel %vm417_vm0, %v7788_v13, inf  ;;  %1126 = vmatpush.msrb.mxu1 %v1043_v53  ;;  %v486_v8 = vsel %vm417_vm0, %v7793_v15, inf }
 0x1c9   :  { %801 = vmatmul.f32.gmra.mxu1 %v8132_v48  ;;  %6322 = vmatmul.msk.f32.gmra.mxu2 %vm700_vm1, %v8134_v26  ;;  %v8147_v63 = vpop.f32.mrf.mxu0  ;;  %v462_v45 = vmax.f32 %v455_v52, %v457_v49  ;;  %v463_v46 = vmax.f32 %v459_v39, %v461_v31  ;;  %v483_v49 = vmin.f32 %v476_v42, %v482_v5  ;;  %v488_v9 = vsel %vm417_vm0, %v7798_v17, inf }
 0x1ca   :  { %v485_v31 = vmin.f32 %v477_v59, %v484_v6  ;;  %v487_v39 = vmin.f32 %v479_v55, %v486_v8  ;;  %v490_v11 = vsel %vm417_vm0, %v7803_v19, inf  ;;  %v492_v13 = vsel %vm417_vm0, %v7808_v21, inf  ;;  %1127 = vmatpush.msrb.mxu1 %v8065_v28  ;;  %v8236_v55 = vld [vmem:[#allocation6 + $0x98] sm:$0xff] }
 0x1cb   :  { %v464_v7 = vmax.f32 %v462_v45, %v463_v46  ;;  %v489_v53 = vmin.f32 %v481_v4, %v488_v9  ;;  %v491_v57 = vmin.f32 %v483_v49, %v490_v11  ;;  %v494_v51 = vsel %vm417_vm0, %v7813_v23, inf  ;;  %v8248_v6 = vld [vmem:[#allocation6 + $0xb8] sm:$0xff] }
 0x1cc   :  { %6397 = vmatmul.msk.f32.gmra.mxu0 %vm417_vm0, %v8074_v20  ;;  %v8177_v20 = vld [vmem:[#allocation6 + $0x68] sm:$0xff]  ;;  %v493_v15 = vmin.f32 %v485_v31, %v492_v13  ;;  %v495_v17 = vmin.f32 %v487_v39, %v494_v51  ;;  %v496_v19 = vsel %vm417_vm0, %v7818_v25, inf  ;;  %v498_v21 = vsel %vm417_vm0, %v7823_v27, inf  ;;  %1128 = vmatpush.msrb.mxu1 %v8047_v16  ;;  %v8260_v9 = vld [vmem:[#allocation6 + $0xd8] sm:$0xff] }
 0x1cd   :  { %465 = vmax.xlane.f32.xlu0 %v464_v7  ;;  %v500_v34 = vsel %vm417_vm0, %v7828_v29, inf  ;;  %v497_v10 = vmin.f32 %v489_v53, %v496_v19  ;;  %v499_v28 = vmin.f32 %v491_v57, %v498_v21  ;;  %v502_v33 = vsel %vm417_vm0, %v7835_v32, inf  ;;  %v8254_v31 = vld [vmem:[#allocation6 + $0xc8] sm:$0xff]  ;;  %v8274_v51 = vld [vmem:[#allocation6 + $0xf8] sm:$0xff] }
 0x1ce   :  { %v501_v52 = vmin.f32 %v493_v15, %v500_v34  ;;  %v503_v25 = vmin.f32 %v495_v17, %v502_v33  ;;  %v504_v27 = vsel %vm417_vm0, %v7842_v35, inf  ;;  %v506_v29 = vsel %vm417_vm0, %v7849_v38, inf  ;;  %1129 = vmatpush.msrb.mxu1 %v8029_v56  ;;  %v8266_v53 = vld [vmem:[#allocation6 + $0xe8] sm:$0xff]  ;;  %v12270_v33 = vld [vmem:[#allocation56_spill] sm:$0xff] }
 0x1cf   :  { %v508_v16 = vsel %vm417_vm0, %v7856_v41, inf  ;;  %v505_v32 = vmin.f32 %v497_v10, %v504_v27  ;;  %v507_v37 = vmin.f32 %v499_v28, %v506_v29  ;;  %v510_v42 = vsel %vm417_vm0, %v7863_v44, inf  ;;  %v8216_v44 = vld [vmem:[#allocation6 + $0x78] sm:$0xff]  ;;  %v8284_v21 = vld [vmem:[#allocation6 + $0x108] sm:$0xf]  ;;  %v12272_v27 = vld [vmem:[#allocation40_spill] sm:$0xff] }
 0x1d0   :  { %v509_v62 = vmin.f32 %v501_v52, %v508_v16  ;;  %v511_v59 = vmin.f32 %v503_v25, %v510_v42  ;;  %v512_v45 = vsel %vm417_vm0, %v7870_v47, inf  ;;  %v514_v35 = vsel %vm417_vm0, %v7878_v50, inf  ;;  %1130 = vmatpush.msrb.mxu1 %v8015_v58  ;;  %v8225_v58 = vld [vmem:[#allocation6 + $0xe0] sm:$0xff]  ;;  %v12273_v16 = vld [vmem:[#allocation52_spill] sm:$0xff] }
 0x1d1   :  { %804 = vmatmul.f32.gmra.mxu1 %v8175_v22  ;;  %6323 = vmatmul.msk.f32.gmra.mxu2 %vm700_vm1, %v8177_v20  ;;  %v8194_v23 = vpop.f32.mrf.mxu0  ;;  %v516_v38 = vsel %vm417_vm0, %v7887_v54, inf  ;;  %v513_v41 = vmin.f32 %v505_v32, %v512_v45  ;;  %v515_v56 = vmin.f32 %v507_v37, %v514_v35  ;;  %v12271_v25 = vld [vmem:[#allocation54_spill] sm:$0xff] }
 0x1d2   :  { %v517_v46 = vmin.f32 %v509_v62, %v516_v38  ;;  %1131 = vmatpush.msrb.mxu1 %v8000_v30  ;;  %v8234_v30 = vld [vmem:[#allocation6 + $0xf0] sm:$0xff]  ;;  %v12274_v32 = vld [vmem:[#allocation50_spill] sm:$0xff] }
 0x1d3   :  { %v518_v14 = vmin.f32 %v511_v59, %v513_v41  ;;  %v12275_v62 = vld [vmem:[#allocation48_spill] sm:$0xff]  ;;  %v12276_v42 = vld [vmem:[#allocation46_spill] sm:$0xff]  ;;  %v12277_v59 = vld [vmem:[#allocation41_spill] sm:$0xff] }
 0x1d4   :  { %6398 = vmatmul.msk.f32.gmra.mxu0 %vm417_vm0, %v8078_v43  ;;  %v519_v47 = vmin.f32 %v515_v56, %v517_v46  ;;  %1132 = vmatpush.msrb.mxu1 %v7990_v24  ;;  %v8227_v43 = vld [vmem:[#allocation6 + $0x88] sm:$0xff]  ;;  %v12278_v56 = vld [vmem:[#allocation42_spill] sm:$0xff] }
 0x1d6   :  { %v520_v50 = vmin.f32 %v518_v14, %v519_v47  ;;  %1648 = vmatpush.msra.mxu1 %v7738_v0 }
 0x1d8   :  { %521 = vmin.xlane.f32.xlu0 %v520_v50  ;;  %1649 = vmatpush.msra.mxu1 %v7740_v1 }
 0x1d9   :  { %807 = vmatmul.f32.gmra.mxu1 %v8214_v12  ;;  %6324 = vmatmul.msk.f32.gmra.mxu2 %vm700_vm1, %v8216_v44  ;;  %v1322_v54 = vpop.f32.mrf.mxu0 }
 0x1da   :  { %1650 = vmatpush.msra.mxu1 %v7744_v2  ;;  %v8241_v2 = vld [vmem:[#allocation6 + $0x100] sm:$0xf] }
 0x1dc   :  { %1651 = vmatpush.msra.mxu1 %v7748_v3  ;;  %v8243_v3 = vld [vmem:[#allocation6 + $0xa8] sm:$0xff] }
 0x1e1   :  { %810 = vmatmul.f32.gmra.mxu1 %v8225_v58  ;;  %6325 = vmatmul.msk.f32.gmra.mxu2 %vm700_vm1, %v8227_v43  ;;  %v1325_v24 = vpop.f32.mrf.mxu0 }
 0x1e9   :  { %813 = vmatmul.f32.gmra.mxu1 %v8234_v30  ;;  %6326 = vmatmul.msk.f32.gmra.mxu2 %vm700_vm1, %v8236_v55  ;;  %v1328_v0 = vpop.f32.mrf.mxu0 }
 0x1ee   :  { %v769_v1 = vpop.f32.mrf.mxu1 }
 0x1f1   :  { %816 = vmatmul.f32.gmra.mxu1 %v8241_v2  ;;  %6327 = vmatmul.msk.f32.gmra.mxu2 %vm700_vm1, %v8243_v3  ;;  %v1331_v4 = vpop.f32.mrf.mxu0 }
 0x1f6   :  { %v772_v5 = vpop.f32.mrf.mxu1 }
 0x1f9   :  { %6328 = vmatmul.msk.f32.gmra.mxu2 %vm700_vm1, %v8248_v6  ;;  %6358 = vmatmul.msk.f32.vlgmr.msrb.gmra.mxu1 %vm700_vm1, %v8005_v36  ;;  %v1334_v7 = vpop.f32.mrf.mxu0 }
 0x1fe   :  { %v775_v49 = vpop.f32.mrf.mxu1 }
 0x201   :  { %6329 = vmatmul.msk.f32.gmra.mxu2 %vm700_vm1, %v8254_v31  ;;  %6359 = vmatmul.msk.f32.gmra.mxu1 %vm700_vm1, %v8020_v18  ;;  %v1337_v8 = vpop.f32.mrf.mxu0 }
 0x206   :  { %v778_v39 = vpop.f32.mrf.mxu1 }
 0x209   :  { %6330 = vmatmul.msk.f32.gmra.mxu2 %vm700_vm1, %v8260_v9  ;;  %6360 = vmatmul.msk.f32.gmra.mxu1 %vm700_vm1, %v8037_v40  ;;  %v1340_v11 = vpop.f32.mrf.mxu0 }
 0x20e   :  { %v781_v13 = vpop.f32.mrf.mxu1 }
 0x211   :  { %6331 = vmatmul.msk.f32.gmra.mxu2 %vm700_vm1, %v8266_v53  ;;  %6361 = vmatmul.msk.f32.gmra.mxu1 %vm700_vm1, %v8055_v60  ;;  %v1343_v57 = vpop.f32.mrf.mxu0 }
 0x212   :  { %1370 = vmatpush.msrb.mxu3 %v1343_v57 }
 0x214   :  { %1371 = vmatpush.msrb.mxu3 %v1340_v11 }
 0x216   :  { %v8272_v15 = vpop.f32.mrf.mxu1  ;;  %1372 = vmatpush.msrb.mxu3 %v1337_v8  ;;  %v12280_v8 = vld [vmem:[#allocation44_spill] sm:$0xff] }
 0x218   :  { %1373 = vmatpush.msrb.mxu3 %v1334_v7 }
 0x219   :  { %6332 = vmatmul.msk.f32.gmra.mxu2 %vm700_vm1, %v8274_v51  ;;  %6362 = vmatmul.msk.f32.gmra.mxu1 %vm700_vm1, %v8083_v61  ;;  %v8280_v17 = vpop.f32.mrf.mxu0 }
 0x21a   :  { %1374 = vmatpush.msrb.mxu3 %v1331_v4 }
 0x21c   :  { %1375 = vmatpush.msrb.mxu3 %v1328_v0 }
 0x21e   :  { %v8282_v19 = vpop.f32.mrf.mxu1  ;;  %1376 = vmatpush.msrb.mxu3 %v1325_v24 }
 0x220   :  { %1377 = vmatpush.msrb.mxu3 %v1322_v54  ;;  %v12279_v54 = vld [vmem:[#allocation43_spill] sm:$0xff] }
 0x221   :  { %6333 = vmatmul.msk.f32.gmra.mxu2 %vm700_vm1, %v8284_v21  ;;  %6363 = vmatmul.msk.f32.gmra.mxu1 %vm700_vm1, %v8134_v26  ;;  %v8290_v34 = vpop.f32.mrf.mxu0 }
 0x222   :  { %1378 = vmatpush.msrb.mxu3 %v8194_v23 }
 0x224   :  { %v837_v10 = vpop.f32.mrf.mxu2  ;;  %1379 = vmatpush.msrb.mxu3 %v8147_v63 }
 0x225   :  { %v8294_v28 = vadd.f32 %v837_v10, %v769_v1 }
 0x226   :  { %v8296_v52 = vpop.f32.mrf.mxu1  ;;  %1380 = vmatpush.msrb.mxu3 %v12270_v33 }
 0x228   :  { %1381 = vmatpush.msrb.mxu3 %v12271_v25 }
 0x229   :  { %1065 = vmatmul.f32.vlgmr.msrb.gmra.mxu2 %v12272_v27  ;;  %6364 = vmatmul.msk.f32.gmra.mxu1 %vm700_vm1, %v8177_v20  ;;  %v8303_v29 = vpop.f32.mrf.mxu0 }
 0x22a   :  { %1382 = vmatpush.msrb.mxu3 %v12273_v16 }
 0x22c   :  { %v840_v23 = vpop.f32.mrf.mxu2  ;;  %1383 = vmatpush.msrb.mxu3 %v12274_v32 }
 0x22d   :  { %v8307_v63 = vadd.f32 %v840_v23, %v772_v5  ;;  %v12281_v23 = vld [vmem:[#allocation45_spill] sm:$0xff] }
 0x22e   :  { %v8309_v37 = vpop.f32.mrf.mxu1  ;;  %1384 = vmatpush.msrb.mxu3 %v12275_v62 }
 0x230   :  { %1385 = vmatpush.msrb.mxu3 %v12276_v42 }
 0x231   :  { %1068 = vmatmul.f32.gmra.mxu2 %v12277_v59  ;;  %6365 = vmatmul.msk.f32.gmra.mxu1 %vm700_vm1, %v8216_v44  ;;  %v1355_v45 = vpop.f32.mrf.mxu0 }
 0x232   :  { %1386 = vmatmul.f32.vlgmr.msrb.gmra.mxu3 %v12272_v27 }
 0x234   :  { %v843_v35 = vpop.f32.mrf.mxu2 }
 0x235   :  { %v8317_v38 = vadd.f32 %v843_v35, %v775_v49 }
 0x236   :  { %v8319_v41 = vpop.f32.mrf.mxu1 }
 0x239   :  { %1071 = vmatmul.f32.gmra.mxu2 %v12278_v56  ;;  %6366 = vmatmul.msk.f32.gmra.mxu1 %vm700_vm1, %v8227_v43  ;;  %v1358_v46 = vpop.f32.mrf.mxu0 }
 0x23a   :  { %1389 = vmatmul.f32.gmra.mxu3 %v12277_v59 }
 0x23c   :  { %v846_v14 = vpop.f32.mrf.mxu2 }
 0x23d   :  { %v8325_v47 = vadd.f32 %v846_v14, %v778_v39 }
 0x23e   :  { %v8327_v50 = vpop.f32.mrf.mxu1 }
 0x240   :  { %v466_v0 = vpop.xlane.xlu0 %465 }
 0x241   :  { %1074 = vmatmul.f32.gmra.mxu2 %v12279_v54  ;;  %6367 = vmatmul.msk.f32.gmra.mxu1 %vm700_vm1, %v8236_v55  ;;  %v1361_v24 = vpop.f32.mrf.mxu0  ;;  %v467_v1 = vrot.slane %v466_v0, 4 }
 0x242   :  { %1392 = vmatmul.f32.gmra.mxu3 %v12278_v56 }
 0x243   :  { %v468_v49 = vmax.f32 %v466_v0, %v467_v1  ;;  %v12282_v1 = vld [vmem:[#allocation47_spill] sm:$0xff] }
 0x244   :  { %v849_v4 = vpop.f32.mrf.mxu2 }
 0x245   :  { %v8333_v5 = vadd.f32 %v849_v4, %v781_v13  ;;  %v469_v11 = vrot.slane %v468_v49, 2 }
 0x246   :  { %v8335_v7 = vpop.f32.mrf.mxu1 }
 0x247   :  { %v470_v27 = vmax.f32 %v468_v49, %v469_v11 }
 0x249   :  { %1077 = vmatmul.f32.gmra.mxu2 %v12280_v8  ;;  %6368 = vmatmul.msk.f32.gmra.mxu1 %vm700_vm1, %v8243_v3  ;;  %v1364_v39 = vpop.f32.mrf.mxu0  ;;  %v471_v62 = vrot.slane %v470_v27, 1 }
 0x24a   :  { %1395 = vmatmul.f32.gmra.mxu3 %v12279_v54 }
 0x24b   :  { %v522_v33 = vpop.xlane.xlu0 %521  ;;  %v472_v59 = vmax.f32 %v470_v27, %v471_v62 }
 0x24c   :  { %v852_v57 = vpop.f32.mrf.mxu2  ;;  %v523_v13 = vrot.slane %v522_v33, 4 }
 0x24d   :  { %v8342_v10 = vadd.f32 %v852_v57, %v8272_v15  ;;  %6806 = vpush %v472_v59 }
 0x24e   :  { %v8344_v25 = vpop.f32.mrf.mxu1  ;;  %v524_v16 = vmin.f32 %v522_v33, %v523_v13  ;;  %v12285_v13 = vld [vmem:[#allocation53_spill] sm:$0xff] }
 0x250   :  { %v525_v42 = vrot.slane %v524_v16, 2 }
 0x251   :  { %1080 = vmatmul.f32.gmra.mxu2 %v12281_v23  ;;  %6369 = vmatmul.msk.f32.gmra.mxu1 %vm700_vm1, %v8248_v6  ;;  %v1367_v32 = vpop.f32.mrf.mxu0 }
 0x252   :  { %1446 = vmatpush.msra.mxu2 %v1367_v32  ;;  %1398 = vmatmul.f32.gmra.mxu3 %v12280_v8  ;;  %v526_v35 = vmin.f32 %v524_v16, %v525_v42  ;;  %v6969_v8 = vld [vmem:[#allocation7 + $0x10] sm:$0xff] }
 0x253   :  { %v8388_v32 = vld [vmem:[#allocation4] sm:$0xff] }
 0x254   :  { %v855_v15 = vpop.f32.mrf.mxu2  ;;  %1447 = vmatpush.msra.mxu2 %v1364_v39  ;;  %v527_v54 = vrot.slane %v526_v35, 1  ;;  %v6970_v39 = vld [vmem:[#allocation7 + $0x8] sm:$0xff]  ;;  %v1540_v62 = vmul.f32 %v8388_v32, %v8388_v32 }
 0x255   :  { %v8351_v56 = vadd.f32 %v855_v15, %v8282_v19 }
 0x256   :  { %v808_v14 = vpop.f32.mrf.mxu1  ;;  %1448 = vmatpush.msra.mxu2 %v1361_v24  ;;  %v528_v0 = vmin.f32 %v526_v35, %v527_v54  ;;  %v8401_v35 = vld [vmem:[#allocation4 + $0x8] sm:$0xff] }
 0x257   :  { %v1541_v54 = vmul.f32 %v8401_v35, %v8401_v35 }
 0x258   :  { %1449 = vmatpush.msra.mxu2 %v1358_v46  ;;  %6808 = vpush %v528_v0  ;;  %v12283_v46 = vld [vmem:[#allocation49_spill] sm:$0xff] }
 0x259   :  { %1083 = vmatmul.f32.gmra.mxu2 %v12282_v1  ;;  %6370 = vmatmul.msk.f32.gmra.mxu1 %vm700_vm1, %v8254_v31 }
 0x25a   :  { %1450 = vmatpush.msra.mxu2 %v1355_v45  ;;  %1401 = vmatmul.f32.gmra.mxu3 %v12281_v23  ;;  %v6968_v45 = vld [vmem:[#allocation7 + $0x18] sm:$0xff] }
 0x25b   :  { %v12286_v23 = vld [vmem:[#allocation55_spill] sm:$0xff] }
 0x25c   :  { %v858_v4 = vpop.f32.mrf.mxu2  ;;  %1451 = vmatpush.msra.mxu2 %v8303_v29 }
 0x25d   :  { %v8359_v19 = vadd.f32 %v858_v4, %v8296_v52  ;;  %v8412_v4 = vld [vmem:[#allocation4 + $0x10] sm:$0xff] }
 0x25e   :  { %v811_v49 = vpop.f32.mrf.mxu1  ;;  %1452 = vmatpush.msra.mxu2 %v8290_v34  ;;  %v6971_v34 = vld [vmem:[#allocation7] sm:$0xff] }
 0x260   :  { %1453 = vmatpush.msra.mxu2 %v8280_v17  ;;  %v12284_v17 = vld [vmem:[#allocation51_spill] sm:$0xff] }
 0x261   :  { %1086 = vmatmul.f32.gmra.mxu2 %v12283_v46  ;;  %6371 = vmatmul.msk.f32.gmra.mxu1 %vm700_vm1, %v8260_v9 }
 0x262   :  { %1404 = vmatmul.f32.gmra.mxu3 %v12282_v1  ;;  %2003 = vmatpush.msrb.mxu2 %v6968_v45 }
 0x264   :  { %v861_v24 = vpop.f32.mrf.mxu2  ;;  %2004 = vmatpush.msrb.mxu2 %v6969_v8 }
 0x265   :  { %v8368_v52 = vadd.f32 %v861_v24, %v8309_v37 }
 0x266   :  { %v814_v29 = vpop.f32.mrf.mxu1  ;;  %2005 = vmatpush.msrb.mxu2 %v6970_v39 }
 0x268   :  { %2006 = vmatpush.msrb.mxu2 %v6971_v34 }
 0x269   :  { %1089 = vmatmul.f32.gmra.mxu2 %v12284_v17  ;;  %6372 = vmatmul.msk.f32.gmra.mxu1 %vm700_vm1, %v8266_v53 }
 0x26a   :  { %1407 = vmatmul.f32.gmra.mxu3 %v12283_v46 }
 0x26c   :  { %v864_v11 = vpop.f32.mrf.mxu2 }
 0x26d   :  { %v8375_v57 = vadd.f32 %v864_v11, %v8319_v41 }
 0x26e   :  { %v817_v33 = vpop.f32.mrf.mxu1 }
 0x271   :  { %1092 = vmatmul.f32.gmra.mxu2 %v12285_v13  ;;  %6373 = vmatmul.msk.f32.gmra.mxu1 %vm700_vm1, %v8274_v51 }
 0x272   :  { %1410 = vmatmul.f32.gmra.mxu3 %v12284_v17 }
 0x274   :  { %v867_v37 = vpop.f32.mrf.mxu2 }
 0x275   :  { %v8382_v27 = vadd.f32 %v867_v37, %v8327_v50 }
 0x276   :  { %v1134_v16 = vpop.f32.mrf.mxu1 }
 0x279   :  { %1095 = vmatmul.f32.gmra.mxu2 %v12286_v23  ;;  %6374 = vmatmul.msk.f32.gmra.mxu1 %vm700_vm1, %v8284_v21 }
 0x27a   :  { %1413 = vmatmul.f32.gmra.mxu3 %v12285_v13 }
 0x27c   :  { %v870_v41 = vpop.f32.mrf.mxu2 }
 0x27d   :  { %v8393_v42 = vadd.f32 %v870_v41, %v8335_v7  ;;  %v2574_v41 = vmul.f32 2.0, %v8294_v28 }
 0x27e   :  { %v1137_v59 = vpop.f32.mrf.mxu1  ;;  %s6807_s17 = spop %6806 }
 0x27f   :  { %p530_p0 = scmp.gt.f32.partialorder %s6807_s17, 128.0 }
 0x281   :  { %1098 = vmatmul.f32.gmra.mxu2 %v8132_v48  ;;  %6416 = vmatmul.msk.f32.vlgmr.msra.gmra.mxu1 %vm417_vm0, %v1540_v62  ;;  %v8455_v62 = vld [vmem:[#allocation4 + $0x30] sm:$0xff]  ;;  %s531_s29 = scalar_select %p530_p0, 255.0, 1.0 }
 0x282   :  { %1416 = vmatmul.f32.gmra.mxu3 %v12286_v23 }
 0x284   :  { %v873_v50 = vpop.f32.mrf.mxu2 }
 0x285   :  { %v8399_v15 = vadd.f32 %v873_v50, %v8344_v25  ;;  %v1542_v25 = vmul.f32 %v8412_v4, %v8412_v4 }
 0x286   :  { %v8405_v0 = vpop.f32.mrf.mxu1 }
 0x289   :  { %1101 = vmatmul.f32.gmra.mxu2 %v8175_v22  ;;  %6417 = vmatmul.msk.f32.gmra.mxu1 %vm417_vm0, %v1541_v54  ;;  %s6809_s18 = spop %6808 }
 0x28a   :  { %1419 = vmatmul.f32.gmra.mxu3 %v8132_v48  ;;  %v8423_v48 = vld [vmem:[#allocation4 + $0x18] sm:$0xff]  ;;  %p532_p1 = scmp.lt.f32.partialorder %s6809_s18, -0.5 }
 0x28c   :  { %v876_v7 = vpop.f32.mrf.mxu2  ;;  %s533_s27 = scalar_select %p532_p1, -1.0, 0.0 }
 0x28d   :  { %v8410_v1 = vadd.f32 %v876_v7, %v808_v14  ;;  %v1543_v14 = vmul.f32 %v8423_v48, %v8423_v48  ;;  %v8465_v7 = vmul.f32 %v8294_v28, %v8294_v28 }
 0x28e   :  { %v8416_v46 = vpop.f32.mrf.mxu1  ;;  %s9434_s5 = ssub.f32 %s531_s29, %s533_s27 }
 0x290   :  { %s535_s6 = smul.f32 0.01, %s9434_s5 }
 0x291   :  { %1104 = vmatmul.f32.gmra.mxu2 %v8214_v12  ;;  %6418 = vmatmul.msk.f32.gmra.mxu1 %vm417_vm0, %v1542_v25  ;;  %s537_s8 = smul.f32 0.03, %s9434_s5 }
 0x292   :  { %1422 = vmatmul.f32.gmra.mxu3 %v8175_v22  ;;  %v8434_v22 = vld [vmem:[#allocation4 + $0x20] sm:$0xff]  ;;  %s536_s3 = smul.f32 %s535_s6, %s535_s6 }
 0x293   :  { %s538_s24 = smul.f32 %s537_s8, %s537_s8 }
 0x294   :  { %v879_v45 = vpop.f32.mrf.mxu2 }
 0x295   :  { %v8421_v24 = vadd.f32 %v879_v45, %v811_v49  ;;  %v1544_v49 = vmul.f32 %v8434_v22, %v8434_v22 }
 0x296   :  { %v8427_v8 = vpop.f32.mrf.mxu1 }
 0x299   :  { %1107 = vmatmul.f32.gmra.mxu2 %v8225_v58  ;;  %6419 = vmatmul.msk.f32.gmra.mxu1 %vm417_vm0, %v1543_v14  ;;  %v2575_v14 = vmul.f32 2.0, %v8307_v63 }
 0x29a   :  { %1425 = vmatmul.f32.gmra.mxu3 %v8214_v12  ;;  %v8445_v12 = vld [vmem:[#allocation4 + $0x28] sm:$0xff] }
 0x29c   :  { %v882_v39 = vpop.f32.mrf.mxu2 }
 0x29d   :  { %v8432_v34 = vadd.f32 %v882_v39, %v814_v29  ;;  %v1545_v29 = vmul.f32 %v8445_v12, %v8445_v12 }
 0x29e   :  { %v8438_v17 = vpop.f32.mrf.mxu1 }
 0x2a1   :  { %1110 = vmatmul.f32.gmra.mxu2 %v8234_v30  ;;  %6420 = vmatmul.msk.f32.gmra.mxu1 %vm417_vm0, %v1544_v49  ;;  %v8481_v49 = vld [vmem:[#allocation4 + $0x38] sm:$0xff] }
 0x2a2   :  { %1428 = vmatmul.f32.gmra.mxu3 %v8225_v58 }
 0x2a4   :  { %v885_v11 = vpop.f32.mrf.mxu2 }
 0x2a5   :  { %v8443_v13 = vadd.f32 %v885_v11, %v817_v33  ;;  %v1546_v33 = vmul.f32 %v8455_v62, %v8455_v62 }
 0x2a6   :  { %v8449_v37 = vpop.f32.mrf.mxu1 }
 0x2a9   :  { %1113 = vmatmul.f32.gmra.mxu2 %v8241_v2  ;;  %6421 = vmatmul.msk.f32.gmra.mxu1 %vm417_vm0, %v1545_v29  ;;  %v8491_v29 = vmul.f32 %v8307_v63, %v8307_v63 }
 0x2aa   :  { %1431 = vmatmul.f32.gmra.mxu3 %v8234_v30 }
 0x2ab   :  { %12291 = vst [vmem:[#allocation50_spill] sm:$0xff] %v8491_v29 }
 0x2ac   :  { %v1066_v23 = vpop.f32.mrf.mxu2 }
 0x2ad   :  { %v1135_v58 = vadd.f32 %v1134_v16, %v1066_v23 }
 0x2ae   :  { %v8459_v50 = vpop.f32.mrf.mxu1 }
 0x2af   :  { %v8461_v54 = vmul.f32 %v2574_v41, %v1135_v58  ;;  %v8467_v25 = vmul.f32 %v1135_v58, %v1135_v58  ;;  %v8470_v30 = vmul.f32 %v1135_v58, %v8294_v28  ;;  %v1547_v28 = vmul.f32 %v8481_v49, %v8481_v49 }
 0x2b0   :  { %v2576_v58 = vmul.f32 2.0, %v8317_v38 }
 0x2b1   :  { %12287 = vst [vmem:[#allocation56_spill] sm:$0xff] %v8461_v54  ;;  %6399 = vmatmul.msk.f32.vlgmr.msra.gmra.mxu2 %vm700_vm1, %v8005_v36  ;;  %6422 = vmatmul.msk.f32.gmra.mxu1 %vm417_vm0, %v1546_v33  ;;  %v8477_v16 = vadd.f32 %v8467_v25, %v8465_v7  ;;  %v8559_v54 = vld [vmem:[#allocation4 + $0x50] sm:$0xff] }
 0x2b2   :  { %12288 = vst [vmem:[#allocation54_spill] sm:$0xff] %v8470_v30  ;;  %1434 = vmatmul.f32.gmra.mxu3 %v8241_v2 }
 0x2b3   :  { %12289 = vst [vmem:[#allocation40_spill] sm:$0xff] %v8477_v16  ;;  %v8637_v16 = vld [vmem:[#allocation4 + $0x68] sm:$0xff] }
 0x2b4   :  { %v1069_v45 = vpop.f32.mrf.mxu2 }
 0x2b5   :  { %v1138_v39 = vadd.f32 %v1137_v59, %v1069_v45  ;;  %v8507_v45 = vld [vmem:[#allocation4 + $0x40] sm:$0xff] }
 0x2b6   :  { %v8485_v11 = vpop.f32.mrf.mxu1 }
 0x2b7   :  { %v8487_v36 = vmul.f32 %v2575_v14, %v1138_v39  ;;  %v8493_v23 = vmul.f32 %v1138_v39, %v1138_v39  ;;  %v8496_v2 = vmul.f32 %v1138_v39, %v8307_v63  ;;  %v1548_v63 = vmul.f32 %v8507_v45, %v8507_v45 }
 0x2b9   :  { %12290 = vst [vmem:[#allocation52_spill] sm:$0xff] %v8487_v36  ;;  %6400 = vmatmul.msk.f32.gmra.mxu2 %vm700_vm1, %v8020_v18  ;;  %6423 = vmatmul.msk.f32.gmra.mxu1 %vm417_vm0, %v1547_v28  ;;  %v8503_v59 = vadd.f32 %v8493_v23, %v8491_v29  ;;  %v8517_v18 = vmul.f32 %v8317_v38, %v8317_v38 }
 0x2ba   :  { %12292 = vst [vmem:[#allocation48_spill] sm:$0xff] %v8493_v23 }
 0x2bb   :  { %12293 = vst [vmem:[#allocation46_spill] sm:$0xff] %v8496_v2 }
 0x2bc   :  { %12294 = vst [vmem:[#allocation41_spill] sm:$0xff] %v8503_v59  ;;  %v1072_v41 = vpop.f32.mrf.mxu2  ;;  %v8611_v59 = vld [vmem:[#allocation4 + $0x60] sm:$0xff] }
 0x2bd   :  { %v1141_v33 = vadd.f32 %v8405_v0, %v1072_v41  ;;  %12296 = vst [vmem:[#allocation43_spill] sm:$0xff] %v8517_v18 }
 0x2be   :  { %v8511_v14 = vpop.f32.mrf.mxu1 }
 0x2bf   :  { %v8513_v39 = vmul.f32 %v2576_v58, %v1141_v33  ;;  %v8519_v28 = vmul.f32 %v1141_v33, %v1141_v33  ;;  %v8522_v2 = vmul.f32 %v1141_v33, %v8317_v38  ;;  %v2577_v58 = vmul.f32 2.0, %v8325_v47 }
 0x2c1   :  { %12295 = vst [vmem:[#allocation42_spill] sm:$0xff] %v8513_v39  ;;  %6401 = vmatmul.msk.f32.gmra.mxu2 %vm700_vm1, %v8037_v40  ;;  %6424 = vmatmul.msk.f32.gmra.mxu1 %vm417_vm0, %v1548_v63  ;;  %v8529_v0 = vadd.f32 %v8519_v28, %v8517_v18  ;;  %v8533_v39 = vld [vmem:[#allocation4 + $0x48] sm:$0xff]  ;;  %v8543_v40 = vmul.f32 %v8325_v47, %v8325_v47 }
 0x2c2   :  { %12297 = vst [vmem:[#allocation44_spill] sm:$0xff] %v8519_v28  ;;  %v1549_v38 = vmul.f32 %v8533_v39, %v8533_v39 }
 0x2c3   :  { %12298 = vst [vmem:[#allocation45_spill] sm:$0xff] %v8522_v2 }
 0x2c4   :  { %12299 = vst [vmem:[#allocation47_spill] sm:$0xff] %v8529_v0  ;;  %v1075_v41 = vpop.f32.mrf.mxu2  ;;  %v8585_v0 = vld [vmem:[#allocation4 + $0x58] sm:$0xff] }
 0x2c5   :  { %v1144_v30 = vadd.f32 %v8416_v46, %v1075_v41 }
 0x2c6   :  { %v8537_v33 = vpop.f32.mrf.mxu1 }
 0x2c7   :  { %v8539_v2 = vmul.f32 %v2577_v58, %v1144_v30  ;;  %v8545_v63 = vmul.f32 %v1144_v30, %v1144_v30  ;;  %v8548_v36 = vmul.f32 %v1144_v30, %v8325_v47  ;;  %v2578_v58 = vmul.f32 2.0, %v8333_v5 }
 0x2c8   :  { %v1550_v47 = vmul.f32 %v8559_v54, %v8559_v54 }
 0x2c9   :  { %12300 = vst [vmem:[#allocation49_spill] sm:$0xff] %v8539_v2  ;;  %6402 = vmatmul.msk.f32.gmra.mxu2 %vm700_vm1, %v8055_v60  ;;  %6425 = vmatmul.msk.f32.gmra.mxu1 %vm417_vm0, %v1549_v38  ;;  %v8555_v46 = vadd.f32 %v8545_v63, %v8543_v40  ;;  %v8569_v60 = vmul.f32 %v8333_v5, %v8333_v5 }
 0x2ca   :  { %12301 = vst [vmem:[#allocation51_spill] sm:$0xff] %v8545_v63  ;;  %v8871_v63 = vld [vmem:[#allocation4 + $0xb0] sm:$0xff] }
 0x2cb   :  { %12302 = vst [vmem:[#allocation53_spill] sm:$0xff] %v8548_v36 }
 0x2cc   :  { %12303 = vst [vmem:[#allocation55_spill] sm:$0xff] %v8555_v46  ;;  %v1078_v41 = vpop.f32.mrf.mxu2 }
 0x2cd   :  { %v1147_v2 = vadd.f32 %v8427_v8, %v1078_v41  ;;  %12305 = vst [vmem:[#allocation58_spill] sm:$0xff] %v8569_v60 }
 0x2ce   :  { %v8563_v30 = vpop.f32.mrf.mxu1 }
 0x2cf   :  { %v8565_v36 = vmul.f32 %v2578_v58, %v1147_v2  ;;  %v8571_v38 = vmul.f32 %v1147_v2, %v1147_v2  ;;  %v8574_v46 = vmul.f32 %v1147_v2, %v8333_v5  ;;  %v2579_v58 = vmul.f32 2.0, %v8342_v10 }
 0x2d0   :  { %v1551_v5 = vmul.f32 %v8585_v0, %v8585_v0 }
 0x2d1   :  { %12304 = vst [vmem:[#allocation57_spill] sm:$0xff] %v8565_v36  ;;  %6403 = vmatmul.msk.f32.gmra.mxu2 %vm700_vm1, %v8083_v61  ;;  %6426 = vmatmul.msk.f32.gmra.mxu1 %vm417_vm0, %v1550_v47  ;;  %v8581_v8 = vadd.f32 %v8571_v38, %v8569_v60  ;;  %v8595_v61 = vmul.f32 %v8342_v10, %v8342_v10  ;;  %v8962_v60 = vld [vmem:[#allocation2 + $0x30] sm:$0xff] }
 0x2d2   :  { %12306 = vst [vmem:[#allocation59_spill] sm:$0xff] %v8571_v38  ;;  %v8819_v38 = vld [vmem:[#allocation4 + $0xa0] sm:$0xff] }
 0x2d3   :  { %12307 = vst [vmem:[#allocation60_spill] sm:$0xff] %v8574_v46 }
 0x2d4   :  { %12308 = vst [vmem:[#allocation61_spill] sm:$0xff] %v8581_v8  ;;  %v1081_v41 = vpop.f32.mrf.mxu2 }
 0x2d5   :  { %v1150_v36 = vadd.f32 %v8438_v17, %v1081_v41  ;;  %12310 = vst [vmem:[#allocation63_spill] sm:$0xff] %v8595_v61 }
 0x2d6   :  { %v8589_v2 = vpop.f32.mrf.mxu1  ;;  %12372 = vst [vmem:[#allocation125_spill] sm:$0xff] %v8962_v60 }
 0x2d7   :  { %v8591_v46 = vmul.f32 %v2579_v58, %v1150_v36  ;;  %v8597_v47 = vmul.f32 %v1150_v36, %v1150_v36  ;;  %v8600_v8 = vmul.f32 %v1150_v36, %v8342_v10  ;;  %v2580_v58 = vmul.f32 2.0, %v8351_v56 }
 0x2d8   :  { %v1552_v10 = vmul.f32 %v8611_v59, %v8611_v59 }
 0x2d9   :  { %12309 = vst [vmem:[#allocation62_spill] sm:$0xff] %v8591_v46  ;;  %6404 = vmatmul.msk.f32.gmra.mxu2 %vm700_vm1, %v8134_v26  ;;  %6427 = vmatmul.msk.f32.gmra.mxu1 %vm417_vm0, %v1551_v5  ;;  %v8607_v17 = vadd.f32 %v8597_v47, %v8595_v61  ;;  %v8621_v26 = vmul.f32 %v8351_v56, %v8351_v56 }
 0x2da   :  { %12311 = vst [vmem:[#allocation64_spill] sm:$0xff] %v8597_v47  ;;  %v8793_v47 = vld [vmem:[#allocation4 + $0x98] sm:$0xff] }
 0x2db   :  { %12312 = vst [vmem:[#allocation65_spill] sm:$0xff] %v8600_v8 }
 0x2dc   :  { %12313 = vst [vmem:[#allocation66_spill] sm:$0xff] %v8607_v17  ;;  %v1084_v41 = vpop.f32.mrf.mxu2 }
 0x2dd   :  { %v1153_v46 = vadd.f32 %v8449_v37, %v1084_v41  ;;  %12315 = vst [vmem:[#allocation68_spill] sm:$0xff] %v8621_v26 }
 0x2de   :  { %v8615_v36 = vpop.f32.mrf.mxu1 }
 0x2df   :  { %v8617_v8 = vmul.f32 %v2580_v58, %v1153_v46  ;;  %v8623_v5 = vmul.f32 %v1153_v46, %v1153_v46  ;;  %v8626_v17 = vmul.f32 %v1153_v46, %v8351_v56  ;;  %v2581_v58 = vmul.f32 2.0, %v8359_v19 }
 0x2e0   :  { %v1553_v56 = vmul.f32 %v8637_v16, %v8637_v16 }
 0x2e1   :  { %12314 = vst [vmem:[#allocation67_spill] sm:$0xff] %v8617_v8  ;;  %6405 = vmatmul.msk.f32.gmra.mxu2 %vm700_vm1, %v8177_v20  ;;  %6428 = vmatmul.msk.f32.gmra.mxu1 %vm417_vm0, %v1552_v10  ;;  %v8633_v37 = vadd.f32 %v8623_v5, %v8621_v26  ;;  %v8647_v20 = vmul.f32 %v8359_v19, %v8359_v19 }
 0x2e2   :  { %12316 = vst [vmem:[#allocation69_spill] sm:$0xff] %v8623_v5  ;;  %v8663_v5 = vld [vmem:[#allocation4 + $0x70] sm:$0xff] }
 0x2e3   :  { %12317 = vst [vmem:[#allocation70_spill] sm:$0xff] %v8626_v17 }
 0x2e4   :  { %12318 = vst [vmem:[#allocation71_spill] sm:$0xff] %v8633_v37  ;;  %v1087_v41 = vpop.f32.mrf.mxu2 }
 0x2e5   :  { %v1156_v8 = vadd.f32 %v8459_v50, %v1087_v41 }
 0x2e6   :  { %v8641_v46 = vpop.f32.mrf.mxu1 }
 0x2e7   :  { %v8643_v17 = vmul.f32 %v2581_v58, %v1156_v8  ;;  %v8649_v10 = vmul.f32 %v1156_v8, %v1156_v8  ;;  %v8652_v37 = vmul.f32 %v1156_v8, %v8359_v19  ;;  %v2582_v58 = vmul.f32 2.0, %v8368_v52 }
 0x2e8   :  { %v1554_v19 = vmul.f32 %v8663_v5, %v8663_v5 }
 0x2e9   :  { %12319 = vst [vmem:[#allocation72_spill] sm:$0xff] %v8643_v17  ;;  %6406 = vmatmul.msk.f32.gmra.mxu2 %vm700_vm1, %v8216_v44  ;;  %6429 = vmatmul.msk.f32.gmra.mxu1 %vm417_vm0, %v1553_v56  ;;  %v8659_v50 = vadd.f32 %v8649_v10, %v8647_v20  ;;  %v8673_v44 = vmul.f32 %v8368_v52, %v8368_v52 }
 0x2ea   :  { %12320 = vst [vmem:[#allocation73_spill] sm:$0xff] %v8649_v10  ;;  %v8689_v10 = vld [vmem:[#allocation4 + $0x78] sm:$0xff] }
 0x2eb   :  { %12321 = vst [vmem:[#allocation74_spill] sm:$0xff] %v8652_v37 }
 0x2ec   :  { %12322 = vst [vmem:[#allocation75_spill] sm:$0xff] %v8659_v50  ;;  %v1090_v41 = vpop.f32.mrf.mxu2 }
 0x2ed   :  { %v1159_v17 = vadd.f32 %v8485_v11, %v1090_v41 }
 0x2ee   :  { %v8667_v8 = vpop.f32.mrf.mxu1 }
 0x2ef   :  { %v8669_v37 = vmul.f32 %v2582_v58, %v1159_v17  ;;  %v8675_v56 = vmul.f32 %v1159_v17, %v1159_v17  ;;  %v8678_v50 = vmul.f32 %v1159_v17, %v8368_v52  ;;  %v2583_v58 = vmul.f32 2.0, %v8375_v57 }
 0x2f0   :  { %v1555_v52 = vmul.f32 %v8689_v10, %v8689_v10 }
 0x2f1   :  { %12323 = vst [vmem:[#allocation76_spill] sm:$0xff] %v8669_v37  ;;  %6407 = vmatmul.msk.f32.gmra.mxu2 %vm700_vm1, %v8227_v43  ;;  %6430 = vmatmul.msk.f32.gmra.mxu1 %vm417_vm0, %v1554_v19  ;;  %v8685_v11 = vadd.f32 %v8675_v56, %v8673_v44  ;;  %v8699_v43 = vmul.f32 %v8375_v57, %v8375_v57 }
 0x2f2   :  { %12324 = vst [vmem:[#allocation77_spill] sm:$0xff] %v8675_v56  ;;  %v8715_v56 = vld [vmem:[#allocation4 + $0x80] sm:$0xff] }
 0x2f3   :  { %12325 = vst [vmem:[#allocation78_spill] sm:$0xff] %v8678_v50 }
 0x2f4   :  { %12326 = vst [vmem:[#allocation79_spill] sm:$0xff] %v8685_v11  ;;  %v1093_v41 = vpop.f32.mrf.mxu2 }
 0x2f5   :  { %v1162_v37 = vadd.f32 %v8511_v14, %v1093_v41 }
 0x2f6   :  { %v8693_v17 = vpop.f32.mrf.mxu1 }
 0x2f7   :  { %v8695_v50 = vmul.f32 %v2583_v58, %v1162_v37  ;;  %v8701_v19 = vmul.f32 %v1162_v37, %v1162_v37  ;;  %v8704_v11 = vmul.f32 %v1162_v37, %v8375_v57  ;;  %v2584_v58 = vmul.f32 2.0, %v8382_v27 }
 0x2f8   :  { %v1556_v57 = vmul.f32 %v8715_v56, %v8715_v56 }
 0x2f9   :  { %12327 = vst [vmem:[#allocation80_spill] sm:$0xff] %v8695_v50  ;;  %6408 = vmatmul.msk.f32.gmra.mxu2 %vm700_vm1, %v8236_v55  ;;  %6431 = vmatmul.msk.f32.gmra.mxu1 %vm417_vm0, %v1555_v52  ;;  %v8711_v14 = vadd.f32 %v8701_v19, %v8699_v43  ;;  %v8725_v55 = vmul.f32 %v8382_v27, %v8382_v27 }
 0x2fa   :  { %12328 = vst [vmem:[#allocation81_spill] sm:$0xff] %v8701_v19  ;;  %v8741_v19 = vld [vmem:[#allocation4 + $0x88] sm:$0xff] }
 0x2fb   :  { %12329 = vst [vmem:[#allocation82_spill] sm:$0xff] %v8704_v11 }
 0x2fc   :  { %12330 = vst [vmem:[#allocation83_spill] sm:$0xff] %v8711_v14  ;;  %v1096_v41 = vpop.f32.mrf.mxu2 }
 0x2fd   :  { %v1165_v50 = vadd.f32 %v8537_v33, %v1096_v41 }
 0x2fe   :  { %v8719_v37 = vpop.f32.mrf.mxu1 }
 0x2ff   :  { %v8721_v11 = vmul.f32 %v2584_v58, %v1165_v50  ;;  %v8727_v52 = vmul.f32 %v1165_v50, %v1165_v50  ;;  %v8730_v14 = vmul.f32 %v1165_v50, %v8382_v27  ;;  %v2585_v58 = vmul.f32 2.0, %v8393_v42 }
 0x300   :  { %v1557_v27 = vmul.f32 %v8741_v19, %v8741_v19 }
 0x301   :  { %12331 = vst [vmem:[#allocation84_spill] sm:$0xff] %v8721_v11  ;;  %6409 = vmatmul.msk.f32.gmra.mxu2 %vm700_vm1, %v8243_v3  ;;  %6432 = vmatmul.msk.f32.gmra.mxu1 %vm417_vm0, %v1556_v57  ;;  %v8737_v33 = vadd.f32 %v8727_v52, %v8725_v55  ;;  %v8751_v3 = vmul.f32 %v8393_v42, %v8393_v42 }
 0x302   :  { %12332 = vst [vmem:[#allocation85_spill] sm:$0xff] %v8727_v52  ;;  %v8767_v52 = vld [vmem:[#allocation4 + $0x90] sm:$0xff] }
 0x303   :  { %12333 = vst [vmem:[#allocation86_spill] sm:$0xff] %v8730_v14 }
 0x304   :  { %12334 = vst [vmem:[#allocation87_spill] sm:$0xff] %v8737_v33  ;;  %v1099_v41 = vpop.f32.mrf.mxu2 }
 0x305   :  { %v1168_v11 = vadd.f32 %v8563_v30, %v1099_v41  ;;  %12336 = vst [vmem:[#allocation89_spill] sm:$0xff] %v8751_v3 }
 0x306   :  { %v8745_v50 = vpop.f32.mrf.mxu1 }
 0x307   :  { %v8747_v14 = vmul.f32 %v2585_v58, %v1168_v11  ;;  %v8753_v57 = vmul.f32 %v1168_v11, %v1168_v11  ;;  %v8756_v33 = vmul.f32 %v1168_v11, %v8393_v42  ;;  %v2586_v58 = vmul.f32 2.0, %v8399_v15 }
 0x308   :  { %v1558_v42 = vmul.f32 %v8767_v52, %v8767_v52 }
 0x309   :  { %12335 = vst [vmem:[#allocation88_spill] sm:$0xff] %v8747_v14  ;;  %6410 = vmatmul.msk.f32.gmra.mxu2 %vm700_vm1, %v8248_v6  ;;  %6433 = vmatmul.msk.f32.gmra.mxu1 %vm417_vm0, %v1557_v27  ;;  %v8763_v30 = vadd.f32 %v8753_v57, %v8751_v3  ;;  %v8777_v6 = vmul.f32 %v8399_v15, %v8399_v15 }
 0x30a   :  { %12337 = vst [vmem:[#allocation90_spill] sm:$0xff] %v8753_v57 }
 0x30b   :  { %12338 = vst [vmem:[#allocation91_spill] sm:$0xff] %v8756_v33 }
 0x30c   :  { %12339 = vst [vmem:[#allocation92_spill] sm:$0xff] %v8763_v30  ;;  %v1102_v41 = vpop.f32.mrf.mxu2 }
 0x30d   :  { %v1171_v14 = vadd.f32 %v8589_v2, %v1102_v41  ;;  %12341 = vst [vmem:[#allocation94_spill] sm:$0xff] %v8777_v6  ;;  %v1387_v41 = vpop.f32.mrf.mxu3 }
 0x30e   :  { %v8771_v11 = vpop.f32.mrf.mxu1 }
 0x30f   :  { %v8773_v33 = vmul.f32 %v2586_v58, %v1171_v14  ;;  %v8779_v27 = vmul.f32 %v1171_v14, %v1171_v14  ;;  %v8782_v30 = vmul.f32 %v1171_v14, %v8399_v15  ;;  %v1559_v15 = vmul.f32 %v8793_v47, %v8793_v47 }
 0x311   :  { %12340 = vst [vmem:[#allocation93_spill] sm:$0xff] %v8773_v33  ;;  %6411 = vmatmul.msk.f32.gmra.mxu2 %vm700_vm1, %v8254_v31  ;;  %6434 = vmatmul.msk.f32.gmra.mxu1 %vm417_vm0, %v1558_v42  ;;  %v8789_v2 = vadd.f32 %v8779_v27, %v8777_v6  ;;  %v2587_v33 = vmul.f32 2.0, %v8410_v1  ;;  %v8803_v42 = vmul.f32 %v8410_v1, %v8410_v1  ;;  %v9241_v6 = vld [vmem:[#allocation6 + $0xd8] sm:$0xff] }
 0x312   :  { %12342 = vst [vmem:[#allocation95_spill] sm:$0xff] %v8779_v27 }
 0x313   :  { %12343 = vst [vmem:[#allocation96_spill] sm:$0xff] %v8782_v30 }
 0x314   :  { %12344 = vst [vmem:[#allocation97_spill] sm:$0xff] %v8789_v2  ;;  %v1105_v58 = vpop.f32.mrf.mxu2 }
 0x315   :  { %v1174_v57 = vadd.f32 %v8615_v36, %v1105_v58  ;;  %12346 = vst [vmem:[#allocation99_spill] sm:$0xff] %v8803_v42  ;;  %v1390_v58 = vpop.f32.mrf.mxu3 }
 0x316   :  { %v8797_v14 = vpop.f32.mrf.mxu1  ;;  %12408 = vst [vmem:[#allocation161_spill] sm:$0xff] %v9241_v6 }
 0x317   :  { %v8799_v31 = vmul.f32 %v2587_v33, %v1174_v57  ;;  %v8805_v30 = vmul.f32 %v1174_v57, %v1174_v57  ;;  %v8808_v2 = vmul.f32 %v1174_v57, %v8410_v1  ;;  %v1560_v1 = vmul.f32 %v8819_v38, %v8819_v38 }
 0x319   :  { %12345 = vst [vmem:[#allocation98_spill] sm:$0xff] %v8799_v31  ;;  %6412 = vmatmul.msk.f32.gmra.mxu2 %vm700_vm1, %v8260_v9  ;;  %6435 = vmatmul.msk.f32.gmra.mxu1 %vm417_vm0, %v1559_v15  ;;  %v8815_v36 = vadd.f32 %v8805_v30, %v8803_v42  ;;  %v2588_v31 = vmul.f32 2.0, %v8421_v24  ;;  %v8829_v15 = vmul.f32 %v8421_v24, %v8421_v24  ;;  %v9222_v42 = vld [vmem:[#allocation6 + $0xb8] sm:$0xff] }
 0x31a   :  { %12347 = vst [vmem:[#allocation100_spill] sm:$0xff] %v8805_v30  ;;  %v8845_v30 = vld [vmem:[#allocation4 + $0xa8] sm:$0xff] }
 0x31b   :  { %12348 = vst [vmem:[#allocation101_spill] sm:$0xff] %v8808_v2 }
 0x31c   :  { %12349 = vst [vmem:[#allocation102_spill] sm:$0xff] %v8815_v36  ;;  %v1108_v33 = vpop.f32.mrf.mxu2 }
 0x31d   :  { %v1177_v27 = vadd.f32 %v8641_v46, %v1108_v33  ;;  %12351 = vst [vmem:[#allocation104_spill] sm:$0xff] %v8829_v15  ;;  %v2589_v33 = vmul.f32 2.0, %v8432_v34 }
 0x31e   :  { %v8823_v57 = vpop.f32.mrf.mxu1  ;;  %12406 = vst [vmem:[#allocation159_spill] sm:$0xff] %v9222_v42 }
 0x31f   :  { %v8825_v9 = vmul.f32 %v2588_v31, %v1177_v27  ;;  %v8831_v2 = vmul.f32 %v1177_v27, %v1177_v27  ;;  %v8834_v36 = vmul.f32 %v1177_v27, %v8421_v24  ;;  %v1561_v24 = vmul.f32 %v8845_v30, %v8845_v30 }
 0x321   :  { %12350 = vst [vmem:[#allocation103_spill] sm:$0xff] %v8825_v9  ;;  %6413 = vmatmul.msk.f32.gmra.mxu2 %vm700_vm1, %v8266_v53  ;;  %6436 = vmatmul.msk.f32.gmra.mxu1 %vm417_vm0, %v1560_v1  ;;  %v8841_v46 = vadd.f32 %v8831_v2, %v8829_v15  ;;  %v8855_v1 = vmul.f32 %v8432_v34, %v8432_v34  ;;  %v9201_v15 = vld [vmem:[#allocation6 + $0x88] sm:$0xff] }
 0x322   :  { %12352 = vst [vmem:[#allocation105_spill] sm:$0xff] %v8831_v2 }
 0x323   :  { %12353 = vst [vmem:[#allocation106_spill] sm:$0xff] %v8834_v36  ;;  %v1393_v36 = vpop.f32.mrf.mxu3 }
 0x324   :  { %12354 = vst [vmem:[#allocation107_spill] sm:$0xff] %v8841_v46  ;;  %v1111_v31 = vpop.f32.mrf.mxu2 }
 0x325   :  { %v1180_v9 = vadd.f32 %v8667_v8, %v1111_v31  ;;  %12356 = vst [vmem:[#allocation109_spill] sm:$0xff] %v8855_v1 }
 0x326   :  { %v8849_v27 = vpop.f32.mrf.mxu1  ;;  %12400 = vst [vmem:[#allocation153_spill] sm:$0xff] %v9201_v15 }
 0x327   :  { %v8851_v53 = vmul.f32 %v2589_v33, %v1180_v9  ;;  %v8857_v46 = vmul.f32 %v1180_v9, %v1180_v9  ;;  %v8860_v2 = vmul.f32 %v1180_v9, %v8432_v34  ;;  %v2590_v33 = vmul.f32 2.0, %v8443_v13 }
 0x328   :  { %v1562_v34 = vmul.f32 %v8871_v63, %v8871_v63 }
 0x329   :  { %12355 = vst [vmem:[#allocation108_spill] sm:$0xff] %v8851_v53  ;;  %6414 = vmatmul.msk.f32.gmra.mxu2 %vm700_vm1, %v8274_v51  ;;  %6437 = vmatmul.msk.f32.gmra.mxu1 %vm417_vm0, %v1561_v24  ;;  %v8867_v8 = vadd.f32 %v8857_v46, %v8855_v1  ;;  %v8881_v51 = vmul.f32 %v8443_v13, %v8443_v13  ;;  %v9191_v1 = vld [vmem:[#allocation6 + $0xc0] sm:$0xff] }
 0x32a   :  { %12357 = vst [vmem:[#allocation110_spill] sm:$0xff] %v8857_v46 }
 0x32b   :  { %12358 = vst [vmem:[#allocation111_spill] sm:$0xff] %v8860_v2  ;;  %v1396_v46 = vpop.f32.mrf.mxu3 }
 0x32c   :  { %12359 = vst [vmem:[#allocation112_spill] sm:$0xff] %v8867_v8  ;;  %v1114_v31 = vpop.f32.mrf.mxu2 }
 0x32d   :  { %v1183_v53 = vadd.f32 %v8693_v17, %v1114_v31  ;;  %12361 = vst [vmem:[#allocation114_spill] sm:$0xff] %v8881_v51 }
 0x32e   :  { %v8875_v9 = vpop.f32.mrf.mxu1  ;;  %12397 = vst [vmem:[#allocation150_spill] sm:$0xff] %v9191_v1 }
 0x32f   :  { %v8877_v2 = vmul.f32 %v2590_v33, %v1183_v53  ;;  %v8883_v24 = vmul.f32 %v1183_v53, %v1183_v53  ;;  %v8886_v8 = vmul.f32 %v1183_v53, %v8443_v13  ;;  %v8895_v33 = vld [vmem:[#allocation2] sm:$0xff]  ;;  %v8901_v13 = vld [vmem:[#allocation4 + $0xb8] sm:$0xff] }
 0x330   :  { %12365 = vst [vmem:[#allocation118_spill] sm:$0xff] %v8895_v33  ;;  %v1563_v53 = vmul.f32 %v8901_v13, %v8901_v13 }
 0x331   :  { %12360 = vst [vmem:[#allocation113_spill] sm:$0xff] %v8877_v2  ;;  %6415 = vmatmul.msk.f32.gmra.mxu2 %vm700_vm1, %v8284_v21  ;;  %6438 = vmatmul.msk.f32.gmra.mxu1 %vm417_vm0, %v1562_v34  ;;  %v8893_v17 = vadd.f32 %v8883_v24, %v8881_v51  ;;  %v1895_v2 = vmul.f32 %v8895_v33, %v8388_v32  ;;  %v8913_v32 = vld [vmem:[#allocation2 + $0x8] sm:$0xff] }
 0x332   :  { %12362 = vst [vmem:[#allocation115_spill] sm:$0xff] %v8883_v24 }
 0x333   :  { %12363 = vst [vmem:[#allocation116_spill] sm:$0xff] %v8886_v8  ;;  %v1399_v8 = vpop.f32.mrf.mxu3 }
 0x334   :  { %12364 = vst [vmem:[#allocation117_spill] sm:$0xff] %v8893_v17  ;;  %v1455_v31 = vpop.f32.mrf.mxu2 }
 0x335   :  { %v8899_v28 = vadd.f32 %v1455_v31, %v1387_v41  ;;  %12367 = vst [vmem:[#allocation120_spill] sm:$0xff] %v8913_v32  ;;  %v1896_v41 = vmul.f32 %v8913_v32, %v8401_v35  ;;  %v8944_v35 = vld [vmem:[#allocation2 + $0x20] sm:$0xff] }
 0x336   :  { %v8905_v21 = vpop.f32.mrf.mxu1  ;;  %12370 = vst [vmem:[#allocation123_spill] sm:$0xff] %v8944_v35 }
 0x339   :  { %6439 = vmatmul.msk.f32.gmra.mxu1 %vm417_vm0, %v1563_v53  ;;  %6457 = vmatmul.msk.f32.vlgmr.msrb.gmra.mxu2 %vm417_vm0, %v1895_v2  ;;  %v8924_v2 = vld [vmem:[#allocation2 + $0x10] sm:$0xff] }
 0x33a   :  { %12368 = vst [vmem:[#allocation121_spill] sm:$0xff] %v8924_v2 }
 0x33b   :  { %v1402_v53 = vpop.f32.mrf.mxu3 }
 0x33c   :  { %v1458_v17 = vpop.f32.mrf.mxu2 }
 0x33d   :  { %v8911_v24 = vadd.f32 %v1458_v17, %v1390_v58  ;;  %v1897_v58 = vmul.f32 %v8924_v2, %v8412_v4  ;;  %v8953_v4 = vld [vmem:[#allocation2 + $0x28] sm:$0xff] }
 0x33e   :  { %v8917_v31 = vpop.f32.mrf.mxu1  ;;  %12371 = vst [vmem:[#allocation124_spill] sm:$0xff] %v8953_v4 }
 0x33f   :  { %12366 = vst [vmem:[#allocation119_spill] sm:$0xff] %v8911_v24 }
 0x341   :  { %6458 = vmatmul.msk.f32.gmra.mxu2 %vm417_vm0, %v1896_v41  ;;  %v8935_v41 = vld [vmem:[#allocation2 + $0x18] sm:$0xff] }
 0x342   :  { %12369 = vst [vmem:[#allocation122_spill] sm:$0xff] %v8935_v41 }
 0x343   :  { %v1405_v29 = vpop.f32.mrf.mxu3 }
 0x344   :  { %v1461_v34 = vpop.f32.mrf.mxu2 }
 0x345   :  { %v8922_v23 = vadd.f32 %v1461_v34, %v1393_v36  ;;  %v1898_v36 = vmul.f32 %v8935_v41, %v8423_v48 }
 0x346   :  { %v8928_v17 = vpop.f32.mrf.mxu1 }
 0x349   :  { %6459 = vmatmul.msk.f32.gmra.mxu2 %vm417_vm0, %v1897_v58 }
 0x34b   :  { %v1408_v48 = vpop.f32.mrf.mxu3 }
 0x34c   :  { %v1464_v32 = vpop.f32.mrf.mxu2 }
 0x34d   :  { %v8933_v33 = vadd.f32 %v1464_v32, %v1396_v46  ;;  %v1899_v46 = vmul.f32 %v8944_v35, %v8434_v22 }
 0x34e   :  { %v1683_v34 = vpop.f32.mrf.mxu1 }
 0x351   :  { %6460 = vmatmul.msk.f32.gmra.mxu2 %vm417_vm0, %v1898_v36 }
 0x353   :  { %v1411_v22 = vpop.f32.mrf.mxu3 }
 0x354   :  { %v1467_v2 = vpop.f32.mrf.mxu2 }
 0x355   :  { %v8942_v24 = vadd.f32 %v1467_v2, %v1399_v8  ;;  %v1900_v8 = vmul.f32 %v8953_v4, %v8445_v12 }
 0x356   :  { %v1686_v32 = vpop.f32.mrf.mxu1 }
 0x359   :  { %6461 = vmatmul.msk.f32.gmra.mxu2 %vm417_vm0, %v1899_v46  ;;  %v8980_v46 = vld [vmem:[#allocation2 + $0x40] sm:$0xff] }
 0x35b   :  { %v1414_v4 = vpop.f32.mrf.mxu3 }
 0x35c   :  { %v1470_v41 = vpop.f32.mrf.mxu2 }
 0x35d   :  { %v8951_v18 = vadd.f32 %v1470_v41, %v1402_v53  ;;  %v1901_v53 = vmul.f32 %v8962_v60, %v8455_v62 }
 0x35e   :  { %v1689_v2 = vpop.f32.mrf.mxu1 }
 0x361   :  { %6462 = vmatmul.msk.f32.gmra.mxu2 %vm417_vm0, %v1900_v8  ;;  %v8971_v8 = vld [vmem:[#allocation2 + $0x38] sm:$0xff] }
 0x364   :  { %v1473_v35 = vpop.f32.mrf.mxu2 }
 0x365   :  { %v8960_v58 = vadd.f32 %v1473_v35, %v1405_v29  ;;  %v1902_v29 = vmul.f32 %v8971_v8, %v8481_v49 }
 0x366   :  { %v1692_v41 = vpop.f32.mrf.mxu1 }
 0x369   :  { %6463 = vmatmul.msk.f32.gmra.mxu2 %vm417_vm0, %v1901_v53 }
 0x36c   :  { %v1476_v12 = vpop.f32.mrf.mxu2 }
 0x36d   :  { %v8969_v36 = vadd.f32 %v1476_v12, %v1408_v48  ;;  %v1903_v48 = vmul.f32 %v8980_v46, %v8507_v45  ;;  %v1417_v12 = vpop.f32.mrf.mxu3 }
 0x36e   :  { %v1695_v35 = vpop.f32.mrf.mxu1 }
 0x371   :  { %6464 = vmatmul.msk.f32.gmra.mxu2 %vm417_vm0, %v1902_v29 }
 0x374   :  { %v1479_v62 = vpop.f32.mrf.mxu2 }
 0x375   :  { %v8978_v60 = vadd.f32 %v1479_v62, %v1411_v22  ;;  %v8989_v22 = vld [vmem:[#allocation2 + $0x48] sm:$0xff] }
 0x376   :  { %v1698_v53 = vpop.f32.mrf.mxu1  ;;  %v1904_v62 = vmul.f32 %v8989_v22, %v8533_v39 }
 0x377   :  { %1725 = vmatpush.msra.mxu3 %v1698_v53  ;;  %v1420_v53 = vpop.f32.mrf.mxu3 }
 0x379   :  { %1726 = vmatpush.msra.mxu3 %v1695_v35  ;;  %6465 = vmatmul.msk.f32.gmra.mxu2 %vm417_vm0, %v1903_v48 }
 0x37b   :  { %1727 = vmatpush.msra.mxu3 %v1692_v41 }
 0x37c   :  { %v1482_v49 = vpop.f32.mrf.mxu2 }
 0x37d   :  { %v8987_v29 = vadd.f32 %v1482_v49, %v1414_v4  ;;  %1728 = vmatpush.msra.mxu3 %v1689_v2  ;;  %v9002_v2 = vld [vmem:[#allocation2 + $0x50] sm:$0xff] }
 0x37e   :  { %v8993_v45 = vpop.f32.mrf.mxu1  ;;  %v1905_v39 = vmul.f32 %v9002_v2, %v8559_v54  ;;  %v9017_v54 = vld [vmem:[#allocation2 + $0x58] sm:$0xff] }
 0x37f   :  { %1729 = vmatpush.msra.mxu3 %v1686_v32  ;;  %12374 = vst [vmem:[#allocation127_spill] sm:$0xff] %v9017_v54  ;;  %v1906_v48 = vmul.f32 %v9017_v54, %v8585_v0  ;;  %v9032_v0 = vld [vmem:[#allocation2 + $0x60] sm:$0xff]  ;;  %v9072_v32 = vld [vmem:[#allocation6 + $0x30] sm:$0xff]  ;;  %v9246_v54 = vld [vmem:[#allocation6 + $0xe8] sm:$0xff] }
 0x380   :  { %12376 = vst [vmem:[#allocation129_spill] sm:$0xff] %v9032_v0  ;;  %v1907_v49 = vmul.f32 %v9032_v0, %v8611_v59  ;;  %v9226_v0 = vld [vmem:[#allocation6 + $0xc8] sm:$0xff] }
 0x381   :  { %1730 = vmatpush.msra.mxu3 %v1683_v34  ;;  %6466 = vmatmul.msk.f32.gmra.mxu2 %vm417_vm0, %v1904_v62  ;;  %12407 = vst [vmem:[#allocation160_spill] sm:$0xff] %v9226_v0 }
 0x383   :  { %1731 = vmatpush.msra.mxu3 %v8928_v17  ;;  %v1423_v17 = vpop.f32.mrf.mxu3 }
 0x384   :  { %v1485_v4 = vpop.f32.mrf.mxu2 }
 0x385   :  { %v8999_v41 = vadd.f32 %v1485_v4, %v1417_v12  ;;  %1732 = vmatpush.msra.mxu3 %v8917_v31  ;;  %v9044_v4 = vld [vmem:[#allocation2 + $0x68] sm:$0xff] }
 0x386   :  { %v9006_v35 = vpop.f32.mrf.mxu1  ;;  %12378 = vst [vmem:[#allocation131_spill] sm:$0xff] %v9044_v4 }
 0x387   :  { %1733 = vmatpush.msra.mxu3 %v8905_v21 }
 0x389   :  { %1734 = vmatpush.msra.mxu3 %v8875_v9  ;;  %6467 = vmatmul.msk.f32.gmra.mxu2 %vm417_vm0, %v1905_v39 }
 0x38b   :  { %1735 = vmatpush.msra.mxu3 %v8849_v27 }
 0x38c   :  { %v1488_v31 = vpop.f32.mrf.mxu2 }
 0x38d   :  { %v9014_v34 = vadd.f32 %v1488_v31, %v1420_v53  ;;  %1736 = vmatpush.msra.mxu3 %v8823_v57  ;;  %v1426_v57 = vpop.f32.mrf.mxu3  ;;  %v9036_v53 = vld [vmem:[#allocation6] sm:$0xff] }
 0x38e   :  { %v9021_v12 = vpop.f32.mrf.mxu1 }
 0x38f   :  { %12373 = vst [vmem:[#allocation126_spill] sm:$0xff] %v9014_v34  ;;  %1737 = vmatpush.msra.mxu3 %v8797_v14 }
 0x391   :  { %1738 = vmatpush.msra.mxu3 %v8771_v11  ;;  %6468 = vmatmul.msk.f32.gmra.mxu2 %vm417_vm0, %v1906_v48 }
 0x393   :  { %1739 = vmatpush.msra.mxu3 %v8745_v50 }
 0x394   :  { %v1491_v27 = vpop.f32.mrf.mxu2 }
 0x395   :  { %v9029_v21 = vadd.f32 %v1491_v27, %v1423_v17  ;;  %1740 = vmatpush.msra.mxu3 %v8719_v37  ;;  %v1908_v37 = vmul.f32 %v9044_v4, %v8637_v16  ;;  %v1429_v59 = vpop.f32.mrf.mxu3  ;;  %v9048_v17 = vld [vmem:[#allocation6 + $0x10] sm:$0xff] }
 0x396   :  { %v1710_v62 = vpop.f32.mrf.mxu1  ;;  %1741 = vmatmul.f32.vlgmr.msra.gmra.mxu3 %v9036_v53 }
 0x397   :  { %12375 = vst [vmem:[#allocation128_spill] sm:$0xff] %v9029_v21 }
 0x399   :  { %6469 = vmatmul.msk.f32.gmra.mxu2 %vm417_vm0, %v1907_v49 }
 0x39c   :  { %v1494_v50 = vpop.f32.mrf.mxu2 }
 0x39d   :  { %v9042_v14 = vadd.f32 %v1494_v50, %v1426_v57  ;;  %v9056_v57 = vld [vmem:[#allocation2 + $0x70] sm:$0xff]  ;;  %v9060_v50 = vld [vmem:[#allocation6 + $0x20] sm:$0xff]  ;;  %v1432_v9 = vpop.f32.mrf.mxu3 }
 0x39e   :  { %v1713_v39 = vpop.f32.mrf.mxu1  ;;  %1744 = vmatmul.f32.gmra.mxu3 %v9048_v17  ;;  %12380 = vst [vmem:[#allocation133_spill] sm:$0xff] %v9056_v57  ;;  %v1909_v49 = vmul.f32 %v9056_v57, %v8663_v5  ;;  %v9137_v57 = vld [vmem:[#allocation6 + $0x28] sm:$0xff] }
 0x39f   :  { %12377 = vst [vmem:[#allocation130_spill] sm:$0xff] %v9042_v14 }
 0x3a1   :  { %6470 = vmatmul.msk.f32.gmra.mxu2 %vm417_vm0, %v1908_v37 }
 0x3a4   :  { %v1497_v48 = vpop.f32.mrf.mxu2 }
 0x3a5   :  { %v9054_v27 = vadd.f32 %v1497_v48, %v1429_v59  ;;  %v9068_v59 = vld [vmem:[#allocation2 + $0x78] sm:$0xff]  ;;  %v1435_v11 = vpop.f32.mrf.mxu3 }
 0x3a6   :  { %v1716_v16 = vpop.f32.mrf.mxu1  ;;  %1747 = vmatmul.f32.gmra.mxu3 %v9060_v50  ;;  %12382 = vst [vmem:[#allocation135_spill] sm:$0xff] %v9068_v59  ;;  %v1910_v48 = vmul.f32 %v9068_v59, %v8689_v10  ;;  %v9084_v59 = vld [vmem:[#allocation6 + $0x40] sm:$0xff] }
 0x3a7   :  { %12379 = vst [vmem:[#allocation132_spill] sm:$0xff] %v9054_v27  ;;  %v9205_v27 = vld [vmem:[#allocation6 + $0xe0] sm:$0xff] }
 0x3a8   :  { %12401 = vst [vmem:[#allocation154_spill] sm:$0xff] %v9205_v27 }
 0x3a9   :  { %6471 = vmatmul.msk.f32.gmra.mxu2 %vm417_vm0, %v1909_v49 }
 0x3ac   :  { %v1500_v37 = vpop.f32.mrf.mxu2 }
 0x3ad   :  { %v9066_v31 = vadd.f32 %v1500_v37, %v1432_v9  ;;  %v9080_v9 = vld [vmem:[#allocation2 + $0x80] sm:$0xff] }
 0x3ae   :  { %v1719_v5 = vpop.f32.mrf.mxu1  ;;  %1750 = vmatmul.f32.gmra.mxu3 %v9072_v32  ;;  %12384 = vst [vmem:[#allocation137_spill] sm:$0xff] %v9080_v9  ;;  %v1911_v37 = vmul.f32 %v9080_v9, %v8715_v56  ;;  %v9165_v9 = vld [vmem:[#allocation6 + $0x48] sm:$0xff] }
 0x3af   :  { %12381 = vst [vmem:[#allocation134_spill] sm:$0xff] %v9066_v31  ;;  %v9198_v31 = vld [vmem:[#allocation6 + $0xd0] sm:$0xff] }
 0x3b0   :  { %12391 = vst [vmem:[#allocation144_spill] sm:$0xff] %v9165_v9 }
 0x3b1   :  { %6472 = vmatmul.msk.f32.gmra.mxu2 %vm417_vm0, %v1910_v48  ;;  %v9092_v48 = vld [vmem:[#allocation2 + $0x88] sm:$0xff]  ;;  %12399 = vst [vmem:[#allocation152_spill] sm:$0xff] %v9198_v31 }
 0x3b2   :  { %12385 = vst [vmem:[#allocation138_spill] sm:$0xff] %v9092_v48  ;;  %v1912_v56 = vmul.f32 %v9092_v48, %v8741_v19 }
 0x3b4   :  { %v1503_v49 = vpop.f32.mrf.mxu2 }
 0x3b5   :  { %v9078_v26 = vadd.f32 %v1503_v49, %v1435_v11  ;;  %v9096_v49 = vld [vmem:[#allocation6 + $0x50] sm:$0xff] }
 0x3b6   :  { %v1722_v10 = vpop.f32.mrf.mxu1  ;;  %1753 = vmatmul.f32.gmra.mxu3 %v9084_v59 }
 0x3b7   :  { %12383 = vst [vmem:[#allocation136_spill] sm:$0xff] %v9078_v26  ;;  %1801 = vmatpush.msra.mxu0 %v1722_v10  ;;  %v9179_v26 = vld [vmem:[#allocation6 + $0x58] sm:$0xff] }
 0x3b8   :  { %12394 = vst [vmem:[#allocation147_spill] sm:$0xff] %v9179_v26 }
 0x3b9   :  { %1802 = vmatpush.msra.mxu0 %v1719_v5  ;;  %6473 = vmatmul.msk.f32.gmra.mxu2 %vm417_vm0, %v1911_v37  ;;  %v9109_v5 = vld [vmem:[#allocation6 + $0x8] sm:$0xff]  ;;  %v9123_v37 = vld [vmem:[#allocation6 + $0x18] sm:$0xff] }
 0x3bb   :  { %1803 = vmatpush.msra.mxu0 %v1716_v16 }
 0x3bc   :  { %v9090_v11 = vpop.f32.mrf.mxu2 }
 0x3bd   :  { %1804 = vmatpush.msra.mxu0 %v1713_v39  ;;  %v9105_v39 = vld [vmem:[#allocation2 + $0x90] sm:$0xff] }
 0x3be   :  { %1756 = vmatmul.f32.gmra.mxu3 %v9096_v49  ;;  %12386 = vst [vmem:[#allocation139_spill] sm:$0xff] %v9105_v39  ;;  %v1913_v19 = vmul.f32 %v9105_v39, %v8767_v52  ;;  %v9127_v52 = vld [vmem:[#allocation6 + $0x70] sm:$0xff]  ;;  %v9151_v39 = vld [vmem:[#allocation6 + $0x38] sm:$0xff] }
 0x3bf   :  { %1805 = vmatpush.msra.mxu0 %v1710_v62  ;;  %v9113_v62 = vld [vmem:[#allocation6 + $0x60] sm:$0xff] }
 0x3c1   :  { %1806 = vmatpush.msra.mxu0 %v9021_v12  ;;  %6474 = vmatmul.msk.f32.gmra.mxu2 %vm417_vm0, %v1912_v56  ;;  %v9119_v12 = vld [vmem:[#allocation2 + $0x98] sm:$0xff]  ;;  %v9133_v56 = vld [vmem:[#allocation2 + $0xa0] sm:$0xff] }
 0x3c2   :  { %12387 = vst [vmem:[#allocation140_spill] sm:$0xff] %v9119_v12 }
 0x3c3   :  { %1807 = vmatpush.msra.mxu0 %v9006_v35  ;;  %12388 = vst [vmem:[#allocation141_spill] sm:$0xff] %v9133_v56 }
 0x3c4   :  { %v9102_v16 = vpop.f32.mrf.mxu2 }
 0x3c5   :  { %1808 = vmatpush.msra.mxu0 %v8993_v45  ;;  %v1914_v45 = vmul.f32 %v9119_v12, %v8793_v47  ;;  %v9141_v47 = vld [vmem:[#allocation6 + $0x80] sm:$0xff] }
 0x3c6   :  { %6440 = vmatmul.msk.f32.vlgmr.msra.gmra.mxu0 %vm700_vm1, %v9109_v5  ;;  %1759 = vmatmul.f32.gmra.mxu3 %v9113_v62 }
 0x3c9   :  { %6475 = vmatmul.msk.f32.gmra.mxu2 %vm417_vm0, %v1913_v19  ;;  %v1915_v19 = vmul.f32 %v9133_v56, %v8819_v38  ;;  %v9155_v38 = vld [vmem:[#allocation6 + $0x90] sm:$0xff] }
 0x3cc   :  { %v9117_v35 = vpop.f32.mrf.mxu2 }
 0x3ce   :  { %6441 = vmatmul.msk.f32.gmra.mxu0 %vm700_vm1, %v9123_v37  ;;  %1762 = vmatmul.f32.gmra.mxu3 %v9127_v52 }
 0x3d1   :  { %6476 = vmatmul.msk.f32.gmra.mxu2 %vm417_vm0, %v1914_v45  ;;  %v9147_v45 = vld [vmem:[#allocation2 + $0xa8] sm:$0xff] }
 0x3d2   :  { %12389 = vst [vmem:[#allocation142_spill] sm:$0xff] %v9147_v45  ;;  %v1916_v12 = vmul.f32 %v9147_v45, %v8845_v30  ;;  %v9169_v30 = vld [vmem:[#allocation6 + $0xa0] sm:$0xff] }
 0x3d3   :  { %12392 = vst [vmem:[#allocation145_spill] sm:$0xff] %v9169_v30 }
 0x3d4   :  { %v9131_v10 = vpop.f32.mrf.mxu2 }
 0x3d6   :  { %6442 = vmatmul.msk.f32.gmra.mxu0 %vm700_vm1, %v9137_v57  ;;  %1765 = vmatmul.f32.gmra.mxu3 %v9141_v47 }
 0x3d9   :  { %6477 = vmatmul.msk.f32.gmra.mxu2 %vm417_vm0, %v1915_v19  ;;  %v9161_v19 = vld [vmem:[#allocation2 + $0xb0] sm:$0xff] }
 0x3da   :  { %12390 = vst [vmem:[#allocation143_spill] sm:$0xff] %v9161_v19  ;;  %v1917_v48 = vmul.f32 %v9161_v19, %v8871_v63  ;;  %v9183_v63 = vld [vmem:[#allocation6 + $0xb0] sm:$0xff] }
 0x3db   :  { %12395 = vst [vmem:[#allocation148_spill] sm:$0xff] %v9183_v63 }
 0x3dc   :  { %v9145_v61 = vpop.f32.mrf.mxu2 }
 0x3de   :  { %6443 = vmatmul.msk.f32.gmra.mxu0 %vm700_vm1, %v9151_v39  ;;  %1768 = vmatmul.f32.gmra.mxu3 %v9155_v38 }
 0x3e1   :  { %6478 = vmatmul.msk.f32.gmra.mxu2 %vm417_vm0, %v1916_v12  ;;  %v9175_v12 = vld [vmem:[#allocation2 + $0xb8] sm:$0xff] }
 0x3e2   :  { %12393 = vst [vmem:[#allocation146_spill] sm:$0xff] %v9175_v12  ;;  %v1918_v51 = vmul.f32 %v9175_v12, %v8901_v13  ;;  %v9194_v12 = vld [vmem:[#allocation6 + $0x78] sm:$0xff] }
 0x3e3   :  { %12398 = vst [vmem:[#allocation151_spill] sm:$0xff] %v9194_v12 }
 0x3e4   :  { %v9159_v56 = vpop.f32.mrf.mxu2 }
 0x3e6   :  { %6444 = vmatmul.msk.f32.gmra.mxu0 %vm700_vm1, %v9165_v9  ;;  %1771 = vmatmul.f32.gmra.mxu3 %v9169_v30  ;;  %v9252_v9 = vld [vmem:[#allocation6 + $0xf8] sm:$0xff] }
 0x3e9   :  { %6479 = vmatmul.msk.f32.gmra.mxu2 %vm417_vm0, %v1917_v48  ;;  %v9187_v48 = vld [vmem:[#allocation6 + $0x68] sm:$0xff] }
 0x3ea   :  { %12396 = vst [vmem:[#allocation149_spill] sm:$0xff] %v9187_v48 }
 0x3ec   :  { %v9173_v45 = vpop.f32.mrf.mxu2 }
 0x3ee   :  { %6445 = vmatmul.msk.f32.gmra.mxu0 %vm700_vm1, %v9179_v26  ;;  %1774 = vmatmul.f32.gmra.mxu3 %v9183_v63 }
 0x3f1   :  { %6480 = vmatmul.msk.f32.gmra.mxu2 %vm417_vm0, %v1918_v51 }
 0x3f4   :  { %v2029_v19 = vpop.f32.mrf.mxu2 }
 0x3f6   :  { %6446 = vmatmul.msk.f32.gmra.mxu0 %vm700_vm1, %v9187_v48  ;;  %1777 = vmatmul.f32.gmra.mxu3 %v9191_v1  ;;  %v9208_v1 = vld [vmem:[#allocation6 + $0x98] sm:$0xff]  ;;  %v9215_v48 = vld [vmem:[#allocation6 + $0xa8] sm:$0xff] }
 0x3f7   :  { %12402 = vst [vmem:[#allocation155_spill] sm:$0xff] %v9208_v1 }
 0x3f8   :  { %12404 = vst [vmem:[#allocation157_spill] sm:$0xff] %v9215_v48 }
 0x3fc   :  { %v2032_v13 = vpop.f32.mrf.mxu2 }
 0x3fe   :  { %6447 = vmatmul.msk.f32.gmra.mxu0 %vm700_vm1, %v9194_v12  ;;  %1780 = vmatmul.f32.gmra.mxu3 %v9198_v31  ;;  %v9212_v12 = vld [vmem:[#allocation6 + $0xf0] sm:$0xff] }
 0x3ff   :  { %12403 = vst [vmem:[#allocation156_spill] sm:$0xff] %v9212_v12 }
 0x404   :  { %v2035_v51 = vpop.f32.mrf.mxu2 }
 0x406   :  { %6448 = vmatmul.msk.f32.gmra.mxu0 %vm700_vm1, %v9201_v15  ;;  %1783 = vmatmul.f32.gmra.mxu3 %v9205_v27  ;;  %v9219_v15 = vld [vmem:[#allocation6 + $0x100] sm:$0xf] }
 0x407   :  { %12405 = vst [vmem:[#allocation158_spill] sm:$0xff] %v9219_v15 }
 0x40c   :  { %v2038_v4 = vpop.f32.mrf.mxu2 }
 0x40e   :  { %6449 = vmatmul.msk.f32.gmra.mxu0 %vm700_vm1, %v9208_v1  ;;  %1786 = vmatmul.f32.gmra.mxu3 %v9212_v12  ;;  %v9230_v12 = vld [vmem:[#allocation10 + $0x18] sm:$0xff] }
 0x40f   :  { %3060 = vmatpush.msrb.mxu0 %v9230_v12 }
 0x414   :  { %v2041_v31 = vpop.f32.mrf.mxu2 }
 0x416   :  { %6450 = vmatmul.msk.f32.gmra.mxu0 %vm700_vm1, %v9215_v48  ;;  %1789 = vmatmul.f32.gmra.mxu3 %v9219_v15  ;;  %v9233_v48 = vld [vmem:[#allocation10 + $0x10] sm:$0xff]  ;;  %v9236_v15 = vld [vmem:[#allocation10 + $0x8] sm:$0xff] }
 0x417   :  { %3061 = vmatpush.msrb.mxu0 %v9233_v48 }
 0x419   :  { %v1742_v1 = vpop.f32.mrf.mxu3  ;;  %3062 = vmatpush.msrb.mxu0 %v9236_v15 }
 0x41c   :  { %v2044_v27 = vpop.f32.mrf.mxu2 }
 0x41e   :  { %6451 = vmatmul.msk.f32.gmra.mxu0 %vm700_vm1, %v9222_v42  ;;  %v9239_v42 = vld [vmem:[#allocation10] sm:$0xff] }
 0x41f   :  { %3063 = vmatpush.msrb.mxu0 %v9239_v42 }
 0x421   :  { %v1745_v26 = vpop.f32.mrf.mxu3 }
 0x424   :  { %v2047_v14 = vpop.f32.mrf.mxu2 }
 0x426   :  { %6452 = vmatmul.msk.f32.gmra.mxu0 %vm700_vm1, %v9226_v0 }
 0x429   :  { %v1748_v21 = vpop.f32.mrf.mxu3 }
 0x42c   :  { %v2050_v63 = vpop.f32.mrf.mxu2 }
 0x42e   :  { %6453 = vmatmul.msk.f32.gmra.mxu0 %vm700_vm1, %v9241_v6 }
 0x431   :  { %v1751_v6 = vpop.f32.mrf.mxu3 }
 0x434   :  { %v2053_v0 = vpop.f32.mrf.mxu2 }
 0x435   :  { %2080 = vmatpush.msrb.mxu3 %v2053_v0 }
 0x436   :  { %6454 = vmatmul.msk.f32.gmra.mxu0 %vm700_vm1, %v9246_v54 }
 0x437   :  { %2081 = vmatpush.msrb.mxu3 %v2050_v63 }
 0x439   :  { %2082 = vmatpush.msrb.mxu3 %v2047_v14 }
 0x43b   :  { %2083 = vmatpush.msrb.mxu3 %v2044_v27  ;;  %v9259_v27 = vld [vmem:[#allocation6 + $0x108] sm:$0xf] }
 0x43c   :  { %v9250_v30 = vpop.f32.mrf.mxu2 }
 0x43d   :  { %2084 = vmatpush.msrb.mxu3 %v2041_v31 }
 0x43e   :  { %6455 = vmatmul.msk.f32.gmra.mxu0 %vm700_vm1, %v9252_v9 }
 0x43f   :  { %2085 = vmatpush.msrb.mxu3 %v2038_v4  ;;  %v12409_v4 = vsub.f32 %v8899_v28, %v8465_v7  ;;  %v12412_v7 = vld [vmem:[#allocation119_spill] sm:$0xff]  ;;  %v12413_v28 = vld [vmem:[#allocation50_spill] sm:$0xff] }
 0x441   :  { %2086 = vmatpush.msrb.mxu3 %v2035_v51  ;;  %v12411_v51 = vld [vmem:[#allocation118_spill] sm:$0xff] }
 0x443   :  { %v1810_v0 = vpop.f32.mrf.mxu0  ;;  %2087 = vmatpush.msrb.mxu3 %v2032_v13 }
 0x444   :  { %v1811_v3 = vadd.f32 %v1810_v0, %v1742_v1  ;;  %v9256_v34 = vpop.f32.mrf.mxu2  ;;  %v1754_v1 = vpop.f32.mrf.mxu3 }
 0x445   :  { %2088 = vmatpush.msrb.mxu3 %v2029_v19 }
 0x446   :  { %v1878_v14 = vsub.f32 %v1811_v3, %v8467_v25  ;;  %6456 = vmatmul.msk.f32.gmra.mxu0 %vm700_vm1, %v9259_v27  ;;  %v12410_v3 = vld [vmem:[#allocation48_spill] sm:$0xff] }
 0x447   :  { %2089 = vmatpush.msrb.mxu3 %v9173_v45  ;;  %v12414_v45 = vsub.f32 %v12412_v7, %v12413_v28  ;;  %v12420_v28 = vld [vmem:[#allocation121_spill] sm:$0xff] }
 0x448   :  { %v9267_v31 = vadd.f32 %v1878_v14, %v12409_v4  ;;  %v12415_v14 = vld [vmem:[#allocation44_spill] sm:$0xff] }
 0x449   :  { %2090 = vmatpush.msrb.mxu3 %v9159_v56 }
 0x44b   :  { %v1813_v63 = vpop.f32.mrf.mxu0  ;;  %2091 = vmatpush.msrb.mxu3 %v9145_v61 }
 0x44c   :  { %v1814_v19 = vadd.f32 %v1813_v63, %v1745_v26  ;;  %v2062_v25 = vpop.f32.mrf.mxu2  ;;  %v1757_v61 = vpop.f32.mrf.mxu3  ;;  %v12416_v63 = vld [vmem:[#allocation120_spill] sm:$0xff] }
 0x44d   :  { %2092 = vmatpush.msrb.mxu3 %v9131_v10 }
 0x44e   :  { %v1879_v13 = vsub.f32 %v1814_v19, %v12410_v3  ;;  %6498 = vmatmul.msk.f32.vlgmr.msrb.gmra.mxu0 %vm417_vm0, %v12411_v51 }
 0x44f   :  { %2093 = vmatpush.msrb.mxu3 %v9117_v35  ;;  %v12417_v35 = vld [vmem:[#allocation43_spill] sm:$0xff] }
 0x450   :  { %v9279_v0 = vadd.f32 %v1879_v13, %v12414_v45  ;;  %v12418_v19 = vsub.f32 %v8922_v23, %v12417_v35 }
 0x451   :  { %2094 = vmatpush.msrb.mxu3 %v9102_v16 }
 0x453   :  { %v1816_v56 = vpop.f32.mrf.mxu0  ;;  %2095 = vmatpush.msrb.mxu3 %v9090_v11 }
 0x454   :  { %v1817_v26 = vadd.f32 %v1816_v56, %v1748_v21  ;;  %v2065_v10 = vpop.f32.mrf.mxu2  ;;  %2096 = vmatmul.f32.vlgmr.msrb.gmra.mxu3 %v9036_v53  ;;  %v1760_v11 = vpop.f32.mrf.mxu3  ;;  %v12419_v21 = vld [vmem:[#allocation51_spill] sm:$0xff]  ;;  %v12421_v53 = vsub.f32 %v8933_v33, %v8543_v40 }
 0x456   :  { %v1880_v4 = vsub.f32 %v1817_v26, %v12415_v14  ;;  %6499 = vmatmul.msk.f32.gmra.mxu0 %vm417_vm0, %v12416_v63  ;;  %v12424_v63 = vld [vmem:[#allocation58_spill] sm:$0xff] }
 0x457   :  { %v12425_v35 = vsub.f32 %v8942_v24, %v12424_v63 }
 0x458   :  { %v9290_v3 = vadd.f32 %v1880_v4, %v12418_v19  ;;  %v12423_v4 = vld [vmem:[#allocation122_spill] sm:$0xff] }
 0x45b   :  { %v1819_v13 = vpop.f32.mrf.mxu0 }
 0x45c   :  { %v1820_v16 = vadd.f32 %v1819_v13, %v1751_v6  ;;  %v2068_v51 = vpop.f32.mrf.mxu2  ;;  %2099 = vmatmul.f32.gmra.mxu3 %v9048_v17  ;;  %v12422_v6 = vld [vmem:[#allocation59_spill] sm:$0xff]  ;;  %v1763_v17 = vpop.f32.mrf.mxu3 }
 0x45e   :  { %v1881_v7 = vsub.f32 %v1820_v16, %v12419_v21  ;;  %6500 = vmatmul.msk.f32.gmra.mxu0 %vm417_vm0, %v12420_v28  ;;  %v12427_v21 = vld [vmem:[#allocation123_spill] sm:$0xff] }
 0x460   :  { %v9299_v45 = vadd.f32 %v1881_v7, %v12421_v53 }
 0x463   :  { %v1822_v56 = vpop.f32.mrf.mxu0 }
 0x464   :  { %v1823_v23 = vadd.f32 %v1822_v56, %v1754_v1  ;;  %v2071_v26 = vpop.f32.mrf.mxu2  ;;  %2102 = vmatmul.f32.gmra.mxu3 %v9060_v50  ;;  %v12426_v1 = vld [vmem:[#allocation64_spill] sm:$0xff]  ;;  %v12428_v50 = vld [vmem:[#allocation63_spill] sm:$0xff]  ;;  %v1766_v53 = vpop.f32.mrf.mxu3 }
 0x465   :  { %v12429_v7 = vsub.f32 %v8951_v18, %v12428_v50  ;;  %v12447_v50 = vld [vmem:[#allocation144_spill] sm:$0xff] }
 0x466   :  { %v1882_v14 = vsub.f32 %v1823_v23, %v12422_v6  ;;  %6501 = vmatmul.msk.f32.gmra.mxu0 %vm417_vm0, %v12423_v4 }
 0x468   :  { %v9308_v19 = vadd.f32 %v1882_v14, %v12425_v35  ;;  %v12432_v14 = vld [vmem:[#allocation68_spill] sm:$0xff] }
 0x469   :  { %v12433_v4 = vsub.f32 %v8960_v58, %v12432_v14  ;;  %v12455_v14 = vld [vmem:[#allocation148_spill] sm:$0xff] }
 0x46b   :  { %v1825_v13 = vpop.f32.mrf.mxu0 }
 0x46c   :  { %v1826_v40 = vadd.f32 %v1825_v13, %v1757_v61  ;;  %v2074_v33 = vpop.f32.mrf.mxu2  ;;  %2105 = vmatmul.f32.gmra.mxu3 %v9072_v32  ;;  %v12430_v61 = vld [vmem:[#allocation69_spill] sm:$0xff]  ;;  %v12431_v32 = vld [vmem:[#allocation124_spill] sm:$0xff]  ;;  %v1769_v35 = vpop.f32.mrf.mxu3 }
 0x46e   :  { %v1883_v16 = vsub.f32 %v1826_v40, %v12426_v1  ;;  %6502 = vmatmul.msk.f32.gmra.mxu0 %vm417_vm0, %v12427_v21  ;;  %v12435_v40 = vld [vmem:[#allocation125_spill] sm:$0xff] }
 0x470   :  { %v9317_v28 = vadd.f32 %v1883_v16, %v12429_v7  ;;  %v12448_v7 = vld [vmem:[#allocation145_spill] sm:$0xff] }
 0x473   :  { %v1828_v56 = vpop.f32.mrf.mxu0 }
 0x474   :  { %v1829_v24 = vadd.f32 %v1828_v56, %v1760_v11  ;;  %v2077_v23 = vpop.f32.mrf.mxu2  ;;  %2108 = vmatmul.f32.gmra.mxu3 %v9084_v59  ;;  %v12434_v59 = vld [vmem:[#allocation73_spill] sm:$0xff]  ;;  %v12451_v56 = vld [vmem:[#allocation128_spill] sm:$0xff] }
 0x475   :  { %2156 = vmatpush.msrb.mxu1 %v2077_v23 }
 0x476   :  { %v1884_v6 = vsub.f32 %v1829_v24, %v12430_v61  ;;  %6503 = vmatmul.msk.f32.gmra.mxu0 %vm417_vm0, %v12431_v32  ;;  %v12454_v32 = vld [vmem:[#allocation147_spill] sm:$0xff] }
 0x477   :  { %2157 = vmatpush.msrb.mxu1 %v2074_v33  ;;  %v12436_v33 = vsub.f32 %v8969_v36, %v8647_v20  ;;  %v12438_v20 = vsub.f32 %v8978_v60, %v8673_v44  ;;  %v12440_v60 = vsub.f32 %v8987_v29, %v8699_v43 }
 0x478   :  { %v9326_v63 = vadd.f32 %v1884_v6, %v12433_v4 }
 0x479   :  { %2158 = vmatpush.msrb.mxu1 %v2071_v26 }
 0x47b   :  { %v1831_v18 = vpop.f32.mrf.mxu0  ;;  %2159 = vmatpush.msrb.mxu1 %v2068_v51 }
 0x47c   :  { %v1832_v11 = vadd.f32 %v1831_v18, %v1763_v17  ;;  %2111 = vmatmul.f32.gmra.mxu3 %v9096_v49  ;;  %v1772_v49 = vpop.f32.mrf.mxu3  ;;  %v12444_v17 = vld [vmem:[#allocation126_spill] sm:$0xff]  ;;  %v12456_v18 = vld [vmem:[#allocation100_spill] sm:$0xff] }
 0x47d   :  { %2160 = vmatpush.msrb.mxu1 %v2065_v10 }
 0x47e   :  { %v1885_v13 = vsub.f32 %v1832_v11, %v12434_v59  ;;  %6504 = vmatmul.msk.f32.gmra.mxu0 %vm417_vm0, %v12435_v40  ;;  %v12457_v11 = vld [vmem:[#allocation129_spill] sm:$0xff]  ;;  %v12458_v59 = vld [vmem:[#allocation130_spill] sm:$0xff] }
 0x47f   :  { %2161 = vmatpush.msrb.mxu1 %v2062_v25  ;;  %v12437_v25 = vld [vmem:[#allocation77_spill] sm:$0xff] }
 0x480   :  { %v9335_v58 = vadd.f32 %v1885_v13, %v12436_v33  ;;  %v12459_v13 = vld [vmem:[#allocation99_spill] sm:$0xff] }
 0x481   :  { %2162 = vmatpush.msrb.mxu1 %v9256_v34  ;;  %v12460_v40 = vsub.f32 %v12458_v59, %v12459_v13  ;;  %v12492_v59 = vld [vmem:[#allocation158_spill] sm:$0xff] }
 0x482   :  { %v12493_v13 = vld [vmem:[#allocation138_spill] sm:$0xff] }
 0x483   :  { %v1834_v26 = vpop.f32.mrf.mxu0  ;;  %2163 = vmatpush.msrb.mxu1 %v9250_v30 }
 0x484   :  { %v1835_v51 = vadd.f32 %v1834_v26, %v1766_v53  ;;  %6481 = vmatmul.msk.f32.vlgmr.msrb.gmra.mxu1 %vm700_vm1, %v9109_v5  ;;  %2114 = vmatmul.f32.gmra.mxu3 %v9113_v62  ;;  %v12439_v62 = vld [vmem:[#allocation81_spill] sm:$0xff]  ;;  %v1775_v30 = vpop.f32.mrf.mxu3  ;;  %v12450_v53 = vld [vmem:[#allocation127_spill] sm:$0xff] }
 0x485   :  { %3291 = vmatpush.msra.mxu1 %v9230_v12 }
 0x486   :  { %v1886_v10 = vsub.f32 %v1835_v51, %v12437_v25  ;;  %6505 = vmatmul.msk.f32.gmra.mxu0 %vm417_vm0, %v8971_v8  ;;  %v12462_v25 = vld [vmem:[#allocation150_spill] sm:$0xff] }
 0x487   :  { %3292 = vmatpush.msra.mxu1 %v9233_v48 }
 0x488   :  { %v9350_v36 = vadd.f32 %v1886_v10, %v12438_v20  ;;  %v12463_v10 = vld [vmem:[#allocation105_spill] sm:$0xff] }
 0x489   :  { %3293 = vmatpush.msra.mxu1 %v9236_v15 }
 0x48b   :  { %v1837_v34 = vpop.f32.mrf.mxu0  ;;  %3294 = vmatpush.msra.mxu1 %v9239_v42  ;;  %v12441_v42 = vld [vmem:[#allocation85_spill] sm:$0xff] }
 0x48c   :  { %v1838_v5 = vadd.f32 %v1837_v34, %v1769_v35  ;;  %6482 = vmatmul.msk.f32.gmra.mxu1 %vm700_vm1, %v9123_v37  ;;  %2117 = vmatmul.f32.gmra.mxu3 %v9127_v52  ;;  %v1778_v43 = vpop.f32.mrf.mxu3  ;;  %v12464_v34 = vld [vmem:[#allocation131_spill] sm:$0xff] }
 0x48e   :  { %v1887_v8 = vsub.f32 %v1838_v5, %v12439_v62  ;;  %6506 = vmatmul.msk.f32.gmra.mxu0 %vm417_vm0, %v8980_v46  ;;  %v12442_v46 = vsub.f32 %v8999_v41, %v8725_v55  ;;  %v12465_v62 = vld [vmem:[#allocation132_spill] sm:$0xff] }
 0x490   :  { %v9363_v44 = vadd.f32 %v1887_v8, %v12440_v60  ;;  %v12466_v8 = vld [vmem:[#allocation104_spill] sm:$0xff] }
 0x493   :  { %v1840_v15 = vpop.f32.mrf.mxu0 }
 0x494   :  { %v1841_v12 = vadd.f32 %v1840_v15, %v1772_v49  ;;  %6483 = vmatmul.msk.f32.gmra.mxu1 %vm700_vm1, %v9137_v57  ;;  %2120 = vmatmul.f32.gmra.mxu3 %v9141_v47  ;;  %v12443_v57 = vld [vmem:[#allocation90_spill] sm:$0xff]  ;;  %v1781_v41 = vpop.f32.mrf.mxu3  ;;  %v12461_v49 = vld [vmem:[#allocation149_spill] sm:$0xff] }
 0x496   :  { %v1888_v37 = vsub.f32 %v1841_v12, %v12441_v42  ;;  %6507 = vmatmul.msk.f32.gmra.mxu0 %vm417_vm0, %v8989_v22  ;;  %v12445_v22 = vld [vmem:[#allocation89_spill] sm:$0xff]  ;;  %v12469_v42 = vld [vmem:[#allocation151_spill] sm:$0xff] }
 0x497   :  { %v12446_v1 = vsub.f32 %v12444_v17, %v12445_v22 }
 0x498   :  { %v9374_v52 = vadd.f32 %v1888_v37, %v12442_v46  ;;  %v12470_v37 = vld [vmem:[#allocation152_spill] sm:$0xff]  ;;  %v12471_v46 = vld [vmem:[#allocation110_spill] sm:$0xff] }
 0x49b   :  { %v1843_v29 = vpop.f32.mrf.mxu0 }
 0x49c   :  { %v1844_v48 = vadd.f32 %v1843_v29, %v1775_v30  ;;  %6484 = vmatmul.msk.f32.gmra.mxu1 %vm700_vm1, %v9151_v39  ;;  %2123 = vmatmul.f32.gmra.mxu3 %v9155_v38  ;;  %v12449_v39 = vld [vmem:[#allocation95_spill] sm:$0xff]  ;;  %v1784_v4 = vpop.f32.mrf.mxu3  ;;  %v12467_v30 = vsub.f32 %v12465_v62, %v12466_v8  ;;  %v12472_v29 = vld [vmem:[#allocation133_spill] sm:$0xff] }
 0x49d   :  { %v12499_v62 = vld [vmem:[#allocation139_spill] sm:$0xff] }
 0x49e   :  { %v1889_v47 = vsub.f32 %v1844_v48, %v12443_v57  ;;  %6508 = vmatmul.msk.f32.gmra.mxu0 %vm417_vm0, %v9002_v2  ;;  %v12452_v2 = vld [vmem:[#allocation94_spill] sm:$0xff]  ;;  %v12474_v57 = vld [vmem:[#allocation109_spill] sm:$0xff] }
 0x49f   :  { %v12453_v24 = vsub.f32 %v12451_v56, %v12452_v2  ;;  %v12473_v48 = vld [vmem:[#allocation134_spill] sm:$0xff] }
 0x4a0   :  { %v9385_v16 = vadd.f32 %v1889_v47, %v12446_v1  ;;  %v12475_v47 = vsub.f32 %v12473_v48, %v12474_v57  ;;  %v9505_v57 = vstv %s538_s24 }
 0x4a3   :  { %v1846_v55 = vpop.f32.mrf.mxu0 }
 0x4a4   :  { %v1847_v21 = vadd.f32 %v1846_v55, %v1778_v43  ;;  %6485 = vmatmul.msk.f32.gmra.mxu1 %vm700_vm1, %v12447_v50  ;;  %2126 = vmatmul.f32.gmra.mxu3 %v12448_v7  ;;  %v1787_v5 = vpop.f32.mrf.mxu3  ;;  %v12479_v50 = vld [vmem:[#allocation115_spill] sm:$0xff] }
 0x4a6   :  { %v1890_v38 = vsub.f32 %v1847_v21, %v12449_v39  ;;  %6509 = vmatmul.msk.f32.gmra.mxu0 %vm417_vm0, %v12450_v53  ;;  %v12478_v21 = vld [vmem:[#allocation154_spill] sm:$0xff]  ;;  %v12480_v39 = vld [vmem:[#allocation135_spill] sm:$0xff] }
 0x4a7   :  { %v12482_v53 = vld [vmem:[#allocation114_spill] sm:$0xff] }
 0x4a8   :  { %v9396_v23 = vadd.f32 %v1890_v38, %v12453_v24  ;;  %v12481_v38 = vld [vmem:[#allocation136_spill] sm:$0xff] }
 0x4a9   :  { %v12483_v56 = vsub.f32 %v12481_v38, %v12482_v53 }
 0x4ab   :  { %v1849_v61 = vpop.f32.mrf.mxu0 }
 0x4ac   :  { %v1850_v6 = vadd.f32 %v1849_v61, %v1781_v41  ;;  %6486 = vmatmul.msk.f32.gmra.mxu1 %vm700_vm1, %v12454_v32  ;;  %2129 = vmatmul.f32.gmra.mxu3 %v12455_v14  ;;  %v1790_v22 = vpop.f32.mrf.mxu3  ;;  %v12477_v41 = vld [vmem:[#allocation153_spill] sm:$0xff]  ;;  %v12486_v61 = vld [vmem:[#allocation155_spill] sm:$0xff]  ;;  %v9452_v14 = vstv %s536_s3 }
 0x4ad   :  { %v12488_v32 = vld [vmem:[#allocation137_spill] sm:$0xff] }
 0x4ae   :  { %v1891_v35 = vsub.f32 %v1850_v6, %v12456_v18  ;;  %6510 = vmatmul.msk.f32.gmra.mxu0 %vm417_vm0, %v12457_v11  ;;  %v12487_v6 = vld [vmem:[#allocation156_spill] sm:$0xff]  ;;  %v12491_v11 = vld [vmem:[#allocation157_spill] sm:$0xff] }
 0x4b0   :  { %v9407_v33 = vadd.f32 %v1891_v35, %v12460_v40  ;;  %v12494_v40 = vld [vmem:[#allocation41_spill] sm:$0xff] }
 0x4b3   :  { %v1852_v26 = vpop.f32.mrf.mxu0 }
 0x4b4   :  { %v1853_v51 = vadd.f32 %v1852_v26, %v1784_v4  ;;  %6487 = vmatmul.msk.f32.gmra.mxu1 %vm700_vm1, %v12461_v49  ;;  %2132 = vmatmul.f32.gmra.mxu3 %v12462_v25  ;;  %v12489_v4 = vld [vmem:[#allocation40_spill] sm:$0xff]  ;;  %v9465_v26 = vadd.f32 %v12494_v40, %v9452_v14  ;;  %v12496_v25 = vld [vmem:[#allocation47_spill] sm:$0xff] }
 0x4b5   :  { %v2660_v18 = vadd.f32 %v12489_v4, %v9452_v14 }
 0x4b6   :  { %v1892_v20 = vsub.f32 %v1853_v51, %v12463_v10  ;;  %6511 = vmatmul.msk.f32.gmra.mxu0 %vm417_vm0, %v12464_v34  ;;  %v9474_v10 = vadd.f32 %v12496_v25, %v9452_v14  ;;  %v12498_v34 = vld [vmem:[#allocation55_spill] sm:$0xff]  ;;  %vm2697_vm7 = vweird.f32 %v9465_v26 }
 0x4b7   :  { %6868 = vrcp.f32 %v2660_v18  ;;  %v2688_v38 = vand.u32 2147483648, %v2660_v18  ;;  %vm2682_vm3 = vweird.f32 %v2660_v18 }
 0x4b8   :  { %v9418_v60 = vadd.f32 %v1892_v20, %v12467_v30  ;;  %6870 = vrcp.f32 %v9465_v26  ;;  %v12497_v20 = vld [vmem:[#allocation159_spill] sm:$0xff]  ;;  %vm2712_vm10 = vweird.f32 %v9474_v10 }
 0x4b9   :  { %6872 = vrcp.f32 %v9474_v10 }
 0x4ba   :  { %12468 = vst [vmem:[#allocation48_spill] sm:$0xff] %v9418_v60 }
 0x4bb   :  { %v1855_v15 = vpop.f32.mrf.mxu0 }
 0x4bc   :  { %v1856_v12 = vadd.f32 %v1855_v15, %v1787_v5  ;;  %6488 = vmatmul.msk.f32.gmra.mxu1 %vm700_vm1, %v12469_v42  ;;  %2135 = vmatmul.f32.gmra.mxu3 %v12470_v37  ;;  %v9481_v5 = vadd.f32 %v12498_v34, %v9452_v14 }
 0x4bd   :  { %v9470_v49 = vpop.eup %6868 }
 0x4be   :  { %v1893_v43 = vsub.f32 %v1856_v12, %v12471_v46  ;;  %6512 = vmatmul.msk.f32.gmra.mxu0 %vm417_vm0, %v12472_v29  ;;  %v2678_v8 = vmul.f32 %v9470_v49, %v2660_v18  ;;  %v9489_v15 = vpop.eup %6870  ;;  %v12500_v12 = vld [vmem:[#allocation61_spill] sm:$0xff]  ;;  %6874 = vrcp.f32 %v9481_v5  ;;  %v12502_v29 = vld [vmem:[#allocation160_spill] sm:$0xff]  ;;  %vm2683_vm2 = vweird.f32 %v9470_v49 }
 0x4bf   :  { %v9493_v42 = vadd.f32 %v12500_v12, %v9452_v14  ;;  %v9503_v48 = vpop.eup %6872  ;;  %vm9547_vm4 = vmor %vm2682_vm3, %vm2683_vm2  ;;  %v2701_v12 = vand.u32 2147483647, %v9465_v26  ;;  %vm2698_vm6 = vweird.f32 %v9489_v15  ;;  %vm2727_vm15 = vweird.f32 %v9481_v5 }
 0x4c0   :  { %v9429_v17 = vadd.f32 %v1893_v43, %v12475_v47  ;;  %v2679_v37 = vsub.f32 1.0, %v2678_v8  ;;  %v2693_v43 = vmul.f32 %v9489_v15, %v9465_v26  ;;  %v12503_v47 = vld [vmem:[#allocation66_spill] sm:$0xff]  ;;  %v12513_v8 = vld [vmem:[#allocation141_spill] sm:$0xff]  ;;  %vm9599_vm9 = vmor %vm2697_vm7, %vm2698_vm6  ;;  %vm2713_vm12 = vweird.f32 %v9503_v48 }
 0x4c1   :  { %6876 = vrcp.f32 %v9493_v42  ;;  %vm9583_vm8 = vcmp.eq.f32.partialorder %v2701_v12, 8.507059e+37  ;;  %vm9650_vm14 = vmor %vm2712_vm10, %vm2713_vm12 }
 0x4c2   :  { %12476 = vst [vmem:[#allocation118_spill] sm:$0xff] %v9429_v17  ;;  %v12534_v17 = vld [vmem:[#allocation62_spill] sm:$0xff] }
 0x4c3   :  { %v1858_v1 = vpop.f32.mrf.mxu0 }
 0x4c4   :  { %v1859_v55 = vadd.f32 %v1858_v1, %v1790_v22  ;;  %6489 = vmatmul.msk.f32.gmra.mxu1 %vm700_vm1, %v12477_v41  ;;  %2138 = vmatmul.f32.gmra.mxu3 %v12478_v21  ;;  %v9509_v22 = vadd.f32 %v12503_v47, %v9452_v14  ;;  %v12504_v1 = vld [vmem:[#allocation140_spill] sm:$0xff]  ;;  %v9514_v41 = vpop.eup %6874  ;;  %v2694_v21 = vsub.f32 1.0, %v2693_v43 }
 0x4c5   :  { %vm2728_vm13 = vweird.f32 %v9514_v41 }
 0x4c6   :  { %v1894_v7 = vsub.f32 %v1859_v55, %v12479_v50  ;;  %6513 = vmatmul.msk.f32.gmra.mxu0 %vm417_vm0, %v12480_v39  ;;  %v2680_v55 = vmul.f32 %v9470_v49, %v2679_v37  ;;  %v9518_v50 = vadd.f32 %v9267_v31, %v9505_v57  ;;  %6878 = vrcp.f32 %v9509_v22  ;;  %vm9665_vm3 = vmor %vm2727_vm15, %vm2728_vm13 }
 0x4c7   :  { %v2686_v39 = vand.u32 2147483647, %v2660_v18  ;;  %v2703_v37 = vand.u32 2147483648, %v9465_v26 }
 0x4c8   :  { %v9442_v2 = vadd.f32 %v1894_v7, %v12483_v56  ;;  %v2708_v7 = vmul.f32 %v9503_v48, %v9474_v10  ;;  %v9525_v56 = vpop.eup %6876  ;;  %v2681_v4 = vadd.f32 %v9470_v49, %v2680_v55  ;;  %6880 = vrcp.f32 %v9518_v50 }
 0x4c9   :  { %vm9551_vm5 = vcmp.eq.f32.partialorder %v2686_v39, 8.507059e+37  ;;  %v2716_v55 = vand.u32 2147483647, %v9474_v10  ;;  %vm2324_vm15 = vweird.f32 %v9518_v50 }
 0x4ca   :  { %12484 = vst [vmem:[#allocation119_spill] sm:$0xff] %v9442_v2  ;;  %v2709_v25 = vsub.f32 1.0, %v2708_v7  ;;  %v2685_v18 = vsel %vm9547_vm4, %v9470_v49, %v2681_v4  ;;  %v12514_v7 = vld [vmem:[#allocation52_spill] sm:$0xff]  ;;  %vm2743_vm4 = vweird.f32 %v9525_v56 }
 0x4cb   :  { %v9445_v24 = vpop.f32.mrf.mxu0  ;;  %v9571_v39 = vadd.f32 %v9452_v14, %v12514_v7  ;;  %vm9612_vm11 = vcmp.eq.f32.partialorder %v2716_v55, 8.507059e+37  ;;  %v12523_v7 = vld [vmem:[#allocation49_spill] sm:$0xff]  ;;  %v12524_v55 = vld [vmem:[#allocation75_spill] sm:$0xff] }
 0x4cc   :  { %12485 = vst [vmem:[#allocation50_spill] sm:$0xff] %v9445_v24  ;;  %6490 = vmatmul.msk.f32.gmra.mxu1 %vm700_vm1, %v12486_v61  ;;  %2141 = vmatmul.f32.gmra.mxu3 %v12487_v6  ;;  %v2723_v61 = vmul.f32 %v9514_v41, %v9481_v5  ;;  %v12505_v6 = vld [vmem:[#allocation71_spill] sm:$0xff]  ;;  %v9563_v47 = vpop.eup %6878  ;;  %v2710_v49 = vmul.f32 %v9503_v48, %v2709_v25 }
 0x4cd   :  { %v9644_v24 = vadd.f32 %v9290_v3, %v9505_v57 }
 0x4ce   :  { %6514 = vmatmul.msk.f32.gmra.mxu0 %vm417_vm0, %v12488_v32  ;;  %v9531_v32 = vadd.f32 %v12505_v6, %v9452_v14  ;;  %v2724_v43 = vsub.f32 1.0, %v2723_v61  ;;  %v9575_v61 = vadd.f32 %v9279_v0, %v9505_v57  ;;  %v2753_v0 = vmul.f32 %v9563_v47, %v9509_v22 }
 0x4d0   :  { %6882 = vrcp.f32 %v9531_v32  ;;  %v2754_v25 = vsub.f32 1.0, %v2753_v0  ;;  %v2746_v0 = vand.u32 2147483647, %v9493_v42 }
 0x4d1   :  { %6884 = vrcp.f32 %v9575_v61 }
 0x4d2   :  { %vm9705_vm7 = vcmp.eq.f32.partialorder %v2746_v0, 8.507059e+37 }
 0x4d3   :  { %v9456_v35 = vpop.f32.mrf.mxu0 }
 0x4d4   :  { %12490 = vst [vmem:[#allocation44_spill] sm:$0xff] %v9456_v35  ;;  %6491 = vmatmul.msk.f32.gmra.mxu1 %vm700_vm1, %v12491_v11  ;;  %2144 = vmatmul.f32.gmra.mxu3 %v12492_v59  ;;  %v12507_v11 = vld [vmem:[#allocation161_spill] sm:$0xff]  ;;  %v2695_v59 = vmul.f32 %v9489_v15, %v2694_v21  ;;  %v2718_v21 = vand.u32 2147483648, %v9474_v10  ;;  %v9691_v35 = vadd.f32 %v9452_v14, %v12534_v17 }
 0x4d6   :  { %6515 = vmatmul.msk.f32.gmra.mxu0 %vm417_vm0, %v12493_v13  ;;  %v12508_v13 = vld [vmem:[#allocation56_spill] sm:$0xff] }
 0x4d7   :  { %v9487_v30 = vpop.f32.mrf.mxu3  ;;  %v9542_v40 = vadd.f32 %v9452_v14, %v12508_v13  ;;  %v9587_v13 = vpop.eup %6880 }
 0x4d8   :  { %vm2325_vm12 = vweird.f32 %v9587_v13 }
 0x4db   :  { %v9468_v51 = vpop.f32.mrf.mxu0 }
 0x4dc   :  { %12495 = vst [vmem:[#allocation120_spill] sm:$0xff] %v9468_v51  ;;  %6492 = vmatmul.msk.f32.gmra.mxu1 %vm700_vm1, %v12497_v20  ;;  %v2738_v20 = vmul.f32 %v9525_v56, %v9493_v42  ;;  %v9868_v51 = vadd.f32 %v9317_v28, %v9505_v57 }
 0x4de   :  { %6516 = vmatmul.msk.f32.gmra.mxu0 %vm417_vm0, %v12499_v62  ;;  %v2739_v4 = vsub.f32 1.0, %v2738_v20 }
 0x4df   :  { %v9523_v53 = vpop.f32.mrf.mxu3 }
 0x4e3   :  { %v9496_v46 = vpop.f32.mrf.mxu0 }
 0x4e4   :  { %12501 = vst [vmem:[#allocation43_spill] sm:$0xff] %v9496_v46  ;;  %6493 = vmatmul.msk.f32.gmra.mxu1 %vm700_vm1, %v12502_v29  ;;  %v2689_v29 = vor.u32 1.1754944e-38, %v2688_v38  ;;  %v12515_v38 = vld [vmem:[#allocation42_spill] sm:$0xff] }
 0x4e5   :  { %v9581_v6 = vadd.f32 %v9452_v14, %v12515_v38  ;;  %v12525_v38 = vld [vmem:[#allocation142_spill] sm:$0xff] }
 0x4e6   :  { %6517 = vmatmul.msk.f32.gmra.mxu0 %vm417_vm0, %v12504_v1  ;;  %v2696_v1 = vadd.f32 %v9489_v15, %v2695_v59  ;;  %v2704_v59 = vor.u32 1.1754944e-38, %v2703_v37  ;;  %v9595_v26 = vsel %vm9551_vm5, %v2689_v29, %v2685_v18  ;;  %v2719_v37 = vor.u32 1.1754944e-38, %v2718_v21  ;;  %v9617_v29 = vpop.eup %6882 }
 0x4e7   :  { %v9603_v20 = vpop.f32.mrf.mxu3  ;;  %v2731_v18 = vand.u32 2147483647, %v9481_v5  ;;  %v9631_v21 = vadd.f32 %v12524_v55, %v9452_v14  ;;  %v2768_v55 = vmul.f32 %v9617_v29, %v9531_v32  ;;  %vm2742_vm5 = vweird.f32 %v9493_v42 }
 0x4e8   :  { %v2700_v62 = vsel %vm9599_vm9, %v9489_v15, %v2696_v1  ;;  %v9625_v15 = vadd.f32 %v9452_v14, %v12523_v7  ;;  %v2320_v1 = vmul.f32 %v9587_v13, %v9518_v50  ;;  %vm9701_vm6 = vmor %vm2742_vm5, %vm2743_vm4  ;;  %vm2758_vm9 = vweird.f32 %v9563_v47 }
 0x4e9   :  { %v9638_v2 = vsel %vm9583_vm8, %v2704_v59, %v2700_v62  ;;  %vm9655_vm2 = vcmp.eq.f32.partialorder %v2731_v18, 8.507059e+37  ;;  %6886 = vrcp.f32 %v9631_v21  ;;  %v9671_v18 = vpop.eup %6884  ;;  %vm2757_vm8 = vweird.f32 %v9509_v22  ;;  %v12542_v62 = vld [vmem:[#allocation67_spill] sm:$0xff] }
 0x4ea   :  { %v2321_v10 = vsub.f32 1.0, %v2320_v1  ;;  %v2755_v1 = vmul.f32 %v9563_v47, %v2754_v25  ;;  %6888 = vrcp.f32 %v9644_v24  ;;  %v2335_v17 = vmul.f32 %v9671_v18, %v9575_v61  ;;  %vm9755_vm13 = vmor %vm2757_vm8, %vm2758_vm9 }
 0x4eb   :  { %v9533_v31 = vpop.f32.mrf.mxu0  ;;  %vm2787_vm9 = vweird.f32 %v9631_v21 }
 0x4ec   :  { %12506 = vst [vmem:[#allocation51_spill] sm:$0xff] %v9533_v31  ;;  %6494 = vmatmul.msk.f32.gmra.mxu1 %vm700_vm1, %v12507_v11  ;;  %v2322_v12 = vmul.f32 %v9587_v13, %v2321_v10  ;;  %v2756_v0 = vadd.f32 %v9563_v47, %v2755_v1  ;;  %v9732_v11 = vadd.f32 %v9452_v14, %v12542_v62  ;;  %v2336_v62 = vsub.f32 1.0, %v2335_v17  ;;  %v12545_v17 = vld [vmem:[#allocation54_spill] sm:$0xff] }
 0x4ee   :  { %6518 = vmatmul.msk.f32.gmra.mxu0 %vm417_vm0, %v12513_v8  ;;  %v2725_v8 = vmul.f32 %v9514_v41, %v2724_v43  ;;  %v2711_v43 = vadd.f32 %v9503_v48, %v2710_v49  ;;  %v2740_v49 = vmul.f32 %v9525_v56, %v2739_v4  ;;  %v2761_v4 = vand.u32 2147483647, %v9509_v22 }
 0x4ef   :  { %v9697_v25 = vpop.f32.mrf.mxu3  ;;  %v9728_v10 = vpop.eup %6886  ;;  %v2337_v46 = vmul.f32 %v9671_v18, %v2336_v62 }
 0x4f0   :  { %v2726_v7 = vadd.f32 %v9514_v41, %v2725_v8  ;;  %v2715_v3 = vsel %vm9650_vm14, %v9503_v48, %v2711_v43  ;;  %v2748_v8 = vand.u32 2147483648, %v9493_v42  ;;  %vm9724_vm10 = vcmp.eq.f32.partialorder %v2761_v4, 8.507059e+37 }
 0x4f1   :  { %vm2773_vm14 = vweird.f32 %v9617_v29 }
 0x4f2   :  { %v2749_v42 = vor.u32 1.1754944e-38, %v2748_v8  ;;  %v2791_v8 = vand.u32 2147483647, %v9631_v21 }
 0x4f3   :  { %v9591_v34 = vpop.f32.mrf.mxu0 }
 0x4f4   :  { %12518 = vst [vmem:[#allocation121_spill] sm:$0xff] %v9591_v34  ;;  %6495 = vmatmul.msk.f32.gmra.mxu1 %vm700_vm1, %v9246_v54  ;;  %v2733_v54 = vand.u32 2147483648, %v9481_v5  ;;  %v2741_v5 = vadd.f32 %v9525_v56, %v2740_v49  ;;  %v2769_v49 = vsub.f32 1.0, %v2768_v55 }
 0x4f6   :  { %6519 = vmatmul.msk.f32.gmra.mxu0 %vm417_vm0, %v12525_v38  ;;  %v2734_v59 = vor.u32 1.1754944e-38, %v2733_v54  ;;  %v12532_v38 = vld [vmem:[#allocation57_spill] sm:$0xff]  ;;  %v2730_v54 = vsel %vm9665_vm3, %v9514_v41, %v2726_v7  ;;  %v9695_v41 = vsel %vm9612_vm11, %v2719_v37, %v2715_v3  ;;  %v12539_v37 = vld [vmem:[#allocation143_spill] sm:$0xff]  ;;  %v2745_v3 = vsel %vm9701_vm6, %v9525_v56, %v2741_v5  ;;  %vm9787_vm3 = vmor %vm2324_vm15, %vm2325_vm12 }
 0x4f7   :  { %v9675_v48 = vadd.f32 %v9452_v14, %v12532_v38  ;;  %v2763_v38 = vand.u32 2147483648, %v9509_v22  ;;  %v2776_v56 = vand.u32 2147483647, %v9531_v32  ;;  %v9738_v5 = vadd.f32 %v9299_v45, %v9505_v57  ;;  %v9801_v60 = vpop.f32.mrf.mxu3 }
 0x4f8   :  { %v9716_v55 = vsel %vm9655_vm2, %v2734_v59, %v2730_v54  ;;  %v2770_v54 = vmul.f32 %v9617_v29, %v2769_v49  ;;  %v9742_v4 = vsel %vm9705_vm7, %v2749_v42, %v2745_v3  ;;  %vm2772_vm11 = vweird.f32 %v9531_v32 }
 0x4f9   :  { %v2764_v59 = vor.u32 1.1754944e-38, %v2763_v38  ;;  %v2778_v7 = vand.u32 2147483648, %v9531_v32  ;;  %v2323_v49 = vadd.f32 %v9587_v13, %v2322_v12  ;;  %v2330_v42 = vand.u32 2147483648, %v9518_v50  ;;  %vm9811_vm4 = vmor %vm2772_vm11, %vm2773_vm14 }
 0x4fa   :  { %v2328_v22 = vand.u32 2147483647, %v9518_v50  ;;  %vm9774_vm2 = vcmp.eq.f32.partialorder %v2776_v56, 8.507059e+37  ;;  %6890 = vrcp.f32 %v9738_v5  ;;  %vm2340_vm6 = vweird.f32 %v9671_v18 }
 0x4fb   :  { %v9677_v43 = vpop.f32.mrf.mxu0  ;;  %v2331_v34 = vor.u32 1.1754944e-38, %v2330_v42  ;;  %vm2339_vm7 = vweird.f32 %v9575_v61  ;;  %vm2932_vm12 = vcmask 179200   ;;  %vm2354_vm14 = vweird.f32 %v9644_v24 }
 0x4fc   :  { %12533 = vst [vmem:[#allocation59_spill] sm:$0xff] %v9677_v43  ;;  %6496 = vmatmul.msk.f32.gmra.mxu1 %vm700_vm1, %v9252_v9  ;;  %v2783_v9 = vmul.f32 %v9728_v10, %v9631_v21  ;;  %vm2329_vm5 = vcmp.eq.f32.partialorder %v2328_v22, 8.507059e+37  ;;  %v2338_v22 = vadd.f32 %v9671_v18, %v2337_v46  ;;  %vm9847_vm8 = vmor %vm2339_vm7, %vm2340_vm6  ;;  %vm2369_vm6 = vweird.f32 %v9738_v5 }
 0x4fe   :  { %6520 = vmatmul.msk.f32.gmra.mxu0 %vm417_vm0, %v12539_v37  ;;  %v9746_v37 = vpop.eup %6888  ;;  %v2784_v31 = vsub.f32 1.0, %v2783_v9 }
 0x501   :  { %v2165_v1 = vpop.f32.mrf.mxu1 }
 0x502   :  { %v2166_v38 = vadd.f32 %v2165_v1, %v9487_v30  ;;  %v2760_v30 = vsel %vm9755_vm13, %v9563_v47, %v2756_v0  ;;  %v2771_v1 = vadd.f32 %v9617_v29, %v2770_v54  ;;  %v2350_v47 = vmul.f32 %v9746_v37, %v9644_v24  ;;  %v12548_v0 = vld [vmem:[#allocation79_spill] sm:$0xff]  ;;  %v12551_v54 = vld [vmem:[#allocation72_spill] sm:$0xff] }
 0x503   :  { %v9762_v3 = vpop.f32.mrf.mxu0  ;;  %v9793_v56 = vadd.f32 %v9452_v14, %v12551_v54  ;;  %v9829_v54 = vpop.eup %6890  ;;  %vm2355_vm13 = vweird.f32 %v9746_v37 }
 0x504   :  { %v2233_v12 = vsub.f32 %v2166_v38, %v12545_v17  ;;  %6497 = vmatmul.msk.f32.gmra.mxu1 %vm700_vm1, %v9259_v27  ;;  %v9783_v38 = vadd.f32 %v12548_v0, %v9452_v14  ;;  %v2779_v27 = vor.u32 1.1754944e-38, %v2778_v7  ;;  %v2327_v17 = vsel %vm9787_vm3, %v9587_v13, %v2323_v49  ;;  %v12552_v0 = vld [vmem:[#allocation146_spill] sm:$0xff]  ;;  %vm9901_vm15 = vmor %vm2354_vm14, %vm2355_vm13 }
 0x505   :  { %v9805_v7 = vsel %vm9724_vm10, %v2764_v59, %v2760_v30  ;;  %v2793_v13 = vand.u32 2147483648, %v9631_v21  ;;  %v2775_v62 = vsel %vm9811_vm4, %v9617_v29, %v2771_v1  ;;  %v9823_v59 = vadd.f32 %v9308_v19, %v9505_v57  ;;  %v12555_v29 = vld [vmem:[#allocation76_spill] sm:$0xff] }
 0x506   :  { %v2250_v45 = vmul.f32 2.0, %v2233_v12  ;;  %6521 = vmatmul.msk.f32.gmra.mxu0 %vm417_vm0, %v12552_v0  ;;  %6892 = vrcp.f32 %v9783_v38  ;;  %v2332_v32 = vsel %vm2329_vm5, %v2331_v34, %v2327_v17  ;;  %v2351_v42 = vsub.f32 1.0, %v2350_v47  ;;  %v12556_v17 = vld [vmem:[#allocation46_spill] sm:$0xff] }
 0x507   :  { %v9833_v1 = vadd.f32 %v9452_v14, %v12555_v29  ;;  %v2345_v19 = vand.u32 2147483648, %v9575_v61  ;;  %v2785_v34 = vmul.f32 %v9728_v10, %v2784_v31  ;;  %v9839_v47 = vor.u32 1.1754944e-38, %v2793_v13  ;;  %v7054_v12 = vld [vmem:[#allocation4] sm:$0xff]  ;;  %v12559_v29 = vld [vmem:[#allocation83_spill] sm:$0xff] }
 0x508   :  { %v2268_v49 = vadd.f32 %v9505_v57, %v2250_v45  ;;  %v2343_v0 = vand.u32 2147483647, %v9575_v61  ;;  %6894 = vrcp.f32 %v9823_v59  ;;  %v2352_v31 = vmul.f32 %v9746_v37, %v2351_v42 }
 0x509   :  { %v2168_v9 = vpop.f32.mrf.mxu1  ;;  %vm2788_vm10 = vweird.f32 %v9728_v10  ;;  %v2365_v61 = vmul.f32 %v9829_v54, %v9738_v5  ;;  %v2808_v42 = vand.u32 2147483648, %v9783_v38  ;;  %6896 = vrcp.f32 %v9868_v51 }
 0x50a   :  { %v2333_v30 = vmul.f32 %v2332_v32, %v2268_v49  ;;  %v2169_v50 = vadd.f32 %v2168_v9, %v9523_v53  ;;  %v2342_v9 = vsel %vm9847_vm8, %v9671_v18, %v2338_v22  ;;  %vm2344_vm11 = vcmp.eq.f32.partialorder %v2343_v0, 8.507059e+37  ;;  %vm9929_vm3 = vmor %vm2787_vm9, %vm2788_vm10 }
 0x50b   :  { %v9836_v45 = vpop.f32.mrf.mxu0  ;;  %v9878_v18 = vadd.f32 %v9728_v10, %v2785_v34  ;;  %v2353_v28 = vadd.f32 %v9746_v37, %v2352_v31  ;;  %v2358_v34 = vand.u32 2147483647, %v9644_v24  ;;  %v2360_v31 = vand.u32 2147483648, %v9644_v24 }
 0x50c   :  { %v2626_v53 = vmul.f32 %v9542_v40, %v2333_v30  ;;  %v2234_v46 = vsub.f32 %v2169_v50, %v12556_v17  ;;  %6534 = vmatmul.msk.f32.vlgmr.msra.gmra.mxu1 %vm417_vm0, %v7054_v12  ;;  %v9854_v40 = vsel %vm9774_vm2, %v2779_v27, %v2775_v62  ;;  %v9864_v50 = vpop.eup %6892  ;;  %v2346_v27 = vor.u32 1.1754944e-38, %v2345_v19  ;;  %v9882_v19 = vpop.f32.mrf.mxu3 }
 0x50d   :  { %v9874_v17 = vadd.f32 %v12559_v29, %v9452_v14  ;;  %vm9908_vm2 = vcmp.eq.f32.partialorder %v2791_v8, 8.507059e+37  ;;  %vm2359_vm4 = vcmp.eq.f32.partialorder %v2358_v34, 8.507059e+37  ;;  %vm2370_vm5 = vweird.f32 %v9829_v54 }
 0x50e   :  { %v2691_v13 = vmul.f32 %v9595_v26, %v2626_v53  ;;  %v2251_v32 = vmul.f32 2.0, %v2234_v46  ;;  %v2347_v22 = vsel %vm2344_vm11, %v2346_v27, %v2342_v9  ;;  %v2798_v46 = vmul.f32 %v9864_v50, %v9783_v38  ;;  %v9887_v0 = vpop.eup %6894  ;;  %vm9972_vm8 = vmor %vm2369_vm6, %vm2370_vm5 }
 0x50f   :  { %v2977_v27 = vsel %vm2932_vm12, %v2333_v30, 0.0  ;;  %6898 = vrcp.f32 %v9874_v17  ;;  %v9941_v21 = vpop.eup %6896  ;;  %vm2803_vm7 = vweird.f32 %v9864_v50  ;;  %vm2802_vm9 = vweird.f32 %v9783_v38 }
 0x510   :  { %v2269_v26 = vadd.f32 %v9505_v57, %v2251_v32  ;;  %v2366_v32 = vsub.f32 1.0, %v2365_v61  ;;  %v2821_v24 = vand.u32 2147483647, %v9874_v17  ;;  %vm2385_vm11 = vweird.f32 %v9887_v0 }
 0x511   :  { %v2171_v53 = vpop.f32.mrf.mxu1  ;;  %vm2384_vm13 = vweird.f32 %v9823_v59  ;;  %vm2399_vm6 = vweird.f32 %v9868_v51 }
 0x512   :  { %v2348_v12 = vmul.f32 %v2347_v22, %v2269_v26  ;;  %v2172_v49 = vadd.f32 %v2171_v53, %v9603_v20  ;;  %v12560_v20 = vld [vmem:[#allocation45_spill] sm:$0xff]  ;;  %v7055_v53 = vld [vmem:[#allocation4 + $0x8] sm:$0xff]  ;;  %v2367_v43 = vmul.f32 %v9829_v54, %v2366_v32 }
 0x513   :  { %v9893_v9 = vpop.f32.mrf.mxu0 }
 0x514   :  { %v2627_v29 = vmul.f32 %v9571_v39, %v2348_v12  ;;  %v2978_v26 = vsel %vm2932_vm12, %v2348_v12, 0.0  ;;  %v2235_v61 = vsub.f32 %v2172_v49, %v12560_v20  ;;  %6535 = vmatmul.msk.f32.gmra.mxu1 %vm417_vm0, %v7055_v53  ;;  %v12565_v39 = vld [vmem:[#allocation80_spill] sm:$0xff]  ;;  %v2357_v49 = vsel %vm9901_vm15, %v9746_v37, %v2353_v28  ;;  %vm10028_vm15 = vmor %vm2384_vm13, %vm2385_vm11 }
 0x515   :  { %v9914_v30 = vadd.f32 %v9452_v14, %v12565_v39  ;;  %v2979_v12 = vadd.f32 %v2978_v26, %v2977_v27  ;;  %v9919_v20 = vor.u32 1.1754944e-38, %v2808_v42  ;;  %v2380_v53 = vmul.f32 %v9887_v0, %v9823_v59  ;;  %v9954_v39 = vpop.f32.mrf.mxu3 }
 0x516   :  { %v2706_v62 = vmul.f32 %v9638_v2, %v2627_v29  ;;  %v2252_v8 = vmul.f32 2.0, %v2235_v61  ;;  %v2799_v26 = vsub.f32 1.0, %v2798_v46  ;;  %v2361_v37 = vor.u32 1.1754944e-38, %v2360_v31 }
 0x517   :  { %v2790_v2 = vsel %vm9929_vm3, %v9728_v10, %v9878_v18  ;;  %v2933_v42 = vsel %vm2932_vm12, %v2691_v13, 0.0  ;;  %v9945_v46 = vadd.f32 %v9326_v63, %v9505_v57  ;;  %v2368_v13 = vadd.f32 %v9829_v54, %v2367_v43 }
 0x518   :  { %v2934_v28 = vsel %vm2932_vm12, %v2706_v62, 0.0  ;;  %v2270_v32 = vadd.f32 %v9505_v57, %v2252_v8  ;;  %v2362_v31 = vsel %vm2359_vm4, %v2361_v37, %v2357_v49  ;;  %v2381_v62 = vsub.f32 1.0, %v2380_v53  ;;  %v7056_v53 = vld [vmem:[#allocation4 + $0x10] sm:$0xff]  ;;  %v9963_v37 = vpop.eup %6898 }
 0x519   :  { %v2935_v29 = vadd.f32 %v2934_v28, %v2933_v42  ;;  %v2174_v61 = vpop.f32.mrf.mxu1  ;;  %v2375_v18 = vand.u32 2147483648, %v9738_v5  ;;  %v2800_v63 = vmul.f32 %v9864_v50, %v2799_v26  ;;  %v2373_v43 = vand.u32 2147483647, %v9738_v5 }
 0x51a   :  { %v2363_v22 = vmul.f32 %v2362_v31, %v2270_v32  ;;  %v2175_v10 = vadd.f32 %v2174_v61, %v9697_v25  ;;  %v12568_v25 = vld [vmem:[#allocation53_spill] sm:$0xff]  ;;  %v2395_v42 = vmul.f32 %v9941_v21, %v9868_v51  ;;  %6900 = vrcp.f32 %v9945_v46  ;;  %v12571_v61 = vld [vmem:[#allocation87_spill] sm:$0xff] }
 0x51b   :  { %v9952_v34 = vpop.f32.mrf.mxu0  ;;  %v9979_v28 = vsel %vm9908_vm2, %v9839_v47, %v2790_v2  ;;  %v2382_v5 = vmul.f32 %v9887_v0, %v2381_v62  ;;  %v2823_v47 = vand.u32 2147483648, %v9874_v17  ;;  %vm2374_vm10 = vcmp.eq.f32.partialorder %v2373_v43, 8.507059e+37  ;;  %vm10047_vm2 = vmor %vm2802_vm9, %vm2803_vm7 }
 0x51c   :  { %v2628_v49 = vmul.f32 %v9581_v6, %v2363_v22  ;;  %v2980_v8 = vsel %vm2932_vm12, %v2363_v22, 0.0  ;;  %v2236_v27 = vsub.f32 %v2175_v10, %v12568_v25  ;;  %6536 = vmatmul.msk.f32.gmra.mxu1 %vm417_vm0, %v7056_v53  ;;  %v9989_v22 = vadd.f32 %v12571_v61, %v9452_v14 }
 0x51d   :  { %v2981_v26 = vadd.f32 %v2980_v8, %v2979_v12  ;;  %v2372_v12 = vsel %vm9972_vm8, %v9829_v54, %v2368_v13  ;;  %v2376_v10 = vor.u32 1.1754944e-38, %v2375_v18  ;;  %v10000_v54 = vadd.f32 %v9335_v58, %v9505_v57 }
 0x51e   :  { %v2721_v32 = vmul.f32 %v9695_v41, %v2628_v49  ;;  %v2253_v31 = vmul.f32 2.0, %v2236_v27  ;;  %v9996_v49 = vadd.f32 %v9864_v50, %v2800_v63  ;;  %v2396_v18 = vsub.f32 1.0, %v2395_v42  ;;  %v12572_v42 = vld [vmem:[#allocation60_spill] sm:$0xff] }
 0x51f   :  { %v2377_v62 = vsel %vm2374_vm10, %v2376_v10, %v2372_v12  ;;  %v2383_v53 = vadd.f32 %v9887_v0, %v2382_v5  ;;  %v2813_v63 = vmul.f32 %v9963_v37, %v9874_v17  ;;  %6902 = vrcp.f32 %v9989_v22  ;;  %v7057_v12 = vld [vmem:[#allocation4 + $0x18] sm:$0xff] }
 0x520   :  { %v2936_v2 = vsel %vm2932_vm12, %v2721_v32, 0.0  ;;  %v2271_v41 = vadd.f32 %v9505_v57, %v2253_v31  ;;  %v10005_v6 = vpop.eup %6900  ;;  %v2390_v58 = vand.u32 2147483648, %v9823_v59  ;;  %v2388_v31 = vand.u32 2147483647, %v9823_v59 }
 0x521   :  { %v2937_v13 = vadd.f32 %v2936_v2, %v2935_v29  ;;  %v2177_v8 = vpop.f32.mrf.mxu1  ;;  %v12573_v5 = vand.u32 2147483647, %v9783_v38  ;;  %6904 = vrcp.f32 %v10000_v54  ;;  %v2397_v59 = vmul.f32 %v9941_v21, %v2396_v18  ;;  %v10033_v2 = vpop.f32.mrf.mxu3 }
 0x522   :  { %v2378_v25 = vmul.f32 %v2377_v62, %v2271_v41  ;;  %v2178_v27 = vadd.f32 %v2177_v8, %v9801_v60  ;;  %v10035_v41 = vor.u32 1.1754944e-38, %v2823_v47  ;;  %v2410_v62 = vmul.f32 %v10005_v6, %v9945_v46  ;;  %v12580_v47 = vld [vmem:[#allocation84_spill] sm:$0xff] }
 0x523   :  { %v10012_v29 = vpop.f32.mrf.mxu0  ;;  %vm10021_vm14 = vcmp.eq.f32.partialorder %v12573_v5, 8.507059e+37  ;;  %vm2389_vm3 = vcmp.eq.f32.partialorder %v2388_v31, 8.507059e+37  ;;  %vm2400_vm4 = vweird.f32 %v9941_v21  ;;  %vm2818_vm5 = vweird.f32 %v9963_v37 }
 0x524   :  { %v2629_v43 = vmul.f32 %v9625_v15, %v2378_v25  ;;  %v2982_v60 = vsel %vm2932_vm12, %v2378_v25, 0.0  ;;  %v2237_v32 = vsub.f32 %v2178_v27, %v12572_v42  ;;  %6537 = vmatmul.msk.f32.gmra.mxu1 %vm417_vm0, %v7057_v12  ;;  %v10053_v27 = vadd.f32 %v9452_v14, %v12580_v47  ;;  %vm10087_vm8 = vmor %vm2399_vm6, %vm2400_vm4 }
 0x525   :  { %v2983_v10 = vadd.f32 %v2982_v60, %v2981_v26  ;;  %v2387_v26 = vsel %vm10028_vm15, %v9887_v0, %v2383_v53  ;;  %v2814_v60 = vsub.f32 1.0, %v2813_v63  ;;  %v2391_v42 = vor.u32 1.1754944e-38, %v2390_v58 }
 0x526   :  { %v2736_v8 = vmul.f32 %v9716_v55, %v2629_v43  ;;  %v2254_v25 = vmul.f32 2.0, %v2237_v32  ;;  %v2805_v55 = vsel %vm10047_vm2, %v9864_v50, %v9996_v49  ;;  %v10061_v0 = vadd.f32 %v9350_v36, %v9505_v57  ;;  %v10065_v43 = vpop.eup %6902 }
 0x527   :  { %v2392_v12 = vsel %vm2389_vm3, %v2391_v42, %v2387_v26  ;;  %v2398_v58 = vadd.f32 %v9941_v21, %v2397_v59  ;;  %v2411_v49 = vsub.f32 1.0, %v2410_v62  ;;  %v2838_v5 = vand.u32 2147483648, %v9989_v22  ;;  %v10072_v15 = vpop.eup %6904 }
 0x528   :  { %v2938_v38 = vsel %vm2932_vm12, %v2736_v8, 0.0  ;;  %v2272_v53 = vadd.f32 %v9505_v57, %v2254_v25  ;;  %v2405_v31 = vand.u32 2147483648, %v9868_v51  ;;  %v2815_v59 = vmul.f32 %v9963_v37, %v2814_v60  ;;  %v12581_v25 = vld [vmem:[#allocation65_spill] sm:$0xff] }
 0x529   :  { %v2939_v32 = vadd.f32 %v2938_v38, %v2937_v13  ;;  %v2180_v63 = vpop.f32.mrf.mxu1  ;;  %v2403_v13 = vand.u32 2147483647, %v9868_v51  ;;  %vm2817_vm7 = vweird.f32 %v9874_v17  ;;  %6906 = vrcp.f32 %v10061_v0  ;;  %v7058_v51 = vld [vmem:[#allocation4 + $0x20] sm:$0xff] }
 0x52a   :  { %v2393_v50 = vmul.f32 %v2392_v12, %v2272_v53  ;;  %v2181_v36 = vadd.f32 %v2180_v63, %v9882_v19  ;;  %v2402_v60 = vsel %vm10087_vm8, %v9941_v21, %v2398_v58  ;;  %v2836_v42 = vand.u32 2147483647, %v9989_v22  ;;  %v12584_v21 = vld [vmem:[#allocation92_spill] sm:$0xff] }
 0x52b   :  { %v10077_v8 = vpop.f32.mrf.mxu0  ;;  %v2425_v38 = vmul.f32 %v10072_v15, %v10000_v54  ;;  %v2412_v63 = vmul.f32 %v10005_v6, %v2411_v49  ;;  %v10109_v58 = vadd.f32 %v12584_v21, %v9452_v14  ;;  %v2406_v61 = vor.u32 1.1754944e-38, %v2405_v31  ;;  %v7059_v21 = vld [vmem:[#allocation4 + $0x28] sm:$0xff] }
 0x52c   :  { %v2630_v19 = vmul.f32 %v9675_v48, %v2393_v50  ;;  %v2984_v62 = vsel %vm2932_vm12, %v2393_v50, 0.0  ;;  %v2238_v26 = vsub.f32 %v2181_v36, %v12581_v25  ;;  %6538 = vmatmul.msk.f32.gmra.mxu1 %vm417_vm0, %v7058_v51  ;;  %v10098_v48 = vsel %vm10021_vm14, %v9919_v20, %v2805_v55  ;;  %v10111_v20 = vpop.f32.mrf.mxu3  ;;  %vm10147_vm14 = vmor %vm2817_vm7, %vm2818_vm5 }
 0x52d   :  { %v2985_v47 = vadd.f32 %v2984_v62, %v2983_v10  ;;  %v2828_v10 = vmul.f32 %v10065_v43, %v9989_v22  ;;  %vm10115_vm9 = vcmp.eq.f32.partialorder %v2821_v24, 8.507059e+37  ;;  %vm2404_vm10 = vcmp.eq.f32.partialorder %v2403_v13, 8.507059e+37 }
 0x52e   :  { %v2751_v53 = vmul.f32 %v9742_v4, %v2630_v19  ;;  %v2255_v12 = vmul.f32 2.0, %v2238_v26  ;;  %v10119_v4 = vor.u32 1.1754944e-38, %v2838_v5  ;;  %v2816_v49 = vadd.f32 %v9963_v37, %v2815_v59 }
 0x52f   :  { %v10126_v31 = vadd.f32 %v9363_v44, %v9505_v57  ;;  %v2407_v62 = vsel %vm2404_vm10, %v2406_v61, %v2402_v60  ;;  %vm2415_vm11 = vweird.f32 %v10005_v6  ;;  %v10129_v24 = vpop.eup %6906  ;;  %v2413_v18 = vadd.f32 %v10005_v6, %v2412_v63 }
 0x530   :  { %v2940_v50 = vsel %vm2932_vm12, %v2751_v53, 0.0  ;;  %v2273_v36 = vadd.f32 %v9505_v57, %v2255_v12  ;;  %v2426_v51 = vsub.f32 1.0, %v2425_v38  ;;  %v2829_v13 = vsub.f32 1.0, %v2828_v10  ;;  %v12587_v53 = vld [vmem:[#allocation70_spill] sm:$0xff] }
 0x531   :  { %v2941_v19 = vadd.f32 %v2940_v50, %v2939_v32  ;;  %v2183_v25 = vpop.f32.mrf.mxu1  ;;  %6908 = vrcp.f32 %v10109_v58  ;;  %vm2414_vm13 = vweird.f32 %v9945_v46  ;;  %v2420_v44 = vand.u32 2147483648, %v9945_v46  ;;  %v12593_v38 = vld [vmem:[#allocation74_spill] sm:$0xff] }
 0x532   :  { %v2408_v5 = vmul.f32 %v2407_v62, %v2273_v36  ;;  %v2184_v26 = vadd.f32 %v2183_v25, %v9954_v39  ;;  %v2418_v39 = vand.u32 2147483647, %v9945_v46  ;;  %6910 = vrcp.f32 %v10126_v31  ;;  %vm10156_vm15 = vmor %vm2414_vm13, %vm2415_vm11  ;;  %v12592_v36 = vld [vmem:[#allocation88_spill] sm:$0xff] }
 0x533   :  { %v10136_v32 = vpop.f32.mrf.mxu0  ;;  %v2820_v17 = vsel %vm10147_vm14, %v9963_v37, %v2816_v49  ;;  %vm2832_vm2 = vweird.f32 %v9989_v22  ;;  %v2417_v50 = vsel %vm10156_vm15, %v10005_v6, %v2413_v18  ;;  %v10171_v62 = vadd.f32 %v9452_v14, %v12592_v36 }
 0x534   :  { %v2631_v59 = vmul.f32 %v9691_v35, %v2408_v5  ;;  %v2986_v60 = vsel %vm2932_vm12, %v2408_v5, 0.0  ;;  %v2239_v12 = vsub.f32 %v2184_v26, %v12587_v53  ;;  %6539 = vmatmul.msk.f32.gmra.mxu1 %vm417_vm0, %v7059_v21  ;;  %v2440_v35 = vmul.f32 %v10129_v24, %v10061_v0 }
 0x535   :  { %v2987_v63 = vadd.f32 %v2986_v60, %v2985_v47  ;;  %v2427_v47 = vmul.f32 %v10072_v15, %v2426_v51  ;;  %v2421_v25 = vor.u32 1.1754944e-38, %v2420_v44  ;;  %v2830_v5 = vmul.f32 %v10065_v43, %v2829_v13 }
 0x536   :  { %v2766_v10 = vmul.f32 %v9805_v7, %v2631_v59  ;;  %v2256_v61 = vmul.f32 2.0, %v2239_v12  ;;  %vm2833_vm3 = vweird.f32 %v10065_v43  ;;  %vm2419_vm4 = vcmp.eq.f32.partialorder %v2418_v39, 8.507059e+37  ;;  %v10188_v59 = vpop.f32.mrf.mxu3 }
 0x537   :  { %v10180_v6 = vsel %vm10115_vm9, %v10035_v41, %v2820_v17  ;;  %v10182_v49 = vpop.eup %6908  ;;  %v10186_v26 = vadd.f32 %v9374_v52, %v9505_v57  ;;  %v2422_v51 = vsel %vm2419_vm4, %v2421_v25, %v2417_v50  ;;  %v2441_v44 = vsub.f32 1.0, %v2440_v35  ;;  %v7060_v17 = vld [vmem:[#allocation4 + $0x30] sm:$0xff]  ;;  %vm10228_vm8 = vmor %vm2832_vm2, %vm2833_vm3 }
 0x538   :  { %v2942_v37 = vsel %vm2932_vm12, %v2766_v10, 0.0  ;;  %v2274_v7 = vadd.f32 %v9505_v57, %v2256_v61  ;;  %v2428_v12 = vadd.f32 %v10072_v15, %v2427_v47  ;;  %vm2430_vm5 = vweird.f32 %v10072_v15  ;;  %v10193_v41 = vpop.eup %6910  ;;  %v12594_v10 = vld [vmem:[#allocation97_spill] sm:$0xff] }
 0x539   :  { %v2943_v18 = vadd.f32 %v2942_v37, %v2941_v19  ;;  %v2186_v13 = vpop.f32.mrf.mxu1  ;;  %vm2429_vm6 = vweird.f32 %v10000_v54  ;;  %v2435_v52 = vand.u32 2147483648, %v10000_v54  ;;  %v10198_v19 = vadd.f32 %v10065_v43, %v2830_v5 }
 0x53a   :  { %v2423_v60 = vmul.f32 %v2422_v51, %v2274_v7  ;;  %v2187_v53 = vadd.f32 %v2186_v13, %v10033_v2  ;;  %v2851_v39 = vand.u32 2147483647, %v10109_v58  ;;  %v2433_v46 = vand.u32 2147483647, %v10000_v54  ;;  %vm10213_vm7 = vmor %vm2429_vm6, %vm2430_vm5 }
 0x53b   :  { %v3107_v55 = vpop.f32.mrf.mxu0  ;;  %6912 = vrcp.f32 %v10186_v26  ;;  %v10209_v61 = vadd.f32 %v12594_v10, %v9452_v14  ;;  %v2442_v47 = vmul.f32 %v10129_v24, %v2441_v44  ;;  %v2455_v54 = vmul.f32 %v10193_v41, %v10126_v31 }
 0x53c   :  { %v2632_v21 = vmul.f32 %v9732_v11, %v2423_v60  ;;  %v2988_v2 = vsel %vm2932_vm12, %v2423_v60, 0.0  ;;  %v2240_v35 = vsub.f32 %v2187_v53, %v12593_v38  ;;  %6540 = vmatmul.msk.f32.gmra.mxu1 %vm417_vm0, %v7060_v17  ;;  %v2432_v5 = vsel %vm10213_vm7, %v10072_v15, %v2428_v12 }
 0x53d   :  { %v2989_v50 = vadd.f32 %v2988_v2, %v2987_v63  ;;  %vm10234_vm9 = vcmp.eq.f32.partialorder %v2836_v42, 8.507059e+37  ;;  %v2436_v7 = vor.u32 1.1754944e-38, %v2435_v52  ;;  %v2835_v15 = vsel %vm10228_vm8, %v10065_v43, %v10198_v19 }
 0x53e   :  { %v2781_v36 = vmul.f32 %v9854_v40, %v2632_v21  ;;  %v2257_v25 = vmul.f32 2.0, %v2240_v35  ;;  %v2843_v40 = vmul.f32 %v10182_v49, %v10109_v58  ;;  %v2853_v51 = vand.u32 2147483648, %v10109_v58  ;;  %v10260_v35 = vpop.f32.mrf.mxu3 }
 0x53f   :  { %v10247_v13 = vadd.f32 %v9385_v16, %v9505_v57  ;;  %vm2434_vm10 = vcmp.eq.f32.partialorder %v2433_v46, 8.507059e+37  ;;  %v2443_v12 = vadd.f32 %v10129_v24, %v2442_v47  ;;  %vm2445_vm11 = vweird.f32 %v10129_v24  ;;  %v7061_v47 = vld [vmem:[#allocation4 + $0x38] sm:$0xff] }
 0x540   :  { %v2944_v22 = vsel %vm2932_vm12, %v2781_v36, 0.0  ;;  %v2275_v42 = vadd.f32 %v9505_v57, %v2257_v25  ;;  %v2437_v60 = vsel %vm2434_vm10, %v2436_v7, %v2432_v5  ;;  %6914 = vrcp.f32 %v10209_v61 }
 0x541   :  { %v2945_v44 = vadd.f32 %v2944_v22, %v2943_v18  ;;  %v2189_v53 = vpop.f32.mrf.mxu1  ;;  %v2456_v19 = vsub.f32 1.0, %v2455_v54  ;;  %v10255_v16 = vpop.eup %6912  ;;  %v2844_v21 = vsub.f32 1.0, %v2843_v40  ;;  %vm2444_vm13 = vweird.f32 %v10061_v0 }
 0x542   :  { %v2438_v43 = vmul.f32 %v2437_v60, %v2275_v42  ;;  %v2190_v52 = vadd.f32 %v2189_v53, %v10111_v20  ;;  %v2448_v2 = vand.u32 2147483647, %v10061_v0  ;;  %v2450_v18 = vand.u32 2147483648, %v10061_v0  ;;  %v12601_v20 = vld [vmem:[#allocation78_spill] sm:$0xff]  ;;  %vm10268_vm14 = vmor %vm2444_vm13, %vm2445_vm11  ;;  %v12604_v0 = vld [vmem:[#allocation93_spill] sm:$0xff] }
 0x543   :  { %v3110_v38 = vpop.f32.mrf.mxu0  ;;  %6916 = vrcp.f32 %v10247_v13  ;;  %v10275_v54 = vadd.f32 %v9452_v14, %v12604_v0  ;;  %v10280_v25 = vor.u32 1.1754944e-38, %v2853_v51  ;;  %v2470_v5 = vmul.f32 %v10255_v16, %v10186_v26 }
 0x544   :  { %v2633_v46 = vmul.f32 %v9793_v56, %v2438_v43  ;;  %v2990_v17 = vsel %vm2932_vm12, %v2438_v43, 0.0  ;;  %v2241_v10 = vsub.f32 %v2190_v52, %v12601_v20  ;;  %3173 = vmatpush.msra.mxu3 %v3110_v38  ;;  %6541 = vmatmul.msk.f32.gmra.mxu1 %vm417_vm0, %v7061_v47  ;;  %v2447_v56 = vsel %vm10268_vm14, %v10129_v24, %v2443_v12 }
 0x545   :  { %v2991_v36 = vadd.f32 %v2990_v17, %v2989_v50  ;;  %v2457_v7 = vmul.f32 %v10193_v41, %v2456_v19  ;;  %v2451_v22 = vor.u32 1.1754944e-38, %v2450_v18  ;;  %v10289_v50 = vsel %vm10234_vm9, %v10119_v4, %v2835_v15  ;;  %v7062_v17 = vld [vmem:[#allocation4 + $0x40] sm:$0xff] }
 0x546   :  { %v2796_v63 = vmul.f32 %v9979_v28, %v2633_v46  ;;  %v2258_v40 = vmul.f32 2.0, %v2241_v10  ;;  %3174 = vmatpush.msra.mxu3 %v3107_v55  ;;  %vm2848_vm15 = vweird.f32 %v10182_v49  ;;  %v2868_v24 = vand.u32 2147483648, %v10209_v61  ;;  %v10293_v51 = vpop.eup %6914  ;;  %v10337_v11 = vpop.f32.mrf.mxu3 }
 0x547   :  { %vm2449_vm2 = vcmp.eq.f32.partialorder %v2448_v2, 8.507059e+37  ;;  %v2845_v55 = vmul.f32 %v10182_v49, %v2844_v21  ;;  %v10301_v37 = vadd.f32 %v9396_v23, %v9505_v57  ;;  %vm2460_vm3 = vweird.f32 %v10193_v41 }
 0x548   :  { %v2946_v42 = vsel %vm2932_vm12, %v2796_v63, 0.0  ;;  %v2276_v28 = vadd.f32 %v9505_v57, %v2258_v40  ;;  %3175 = vmatpush.msra.mxu3 %v10136_v32  ;;  %v2452_v15 = vsel %vm2449_vm2, %v2451_v22, %v2447_v56  ;;  %vm2847_vm4 = vweird.f32 %v10109_v58 }
 0x549   :  { %v2947_v4 = vadd.f32 %v2946_v42, %v2945_v44  ;;  %v2192_v60 = vpop.f32.mrf.mxu1  ;;  %v10305_v53 = vpop.eup %6916  ;;  %v2458_v32 = vadd.f32 %v10193_v41, %v2457_v7  ;;  %v2471_v52 = vsub.f32 1.0, %v2470_v5  ;;  %v10312_v23 = vmul.f32 %v10293_v51, %v10209_v61  ;;  %v12605_v44 = vld [vmem:[#allocation102_spill] sm:$0xff]  ;;  %vm10372_vm10 = vmor %vm2847_vm4, %vm2848_vm15 }
 0x54a   :  { %v2453_v12 = vmul.f32 %v2452_v15, %v2276_v28  ;;  %v2193_v43 = vadd.f32 %v2192_v60, %v10188_v59  ;;  %3176 = vmatpush.msra.mxu3 %v10077_v8  ;;  %v10316_v19 = vadd.f32 %v12605_v44, %v9452_v14  ;;  %vm2459_vm5 = vweird.f32 %v10126_v31  ;;  %v12606_v8 = vld [vmem:[#allocation82_spill] sm:$0xff]  ;;  %v7063_v44 = vld [vmem:[#allocation4 + $0x48] sm:$0xff] }
 0x54b   :  { %v2465_v21 = vand.u32 2147483648, %v10126_v31  ;;  %v10320_v2 = vpop.f32.mrf.mxu0  ;;  %v2463_v46 = vand.u32 2147483647, %v10126_v31  ;;  %v2485_v20 = vmul.f32 %v10305_v53, %v10247_v13  ;;  %6918 = vrcp.f32 %v10301_v37  ;;  %vm10333_vm6 = vmor %vm2459_vm5, %vm2460_vm3 }
 0x54c   :  { %v2634_v59 = vmul.f32 %v9833_v1, %v2453_v12  ;;  %v2992_v18 = vsel %vm2932_vm12, %v2453_v12, 0.0  ;;  %v2242_v38 = vsub.f32 %v2193_v43, %v12606_v8  ;;  %3177 = vmatpush.msra.mxu3 %v10012_v29  ;;  %6542 = vmatmul.msk.f32.gmra.mxu1 %vm417_vm0, %v7062_v17  ;;  %v2866_v31 = vand.u32 2147483647, %v10209_v61  ;;  %v12617_v17 = vld [vmem:[#allocation59_spill] sm:$0xff] }
 0x54d   :  { %v2993_v10 = vadd.f32 %v2992_v18, %v2991_v36  ;;  %v2462_v0 = vsel %vm10333_vm6, %v10193_v41, %v2458_v32  ;;  %v2472_v36 = vmul.f32 %v10255_v16, %v2471_v52  ;;  %vm10348_vm7 = vcmp.eq.f32.partialorder %v2851_v39, 8.507059e+37  ;;  %v12614_v32 = vld [vmem:[#allocation86_spill] sm:$0xff] }
 0x54e   :  { %v2811_v29 = vmul.f32 %v10098_v48, %v2634_v59  ;;  %v2259_v47 = vmul.f32 2.0, %v2242_v38  ;;  %3178 = vmatpush.msra.mxu3 %v9952_v34  ;;  %6920 = vrcp.f32 %v10316_v19  ;;  %v2466_v5 = vor.u32 1.1754944e-38, %v2465_v21 }
 0x54f   :  { %v2846_v48 = vadd.f32 %v10182_v49, %v2845_v55  ;;  %v10354_v63 = vor.u32 1.1754944e-38, %v2868_v24  ;;  %vm2464_vm8 = vcmp.eq.f32.partialorder %v2463_v46, 8.507059e+37  ;;  %v2859_v34 = vsub.f32 1.0, %v10312_v23 }
 0x550   :  { %v2948_v40 = vsel %vm2932_vm12, %v2811_v29, 0.0  ;;  %v2277_v41 = vadd.f32 %v9505_v57, %v2259_v47  ;;  %3179 = vmatpush.msra.mxu3 %v9893_v9  ;;  %v10362_v39 = vadd.f32 %v9407_v33, %v9505_v57  ;;  %v2467_v22 = vsel %vm2464_vm8, %v2466_v5, %v2462_v0  ;;  %v12619_v47 = vld [vmem:[#allocation48_spill] sm:$0xff]  ;;  %v12620_v5 = vld [vmem:[#allocation121_spill] sm:$0xff] }
 0x551   :  { %v2949_v7 = vadd.f32 %v2948_v40, %v2947_v4  ;;  %v2195_v42 = vpop.f32.mrf.mxu1  ;;  %v2486_v28 = vsub.f32 1.0, %v2485_v20  ;;  %v2473_v15 = vadd.f32 %v10255_v16, %v2472_v36  ;;  %vm2475_vm9 = vweird.f32 %v10255_v16  ;;  %v10376_v9 = vpop.eup %6918  ;;  %v12613_v4 = vld [vmem:[#allocation98_spill] sm:$0xff] }
 0x552   :  { %v2468_v55 = vmul.f32 %v2467_v22, %v2277_v41  ;;  %v2196_v24 = vadd.f32 %v2195_v42, %v10260_v35  ;;  %3180 = vmatpush.msra.mxu3 %v9836_v45  ;;  %v10380_v60 = vadd.f32 %v9452_v14, %v12613_v4  ;;  %vm2474_vm11 = vweird.f32 %v10186_v26  ;;  %v12621_v22 = vld [vmem:[#allocation51_spill] sm:$0xff] }
 0x553   :  { %v2480_v35 = vand.u32 2147483648, %v10186_v26  ;;  %v2850_v45 = vsel %vm10372_vm10, %v10182_v49, %v2846_v48  ;;  %v10387_v12 = vpop.f32.mrf.mxu0  ;;  %v2478_v23 = vand.u32 2147483647, %v10186_v26  ;;  %vm2863_vm13 = vweird.f32 %v10293_v51  ;;  %vm10403_vm14 = vmor %vm2474_vm11, %vm2475_vm9  ;;  %v12618_v26 = vld [vmem:[#allocation107_spill] sm:$0xff] }
 0x554   :  { %v2635_v58 = vmul.f32 %v9914_v30, %v2468_v55  ;;  %v2994_v43 = vsel %vm2932_vm12, %v2468_v55, 0.0  ;;  %v2243_v52 = vsub.f32 %v2196_v24, %v12614_v32  ;;  %3181 = vmatpush.msra.mxu3 %v9762_v3  ;;  %6543 = vmatmul.msk.f32.gmra.mxu1 %vm417_vm0, %v7063_v44  ;;  %v10396_v21 = vpop.eup %6920  ;;  %6922 = vrcp.f32 %v10362_v39 }
 0x555   :  { %v2995_v49 = vadd.f32 %v2994_v43, %v2993_v10  ;;  %v2487_v3 = vmul.f32 %v10305_v53, %v2486_v28  ;;  %v2860_v59 = vmul.f32 %v10293_v51, %v2859_v34  ;;  %v2500_v18 = vmul.f32 %v10376_v9, %v10301_v37  ;;  %v7064_v43 = vld [vmem:[#allocation4 + $0x50] sm:$0xff] }
 0x556   :  { %v2826_v8 = vmul.f32 %v10180_v6, %v2635_v58  ;;  %v2260_v38 = vmul.f32 2.0, %v2243_v52  ;;  %v2477_v46 = vsel %vm10403_vm14, %v10255_v16, %v2473_v15  ;;  %3182 = vmatpush.msra.mxu3 %v12617_v17  ;;  %vm2862_vm15 = vweird.f32 %v10209_v61  ;;  %v2133_v6 = vpop.f32.mrf.mxu3  ;;  %v12632_v17 = vld [vmem:[#allocation44_spill] sm:$0xff]  ;;  %v12633_v61 = vld [vmem:[#allocation118_spill] sm:$0xff] }
 0x557   :  { %v10419_v20 = vadd.f32 %v12618_v26, %v9452_v14  ;;  %v2481_v10 = vor.u32 1.1754944e-38, %v2480_v35  ;;  %v10424_v1 = vsel %vm10348_vm7, %v10280_v25, %v2850_v45  ;;  %v2883_v29 = vand.u32 2147483648, %v10316_v19  ;;  %v12622_v35 = vld [vmem:[#allocation91_spill] sm:$0xff]  ;;  %vm10486_vm7 = vmor %vm2862_vm15, %vm2863_vm13 }
 0x558   :  { %v10429_v16 = vadd.f32 %v12619_v47, %v9505_v57  ;;  %v2950_v0 = vsel %vm2932_vm12, %v2826_v8, 0.0  ;;  %v2278_v36 = vadd.f32 %v9505_v57, %v2260_v38  ;;  %vm2479_vm2 = vcmp.eq.f32.partialorder %v2478_v23, 8.507059e+37  ;;  %3183 = vmatpush.msra.mxu3 %v12620_v5 }
 0x559   :  { %v2482_v48 = vsel %vm2479_vm2, %v2481_v10, %v2477_v46  ;;  %v2198_v40 = vpop.f32.mrf.mxu1  ;;  %v2488_v56 = vadd.f32 %v10305_v53, %v2487_v3  ;;  %vm2490_vm3 = vweird.f32 %v10305_v53  ;;  %v2951_v25 = vadd.f32 %v2950_v0, %v2949_v7  ;;  %v12626_v3 = vld [vmem:[#allocation120_spill] sm:$0xff] }
 0x55a   :  { %v2483_v41 = vmul.f32 %v2482_v48, %v2278_v36  ;;  %v2199_v34 = vadd.f32 %v2198_v40, %v10337_v11  ;;  %3184 = vmatpush.msra.mxu3 %v12621_v22  ;;  %v2501_v42 = vsub.f32 1.0, %v2500_v18  ;;  %v10439_v28 = vadd.f32 %v10293_v51, %v2860_v59  ;;  %v10441_v55 = vpop.eup %6922 }
 0x55b   :  { %vm2489_vm4 = vweird.f32 %v10247_v13  ;;  %v2493_v24 = vand.u32 2147483647, %v10247_v13  ;;  %v2495_v15 = vand.u32 2147483648, %v10247_v13  ;;  %v10446_v33 = vpop.f32.mrf.mxu0  ;;  %v2873_v7 = vmul.f32 %v10396_v21, %v10316_v19  ;;  %v12625_v13 = vld [vmem:[#allocation43_spill] sm:$0xff] }
 0x55c   :  { %6924 = vrcp.f32 %v10429_v16  ;;  %v2636_v11 = vmul.f32 %v10053_v27, %v2483_v41  ;;  %v2996_v4 = vsel %vm2932_vm12, %v2483_v41, 0.0  ;;  %v2244_v45 = vsub.f32 %v2199_v34, %v12622_v35  ;;  %vm10456_vm5 = vmor %vm2489_vm4, %vm2490_vm3  ;;  %3185 = vmatpush.msra.mxu3 %v12625_v13  ;;  %6544 = vmatmul.msk.f32.gmra.mxu1 %vm417_vm0, %v7064_v43  ;;  %v12634_v34 = vld [vmem:[#allocation50_spill] sm:$0xff]  ;;  %v12636_v35 = vld [vmem:[#allocation103_spill] sm:$0xff] }
 0x55d   :  { %6926 = vrcp.f32 %v10419_v20  ;;  %v2997_v32 = vadd.f32 %v2996_v4, %v2995_v49  ;;  %v2492_v27 = vsel %vm10456_vm5, %v10305_v53, %v2488_v56  ;;  %v2881_v52 = vand.u32 2147483647, %v10316_v19  ;;  %v12629_v53 = vld [vmem:[#allocation112_spill] sm:$0xff]  ;;  %v7065_v4 = vld [vmem:[#allocation4 + $0x58] sm:$0xff] }
 0x55e   :  { %v2515_v23 = vmul.f32 %v10441_v55, %v10362_v39  ;;  %v2841_v44 = vmul.f32 %v10289_v50, %v2636_v11  ;;  %v2261_v30 = vmul.f32 2.0, %v2244_v45  ;;  %3186 = vmatpush.msra.mxu3 %v12626_v3  ;;  %v2502_v59 = vmul.f32 %v10376_v9, %v2501_v42 }
 0x55f   :  { %vm10474_vm6 = vcmp.eq.f32.partialorder %v2866_v31, 8.507059e+37  ;;  %v10480_v18 = vadd.f32 %v12629_v53, %v9452_v14  ;;  %v2496_v8 = vor.u32 1.1754944e-38, %v2495_v15  ;;  %v2874_v38 = vsub.f32 1.0, %v2873_v7  ;;  %v12635_v15 = vld [vmem:[#allocation96_spill] sm:$0xff]  ;;  %v12639_v53 = vld [vmem:[#allocation119_spill] sm:$0xff] }
 0x560   :  { %v10490_v46 = vor.u32 1.1754944e-38, %v2883_v29  ;;  %v2279_v31 = vadd.f32 %v9505_v57, %v2261_v30  ;;  %vm2494_vm8 = vcmp.eq.f32.partialorder %v2493_v24, 8.507059e+37  ;;  %3187 = vmatpush.msra.mxu3 %v12632_v17  ;;  %v2865_v26 = vsel %vm10486_vm7, %v10293_v51, %v10439_v28  ;;  %v2136_v29 = vpop.f32.mrf.mxu3 }
 0x561   :  { %v2952_v10 = vsel %vm2932_vm12, %v2841_v44, 0.0  ;;  %v10501_v47 = vadd.f32 %v12633_v61, %v9505_v57  ;;  %v2497_v0 = vsel %vm2494_vm8, %v2496_v8, %v2492_v27  ;;  %v2201_v36 = vpop.f32.mrf.mxu1  ;;  %vm2505_vm9 = vweird.f32 %v10376_v9  ;;  %v12640_v61 = vld [vmem:[#allocation117_spill] sm:$0xff] }
 0x562   :  { %v2953_v5 = vadd.f32 %v2952_v10, %v2951_v25  ;;  %v10504_v48 = vpop.eup %6924  ;;  %v2498_v40 = vmul.f32 %v2497_v0, %v2279_v31  ;;  %v2202_v56 = vadd.f32 %v2201_v36, %v2133_v6  ;;  %v2503_v41 = vadd.f32 %v10376_v9, %v2502_v59  ;;  %3188 = vmatpush.msra.mxu3 %v12634_v34  ;;  %v12641_v34 = vld [vmem:[#allocation101_spill] sm:$0xff] }
 0x563   :  { %v2516_v51 = vsub.f32 1.0, %v2515_v23  ;;  %v10508_v22 = vpop.eup %6926  ;;  %6928 = vrcp.f32 %v10480_v18  ;;  %vm2504_vm10 = vweird.f32 %v10301_v37  ;;  %v2510_v42 = vand.u32 2147483648, %v10301_v37  ;;  %v10513_v28 = vpop.f32.mrf.mxu0 }
 0x564   :  { %v2875_v25 = vmul.f32 %v10396_v21, %v2874_v38  ;;  %v2637_v24 = vmul.f32 %v10171_v62, %v2498_v40  ;;  %v2998_v6 = vsel %vm2932_vm12, %v2498_v40, 0.0  ;;  %v2245_v7 = vsub.f32 %v2202_v56, %v12635_v15  ;;  %6545 = vmatmul.msk.f32.gmra.mxu1 %vm417_vm0, %v7065_v4  ;;  %vm10530_vm11 = vmor %vm2504_vm10, %vm2505_vm9 }
 0x565   :  { %v2508_v11 = vand.u32 2147483647, %v10301_v37  ;;  %v10523_v45 = vadd.f32 %v9452_v14, %v12636_v35  ;;  %v2530_v58 = vmul.f32 %v10504_v48, %v10429_v16  ;;  %6930 = vrcp.f32 %v10501_v47 }
 0x566   :  { %v2999_v13 = vadd.f32 %v2998_v6, %v2997_v32  ;;  %vm2877_vm13 = vweird.f32 %v10316_v19  ;;  %v2856_v37 = vmul.f32 %v10424_v1, %v2637_v24  ;;  %v2262_v43 = vmul.f32 2.0, %v2245_v7 }
 0x567   :  { %v2507_v27 = vsel %vm10530_vm11, %v10376_v9, %v2503_v41  ;;  %v2517_v23 = vmul.f32 %v10441_v55, %v2516_v51  ;;  %v2511_v44 = vor.u32 1.1754944e-38, %v2510_v42  ;;  %v2870_v32 = vsel %vm10474_vm6, %v10354_v63, %v2865_v26 }
 0x568   :  { %vm2878_vm14 = vweird.f32 %v10396_v21  ;;  %v2888_v30 = vmul.f32 %v10508_v22, %v10419_v20  ;;  %v2280_v3 = vadd.f32 %v9505_v57, %v2262_v43  ;;  %vm2509_vm15 = vcmp.eq.f32.partialorder %v2508_v11, 8.507059e+37  ;;  %v2139_v40 = vpop.f32.mrf.mxu3 }
 0x569   :  { %v10548_v1 = vadd.f32 %v10396_v21, %v2875_v25  ;;  %v2954_v9 = vsel %vm2932_vm12, %v2856_v37, 0.0  ;;  %v10551_v59 = vpop.eup %6928  ;;  %v10555_v8 = vadd.f32 %v12639_v53, %v9505_v57  ;;  %v2512_v63 = vsel %vm2509_vm15, %v2511_v44, %v2507_v27  ;;  %v2204_v49 = vpop.f32.mrf.mxu1  ;;  %v7066_v25 = vld [vmem:[#allocation4 + $0x60] sm:$0xff]  ;;  %vm10598_vm6 = vmor %vm2877_vm13, %vm2878_vm14 }
 0x56a   :  { %v2531_v50 = vsub.f32 1.0, %v2530_v58  ;;  %v2955_v38 = vadd.f32 %v2954_v9, %v2953_v5  ;;  %v2513_v31 = vmul.f32 %v2512_v63, %v2280_v3  ;;  %v2205_v17 = vadd.f32 %v2204_v49, %v2136_v29  ;;  %v10622_v49 = vld [vmem:[#allocation9] sm:$0xff] }
 0x56b   :  { %v2518_v26 = vadd.f32 %v10441_v55, %v2517_v23  ;;  %vm2520_vm2 = vweird.f32 %v10441_v55  ;;  %v10559_v10 = vpop.eup %6930  ;;  %v10563_v0 = vadd.f32 %v12640_v61, %v9452_v14  ;;  %vm2519_vm3 = vweird.f32 %v10362_v39  ;;  %v10567_v56 = vpop.f32.mrf.mxu0  ;;  %v7067_v61 = vld [vmem:[#allocation4 + $0x68] sm:$0xff]  ;;  %3189 = vmatmul.f32.vlgmr.msra.gmra.mxu3 %v10622_v49 }
 0x56c   :  { %v2525_v36 = vand.u32 2147483648, %v10362_v39  ;;  %v2889_v5 = vsub.f32 1.0, %v2888_v30  ;;  %v2638_v29 = vmul.f32 %v10275_v54, %v2513_v31  ;;  %v3000_v41 = vsel %vm2932_vm12, %v2513_v31, 0.0  ;;  %6546 = vmatmul.msk.f32.gmra.mxu1 %vm417_vm0, %v7066_v25  ;;  %vm10583_vm5 = vmor %vm2519_vm3, %vm2520_vm2 }
 0x56d   :  { %v2246_v51 = vsub.f32 %v2205_v17, %v12641_v34  ;;  %v2523_v42 = vand.u32 2147483647, %v10362_v39  ;;  %vm10576_vm4 = vcmp.eq.f32.partialorder %v2881_v52, 8.507059e+37  ;;  %6932 = vrcp.f32 %v10555_v8 }
 0x56e   :  { %v2532_v6 = vmul.f32 %v10504_v48, %v2531_v50  ;;  %v2896_v39 = vand.u32 2147483647, %v10419_v20  ;;  %v3001_v15 = vadd.f32 %v3000_v41, %v2999_v13  ;;  %v2545_v7 = vmul.f32 %v10559_v10, %v10501_v47 }
 0x56f   :  { %v2263_v52 = vmul.f32 2.0, %v2246_v51  ;;  %v2522_v11 = vsel %vm10583_vm5, %v10441_v55, %v2518_v26  ;;  %v2871_v4 = vmul.f32 %v2870_v32, %v2638_v29  ;;  %v2526_v58 = vor.u32 1.1754944e-38, %v2525_v36 }
 0x570   :  { %v2880_v13 = vsel %vm10598_vm6, %v10396_v21, %v10548_v1  ;;  %v2890_v62 = vmul.f32 %v10508_v22, %v2889_v5  ;;  %v2903_v55 = vmul.f32 %v10551_v59, %v10480_v18  ;;  %6934 = vrcp.f32 %v10563_v0 }
 0x571   :  { %v2281_v37 = vadd.f32 %v9505_v57, %v2263_v52  ;;  %vm2524_vm7 = vcmp.eq.f32.partialorder %v2523_v42, 8.507059e+37  ;;  %v2956_v19 = vsel %vm2932_vm12, %v2871_v4, 0.0  ;;  %v2207_v27 = vpop.f32.mrf.mxu1  ;;  %v2533_v23 = vadd.f32 %v10504_v48, %v2532_v6 }
 0x572   :  { %v2527_v43 = vsel %vm2524_vm7, %v2526_v58, %v2522_v11  ;;  %vm2535_vm8 = vweird.f32 %v10504_v48  ;;  %v2957_v44 = vadd.f32 %v2956_v19, %v2955_v38  ;;  %v2208_v32 = vadd.f32 %v2207_v27, %v2139_v40  ;;  %v12648_v38 = vld [vmem:[#allocation106_spill] sm:$0xff]  ;;  %v2142_v40 = vpop.f32.mrf.mxu3  ;;  %v12655_v19 = vld [vmem:[#allocation111_spill] sm:$0xff] }
 0x573   :  { %v2528_v21 = vmul.f32 %v2527_v43, %v2281_v37  ;;  %v2546_v30 = vsub.f32 1.0, %v2545_v7  ;;  %vm2893_vm9 = vweird.f32 %v10508_v22  ;;  %v10615_v3 = vpop.eup %6932  ;;  %vm2534_vm10 = vweird.f32 %v10429_v16  ;;  %v10619_v9 = vpop.f32.mrf.mxu0  ;;  %v10672_v37 = vld [vmem:[#allocation9 + $0x10] sm:$0xff] }
 0x574   :  { %v2540_v1 = vand.u32 2147483648, %v10429_v16  ;;  %v2891_v53 = vadd.f32 %v10508_v22, %v2890_v62  ;;  %v2904_v63 = vsub.f32 1.0, %v2903_v55  ;;  %v2247_v31 = vsub.f32 %v2208_v32, %v12648_v38  ;;  %vm10628_vm11 = vmor %vm2534_vm10, %vm2535_vm8  ;;  %6547 = vmatmul.msk.f32.gmra.mxu1 %vm417_vm0, %v7067_v61  ;;  %3192 = vmatmul.f32.gmra.mxu3 %v10672_v37 }
 0x575   :  { %v2639_v50 = vmul.f32 %v10380_v60, %v2528_v21  ;;  %v2538_v26 = vand.u32 2147483647, %v10429_v16  ;;  %v3002_v36 = vsel %vm2932_vm12, %v2528_v21, 0.0  ;;  %v2537_v60 = vsel %vm10628_vm11, %v10504_v48, %v2533_v23  ;;  %v7068_v23 = vld [vmem:[#allocation4 + $0x70] sm:$0xff] }
 0x576   :  { %v2885_v5 = vsel %vm10576_vm4, %v10490_v46, %v2880_v13  ;;  %vm2892_vm13 = vweird.f32 %v10419_v20  ;;  %v3003_v29 = vadd.f32 %v3002_v36, %v3001_v15  ;;  %v10643_v16 = vpop.eup %6934  ;;  %v2264_v41 = vmul.f32 2.0, %v2247_v31  ;;  %v12658_v36 = vld [vmem:[#allocation108_spill] sm:$0xff] }
 0x577   :  { %v2547_v34 = vmul.f32 %v10559_v10, %v2546_v30  ;;  %v2560_v51 = vmul.f32 %v10615_v3, %v10555_v8  ;;  %v2886_v42 = vmul.f32 %v2885_v5, %v2639_v50  ;;  %vm10650_vm14 = vmor %vm2892_vm13, %vm2893_vm9  ;;  %v2541_v25 = vor.u32 1.1754944e-38, %v2540_v1 }
 0x578   :  { %v2895_v46 = vsel %vm10650_vm14, %v10508_v22, %v2891_v53  ;;  %vm10657_vm15 = vcmp.eq.f32.partialorder %v2896_v39, 8.507059e+37  ;;  %v2898_v54 = vand.u32 2147483648, %v10419_v20  ;;  %v2282_v6 = vadd.f32 %v9505_v57, %v2264_v41 }
 0x579   :  { %vm2539_vm2 = vcmp.eq.f32.partialorder %v2538_v26, 8.507059e+37  ;;  %v2905_v15 = vmul.f32 %v10551_v59, %v2904_v63  ;;  %v2958_v7 = vsel %vm2932_vm12, %v2886_v42, 0.0  ;;  %v2210_v11 = vpop.f32.mrf.mxu1  ;;  %vm2550_vm3 = vweird.f32 %v10559_v10 }
 0x57a   :  { %v2542_v52 = vsel %vm2539_vm2, %v2541_v25, %v2537_v60  ;;  %v2918_v22 = vmul.f32 %v10643_v16, %v10563_v0  ;;  %v2959_v39 = vadd.f32 %v2958_v7, %v2957_v44  ;;  %v2211_v35 = vadd.f32 %v2210_v11, %v2142_v40  ;;  %v2145_v17 = vpop.f32.mrf.mxu3  ;;  %v7069_v7 = vld [vmem:[#allocation4 + $0x78] sm:$0xff] }
 0x57b   :  { %v2543_v4 = vmul.f32 %v2542_v52, %v2282_v6  ;;  %v2548_v58 = vadd.f32 %v10559_v10, %v2547_v34  ;;  %v2561_v20 = vsub.f32 1.0, %v2560_v51  ;;  %vm2549_vm4 = vweird.f32 %v10501_v47  ;;  %v3131_v62 = vpop.f32.mrf.mxu0  ;;  %v10714_v6 = vld [vmem:[#allocation9 + $0x20] sm:$0xff] }
 0x57c   :  { %v2555_v13 = vand.u32 2147483648, %v10501_v47  ;;  %v2899_v55 = vor.u32 1.1754944e-38, %v2898_v54  ;;  %vm2908_vm5 = vweird.f32 %v10551_v59  ;;  %v2248_v43 = vsub.f32 %v2211_v35, %v12655_v19  ;;  %6548 = vmatmul.msk.f32.gmra.mxu1 %vm417_vm0, %v7068_v23  ;;  %vm10682_vm6 = vmor %vm2549_vm4, %vm2550_vm3  ;;  %3195 = vmatmul.f32.gmra.mxu3 %v10714_v6 }
 0x57d   :  { %v2553_v27 = vand.u32 2147483647, %v10501_v47  ;;  %v2640_v44 = vmul.f32 %v10523_v45, %v2543_v4  ;;  %v3004_v21 = vsel %vm2932_vm12, %v2543_v4, 0.0  ;;  %v2906_v47 = vadd.f32 %v10551_v59, %v2905_v15  ;;  %v12661_v15 = vld [vmem:[#allocation116_spill] sm:$0xff] }
 0x57e   :  { %v2900_v30 = vsel %vm10657_vm15, %v2899_v55, %v2895_v46  ;;  %v2919_v1 = vsub.f32 1.0, %v2918_v22  ;;  %v3005_v53 = vadd.f32 %v3004_v21, %v3003_v29  ;;  %v2265_v63 = vmul.f32 2.0, %v2248_v43 }
 0x57f   :  { %v2552_v45 = vsel %vm10682_vm6, %v10559_v10, %v2548_v58  ;;  %v2562_v50 = vmul.f32 %v10615_v3, %v2561_v20  ;;  %v2901_v38 = vmul.f32 %v2900_v30, %v2640_v44  ;;  %v2556_v31 = vor.u32 1.1754944e-38, %v2555_v13  ;;  %v10790_v10 = vld [vmem:[#allocation9 + $0x38] sm:$0xff] }
 0x580   :  { %vm2907_vm7 = vweird.f32 %v10480_v18  ;;  %v2911_v26 = vand.u32 2147483647, %v10480_v18  ;;  %v2913_v61 = vand.u32 2147483648, %v10480_v18  ;;  %v2624_v60 = vadd.f32 %v9452_v14, %v12658_v36 }
 0x581   :  { %v2283_v40 = vadd.f32 %v9505_v57, %v2265_v63  ;;  %vm2554_vm8 = vcmp.eq.f32.partialorder %v2553_v27, 8.507059e+37  ;;  %vm10701_vm9 = vmor %vm2907_vm7, %vm2908_vm5  ;;  %v2960_v5 = vsel %vm2932_vm12, %v2901_v38, 0.0  ;;  %v2213_v41 = vpop.f32.mrf.mxu1  ;;  %v2920_v34 = vmul.f32 %v10643_v16, %v2919_v1  ;;  %v7070_v1 = vld [vmem:[#allocation4 + $0x80] sm:$0xff] }
 0x582   :  { %v2557_v29 = vsel %vm2554_vm8, %v2556_v31, %v2552_v45  ;;  %v2910_v18 = vsel %vm10701_vm9, %v10551_v59, %v2906_v47  ;;  %v2961_v51 = vadd.f32 %v2960_v5, %v2959_v39  ;;  %v2214_v48 = vadd.f32 %v2213_v41, %v2145_v17  ;;  %v10750_v47 = vld [vmem:[#allocation9 + $0x30] sm:$0xff]  ;;  %v7071_v17 = vld [vmem:[#allocation4 + $0x88] sm:$0xff]  ;;  %v10835_v39 = vld [vmem:[#allocation9 + $0x88] sm:$0xff] }
 0x583   :  { %v2558_v42 = vmul.f32 %v2557_v29, %v2283_v40  ;;  %v2563_v25 = vadd.f32 %v10615_v3, %v2562_v50  ;;  %vm2565_vm10 = vweird.f32 %v10615_v3  ;;  %vm2564_vm11 = vweird.f32 %v10555_v8  ;;  %v3134_v54 = vpop.f32.mrf.mxu0  ;;  %v7073_v40 = vld [vmem:[#allocation4 + $0x98] sm:$0xff]  ;;  %v10796_v29 = vld [vmem:[#allocation9 + $0x70] sm:$0xff] }
 0x584   :  { %v2570_v46 = vand.u32 2147483648, %v10555_v8  ;;  %vm2912_vm13 = vcmp.eq.f32.partialorder %v2911_v26, 8.507059e+37  ;;  %v2914_v24 = vor.u32 1.1754944e-38, %v2913_v61  ;;  %v2249_v59 = vsub.f32 %v2214_v48, %v12661_v15  ;;  %6549 = vmatmul.msk.f32.gmra.mxu1 %vm417_vm0, %v7069_v7  ;;  %3234 = vmatpush.msra.mxu2 %v3134_v54  ;;  %vm10720_vm14 = vmor %vm2564_vm11, %vm2565_vm10  ;;  %v7072_v26 = vld [vmem:[#allocation4 + $0x90] sm:$0xff]  ;;  %v10780_v61 = vld [vmem:[#allocation9 + $0x28] sm:$0xff] }
 0x585   :  { %v2568_v52 = vand.u32 2147483647, %v10555_v8  ;;  %v2641_v11 = vmul.f32 %v2624_v60, %v2558_v42  ;;  %v3006_v22 = vsel %vm2932_vm12, %v2558_v42, 0.0  ;;  %vm2923_vm15 = vweird.f32 %v10643_v16  ;;  %3198 = vmatmul.f32.gmra.mxu3 %v10750_v47  ;;  %v10786_v60 = vld [vmem:[#allocation9 + $0x60] sm:$0xff]  ;;  %v7074_v41 = vld [vmem:[#allocation4 + $0xa0] sm:$0xff]  ;;  %v7075_v42 = vld [vmem:[#allocation4 + $0xa8] sm:$0xff] }
 0x586   :  { %v2915_v4 = vsel %vm2912_vm13, %v2914_v24, %v2910_v18  ;;  %v3007_v35 = vadd.f32 %v3006_v22, %v3005_v53  ;;  %v2266_v58 = vmul.f32 2.0, %v2249_v59  ;;  %v2567_v20 = vsel %vm10720_vm14, %v10615_v3, %v2563_v25  ;;  %3235 = vmatpush.msra.mxu2 %v3131_v62  ;;  %v10800_v18 = vld [vmem:[#allocation9 + $0x48] sm:$0xff]  ;;  %v10810_v48 = vld [vmem:[#allocation9 + $0x58] sm:$0xff]  ;;  %v7076_v24 = vld [vmem:[#allocation4 + $0xb0] sm:$0xff] }
 0x587   :  { %v2916_v8 = vmul.f32 %v2915_v4, %v2641_v11  ;;  %v2921_v13 = vadd.f32 %v10643_v16, %v2920_v34  ;;  %v2571_v55 = vor.u32 1.1754944e-38, %v2570_v46  ;;  %vm2922_vm2 = vweird.f32 %v10563_v0  ;;  %v10816_v46 = vld [vmem:[#allocation9 + $0x90] sm:$0xff]  ;;  %v10820_v54 = vld [vmem:[#allocation9 + $0x68] sm:$0xff]  ;;  %v10824_v59 = vld [vmem:[#allocation9 + $0xa0] sm:$0xff] }
 0x588   :  { %v2928_v19 = vand.u32 2147483648, %v10563_v0  ;;  %v2284_v43 = vadd.f32 %v9505_v57, %v2266_v58  ;;  %vm2569_vm3 = vcmp.eq.f32.partialorder %v2568_v52, 8.507059e+37  ;;  %v2926_v27 = vand.u32 2147483647, %v10563_v0  ;;  %3236 = vmatpush.msra.mxu2 %v10619_v9  ;;  %vm10740_vm4 = vmor %vm2922_vm2, %vm2923_vm15  ;;  %v12666_v57 = vld [vmem:[#allocation113_spill] sm:$0xff]  ;;  %v10828_v52 = vld [vmem:[#allocation9 + $0x78] sm:$0xff] }
 0x589   :  { %v2962_v23 = vsel %vm2932_vm12, %v2916_v8, 0.0  ;;  %v10736_v44 = vpop.f32.mrf.mxu1  ;;  %v2572_v3 = vsel %vm2569_vm3, %v2571_v55, %v2567_v20  ;;  %vm2964_vm5 = vcmask 175104   ;;  %v2625_v30 = vadd.f32 %v9452_v14, %v12666_v57  ;;  %v7077_v7 = vld [vmem:[#allocation4 + $0xb8] sm:$0xff]  ;;  %v10832_v22 = vld [vmem:[#allocation9 + $0xb0] sm:$0xff] }
 0x58a   :  { %v2963_v21 = vadd.f32 %v2962_v23, %v2961_v51  ;;  %v2573_v32 = vmul.f32 %v2572_v3, %v2284_v43  ;;  %v2925_v0 = vsel %vm10740_vm4, %v10643_v16, %v2921_v13  ;;  %3237 = vmatpush.msra.mxu2 %v10567_v56  ;;  %v2929_v9 = vor.u32 1.1754944e-38, %v2928_v19  ;;  %v10759_v16 = vld [vmem:[#allocation9 + $0x8] sm:$0xff]  ;;  %v10806_v51 = vld [vmem:[#allocation9 + $0x80] sm:$0xff]  ;;  %v10847_v13 = vld [vmem:[#allocation9 + $0xb8] sm:$0xff] }
 0x58b   :  { %vm2927_vm12 = vcmp.eq.f32.partialorder %v2926_v27, 8.507059e+37  ;;  %v10843_v20 = vld [vmem:[#allocation9 + $0xa8] sm:$0xff]  ;;  %v10851_v43 = vld [vmem:[#allocation13 + $0x8] sm:$0xff] }
 0x58c   :  { %6550 = vmatmul.msk.f32.gmra.mxu1 %vm417_vm0, %v7070_v1  ;;  %v2642_v53 = vmul.f32 %v2625_v30, %v2573_v32  ;;  %v3008_v63 = vsel %vm2964_vm5, %v2573_v32, 0.0  ;;  %3238 = vmatpush.msra.mxu2 %v10513_v28  ;;  %v2930_v45 = vsel %vm2927_vm12, %v2929_v9, %v2925_v0  ;;  %v10766_v28 = vld [vmem:[#allocation9 + $0x40] sm:$0xff]  ;;  %v10855_v27 = vld [vmem:[#allocation13] sm:$0xff] }
 0x58d   :  { %v3009_v14 = vadd.f32 %v3008_v63, %v3007_v35  ;;  %3201 = vmatmul.f32.gmra.mxu3 %v10766_v28  ;;  %v10839_v35 = vld [vmem:[#allocation9 + $0x98] sm:$0xff]  ;;  %3605 = vmatpush.msra.mxu0 %v10851_v43 }
 0x58e   :  { %v2931_v50 = vmul.f32 %v2930_v45, %v2642_v53  ;;  %3239 = vmatpush.msra.mxu2 %v10446_v33  ;;  %v10770_v33 = vld [vmem:[#allocation9 + $0x18] sm:$0xff]  ;;  %3875 = vmatpush.msrb.mxu1 %v10851_v43 }
 0x58f   :  { %3606 = vmatpush.msra.mxu0 %v10855_v27 }
 0x590   :  { %v2965_v56 = vsel %vm2964_vm5, %v2931_v50, 0.0  ;;  %3240 = vmatpush.msra.mxu2 %v10387_v12  ;;  %3876 = vmatpush.msrb.mxu1 %v10855_v27 }
 0x591   :  { %v10761_v38 = vpop.f32.mrf.mxu1  ;;  %v2966_v31 = vadd.f32 %v2965_v56, %v2963_v21 }
 0x592   :  { %3241 = vmatpush.msra.mxu2 %v10320_v2  ;;  %v10776_v2 = vld [vmem:[#allocation9 + $0x50] sm:$0xff] }
 0x593   :  { %2967 = vadd.xlane.f32.xlu1 %v2966_v31  ;;  %6522 = vmatmul.msk.f32.vlgmr.msra.gmra.mxu2 %vm700_vm1, %v10759_v16 }
 0x594   :  { %6551 = vmatmul.msk.f32.gmra.mxu1 %vm417_vm0, %v7071_v17 }
 0x595   :  { %3204 = vmatmul.f32.gmra.mxu3 %v10776_v2 }
 0x599   :  { %v10772_v12 = vpop.f32.mrf.mxu1 }
 0x59b   :  { %3010 = vadd.xlane.f32.xlu1 %v3009_v14  ;;  %6523 = vmatmul.msk.f32.gmra.mxu2 %vm700_vm1, %v10770_v33 }
 0x59c   :  { %6552 = vmatmul.msk.f32.gmra.mxu1 %vm417_vm0, %v7072_v26 }
 0x59d   :  { %3207 = vmatmul.f32.gmra.mxu3 %v10786_v60 }
 0x5a1   :  { %v10782_v36 = vpop.f32.mrf.mxu1 }
 0x5a3   :  { %6524 = vmatmul.msk.f32.gmra.mxu2 %vm700_vm1, %v10780_v61 }
 0x5a4   :  { %6553 = vmatmul.msk.f32.gmra.mxu1 %vm417_vm0, %v7073_v40 }
 0x5a5   :  { %3210 = vmatmul.f32.gmra.mxu3 %v10796_v29 }
 0x5a9   :  { %v10792_v5 = vpop.f32.mrf.mxu1 }
 0x5ab   :  { %6525 = vmatmul.msk.f32.gmra.mxu2 %vm700_vm1, %v10790_v10 }
 0x5ac   :  { %6554 = vmatmul.msk.f32.gmra.mxu1 %vm417_vm0, %v7074_v41 }
 0x5ad   :  { %3213 = vmatmul.f32.gmra.mxu3 %v10806_v51 }
 0x5b1   :  { %v10802_v34 = vpop.f32.mrf.mxu1 }
 0x5b3   :  { %6526 = vmatmul.msk.f32.gmra.mxu2 %vm700_vm1, %v10800_v18 }
 0x5b4   :  { %6555 = vmatmul.msk.f32.gmra.mxu1 %vm417_vm0, %v7075_v42 }
 0x5b5   :  { %3216 = vmatmul.f32.gmra.mxu3 %v10816_v46 }
 0x5b9   :  { %v10812_v25 = vpop.f32.mrf.mxu1 }
 0x5bb   :  { %6527 = vmatmul.msk.f32.gmra.mxu2 %vm700_vm1, %v10810_v48 }
 0x5bc   :  { %6556 = vmatmul.msk.f32.gmra.mxu1 %vm417_vm0, %v7076_v24 }
 0x5bd   :  { %3219 = vmatmul.f32.gmra.mxu3 %v10824_v59 }
 0x5c1   :  { %v3317_v15 = vpop.f32.mrf.mxu1 }
 0x5c3   :  { %6528 = vmatmul.msk.f32.gmra.mxu2 %vm700_vm1, %v10820_v54 }
 0x5c4   :  { %6557 = vmatmul.msk.f32.gmra.mxu1 %vm417_vm0, %v7077_v7  ;;  %vm3481_vm0 = vcmask 130048  }
 0x5c5   :  { %3222 = vmatmul.f32.gmra.mxu3 %v10832_v22 }
 0x5c9   :  { %v3320_v11 = vpop.f32.mrf.mxu1 }
 0x5cb   :  { %6529 = vmatmul.msk.f32.gmra.mxu2 %vm700_vm1, %v10828_v52 }
 0x5d1   :  { %v3323_v4 = vpop.f32.mrf.mxu1 }
 0x5d3   :  { %6530 = vmatmul.msk.f32.gmra.mxu2 %vm700_vm1, %v10835_v39 }
 0x5d9   :  { %v3326_v58 = vpop.f32.mrf.mxu1 }
 0x5db   :  { %6531 = vmatmul.msk.f32.gmra.mxu2 %vm700_vm1, %v10839_v35 }
 0x5e1   :  { %v3329_v8 = vpop.f32.mrf.mxu1 }
 0x5e3   :  { %6532 = vmatmul.msk.f32.gmra.mxu2 %vm700_vm1, %v10843_v20 }
 0x5e9   :  { %v3332_v55 = vpop.f32.mrf.mxu1 }
 0x5eb   :  { %6533 = vmatmul.msk.f32.gmra.mxu2 %vm700_vm1, %v10847_v13 }
 0x5ee   :  { %v3190_v3 = vpop.f32.mrf.mxu3 }
 0x5f1   :  { %v3335_v19 = vpop.f32.mrf.mxu1 }
 0x5f7   :  { %v3193_v57 = vpop.f32.mrf.mxu3 }
 0x5f9   :  { %v3338_v23 = vpop.f32.mrf.mxu1 }
 0x5ff   :  { %v3196_v31 = vpop.f32.mrf.mxu3 }
 0x601   :  { %v3341_v62 = vpop.f32.mrf.mxu1 }
 0x602   :  { %3368 = vmatpush.msrb.mxu3 %v3341_v62 }
 0x604   :  { %3369 = vmatpush.msrb.mxu3 %v3338_v23 }
 0x606   :  { %3370 = vmatpush.msrb.mxu3 %v3335_v19  ;;  %v2968_v21 = vpop.xlane.xlu1 %2967 }
 0x607   :  { %v2969_v32 = vrot.slane %v2968_v21, 4 }
 0x608   :  { %3371 = vmatpush.msrb.mxu3 %v3332_v55 }
 0x609   :  { %v2970_v30 = vadd.f32 %v2969_v32, %v2968_v21  ;;  %v10859_v0 = vpop.f32.mrf.mxu1 }
 0x60a   :  { %3372 = vmatpush.msrb.mxu3 %v3329_v8 }
 0x60b   :  { %v2971_v9 = vrot.slane %v2970_v30, 2 }
 0x60c   :  { %3373 = vmatpush.msrb.mxu3 %v3326_v58 }
 0x60d   :  { %v2972_v1 = vadd.f32 %v2971_v9, %v2970_v30 }
 0x60e   :  { %3374 = vmatpush.msrb.mxu3 %v3323_v4  ;;  %v3011_v53 = vpop.xlane.xlu1 %3010 }
 0x60f   :  { %v3012_v63 = vrot.slane %v3011_v53, 4  ;;  %v2973_v45 = vrot.slane %v2972_v1, 1 }
 0x610   :  { %3375 = vmatpush.msrb.mxu3 %v3320_v11 }
 0x611   :  { %v3013_v14 = vadd.f32 %v3012_v63, %v3011_v53  ;;  %v10861_v50 = vpop.f32.mrf.mxu1  ;;  %v2974_v56 = vadd.f32 %v2973_v45, %v2972_v1 }
 0x612   :  { %3376 = vmatpush.msrb.mxu3 %v3317_v15 }
 0x613   :  { %v3014_v17 = vrot.slane %v3013_v14, 2  ;;  %6810 = vpush %v2974_v56 }
 0x614   :  { %3377 = vmatpush.msrb.mxu3 %v10812_v25 }
 0x615   :  { %v3015_v26 = vadd.f32 %v3014_v17, %v3013_v14 }
 0x616   :  { %3378 = vmatpush.msrb.mxu3 %v10802_v34  ;;  %v3243_v40 = vpop.f32.mrf.mxu2  ;;  %v3199_v34 = vpop.f32.mrf.mxu3 }
 0x617   :  { %v3016_v41 = vrot.slane %v3015_v26, 1  ;;  %v10865_v42 = vadd.f32 %v3243_v40, %v3190_v3 }
 0x618   :  { %3379 = vmatpush.msrb.mxu3 %v10792_v5 }
 0x619   :  { %v3350_v24 = vpop.f32.mrf.mxu1  ;;  %v3017_v7 = vadd.f32 %v3016_v41, %v3015_v26  ;;  %6570 = vmatmul.msk.f32.vlgmr.msra.gmra.mxu0 %vm3481_vm0, %v10865_v42  ;;  %v3813_v15 = vmul.f32 %v10865_v42, %v10865_v42  ;;  %v3482_v26 = vsel %vm3481_vm0, %v10865_v42, -inf }
 0x61a   :  { %3380 = vmatpush.msrb.mxu3 %v10782_v36 }
 0x61b   :  { %6812 = vpush %v3017_v7  ;;  %6604 = vmatmul.msk.f32.vlgmr.msrb.gmra.mxu1 %vm3481_vm0, %v3813_v15 }
 0x61c   :  { %3381 = vmatpush.msrb.mxu3 %v10772_v12 }
 0x61e   :  { %3382 = vmatpush.msrb.mxu3 %v10761_v38  ;;  %v3246_v25 = vpop.f32.mrf.mxu2  ;;  %v3202_v4 = vpop.f32.mrf.mxu3 }
 0x61f   :  { %v10876_v5 = vadd.f32 %v3246_v25, %v3193_v57 }
 0x620   :  { %3383 = vmatpush.msrb.mxu3 %v10736_v44 }
 0x621   :  { %v3353_v11 = vpop.f32.mrf.mxu1  ;;  %3384 = vmatmul.f32.vlgmr.msrb.gmra.mxu3 %v10622_v49  ;;  %6571 = vmatmul.msk.f32.gmra.mxu0 %vm3481_vm0, %v10876_v5  ;;  %v3814_v36 = vmul.f32 %v10876_v5, %v10876_v5  ;;  %v3483_v40 = vsel %vm3481_vm0, %v10876_v5, -inf }
 0x623   :  { %6605 = vmatmul.msk.f32.gmra.mxu1 %vm3481_vm0, %v3814_v36 }
 0x626   :  { %v3249_v12 = vpop.f32.mrf.mxu2  ;;  %v3205_v55 = vpop.f32.mrf.mxu3 }
 0x627   :  { %v10885_v58 = vadd.f32 %v3249_v12, %v3196_v31 }
 0x629   :  { %v3356_v38 = vpop.f32.mrf.mxu1  ;;  %3387 = vmatmul.f32.gmra.mxu3 %v10672_v37  ;;  %6572 = vmatmul.msk.f32.gmra.mxu0 %vm3481_vm0, %v10885_v58  ;;  %v3815_v49 = vmul.f32 %v10885_v58, %v10885_v58 }
 0x62b   :  { %6606 = vmatmul.msk.f32.gmra.mxu1 %vm3481_vm0, %v3815_v49 }
 0x62e   :  { %v3252_v44 = vpop.f32.mrf.mxu2  ;;  %v3208_v21 = vpop.f32.mrf.mxu3 }
 0x62f   :  { %v10893_v8 = vadd.f32 %v3252_v44, %v3199_v34  ;;  %v3516_v44 = vsel %vm3481_vm0, %v10885_v58, inf }
 0x631   :  { %v3359_v19 = vpop.f32.mrf.mxu1  ;;  %3390 = vmatmul.f32.gmra.mxu3 %v10714_v6  ;;  %6573 = vmatmul.msk.f32.gmra.mxu0 %vm3481_vm0, %v10893_v8  ;;  %v3816_v37 = vmul.f32 %v10893_v8, %v10893_v8  ;;  %v3485_v34 = vsel %vm3481_vm0, %v10893_v8, -inf }
 0x633   :  { %6607 = vmatmul.msk.f32.gmra.mxu1 %vm3481_vm0, %v3816_v37 }
 0x636   :  { %v3255_v23 = vpop.f32.mrf.mxu2  ;;  %v3211_v9 = vpop.f32.mrf.mxu3 }
 0x637   :  { %v10901_v3 = vadd.f32 %v3255_v23, %v3202_v4  ;;  %v3514_v4 = vsel %vm3481_vm0, %v10865_v42, inf }
 0x639   :  { %v3362_v62 = vpop.f32.mrf.mxu1  ;;  %3393 = vmatmul.f32.gmra.mxu3 %v10750_v47  ;;  %6574 = vmatmul.msk.f32.gmra.mxu0 %vm3481_vm0, %v10901_v3  ;;  %v3817_v6 = vmul.f32 %v10901_v3, %v10901_v3  ;;  %v3486_v41 = vsel %vm3481_vm0, %v10901_v3, -inf }
 0x63a   :  { %v3487_v25 = vmax.f32 %v3482_v26, %v3486_v41 }
 0x63b   :  { %6608 = vmatmul.msk.f32.gmra.mxu1 %vm3481_vm0, %v3817_v6 }
 0x63e   :  { %v3258_v32 = vpop.f32.mrf.mxu2  ;;  %v3214_v45 = vpop.f32.mrf.mxu3 }
 0x63f   :  { %v10909_v57 = vadd.f32 %v3258_v32, %v3205_v55  ;;  %v3518_v55 = vsel %vm3481_vm0, %v10901_v3, inf }
 0x641   :  { %v3365_v30 = vpop.f32.mrf.mxu1  ;;  %3396 = vmatmul.f32.gmra.mxu3 %v10766_v28  ;;  %6575 = vmatmul.msk.f32.gmra.mxu0 %vm3481_vm0, %v10909_v57  ;;  %v3818_v47 = vmul.f32 %v10909_v57, %v10909_v57 }
 0x642   :  { %3429 = vmatpush.msrb.mxu2 %v3365_v30 }
 0x643   :  { %6609 = vmatmul.msk.f32.gmra.mxu1 %vm3481_vm0, %v3818_v47 }
 0x644   :  { %3430 = vmatpush.msrb.mxu2 %v3362_v62  ;;  %v3517_v62 = vsel %vm3481_vm0, %v10893_v8, inf  ;;  %s11320_s11 = spop %6810 }
 0x645   :  { %s2976_s12 = smul.f32 0.00034435262, %s11320_s11 }
 0x646   :  { %3431 = vmatpush.msrb.mxu2 %v3359_v19  ;;  %v3261_v1 = vpop.f32.mrf.mxu2  ;;  %v3520_v19 = vsel %vm3481_vm0, %v10909_v57, inf }
 0x647   :  { %v10917_v53 = vadd.f32 %v3261_v1, %v3208_v21  ;;  %v3519_v1 = vmin.f32 %v3514_v4, %v3518_v55 }
 0x648   :  { %3432 = vmatpush.msrb.mxu2 %v3356_v38  ;;  %v3515_v38 = vsel %vm3481_vm0, %v10876_v5, inf }
 0x649   :  { %3399 = vmatmul.f32.gmra.mxu3 %v10776_v2  ;;  %6576 = vmatmul.msk.f32.gmra.mxu0 %vm3481_vm0, %v10917_v53  ;;  %v3819_v28 = vmul.f32 %v10917_v53, %v10917_v53  ;;  %v3490_v7 = vsel %vm3481_vm0, %v10917_v53, -inf  ;;  %v3522_v37 = vsel %vm3481_vm0, %v10917_v53, inf }
 0x64a   :  { %3433 = vmatpush.msrb.mxu2 %v3353_v11 }
 0x64b   :  { %6610 = vmatmul.msk.f32.gmra.mxu1 %vm3481_vm0, %v3819_v28  ;;  %v3521_v28 = vmin.f32 %v3515_v38, %v3520_v19 }
 0x64c   :  { %3434 = vmatpush.msrb.mxu2 %v3350_v24  ;;  %v3488_v24 = vsel %vm3481_vm0, %v10909_v57, -inf  ;;  %s11322_s25 = spop %6812 }
 0x64d   :  { %v3489_v11 = vmax.f32 %v3483_v40, %v3488_v24  ;;  %s3019_s24 = smul.f32 0.00034435262, %s11322_s25 }
 0x64e   :  { %3435 = vmatpush.msrb.mxu2 %v10861_v50  ;;  %v3264_v63 = vpop.f32.mrf.mxu2 }
 0x64f   :  { %v10926_v14 = vadd.f32 %v3264_v63, %v3211_v9  ;;  %v3523_v63 = vmin.f32 %v3516_v44, %v3522_v37 }
 0x650   :  { %3436 = vmatpush.msrb.mxu2 %v10859_v0 }
 0x651   :  { %6558 = vmatmul.msk.f32.vlgmr.msrb.gmra.mxu2 %vm700_vm1, %v10759_v16  ;;  %3402 = vmatmul.f32.gmra.mxu3 %v10786_v60  ;;  %v3820_v2 = vmul.f32 %v10926_v14, %v10926_v14  ;;  %v3217_v16 = vpop.f32.mrf.mxu3  ;;  %v3492_v12 = vsel %vm3481_vm0, %v10926_v14, -inf  ;;  %v3524_v6 = vsel %vm3481_vm0, %v10926_v14, inf }
 0x652   :  { %6577 = vmatmul.msk.f32.gmra.mxu0 %vm3481_vm0, %v10926_v14  ;;  %3742 = vmatpush.msra.mxu2 %v10851_v43  ;;  %v3493_v32 = vmax.f32 %v3485_v34, %v3492_v12 }
 0x653   :  { %6611 = vmatmul.msk.f32.gmra.mxu1 %vm3481_vm0, %v3820_v2  ;;  %v3525_v2 = vmin.f32 %v3517_v62, %v3524_v6 }
 0x654   :  { %3743 = vmatpush.msra.mxu2 %v10855_v27 }
 0x656   :  { %4161 = vmatpush.msrb.mxu2 %v10851_v43  ;;  %v3267_v0 = vpop.f32.mrf.mxu2 }
 0x657   :  { %v10940_v50 = vadd.f32 %v3267_v0, %v3214_v45 }
 0x658   :  { %4162 = vmatpush.msrb.mxu2 %v10855_v27 }
 0x659   :  { %6559 = vmatmul.msk.f32.gmra.mxu2 %vm700_vm1, %v10770_v33  ;;  %3405 = vmatmul.f32.gmra.mxu3 %v10796_v29  ;;  %v3821_v60 = vmul.f32 %v10940_v50, %v10940_v50  ;;  %v3220_v29 = vpop.f32.mrf.mxu3  ;;  %v3526_v0 = vsel %vm3481_vm0, %v10940_v50, inf }
 0x65a   :  { %6578 = vmatmul.msk.f32.gmra.mxu0 %vm3481_vm0, %v10940_v50 }
 0x65b   :  { %6612 = vmatmul.msk.f32.gmra.mxu1 %vm3481_vm0, %v3821_v60 }
 0x65e   :  { %v3270_v56 = vpop.f32.mrf.mxu2 }
 0x65f   :  { %v10951_v31 = vadd.f32 %v3270_v56, %v3217_v16 }
 0x661   :  { %6560 = vmatmul.msk.f32.gmra.mxu2 %vm700_vm1, %v10780_v61  ;;  %3408 = vmatmul.f32.gmra.mxu3 %v10806_v51  ;;  %v3822_v33 = vmul.f32 %v10951_v31, %v10951_v31  ;;  %v3484_v61 = vsel %vm3481_vm0, %v10885_v58, -inf  ;;  %v3223_v49 = vpop.f32.mrf.mxu3  ;;  %v3528_v16 = vsel %vm3481_vm0, %v10951_v31, inf }
 0x662   :  { %6579 = vmatmul.msk.f32.gmra.mxu0 %vm3481_vm0, %v10951_v31  ;;  %v3491_v36 = vmax.f32 %v3484_v61, %v3490_v7  ;;  %v3529_v40 = vmin.f32 %v3521_v28, %v3528_v16 }
 0x663   :  { %6613 = vmatmul.msk.f32.gmra.mxu1 %vm3481_vm0, %v3822_v33 }
 0x666   :  { %v3273_v17 = vpop.f32.mrf.mxu2 }
 0x667   :  { %v10967_v51 = vadd.f32 %v3273_v17, %v3220_v29 }
 0x669   :  { %6561 = vmatmul.msk.f32.gmra.mxu2 %vm700_vm1, %v10790_v10  ;;  %3411 = vmatmul.f32.gmra.mxu3 %v10816_v46  ;;  %v3823_v15 = vmul.f32 %v10967_v51, %v10967_v51  ;;  %v3494_v10 = vsel %vm3481_vm0, %v10940_v50, -inf  ;;  %v3496_v46 = vsel %vm3481_vm0, %v10951_v31, -inf  ;;  %v3498_v23 = vsel %vm3481_vm0, %v10967_v51, -inf }
 0x66a   :  { %6580 = vmatmul.msk.f32.gmra.mxu0 %vm3481_vm0, %v10967_v51  ;;  %v3495_v30 = vmax.f32 %v3487_v25, %v3494_v10  ;;  %v3497_v47 = vmax.f32 %v3489_v11, %v3496_v46  ;;  %v3499_v45 = vmax.f32 %v3491_v36, %v3498_v23  ;;  %v3530_v33 = vsel %vm3481_vm0, %v10967_v51, inf }
 0x66b   :  { %6614 = vmatmul.msk.f32.gmra.mxu1 %vm3481_vm0, %v3823_v15  ;;  %v3531_v61 = vmin.f32 %v3523_v63, %v3530_v33 }
 0x66c   :  { %v3502_v26 = vmax.f32 %v3495_v30, %v3497_v47 }
 0x66e   :  { %v3276_v21 = vpop.f32.mrf.mxu2 }
 0x66f   :  { %v11009_v9 = vadd.f32 %v3276_v21, %v3223_v49 }
 0x671   :  { %6562 = vmatmul.msk.f32.gmra.mxu2 %vm700_vm1, %v10800_v18  ;;  %3414 = vmatmul.f32.gmra.mxu3 %v10824_v59  ;;  %v3824_v60 = vmul.f32 %v11009_v9, %v11009_v9  ;;  %v3500_v56 = vsel %vm3481_vm0, %v11009_v9, -inf  ;;  %v3532_v29 = vsel %vm3481_vm0, %v11009_v9, inf  ;;  %v3527_v18 = vmin.f32 %v3519_v1, %v3526_v0 }
 0x672   :  { %6581 = vmatmul.msk.f32.gmra.mxu0 %vm3481_vm0, %v11009_v9  ;;  %v3501_v17 = vmax.f32 %v3493_v32, %v3500_v56  ;;  %v3533_v41 = vmin.f32 %v3525_v2, %v3532_v29 }
 0x673   :  { %6615 = vmatmul.msk.f32.gmra.mxu1 %vm3481_vm0, %v3824_v60  ;;  %v3534_v7 = vmin.f32 %v3527_v18, %v3529_v40 }
 0x674   :  { %v3503_v59 = vmax.f32 %v3499_v45, %v3501_v17  ;;  %v3535_v15 = vmin.f32 %v3531_v61, %v3533_v41 }
 0x676   :  { %v3504_v24 = vmax.f32 %v3502_v26, %v3503_v59  ;;  %v3536_v34 = vmin.f32 %v3534_v7, %v3535_v15 }
 0x678   :  { %3505 = vmax.xlane.f32.xlu2 %v3504_v24 }
 0x679   :  { %6563 = vmatmul.msk.f32.gmra.mxu2 %vm700_vm1, %v10810_v48  ;;  %3417 = vmatmul.f32.gmra.mxu3 %v10832_v22 }
 0x680   :  { %3537 = vmin.xlane.f32.xlu2 %v3536_v34 }
 0x681   :  { %6564 = vmatmul.msk.f32.gmra.mxu2 %vm700_vm1, %v10820_v54 }
 0x689   :  { %6565 = vmatmul.msk.f32.gmra.mxu2 %vm700_vm1, %v10828_v52 }
 0x691   :  { %6566 = vmatmul.msk.f32.gmra.mxu2 %vm700_vm1, %v10835_v39 }
 0x696   :  { %v11038_v25 = vpop.f32.mrf.mxu0 }
 0x698   :  { %v11040_v11 = vpop.f32.mrf.mxu1 }
 0x699   :  { %6567 = vmatmul.msk.f32.gmra.mxu2 %vm700_vm1, %v10839_v35 }
 0x69e   :  { %v11044_v48 = vpop.f32.mrf.mxu0 }
 0x6a0   :  { %v11046_v22 = vpop.f32.mrf.mxu1 }
 0x6a1   :  { %6568 = vmatmul.msk.f32.gmra.mxu2 %vm700_vm1, %v10843_v20 }
 0x6a4   :  { %v3385_v35 = vpop.f32.mrf.mxu3 }
 0x6a6   :  { %v11050_v54 = vpop.f32.mrf.mxu0 }
 0x6a8   :  { %v11054_v52 = vpop.f32.mrf.mxu1 }
 0x6a9   :  { %6569 = vmatmul.msk.f32.gmra.mxu2 %vm700_vm1, %v10847_v13  ;;  %vm3644_vm1 = vcmask 785408  }
 0x6ac   :  { %v3388_v4 = vpop.f32.mrf.mxu3 }
 0x6ae   :  { %v11056_v39 = vpop.f32.mrf.mxu0 }
 0x6b0   :  { %v11058_v36 = vpop.f32.mrf.mxu1 }
 0x6b4   :  { %v3391_v44 = vpop.f32.mrf.mxu3 }
 0x6b6   :  { %v3620_v12 = vpop.f32.mrf.mxu0 }
 0x6b8   :  { %v11060_v46 = vpop.f32.mrf.mxu1 }
 0x6bc   :  { %v3394_v23 = vpop.f32.mrf.mxu3 }
 0x6be   :  { %v3623_v10 = vpop.f32.mrf.mxu0 }
 0x6c0   :  { %v11062_v49 = vpop.f32.mrf.mxu1 }
 0x6c4   :  { %v3397_v47 = vpop.f32.mrf.mxu3 }
 0x6c6   :  { %v3626_v38 = vpop.f32.mrf.mxu0 }
 0x6c8   :  { %v11064_v55 = vpop.f32.mrf.mxu1 }
 0x6cc   :  { %v3400_v60 = vpop.f32.mrf.mxu3 }
 0x6cf   :  { %v3629_v20 = vpop.f32.mrf.mxu0 }
 0x6d0   :  { %v11070_v6 = vpop.f32.mrf.mxu1 }
 0x6d4   :  { %v3438_v13 = vpop.f32.mrf.mxu2  ;;  %v3403_v15 = vpop.f32.mrf.mxu3 }
 0x6d5   :  { %v11066_v19 = vadd.f32 %v3438_v13, %v3385_v35 }
 0x6d7   :  { %6587 = vmatmul.msk.f32.vlgmr.msra.gmra.mxu2 %vm3481_vm0, %v11066_v19  ;;  %v3632_v37 = vpop.f32.mrf.mxu0 }
 0x6d8   :  { %v3902_v28 = vpop.f32.mrf.mxu1 }
 0x6dc   :  { %v3441_v62 = vpop.f32.mrf.mxu2 }
 0x6dd   :  { %v11072_v21 = vadd.f32 %v3441_v62, %v3388_v4 }
 0x6df   :  { %6588 = vmatmul.msk.f32.gmra.mxu2 %vm3481_vm0, %v11072_v21  ;;  %v3635_v32 = vpop.f32.mrf.mxu0 }
 0x6e0   :  { %v3905_v29 = vpop.f32.mrf.mxu1 }
 0x6e4   :  { %v3444_v30 = vpop.f32.mrf.mxu2 }
 0x6e5   :  { %v11076_v1 = vadd.f32 %v3444_v30, %v3391_v44 }
 0x6e7   :  { %6589 = vmatmul.msk.f32.gmra.mxu2 %vm3481_vm0, %v11076_v1  ;;  %v3638_v63 = vpop.f32.mrf.mxu0 }
 0x6e8   :  { %v3908_v35 = vpop.f32.mrf.mxu1 }
 0x6eb   :  { %v3506_v45 = vpop.xlane.xlu2 %3505 }
 0x6ec   :  { %v3447_v2 = vpop.f32.mrf.mxu2  ;;  %v3507_v0 = vrot.slane %v3506_v45, 4 }
 0x6ed   :  { %v11080_v16 = vadd.f32 %v3447_v2, %v3394_v23 }
 0x6ee   :  { %v3508_v56 = vmax.f32 %v3506_v45, %v3507_v0 }
 0x6ef   :  { %6590 = vmatmul.msk.f32.gmra.mxu2 %vm3481_vm0, %v11080_v16  ;;  %v3641_v33 = vpop.f32.mrf.mxu0 }
 0x6f0   :  { %3664 = vmatpush.msra.mxu3 %v3641_v33  ;;  %v3509_v17 = vrot.slane %v3508_v56, 2 }
 0x6f2   :  { %3665 = vmatpush.msra.mxu3 %v3638_v63  ;;  %v3510_v26 = vmax.f32 %v3508_v56, %v3509_v17  ;;  %v4102_v63 = vmul.f32 %v11080_v16, %v10893_v8 }
 0x6f3   :  { %v3538_v18 = vpop.xlane.xlu2 %3537 }
 0x6f4   :  { %v3450_v59 = vpop.f32.mrf.mxu2  ;;  %3666 = vmatpush.msra.mxu3 %v3635_v32  ;;  %v3539_v40 = vrot.slane %v3538_v18, 4  ;;  %v3511_v61 = vrot.slane %v3510_v26, 1 }
 0x6f5   :  { %v11084_v41 = vadd.f32 %v3450_v59, %v3397_v47 }
 0x6f6   :  { %3667 = vmatpush.msra.mxu3 %v3632_v37  ;;  %v3540_v24 = vmin.f32 %v3538_v18, %v3539_v40  ;;  %v3512_v7 = vmax.f32 %v3510_v26, %v3511_v61  ;;  %v3406_v37 = vpop.f32.mrf.mxu3 }
 0x6f7   :  { %6591 = vmatmul.msk.f32.gmra.mxu2 %vm3481_vm0, %v11084_v41  ;;  %v4103_v45 = vmul.f32 %v11084_v41, %v10901_v3 }
 0x6f8   :  { %3668 = vmatpush.msra.mxu3 %v3629_v20  ;;  %v3541_v34 = vrot.slane %v3540_v24, 2  ;;  %6814 = vpush %v3512_v7 }
 0x6fa   :  { %3669 = vmatpush.msra.mxu3 %v3626_v38  ;;  %v3542_v4 = vmin.f32 %v3540_v24, %v3541_v34  ;;  %v3911_v38 = vpop.f32.mrf.mxu1 }
 0x6fc   :  { %v3453_v44 = vpop.f32.mrf.mxu2  ;;  %3670 = vmatpush.msra.mxu3 %v3623_v10  ;;  %v3543_v13 = vrot.slane %v3542_v4, 1 }
 0x6fd   :  { %v11088_v23 = vadd.f32 %v3453_v44, %v3400_v60  ;;  %v11168_v44 = vld [vmem:[#allocation12 + $0x8] sm:$0xff] }
 0x6fe   :  { %3671 = vmatpush.msra.mxu3 %v3620_v12  ;;  %v3544_v62 = vmin.f32 %v3542_v4, %v3543_v13 }
 0x6ff   :  { %6592 = vmatmul.msk.f32.gmra.mxu2 %vm3481_vm0, %v11088_v23  ;;  %v4104_v0 = vmul.f32 %v11088_v23, %v10909_v57 }
 0x700   :  { %3672 = vmatpush.msra.mxu3 %v11056_v39  ;;  %6816 = vpush %v3544_v62  ;;  %v3409_v39 = vpop.f32.mrf.mxu3  ;;  %v11172_v62 = vld [vmem:[#allocation12 + $0x10] sm:$0xff] }
 0x702   :  { %3673 = vmatpush.msra.mxu3 %v11050_v54 }
 0x704   :  { %v3456_v20 = vpop.f32.mrf.mxu2  ;;  %3674 = vmatpush.msra.mxu3 %v11044_v48 }
 0x705   :  { %v11095_v32 = vadd.f32 %v3456_v20, %v3403_v15  ;;  %v11176_v20 = vld [vmem:[#allocation12 + $0x18] sm:$0xff] }
 0x706   :  { %3675 = vmatpush.msra.mxu3 %v11038_v25 }
 0x707   :  { %6593 = vmatmul.msk.f32.gmra.mxu2 %vm3481_vm0, %v11095_v32  ;;  %v4105_v56 = vmul.f32 %v11095_v32, %v10917_v53 }
 0x708   :  { %3918 = vmatpush.msrb.mxu3 %v3911_v38  ;;  %v3412_v54 = vpop.f32.mrf.mxu3 }
 0x70a   :  { %3919 = vmatpush.msrb.mxu3 %v3908_v35  ;;  %v11164_v35 = vld [vmem:[#allocation12] sm:$0xff] }
 0x70b   :  { %6582 = vmatmul.msk.f32.vlgmr.msra.gmra.mxu3 %vm3644_vm1, %v11164_v35 }
 0x70c   :  { %3920 = vmatpush.msrb.mxu3 %v3905_v29  ;;  %v3459_v12 = vpop.f32.mrf.mxu2 }
 0x70d   :  { %v11100_v10 = vadd.f32 %v3459_v12, %v3406_v37  ;;  %v11180_v12 = vld [vmem:[#allocation12 + $0x20] sm:$0xf] }
 0x70e   :  { %3921 = vmatpush.msrb.mxu3 %v3902_v28  ;;  %v4101_v28 = vmul.f32 %v11076_v1, %v10885_v58 }
 0x70f   :  { %6594 = vmatmul.msk.f32.gmra.mxu2 %vm3481_vm0, %v11100_v10  ;;  %v4106_v29 = vmul.f32 %v11100_v10, %v10926_v14 }
 0x710   :  { %3922 = vmatpush.msrb.mxu3 %v11070_v6 }
 0x712   :  { %3923 = vmatpush.msrb.mxu3 %v11064_v55 }
 0x713   :  { %6583 = vmatmul.msk.f32.gmra.mxu3 %vm3644_vm1, %v11168_v44 }
 0x714   :  { %3924 = vmatpush.msrb.mxu3 %v11062_v49  ;;  %v3462_v25 = vpop.f32.mrf.mxu2  ;;  %v3415_v49 = vpop.f32.mrf.mxu3 }
 0x715   :  { %v11107_v48 = vadd.f32 %v3462_v25, %v3409_v39 }
 0x716   :  { %3925 = vmatpush.msrb.mxu3 %v11060_v46 }
 0x717   :  { %6595 = vmatmul.msk.f32.gmra.mxu2 %vm3481_vm0, %v11107_v48  ;;  %v4107_v26 = vmul.f32 %v11107_v48, %v10940_v50 }
 0x718   :  { %3926 = vmatpush.msrb.mxu3 %v11058_v36 }
 0x71a   :  { %3927 = vmatpush.msrb.mxu3 %v11054_v52 }
 0x71b   :  { %6584 = vmatmul.msk.f32.gmra.mxu3 %vm3644_vm1, %v11172_v62 }
 0x71c   :  { %3928 = vmatpush.msrb.mxu3 %v11046_v22  ;;  %v3465_v6 = vpop.f32.mrf.mxu2  ;;  %v3418_v36 = vpop.f32.mrf.mxu3  ;;  %v4100_v22 = vmul.f32 %v11072_v21, %v10876_v5 }
 0x71d   :  { %v11115_v30 = vadd.f32 %v3465_v6, %v3412_v54 }
 0x71e   :  { %3929 = vmatpush.msrb.mxu3 %v11040_v11  ;;  %v4099_v11 = vmul.f32 %v11066_v19, %v10865_v42 }
 0x71f   :  { %6596 = vmatmul.msk.f32.gmra.mxu2 %vm3481_vm0, %v11115_v30  ;;  %v4108_v59 = vmul.f32 %v11115_v30, %v10951_v31 }
 0x723   :  { %6585 = vmatmul.msk.f32.gmra.mxu3 %vm3644_vm1, %v11176_v20 }
 0x724   :  { %v3468_v46 = vpop.f32.mrf.mxu2 }
 0x725   :  { %v11120_v55 = vadd.f32 %v3468_v46, %v3415_v49  ;;  %v3956_v49 = vmul.f32 %v11066_v19, %v11066_v19 }
 0x727   :  { %6597 = vmatmul.msk.f32.gmra.mxu2 %vm3481_vm0, %v11120_v55  ;;  %v4109_v61 = vmul.f32 %v11120_v55, %v10967_v51 }
 0x729   :  { %s6815_s30 = spop %6814 }
 0x72a   :  { %p3546_p3 = scmp.gt.f32.partialorder %s6815_s30, 128.0 }
 0x72b   :  { %6586 = vmatmul.msk.f32.gmra.mxu3 %vm3644_vm1, %v11180_v12 }
 0x72c   :  { %v3471_v47 = vpop.f32.mrf.mxu2  ;;  %s3547_s7 = scalar_select %p3546_p3, 255.0, 1.0 }
 0x72d   :  { %v11124_v52 = vadd.f32 %v3471_v47, %v3418_v36  ;;  %v3957_v36 = vmul.f32 %v11072_v21, %v11072_v21 }
 0x72f   :  { %6598 = vmatmul.msk.f32.gmra.mxu2 %vm3481_vm0, %v11124_v52  ;;  %v4110_v7 = vmul.f32 %v11124_v52, %v11009_v9 }
 0x731   :  { %s6817_s21 = spop %6816 }
 0x732   :  { %p3548_p2 = scmp.lt.f32.partialorder %s6817_s21, -0.5 }
 0x733   :  { %6616 = vmatmul.msk.f32.vlgmr.msrb.gmra.mxu3 %vm3644_vm1, %v11164_v35 }
 0x734   :  { %s3549_s10 = scalar_select %p3548_p2, -1.0, 0.0 }
 0x736   :  { %s11332_s28 = ssub.f32 %s3547_s7, %s3549_s10 }
 0x737   :  { %6638 = vmatmul.msk.f32.vlgmr.msrb.gmra.mxu2 %vm3481_vm0, %v4099_v11  ;;  %v3958_v11 = vmul.f32 %v11076_v1, %v11076_v1 }
 0x738   :  { %s3551_s1 = smul.f32 0.01, %s11332_s28 }
 0x739   :  { %s3553_s23 = smul.f32 0.03, %s11332_s28 }
 0x73a   :  { %s3552_s13 = smul.f32 %s3551_s1, %s3551_s1 }
 0x73b   :  { %6617 = vmatmul.msk.f32.gmra.mxu3 %vm3644_vm1, %v11168_v44  ;;  %s3554_s0 = smul.f32 %s3553_s23, %s3553_s23 }
 0x73f   :  { %6639 = vmatmul.msk.f32.gmra.mxu2 %vm3481_vm0, %v4100_v22 }
 0x743   :  { %6618 = vmatmul.msk.f32.gmra.mxu3 %vm3644_vm1, %v11172_v62 }
 0x747   :  { %6640 = vmatmul.msk.f32.gmra.mxu2 %vm3481_vm0, %v4101_v28  ;;  %v3959_v28 = vmul.f32 %v11080_v16, %v11080_v16 }
 0x74b   :  { %6619 = vmatmul.msk.f32.gmra.mxu3 %vm3644_vm1, %v11176_v20 }
 0x74f   :  { %6641 = vmatmul.msk.f32.gmra.mxu2 %vm3481_vm0, %v4102_v63 }
 0x753   :  { %6620 = vmatmul.msk.f32.gmra.mxu3 %vm3644_vm1, %v11180_v12 }
 0x757   :  { %6642 = vmatmul.msk.f32.gmra.mxu2 %vm3481_vm0, %v4103_v45  ;;  %v3960_v45 = vmul.f32 %v11084_v41, %v11084_v41 }
 0x75a   :  { %v3745_v2 = vpop.f32.mrf.mxu2 }
 0x75f   :  { %6643 = vmatmul.msk.f32.gmra.mxu2 %vm3481_vm0, %v4104_v0  ;;  %v3961_v0 = vmul.f32 %v11088_v23, %v11088_v23 }
 0x762   :  { %v3748_v60 = vpop.f32.mrf.mxu2 }
 0x767   :  { %6644 = vmatmul.msk.f32.gmra.mxu2 %vm3481_vm0, %v4105_v56  ;;  %v3963_v56 = vmul.f32 %v11100_v10, %v11100_v10 }
 0x76a   :  { %v3751_v33 = vpop.f32.mrf.mxu2 }
 0x76f   :  { %6645 = vmatmul.msk.f32.gmra.mxu2 %vm3481_vm0, %v4106_v29  ;;  %v3964_v29 = vmul.f32 %v11107_v48, %v11107_v48 }
 0x772   :  { %v3754_v17 = vpop.f32.mrf.mxu2 }
 0x777   :  { %6646 = vmatmul.msk.f32.gmra.mxu2 %vm3481_vm0, %v4107_v26  ;;  %v3965_v26 = vmul.f32 %v11115_v30, %v11115_v30 }
 0x77a   :  { %v3757_v18 = vpop.f32.mrf.mxu2 }
 0x77f   :  { %6647 = vmatmul.msk.f32.gmra.mxu2 %vm3481_vm0, %v4108_v59 }
 0x782   :  { %v3760_v40 = vpop.f32.mrf.mxu2 }
 0x787   :  { %6648 = vmatmul.msk.f32.gmra.mxu2 %vm3481_vm0, %v4109_v61 }
 0x78a   :  { %v3763_v24 = vpop.f32.mrf.mxu2 }
 0x78f   :  { %6649 = vmatmul.msk.f32.gmra.mxu2 %vm3481_vm0, %v4110_v7 }
 0x792   :  { %v3766_v15 = vpop.f32.mrf.mxu2 }
 0x79a   :  { %v3769_v34 = vpop.f32.mrf.mxu2 }
 0x7a2   :  { %v3772_v4 = vpop.f32.mrf.mxu2 }
 0x7aa   :  { %v3775_v13 = vpop.f32.mrf.mxu2 }
 0x7b2   :  { %v3778_v37 = vpop.f32.mrf.mxu2 }
 0x7b3   :  { %3785 = vmatpush.msrb.mxu0 %v3778_v37 }
 0x7b5   :  { %3786 = vmatpush.msrb.mxu0 %v3775_v13 }
 0x7b7   :  { %3787 = vmatpush.msrb.mxu0 %v3772_v4 }
 0x7b9   :  { %3788 = vmatpush.msrb.mxu0 %v3769_v34 }
 0x7ba   :  { %v4164_v38 = vpop.f32.mrf.mxu2 }
 0x7bb   :  { %3789 = vmatpush.msrb.mxu0 %v3766_v15 }
 0x7bd   :  { %3790 = vmatpush.msrb.mxu0 %v3763_v24 }
 0x7bf   :  { %3791 = vmatpush.msrb.mxu0 %v3760_v40  ;;  %v3967_v40 = vmul.f32 %v11124_v52, %v11124_v52 }
 0x7c1   :  { %3792 = vmatpush.msrb.mxu0 %v3757_v18  ;;  %v3966_v18 = vmul.f32 %v11120_v55, %v11120_v55 }
 0x7c2   :  { %v4167_v39 = vpop.f32.mrf.mxu2 }
 0x7c3   :  { %3793 = vmatpush.msrb.mxu0 %v3754_v17  ;;  %v4490_v17 = vld [vmem:[#allocation16] sm:$0xff] }
 0x7c5   :  { %3794 = vmatpush.msrb.mxu0 %v3751_v33  ;;  %v4491_v33 = vld [vmem:[#allocation16 + $0x8] sm:$0xff] }
 0x7c7   :  { %3795 = vmatpush.msrb.mxu0 %v3748_v60  ;;  %v3962_v60 = vmul.f32 %v11095_v32, %v11095_v32 }
 0x7c9   :  { %3796 = vmatpush.msrb.mxu0 %v3745_v2 }
 0x7ca   :  { %6599 = vmatmul.msk.f32.vlgmr.msrb.gmra.mxu0 %vm3644_vm1, %v11164_v35  ;;  %v4170_v25 = vpop.f32.mrf.mxu2 }
 0x7cb   :  { %4018 = vmatpush.msra.mxu0 %v10851_v43 }
 0x7cd   :  { %4019 = vmatpush.msra.mxu0 %v10855_v27 }
 0x7d2   :  { %6600 = vmatmul.msk.f32.gmra.mxu0 %vm3644_vm1, %v11168_v44  ;;  %v4173_v54 = vpop.f32.mrf.mxu2 }
 0x7da   :  { %6601 = vmatmul.msk.f32.gmra.mxu0 %vm3644_vm1, %v11172_v62  ;;  %v4176_v6 = vpop.f32.mrf.mxu2 }
 0x7e2   :  { %6602 = vmatmul.msk.f32.gmra.mxu0 %vm3644_vm1, %v11176_v20  ;;  %v4179_v43 = vpop.f32.mrf.mxu2 }
 0x7ea   :  { %6603 = vmatmul.msk.f32.gmra.mxu0 %vm3644_vm1, %v11180_v12  ;;  %v4182_v27 = vpop.f32.mrf.mxu2 }
 0x7f2   :  { %6621 = vmatmul.msk.f32.vlgmr.msra.gmra.mxu0 %vm3481_vm0, %v3956_v49  ;;  %v4185_v46 = vpop.f32.mrf.mxu2 }
 0x7fa   :  { %6622 = vmatmul.msk.f32.gmra.mxu0 %vm3481_vm0, %v3957_v36  ;;  %v4188_v47 = vpop.f32.mrf.mxu2 }
 0x802   :  { %6623 = vmatmul.msk.f32.gmra.mxu0 %vm3481_vm0, %v3958_v11  ;;  %v4191_v22 = vpop.f32.mrf.mxu2 }
 0x80a   :  { %6624 = vmatmul.msk.f32.gmra.mxu0 %vm3481_vm0, %v3959_v28  ;;  %v4194_v63 = vpop.f32.mrf.mxu2 }
 0x812   :  { %6625 = vmatmul.msk.f32.gmra.mxu0 %vm3481_vm0, %v3960_v45  ;;  %v4197_v2 = vpop.f32.mrf.mxu2 }
 0x813   :  { %4204 = vmatpush.msra.mxu1 %v4197_v2 }
 0x815   :  { %4205 = vmatpush.msra.mxu1 %v4194_v63 }
 0x817   :  { %4206 = vmatpush.msra.mxu1 %v4191_v22 }
 0x819   :  { %4207 = vmatpush.msra.mxu1 %v4188_v47 }
 0x81a   :  { %6626 = vmatmul.msk.f32.gmra.mxu0 %vm3481_vm0, %v3961_v0  ;;  %v11402_v0 = vstv %s3554_s0 }
 0x81b   :  { %4208 = vmatpush.msra.mxu1 %v4185_v46 }
 0x81d   :  { %4209 = vmatpush.msra.mxu1 %v4182_v27 }
 0x81f   :  { %4210 = vmatpush.msra.mxu1 %v4179_v43 }
 0x821   :  { %4211 = vmatpush.msra.mxu1 %v4176_v6 }
 0x822   :  { %6627 = vmatmul.msk.f32.gmra.mxu0 %vm3481_vm0, %v3962_v60 }
 0x823   :  { %4212 = vmatpush.msra.mxu1 %v4173_v54 }
 0x825   :  { %4213 = vmatpush.msra.mxu1 %v4170_v25 }
 0x827   :  { %4214 = vmatpush.msra.mxu1 %v4167_v39 }
 0x829   :  { %4215 = vmatpush.msra.mxu1 %v4164_v38 }
 0x82a   :  { %6628 = vmatmul.msk.f32.gmra.mxu0 %vm3481_vm0, %v3963_v56  ;;  %6650 = vmatmul.msk.f32.vlgmr.msra.gmra.mxu1 %vm3644_vm1, %v11164_v35 }
 0x82b   :  { %4612 = vmatpush.msrb.mxu1 %v4491_v33 }
 0x82d   :  { %4613 = vmatpush.msrb.mxu1 %v4490_v17 }
 0x832   :  { %6629 = vmatmul.msk.f32.gmra.mxu0 %vm3481_vm0, %v3964_v29  ;;  %6651 = vmatmul.msk.f32.gmra.mxu1 %vm3644_vm1, %v11168_v44 }
 0x83a   :  { %6630 = vmatmul.msk.f32.gmra.mxu0 %vm3481_vm0, %v3965_v26  ;;  %6652 = vmatmul.msk.f32.gmra.mxu1 %vm3644_vm1, %v11172_v62 }
 0x842   :  { %6631 = vmatmul.msk.f32.gmra.mxu0 %vm3481_vm0, %v3966_v18  ;;  %6653 = vmatmul.msk.f32.gmra.mxu1 %vm3644_vm1, %v11176_v20 }
 0x847   :  { %v11247_v59 = vpop.f32.mrf.mxu0 }
 0x84a   :  { %6632 = vmatmul.msk.f32.gmra.mxu0 %vm3481_vm0, %v3967_v40  ;;  %6654 = vmatmul.msk.f32.gmra.mxu1 %vm3644_vm1, %v11180_v12 }
 0x84f   :  { %v11254_v61 = vpop.f32.mrf.mxu0 }
 0x852   :  { %6673 = vmatmul.msk.f32.vlgmr.msrb.gmra.mxu1 %vm3481_vm0, %v11066_v19 }
 0x857   :  { %v11258_v24 = vpop.f32.mrf.mxu0 }
 0x858   :  { %v11361_v38 = vmul.f32 %v11258_v24, %v11258_v24 }
 0x85a   :  { %6674 = vmatmul.msk.f32.gmra.mxu1 %vm3481_vm0, %v11072_v21 }
 0x85f   :  { %v11262_v7 = vpop.f32.mrf.mxu0 }
 0x860   :  { %v11378_v6 = vmul.f32 %v11262_v7, %v11262_v7 }
 0x862   :  { %6675 = vmatmul.msk.f32.gmra.mxu1 %vm3481_vm0, %v11076_v1 }
 0x867   :  { %v11266_v15 = vpop.f32.mrf.mxu0 }
 0x86a   :  { %6676 = vmatmul.msk.f32.gmra.mxu1 %vm3481_vm0, %v11080_v16 }
 0x86f   :  { %v4021_v34 = vpop.f32.mrf.mxu0 }
 0x872   :  { %6677 = vmatmul.msk.f32.gmra.mxu1 %vm3481_vm0, %v11084_v41 }
 0x877   :  { %v4024_v19 = vpop.f32.mrf.mxu0 }
 0x87a   :  { %6678 = vmatmul.msk.f32.gmra.mxu1 %vm3481_vm0, %v11088_v23 }
 0x87f   :  { %v4027_v4 = vpop.f32.mrf.mxu0 }
 0x882   :  { %6679 = vmatmul.msk.f32.gmra.mxu1 %vm3481_vm0, %v11095_v32 }
 0x887   :  { %v4030_v21 = vpop.f32.mrf.mxu0 }
 0x88a   :  { %6680 = vmatmul.msk.f32.gmra.mxu1 %vm3481_vm0, %v11100_v10 }
 0x88f   :  { %v4033_v1 = vpop.f32.mrf.mxu0 }
 0x892   :  { %6681 = vmatmul.msk.f32.gmra.mxu1 %vm3481_vm0, %v11107_v48  ;;  %v11296_v48 = vpop.f32.mrf.mxu3 }
 0x893   :  { %v4338_v28 = vmul.f32 2.0, %v11296_v48 }
 0x895   :  { %v4343_v56 = vmul.f32 %v4338_v28, %v11247_v59 }
 0x897   :  { %v4036_v16 = vpop.f32.mrf.mxu0 }
 0x89a   :  { %6682 = vmatmul.msk.f32.gmra.mxu1 %vm3481_vm0, %v11115_v30  ;;  %v11300_v30 = vpop.f32.mrf.mxu3 }
 0x89f   :  { %v4039_v41 = vpop.f32.mrf.mxu0 }
 0x8a2   :  { %6683 = vmatmul.msk.f32.gmra.mxu1 %vm3481_vm0, %v11120_v55  ;;  %v11304_v55 = vpop.f32.mrf.mxu3 }
 0x8a7   :  { %v4042_v23 = vpop.f32.mrf.mxu0 }
 0x8aa   :  { %6684 = vmatmul.msk.f32.gmra.mxu1 %vm3481_vm0, %v11124_v52  ;;  %v11310_v52 = vpop.f32.mrf.mxu3 }
 0x8ab   :  { %v11374_v54 = vmul.f32 %v11310_v52, %v11310_v52 }
 0x8ad   :  { %v4362_v36 = vadd.f32 %v11378_v6, %v11374_v54 }
 0x8af   :  { %v4045_v32 = vpop.f32.mrf.mxu0 }
 0x8b7   :  { %v4048_v13 = vpop.f32.mrf.mxu0 }
 0x8bf   :  { %v4051_v37 = vpop.f32.mrf.mxu0 }
 0x8c7   :  { %v4054_v10 = vpop.f32.mrf.mxu0 }
 0x8c8   :  { %4061 = vmatpush.msra.mxu3 %v4054_v10 }
 0x8ca   :  { %4062 = vmatpush.msra.mxu3 %v4051_v37 }
 0x8cc   :  { %4063 = vmatpush.msra.mxu3 %v4048_v13 }
 0x8ce   :  { %4064 = vmatpush.msra.mxu3 %v4045_v32 }
 0x8d0   :  { %4065 = vmatpush.msra.mxu3 %v4042_v23 }
 0x8d2   :  { %4066 = vmatpush.msra.mxu3 %v4039_v41 }
 0x8d4   :  { %4067 = vmatpush.msra.mxu3 %v4036_v16 }
 0x8d6   :  { %4068 = vmatpush.msra.mxu3 %v4033_v1  ;;  %v4341_v1 = vmul.f32 2.0, %v11310_v52 }
 0x8d8   :  { %4069 = vmatpush.msra.mxu3 %v4030_v21  ;;  %v4340_v21 = vmul.f32 2.0, %v11304_v55 }
 0x8da   :  { %4070 = vmatpush.msra.mxu3 %v4027_v4  ;;  %v4339_v4 = vmul.f32 2.0, %v11300_v30 }
 0x8dc   :  { %4071 = vmatpush.msra.mxu3 %v4024_v19  ;;  %v11421_v19 = vmul.f32 %v11266_v15, %v11266_v15 }
 0x8de   :  { %4072 = vmatpush.msra.mxu3 %v4021_v34 }
 0x8df   :  { %6633 = vmatmul.msk.f32.vlgmr.msra.gmra.mxu3 %vm3644_vm1, %v11164_v35  ;;  %v11314_v35 = vpop.f32.mrf.mxu3 }
 0x8e0   :  { %4506 = vmatpush.msrb.mxu3 %v4491_v33  ;;  %v11417_v40 = vmul.f32 %v11314_v35, %v11314_v35  ;;  %v11427_v16 = vmul.f32 2.0, %v11314_v35 }
 0x8e2   :  { %4507 = vmatpush.msrb.mxu3 %v4490_v17 }
 0x8e7   :  { %6634 = vmatmul.msk.f32.gmra.mxu3 %vm3644_vm1, %v11168_v44  ;;  %v4090_v44 = vmul.f32 %v11254_v61, %v11254_v61 }
 0x8ef   :  { %6635 = vmatmul.msk.f32.gmra.mxu3 %vm3644_vm1, %v11172_v62 }
 0x8f7   :  { %6636 = vmatmul.msk.f32.gmra.mxu3 %vm3644_vm1, %v11176_v20  ;;  %v11356_v20 = vmul.f32 %v11304_v55, %v11304_v55 }
 0x8ff   :  { %6637 = vmatmul.msk.f32.gmra.mxu3 %vm3644_vm1, %v11180_v12  ;;  %v11363_v12 = vpop.f32.mrf.mxu1 }
 0x907   :  { %6655 = vmatmul.msk.f32.vlgmr.msrb.gmra.mxu3 %vm3481_vm0, %v10865_v42  ;;  %v3931_v42 = vpop.f32.mrf.mxu3  ;;  %v11393_v11 = vpop.f32.mrf.mxu1 }
 0x90f   :  { %6656 = vmatmul.msk.f32.gmra.mxu3 %vm3481_vm0, %v10876_v5  ;;  %v11324_v5 = vpop.f32.mrf.mxu3  ;;  %v11430_v13 = vpop.f32.mrf.mxu1 }
 0x917   :  { %6657 = vmatmul.msk.f32.gmra.mxu3 %vm3481_vm0, %v10885_v58  ;;  %v11328_v58 = vpop.f32.mrf.mxu3 }
 0x91f   :  { %6658 = vmatmul.msk.f32.gmra.mxu3 %vm3481_vm0, %v10893_v8  ;;  %v3946_v8 = vmul.f32 %v11296_v48, %v11296_v48 }
 0x921   :  { %v3951_v22 = vsub.f32 %v3931_v42, %v3946_v8 }
 0x927   :  { %6659 = vmatmul.msk.f32.gmra.mxu3 %vm3481_vm0, %v10901_v3  ;;  %v4089_v3 = vmul.f32 %v11247_v59, %v11247_v59 }
 0x92f   :  { %6660 = vmatmul.msk.f32.gmra.mxu3 %vm3481_vm0, %v10909_v57  ;;  %v11341_v57 = vpop.f32.mrf.mxu3 }
 0x937   :  { %6661 = vmatmul.msk.f32.gmra.mxu3 %vm3481_vm0, %v10917_v53  ;;  %v4359_v53 = vadd.f32 %v4089_v3, %v3946_v8  ;;  %v11365_v39 = vpop.f32.mrf.mxu3 }
 0x93f   :  { %6662 = vmatmul.msk.f32.gmra.mxu3 %vm3481_vm0, %v10926_v14  ;;  %v11343_v14 = vstv %s3552_s13 }
 0x940   :  { %v11350_v62 = vadd.f32 %v4359_v53, %v11343_v14  ;;  %v11400_v2 = vadd.f32 %v4362_v36, %v11343_v14  ;;  %v11438_v42 = vadd.f32 %v11343_v14, %v4343_v56 }
 0x942   :  { %6936 = vrcp.f32 %v11350_v62  ;;  %v4378_v32 = vand.u32 2147483647, %v11350_v62  ;;  %vm4374_vm7 = vweird.f32 %v11350_v62 }
 0x944   :  { %vm11463_vm9 = vcmp.eq.f32.partialorder %v4378_v32, 8.507059e+37 }
 0x947   :  { %6663 = vmatmul.msk.f32.gmra.mxu3 %vm3481_vm0, %v10940_v50  ;;  %v3947_v50 = vmul.f32 %v11300_v30, %v11300_v30 }
 0x948   :  { %v11380_v43 = vpop.eup %6936 }
 0x949   :  { %v4370_v46 = vmul.f32 %v11380_v43, %v11350_v62  ;;  %v3952_v18 = vsub.f32 %v11324_v5, %v3947_v50  ;;  %vm4375_vm6 = vweird.f32 %v11380_v43  ;;  %v11442_v5 = vmul.f32 %v11247_v59, %v11296_v48 }
 0x94a   :  { %vm11459_vm8 = vmor %vm4374_vm7, %vm4375_vm6  ;;  %v4425_v48 = vand.u32 2147483648, %v11400_v2 }
 0x94b   :  { %v4371_v45 = vsub.f32 1.0, %v4370_v46 }
 0x94d   :  { %v4372_v17 = vmul.f32 %v11380_v43, %v4371_v45 }
 0x94f   :  { %6664 = vmatmul.msk.f32.gmra.mxu3 %vm3481_vm0, %v10951_v31  ;;  %v4360_v31 = vadd.f32 %v4090_v44, %v3947_v50  ;;  %v4373_v10 = vadd.f32 %v11380_v43, %v4372_v17  ;;  %v4344_v50 = vmul.f32 %v4339_v4, %v11254_v61 }
 0x951   :  { %v11368_v25 = vadd.f32 %v4360_v31, %v11343_v14  ;;  %v4380_v31 = vand.u32 2147483648, %v11350_v62  ;;  %v4377_v62 = vsel %vm11459_vm8, %v11380_v43, %v4373_v10  ;;  %v4234_v43 = vmul.f32 %v11258_v24, %v11304_v55 }
 0x953   :  { %6938 = vrcp.f32 %v11368_v25  ;;  %v4395_v46 = vand.u32 2147483648, %v11368_v25  ;;  %v4381_v56 = vor.u32 1.1754944e-38, %v4380_v31  ;;  %vm4389_vm10 = vweird.f32 %v11368_v25 }
 0x955   :  { %v11501_v17 = vsel %vm11463_vm9, %v4381_v56, %v4377_v62 }
 0x957   :  { %6665 = vmatmul.msk.f32.gmra.mxu3 %vm3481_vm0, %v10967_v51  ;;  %v4361_v51 = vadd.f32 %v11361_v38, %v11356_v20 }
 0x959   :  { %v11387_v27 = vadd.f32 %v4361_v51, %v11343_v14 }
 0x95b   :  { %6940 = vrcp.f32 %v11387_v27  ;;  %vm4404_vm15 = vweird.f32 %v11387_v27  ;;  %v4410_v10 = vand.u32 2147483648, %v11387_v27 }
 0x95c   :  { %6942 = vrcp.f32 %v11400_v2 }
 0x95d   :  { %v11550_v62 = vor.u32 1.1754944e-38, %v4410_v10 }
 0x95f   :  { %6666 = vmatmul.msk.f32.gmra.mxu3 %vm3481_vm0, %v11009_v9  ;;  %v11396_v9 = vpop.eup %6938 }
 0x960   :  { %v4385_v60 = vmul.f32 %v11396_v9, %v11368_v25  ;;  %vm4390_vm11 = vweird.f32 %v11396_v9 }
 0x961   :  { %v11412_v26 = vpop.eup %6940  ;;  %vm11519_vm14 = vmor %vm4389_vm10, %vm4390_vm11  ;;  %vm4419_vm10 = vweird.f32 %v11400_v2 }
 0x962   :  { %v4074_v49 = vpop.f32.mrf.mxu3  ;;  %v4386_v23 = vsub.f32 1.0, %v4385_v60  ;;  %v4400_v37 = vmul.f32 %v11412_v26, %v11387_v27  ;;  %v11449_v53 = vpop.eup %6942  ;;  %v11485_v60 = vadd.f32 %v11343_v14, %v4344_v50  ;;  %vm4405_vm2 = vweird.f32 %v11412_v26 }
 0x963   :  { %v4094_v47 = vsub.f32 %v4074_v49, %v4089_v3  ;;  %v4363_v3 = vadd.f32 %v11421_v19, %v11417_v40  ;;  %v4393_v49 = vand.u32 2147483647, %v11368_v25  ;;  %v4408_v25 = vand.u32 2147483647, %v11387_v27  ;;  %vm11572_vm3 = vmor %vm4404_vm15, %vm4405_vm2 }
 0x964   :  { %v4387_v51 = vmul.f32 %v11396_v9, %v4386_v23  ;;  %v4401_v36 = vsub.f32 1.0, %v4400_v37  ;;  %v11513_v23 = vpop.f32.mrf.mxu1  ;;  %vm4420_vm0 = vweird.f32 %v11449_v53 }
 0x965   :  { %v4253_v63 = vadd.f32 %v4094_v47, %v3951_v22  ;;  %v3953_v47 = vsub.f32 %v11328_v58, %v11356_v20  ;;  %v11478_v28 = vadd.f32 %v4363_v3, %v11343_v14  ;;  %vm11492_vm13 = vcmp.eq.f32.partialorder %v4393_v49, 8.507059e+37 }
 0x966   :  { %v4388_v20 = vadd.f32 %v11396_v9, %v4387_v51  ;;  %v4402_v55 = vmul.f32 %v11412_v26, %v4401_v36  ;;  %v11527_v3 = vmul.f32 %v11262_v7, %v11310_v52  ;;  %vm11620_vm9 = vcmp.eq.f32.partialorder %v4408_v25, 8.507059e+37 }
 0x967   :  { %v11408_v33 = vadd.f32 %v4253_v63, %v11402_v0  ;;  %v4415_v63 = vmul.f32 %v11449_v53, %v11400_v2 }
 0x968   :  { %v11535_v59 = vadd.f32 %v11412_v26, %v4402_v55 }
 0x969   :  { %6944 = vrcp.f32 %v11408_v33  ;;  %vm4268_vm6 = vweird.f32 %v11408_v33 }
 0x96a   :  { %v4077_v29 = vpop.f32.mrf.mxu3 }
 0x96b   :  { %v4095_v34 = vsub.f32 %v4077_v29, %v4090_v44  ;;  %v11454_v44 = vmul.f32 %v11254_v61, %v11300_v30  ;;  %v4345_v61 = vmul.f32 %v4340_v21, %v11258_v24  ;;  %v4396_v24 = vor.u32 1.1754944e-38, %v4395_v46 }
 0x96c   :  { %v4416_v21 = vsub.f32 1.0, %v4415_v63 }
 0x96d   :  { %v4254_v41 = vadd.f32 %v4095_v34, %v3952_v18  ;;  %v11497_v29 = vadd.f32 %v11343_v14, %v4345_v61  ;;  %v4237_v61 = vsub.f32 %v11363_v12, %v11442_v5  ;;  %v11566_v12 = vmul.f32 %v11266_v15, %v11314_v35 }
 0x96e   :  { %v4417_v49 = vmul.f32 %v11449_v53, %v4416_v21  ;;  %v11577_v5 = vor.u32 1.1754944e-38, %v4425_v48  ;;  %v4407_v35 = vsel %vm11572_vm3, %v11412_v26, %v11535_v59  ;;  %v4440_v26 = vand.u32 2147483648, %v11478_v28 }
 0x96f   :  { %v11445_v8 = vadd.f32 %v4254_v41, %v11402_v0  ;;  %v11482_v45 = vpop.eup %6944  ;;  %v4346_v41 = vmul.f32 %v4341_v1, %v11262_v7  ;;  %v4392_v1 = vsel %vm11519_vm14, %v11396_v9, %v4388_v20  ;;  %v3954_v7 = vsub.f32 %v11341_v57, %v11374_v54 }
 0x970   :  { %v4264_v34 = vmul.f32 %v11482_v45, %v11408_v33  ;;  %v4239_v57 = vsub.f32 %v11430_v13, %v4234_v43  ;;  %v11558_v36 = vsel %vm11492_vm13, %v4396_v24, %v4392_v1  ;;  %v4423_v13 = vand.u32 2147483647, %v11400_v2 }
 0x971   :  { %6946 = vrcp.f32 %v11445_v8  ;;  %v11544_v9 = vadd.f32 %v11343_v14, %v4346_v41  ;;  %v11590_v27 = vadd.f32 %v11449_v53, %v4417_v49  ;;  %v3955_v24 = vsub.f32 %v11365_v39, %v11417_v40 }
 0x972   :  { %v4080_v30 = vpop.f32.mrf.mxu3  ;;  %6948 = vrcp.f32 %v11478_v28  ;;  %v4265_v52 = vsub.f32 1.0, %v4264_v34  ;;  %vm4269_vm5 = vweird.f32 %v11482_v45  ;;  %v4289_v21 = vand.u32 2147483648, %v11445_v8 }
 0x973   :  { %v4096_v22 = vsub.f32 %v4080_v30, %v11361_v38  ;;  %v4238_v30 = vsub.f32 %v11393_v11, %v11454_v44  ;;  %v11601_v38 = vpop.f32.mrf.mxu1  ;;  %vm4283_vm12 = vweird.f32 %v11445_v8  ;;  %v4287_v37 = vand.u32 2147483647, %v11445_v8  ;;  %vm11632_vm11 = vmor %vm4268_vm6, %vm4269_vm5 }
 0x974   :  { %v4274_v39 = vand.u32 2147483648, %v11408_v33  ;;  %v4290_v25 = vor.u32 1.1754944e-38, %v4289_v21 }
 0x975   :  { %v4255_v58 = vadd.f32 %v4096_v22, %v3953_v47  ;;  %v11562_v47 = vmul.f32 %v11427_v16, %v11266_v15  ;;  %v4266_v15 = vmul.f32 %v11482_v45, %v4265_v52  ;;  %v4242_v22 = vmul.f32 2.0, %v4237_v61 }
 0x976   :  { %v4243_v63 = vmul.f32 2.0, %v4238_v30  ;;  %vm4288_vm14 = vcmp.eq.f32.partialorder %v4287_v37, 8.507059e+37  ;;  %v4275_v30 = vor.u32 1.1754944e-38, %v4274_v39  ;;  %v4438_v39 = vand.u32 2147483647, %v11478_v28 }
 0x977   :  { %v11504_v18 = vpop.eup %6946  ;;  %v11509_v4 = vadd.f32 %v4255_v58, %v11402_v0  ;;  %v4244_v58 = vmul.f32 2.0, %v4239_v57 }
 0x978   :  { %v4279_v32 = vmul.f32 %v11504_v18, %v11445_v8  ;;  %v11552_v46 = vpop.eup %6948  ;;  %vm4284_vm4 = vweird.f32 %v11504_v18  ;;  %v4272_v8 = vand.u32 2147483647, %v11408_v33 }
 0x979   :  { %6950 = vrcp.f32 %v11509_v4  ;;  %v11596_v56 = vmul.f32 %v11552_v46, %v11478_v28  ;;  %vm11614_vm7 = vmor %vm4283_vm12, %vm4284_vm4  ;;  %vm4298_vm13 = vweird.f32 %v11509_v4  ;;  %v4302_v33 = vand.u32 2147483647, %v11509_v4 }
 0x97a   :  { %v4280_v50 = vsub.f32 1.0, %v4279_v32  ;;  %v4083_v31 = vpop.f32.mrf.mxu3  ;;  %v4267_v32 = vadd.f32 %v11482_v45, %v4266_v15  ;;  %vm4273_vm2 = vcmp.eq.f32.partialorder %v4272_v8, 8.507059e+37  ;;  %vm11669_vm12 = vcmp.eq.f32.partialorder %v4423_v13, 8.507059e+37 }
 0x97b   :  { %v4097_v51 = vsub.f32 %v4083_v31, %v11378_v6  ;;  %v4304_v31 = vand.u32 2147483648, %v11509_v4  ;;  %vm4303_vm4 = vcmp.eq.f32.partialorder %v4302_v33, 8.507059e+37  ;;  %v11664_v21 = vpop.f32.mrf.mxu1  ;;  %v4431_v37 = vsub.f32 1.0, %v11596_v56 }
 0x97c   :  { %v4281_v6 = vmul.f32 %v11504_v18, %v4280_v50  ;;  %v4271_v49 = vsel %vm11632_vm11, %v11482_v45, %v4267_v32 }
 0x97d   :  { %v4256_v54 = vadd.f32 %v4097_v51, %v3954_v7  ;;  %v4305_v45 = vor.u32 1.1754944e-38, %v4304_v31  ;;  %v4276_v15 = vsel %vm4273_vm2, %v4275_v30, %v4271_v49  ;;  %vm4452_vm2 = vcmask 44032  }
 0x97e   :  { %v4282_v20 = vadd.f32 %v11504_v18, %v4281_v6 }
 0x97f   :  { %v11579_v44 = vpop.eup %6950  ;;  %v11582_v16 = vadd.f32 %v4256_v54, %v11402_v0  ;;  %v4248_v54 = vadd.f32 %v11402_v0, %v4242_v22 }
 0x980   :  { %v4294_v43 = vmul.f32 %v11579_v44, %v11509_v4  ;;  %vm4299_vm8 = vweird.f32 %v11579_v44  ;;  %v4286_v50 = vsel %vm11614_vm7, %v11504_v18, %v4282_v20  ;;  %v4240_v18 = vsub.f32 %v11513_v23, %v11527_v3  ;;  %vm11688_vm7 = vmor %vm4419_vm10, %vm4420_vm0 }
 0x981   :  { %6952 = vrcp.f32 %v11582_v16  ;;  %vm11649_vm15 = vmor %vm4298_vm13, %vm4299_vm8  ;;  %v4291_v57 = vsel %vm4288_vm14, %v4290_v25, %v4286_v50  ;;  %v4249_v3 = vadd.f32 %v11402_v0, %v4243_v63  ;;  %v4250_v20 = vadd.f32 %v11402_v0, %v4244_v58 }
 0x982   :  { %v4295_v55 = vsub.f32 1.0, %v4294_v43  ;;  %v4086_v34 = vpop.f32.mrf.mxu3  ;;  %v4277_v32 = vmul.f32 %v4276_v15, %v4248_v54  ;;  %v4412_v58 = vsel %vm11620_vm9, %v11550_v62, %v4407_v35  ;;  %vm4313_vm6 = vweird.f32 %v11582_v16 }
 0x983   :  { %v4098_v41 = vsub.f32 %v4086_v34, %v11421_v19  ;;  %v4319_v34 = vand.u32 2147483648, %v11582_v16  ;;  %v4241_v62 = vsub.f32 %v11601_v38, %v11566_v12  ;;  %vm4434_vm8 = vweird.f32 %v11478_v28  ;;  %v11720_v61 = vpop.f32.mrf.mxu1 }
 0x984   :  { %v4296_v10 = vmul.f32 %v11579_v44, %v4295_v55  ;;  %v4354_v12 = vmul.f32 %v11438_v42, %v4277_v32  ;;  %v4432_v38 = vmul.f32 %v11552_v46, %v4431_v37  ;;  %vm4435_vm9 = vweird.f32 %v11552_v46 }
 0x985   :  { %v4257_v1 = vadd.f32 %v4098_v41, %v3955_v24  ;;  %v4292_v24 = vmul.f32 %v4291_v57, %v4249_v3  ;;  %v4317_v41 = vand.u32 2147483647, %v11582_v16  ;;  %v4320_v13 = vor.u32 1.1754944e-38, %v4319_v34 }
 0x986   :  { %v4297_v7 = vadd.f32 %v11579_v44, %v4296_v10  ;;  %vm4444_vm10 = vcmask 48128   ;;  %v4433_v49 = vadd.f32 %v11552_v46, %v4432_v38  ;;  %v4353_v54 = vadd.f32 %v11343_v14, %v11562_v47 }
 0x987   :  { %v6953_v52 = vpop.eup %6952  ;;  %v11642_v51 = vadd.f32 %v4257_v1, %v11402_v0  ;;  %v4355_v35 = vmul.f32 %v11485_v60, %v4292_v24  ;;  %vm4318_vm0 = vcmp.eq.f32.partialorder %v4317_v41, 8.507059e+37  ;;  %v4466_v48 = vsel %vm4444_vm10, %v4292_v24, 0.0 }
 0x988   :  { %v4309_v4 = vmul.f32 %v6953_v52, %v11582_v16  ;;  %v4301_v23 = vsel %vm11649_vm15, %v11579_v44, %v4297_v7  ;;  %v4245_v44 = vmul.f32 2.0, %v4240_v18  ;;  %vm4314_vm5 = vweird.f32 %v6953_v52 }
 0x989   :  { %6954 = vrcp.f32 %v11642_v51  ;;  %v4306_v55 = vsel %vm4303_vm4, %v4305_v45, %v4301_v23  ;;  %vm4315_vm3 = vmor %vm4313_vm6, %vm4314_vm5  ;;  %v4422_v16 = vsel %vm11688_vm7, %v11449_v53, %v11590_v27  ;;  %v4246_v27 = vmul.f32 2.0, %v4241_v62 }
 0x98a   :  { %v11660_v6 = vpop.f32.mrf.mxu3  ;;  %v4310_v43 = vsub.f32 1.0, %v4309_v4  ;;  %v4307_v40 = vmul.f32 %v4306_v55, %v4250_v20  ;;  %v4251_v2 = vadd.f32 %v11402_v0, %v4245_v44  ;;  %v4334_v31 = vand.u32 2147483648, %v11642_v51  ;;  %vm4436_vm4 = vmor %vm4434_vm8, %vm4435_vm9 }
 0x98b   :  { %v4398_v25 = vmul.f32 %v11558_v36, %v4355_v35  ;;  %v4332_v42 = vand.u32 2147483647, %v11642_v51  ;;  %v4383_v18 = vmul.f32 %v11501_v17, %v4354_v12  ;;  %vm4328_vm13 = vweird.f32 %v11642_v51 }
 0x98c   :  { %v4311_v63 = vmul.f32 %v6953_v52, %v4310_v43  ;;  %v4356_v53 = vmul.f32 %v11497_v29, %v4307_v40  ;;  %v4427_v29 = vsel %vm11669_vm12, %v11577_v5, %v4422_v16  ;;  %v4468_v36 = vsel %vm4444_vm10, %v4307_v40, 0.0  ;;  %v4621_v40 = vpop.f32.mrf.mxu1 }
 0x98d   :  { %v4335_v57 = vor.u32 1.1754944e-38, %v4334_v31  ;;  %v4446_v17 = vsel %vm4444_vm10, %v4398_v25, 0.0  ;;  %vm4333_vm15 = vcmp.eq.f32.partialorder %v4332_v42, 8.507059e+37  ;;  %v4437_v20 = vsel %vm4436_vm4, %v11552_v46, %v4433_v49  ;;  %v4486_v25 = vld [vmem:[#allocation15 + $0x10] sm:$0xff] }
 0x98e   :  { %v4312_v10 = vadd.f32 %v6953_v52, %v4311_v63  ;;  %v4413_v30 = vmul.f32 %v4412_v58, %v4356_v53  ;;  %v4445_v24 = vsel %vm4444_vm10, %v4383_v18, 0.0  ;;  %v4441_v44 = vor.u32 1.1754944e-38, %v4440_v26 }
 0x98f   :  { %v6955_v59 = vpop.eup %6954  ;;  %v4447_v63 = vadd.f32 %v4446_v17, %v4445_v24  ;;  %vm4439_vm5 = vcmp.eq.f32.partialorder %v4438_v39, 8.507059e+37  ;;  %v6224_v17 = vlaneseq  ;;  %vm4688_vm7 = vcmask 64512  }
 0x990   :  { %v4316_v56 = vsel %vm4315_vm3, %v6953_v52, %v4312_v10  ;;  %v4324_v19 = vmul.f32 %v6955_v59, %v11642_v51  ;;  %vm4329_vm11 = vweird.f32 %v6955_v59  ;;  %v4465_v52 = vsel %vm4444_vm10, %v4277_v32, 0.0 }
 0x991   :  { %v4321_v1 = vsel %vm4318_vm0, %v4320_v13, %v4316_v56  ;;  %vm4330_vm14 = vmor %vm4328_vm13, %vm4329_vm11  ;;  %v4467_v23 = vadd.f32 %v4466_v48, %v4465_v52  ;;  %v4448_v55 = vsel %vm4444_vm10, %v4413_v30, 0.0  ;;  %v4442_v32 = vsel %vm4439_vm5, %v4441_v44, %v4437_v20  ;;  %v4485_v48 = vld [vmem:[#allocation15 + $0x8] sm:$0xff] }
 0x992   :  { %v11706_v60 = vpop.f32.mrf.mxu3  ;;  %v4322_v8 = vmul.f32 %v4321_v1, %v4251_v2  ;;  %v4325_v50 = vsub.f32 1.0, %v4324_v19  ;;  %v4449_v58 = vadd.f32 %v4448_v55, %v4447_v63  ;;  %vm5173_vm13 = vcmask 5120  }
 0x993   :  { %v4469_v51 = vadd.f32 %v4468_v36, %v4467_v23  ;;  %vm5333_vm4 = vcmask 31744  }
 0x994   :  { %v4326_v7 = vmul.f32 %v6955_v59, %v4325_v50  ;;  %v4357_v33 = vmul.f32 %v11544_v9, %v4322_v8  ;;  %v4252_v9 = vadd.f32 %v11402_v0, %v4246_v27  ;;  %v4470_v5 = vsel %vm4444_vm10, %v4322_v8, 0.0  ;;  %v4484_v27 = vld [vmem:[#allocation15] sm:$0xff] }
 0x995   :  { %v4471_v34 = vadd.f32 %v4470_v5, %v4469_v51  ;;  %v6229_v5 = vstv %s2976_s12 }
 0x996   :  { %v4327_v4 = vadd.f32 %v6955_v59, %v4326_v7  ;;  %v4428_v45 = vmul.f32 %v4427_v29, %v4357_v33  ;;  %v4488_v29 = vld [vmem:[#allocation15 + $0x20] sm:$0xff] }
 0x998   :  { %v4331_v3 = vsel %vm4330_vm14, %v6955_v59, %v4327_v4  ;;  %v4450_v41 = vsel %vm4444_vm10, %v4428_v45, 0.0  ;;  %v4624_v59 = vpop.f32.mrf.mxu1 }
 0x999   :  { %v4336_v15 = vsel %vm4333_vm15, %v4335_v57, %v4331_v3  ;;  %v4451_v46 = vadd.f32 %v4450_v41, %v4449_v58  ;;  %v11757_v3 = vshrl.u32 %v6224_v17, 7 }
 0x99a   :  { %v4515_v0 = vpop.f32.mrf.mxu3  ;;  %v4337_v43 = vmul.f32 %v4336_v15, %v4252_v9  ;;  %v4489_v9 = vld [vmem:[#allocation15 + $0x28] sm:$0xff] }
 0x99b   :  { %vm6227_vm12 = vcmp.eq.s32.totalorder %v11757_v3, 0  ;;  %vm6232_vm6 = vcmp.eq.s32.totalorder %v11757_v3, 1  ;;  %v11762_v15 = vld [vmem:[#allocation19] sm:$0xff]  ;;  %vm6237_vm5 = vcmp.eq.s32.totalorder %v11757_v3, 2 }
 0x99c   :  { %v4472_v14 = vsel %vm4452_vm2, %v4337_v43, 0.0  ;;  %v4358_v47 = vmul.f32 %v4353_v54, %v4337_v43  ;;  %v6230_v45 = vsel %vm6227_vm12, %v6229_v5, 0.0  ;;  %4771 = vmatpush.msra.mxu2 %v11762_v15  ;;  %vm5410_vm12 = vcmask 195584  }
 0x99d   :  { %v4473_v22 = vadd.f32 %v4472_v14, %v4471_v34 }
 0x99e   :  { %v4443_v37 = vmul.f32 %v4442_v32, %v4358_v47  ;;  %4927 = vmatpush.msrb.mxu2 %v11762_v15 }
 0x99f   :  { %4474 = vadd.xlane.f32.xlu1 %v4473_v22 }
 0x9a0   :  { %v4453_v10 = vsel %vm4452_vm2, %v4443_v37, 0.0  ;;  %v4627_v35 = vpop.f32.mrf.mxu1  ;;  %vm5380_vm2 = vcmask 1043456  }
 0x9a1   :  { %v4454_v11 = vadd.f32 %v4453_v10, %v4451_v46 }
 0x9a2   :  { %v4518_v26 = vpop.f32.mrf.mxu3 }
 0x9a3   :  { %4455 = vadd.xlane.f32.xlu0 %v4454_v11 }
 0x9a8   :  { %v4630_v39 = vpop.f32.mrf.mxu1 }
 0x9aa   :  { %v4521_v62 = vpop.f32.mrf.mxu3 }
 0x9b0   :  { %v4633_v2 = vpop.f32.mrf.mxu1 }
 0x9b2   :  { %v4524_v13 = vpop.f32.mrf.mxu3 }
 0x9b8   :  { %v4636_v19 = vpop.f32.mrf.mxu1 }
 0x9ba   :  { %v4527_v28 = vpop.f32.mrf.mxu3 }
 0x9c0   :  { %v4639_v38 = vpop.f32.mrf.mxu1 }
 0x9c2   :  { %v4530_v16 = vpop.f32.mrf.mxu3 }
 0x9c8   :  { %v4642_v50 = vpop.f32.mrf.mxu1 }
 0x9ca   :  { %v4533_v56 = vpop.f32.mrf.mxu3 }
 0x9d0   :  { %v4645_v53 = vpop.f32.mrf.mxu1 }
 0x9d2   :  { %v4536_v1 = vpop.f32.mrf.mxu3 }
 0x9d8   :  { %v4648_v31 = vpop.f32.mrf.mxu1 }
 0x9da   :  { %v4539_v12 = vpop.f32.mrf.mxu3 }
 0x9e2   :  { %v4542_v8 = vpop.f32.mrf.mxu3 }
 0x9e3   :  { %4567 = vmatpush.msrb.mxu0 %v4542_v8 }
 0x9e5   :  { %4568 = vmatpush.msrb.mxu0 %v4539_v12 }
 0x9e7   :  { %4569 = vmatpush.msrb.mxu0 %v4536_v1 }
 0x9e9   :  { %4570 = vmatpush.msrb.mxu0 %v4533_v56 }
 0x9eb   :  { %4571 = vmatpush.msrb.mxu0 %v4530_v16 }
 0x9ed   :  { %4572 = vmatpush.msrb.mxu0 %v4527_v28 }
 0x9ef   :  { %4573 = vmatpush.msrb.mxu0 %v4524_v13 }
 0x9f1   :  { %4574 = vmatpush.msrb.mxu0 %v4521_v62 }
 0x9f3   :  { %4575 = vmatpush.msrb.mxu0 %v4518_v26 }
 0x9f5   :  { %4576 = vmatpush.msrb.mxu0 %v4515_v0 }
 0x9f7   :  { %4577 = vmatpush.msrb.mxu0 %v11706_v60 }
 0x9f9   :  { %4578 = vmatpush.msrb.mxu0 %v11660_v6  ;;  %v4487_v6 = vld [vmem:[#allocation15 + $0x18] sm:$0xff] }
 0x9fa   :  { %6667 = vmatmul.msk.f32.vlgmr.msrb.gmra.mxu0 %vm3644_vm1, %v4484_v27 }
 0x9fb   :  { %4655 = vmatpush.msra.mxu0 %v4648_v31 }
 0x9fd   :  { %4656 = vmatpush.msra.mxu0 %v4645_v53 }
 0x9ff   :  { %4657 = vmatpush.msra.mxu0 %v4642_v50 }
 0xa01   :  { %4658 = vmatpush.msra.mxu0 %v4639_v38 }
 0xa02   :  { %6668 = vmatmul.msk.f32.gmra.mxu0 %vm3644_vm1, %v4485_v48 }
 0xa03   :  { %4659 = vmatpush.msra.mxu0 %v4636_v19 }
 0xa05   :  { %4660 = vmatpush.msra.mxu0 %v4633_v2 }
 0xa07   :  { %4661 = vmatpush.msra.mxu0 %v4630_v39 }
 0xa09   :  { %4662 = vmatpush.msra.mxu0 %v4627_v35 }
 0xa0a   :  { %6669 = vmatmul.msk.f32.gmra.mxu0 %vm3644_vm1, %v4486_v25 }
 0xa0b   :  { %4663 = vmatpush.msra.mxu0 %v4624_v59 }
 0xa0d   :  { %4664 = vmatpush.msra.mxu0 %v4621_v40 }
 0xa0f   :  { %4665 = vmatpush.msra.mxu0 %v11720_v61 }
 0xa11   :  { %4666 = vmatpush.msra.mxu0 %v11664_v21 }
 0xa12   :  { %6670 = vmatmul.msk.f32.gmra.mxu0 %vm3644_vm1, %v4487_v6  ;;  %v4475_v60 = vpop.xlane.xlu1 %4474 }
 0xa13   :  { %v4476_v7 = vrot.slane %v4475_v60, 4 }
 0xa15   :  { %v4477_v42 = vadd.f32 %v4476_v7, %v4475_v60 }
 0xa16   :  { %v4456_v33 = vpop.xlane.xlu0 %4455 }
 0xa17   :  { %v4478_v52 = vrot.slane %v4477_v42, 2  ;;  %v4457_v18 = vrot.slane %v4456_v33, 4 }
 0xa19   :  { %v4458_v49 = vadd.f32 %v4457_v18, %v4456_v33  ;;  %v4479_v4 = vadd.f32 %v4478_v52, %v4477_v42 }
 0xa1a   :  { %6671 = vmatmul.msk.f32.gmra.mxu0 %vm3644_vm1, %v4488_v29 }
 0xa1b   :  { %v4459_v36 = vrot.slane %v4458_v49, 2  ;;  %v4480_v61 = vrot.slane %v4479_v4, 1 }
 0xa1d   :  { %v4460_v30 = vadd.f32 %v4459_v36, %v4458_v49  ;;  %v4481_v23 = vadd.f32 %v4480_v61, %v4479_v4 }
 0xa1f   :  { %v4461_v57 = vrot.slane %v4460_v30, 1 }
 0xa21   :  { %v4462_v21 = vadd.f32 %v4461_v57, %v4460_v30 }
 0xa22   :  { %6672 = vmatmul.msk.f32.gmra.mxu0 %vm3644_vm1, %v4489_v9 }
 0xa23   :  { %6818 = vpush %v4462_v21 }
 0xa24   :  { %6820 = vpush %v4481_v23  ;;  %v11836_v23 = vld [vmem:[#allocation18] sm:$0x3f] }
 0xa2a   :  { %6685 = vmatmul.msk.f32.vlgmr.msra.gmra.mxu0 %vm3644_vm1, %v4484_v27 }
 0xa32   :  { %6686 = vmatmul.msk.f32.gmra.mxu0 %vm3644_vm1, %v4485_v48 }
 0xa3a   :  { %6687 = vmatmul.msk.f32.gmra.mxu0 %vm3644_vm1, %v4486_v25 }
 0xa42   :  { %6688 = vmatmul.msk.f32.gmra.mxu0 %vm3644_vm1, %v4487_v6 }
 0xa4a   :  { %6689 = vmatmul.msk.f32.gmra.mxu0 %vm3644_vm1, %v4488_v29 }
 0xa52   :  { %6690 = vmatmul.msk.f32.gmra.mxu0 %vm3644_vm1, %v4489_v9  ;;  %vm4791_vm1 = vcmask 392192  }
 0xa54   :  { %s6819_s22 = spop %6818 }
 0xa55   :  { %s4464_s2 = smul.f32 0.0046296297, %s6819_s22  ;;  %s11909_s14 = spop %6820 }
 0xa56   :  { %s4483_s11 = smul.f32 0.0046296297, %s11909_s14 }
 0xa57   :  { %v6234_v54 = vstv %s4464_s2 }
 0xa58   :  { %v11764_v51 = vsel %vm6232_vm6, %v6234_v54, %v6230_v45  ;;  %vm5886_vm6 = vcmask 1041408  }
 0xa77   :  { %v11768_v0 = vpop.f32.mrf.mxu0 }
 0xa78   :  { %6691 = vmatmul.msk.f32.vlgmr.msra.gmra.mxu2 %vm4688_vm7, %v11768_v0  ;;  %v4689_v14 = vsel %vm4688_vm7, %v11768_v0, -inf  ;;  %v4709_v41 = vsel %vm4688_vm7, %v11768_v0, inf  ;;  %v4888_v56 = vmul.f32 %v11768_v0, %v11768_v0 }
 0xa7f   :  { %v11772_v43 = vpop.f32.mrf.mxu0 }
 0xa80   :  { %6692 = vmatmul.msk.f32.gmra.mxu2 %vm4688_vm7, %v11772_v43  ;;  %v4690_v47 = vsel %vm4688_vm7, %v11772_v43, -inf  ;;  %v4710_v22 = vsel %vm4688_vm7, %v11772_v43, inf  ;;  %v4889_v19 = vmul.f32 %v11772_v43, %v11772_v43 }
 0xa87   :  { %v11776_v20 = vpop.f32.mrf.mxu0 }
 0xa88   :  { %6693 = vmatmul.msk.f32.gmra.mxu2 %vm4688_vm7, %v11776_v20  ;;  %v4691_v59 = vsel %vm4688_vm7, %v11776_v20, -inf  ;;  %v4711_v62 = vsel %vm4688_vm7, %v11776_v20, inf  ;;  %v4890_v1 = vmul.f32 %v11776_v20, %v11776_v20 }
 0xa8f   :  { %v11780_v24 = vpop.f32.mrf.mxu0 }
 0xa90   :  { %6694 = vmatmul.msk.f32.gmra.mxu2 %vm4688_vm7, %v11780_v24  ;;  %v4692_v32 = vsel %vm4688_vm7, %v11780_v24, -inf  ;;  %v4712_v37 = vsel %vm4688_vm7, %v11780_v24, inf  ;;  %v4891_v12 = vmul.f32 %v11780_v24, %v11780_v24 }
 0xa91   :  { %v4698_v35 = vmax.f32 %v4691_v59, %v4692_v32  ;;  %v4718_v39 = vmin.f32 %v4711_v62, %v4712_v37 }
 0xa97   :  { %v11784_v55 = vpop.f32.mrf.mxu0 }
 0xa98   :  { %6695 = vmatmul.msk.f32.gmra.mxu2 %vm4688_vm7, %v11784_v55  ;;  %v4693_v34 = vsel %vm4688_vm7, %v11784_v55, -inf  ;;  %v4713_v44 = vsel %vm4688_vm7, %v11784_v55, inf  ;;  %v4892_v38 = vmul.f32 %v11784_v55, %v11784_v55 }
 0xa99   :  { %v4694_v40 = vmax.f32 %v4689_v14, %v4693_v34  ;;  %v4714_v11 = vmin.f32 %v4709_v41, %v4713_v44 }
 0xa9f   :  { %v11792_v63 = vpop.f32.mrf.mxu0 }
 0xaa0   :  { %6696 = vmatmul.msk.f32.gmra.mxu2 %vm4688_vm7, %v11792_v63  ;;  %v4695_v58 = vsel %vm4688_vm7, %v11792_v63, -inf  ;;  %v4715_v46 = vsel %vm4688_vm7, %v11792_v63, inf  ;;  %v4893_v8 = vmul.f32 %v11792_v63, %v11792_v63 }
 0xaa1   :  { %v4696_v10 = vmax.f32 %v4690_v47, %v4695_v58  ;;  %v4716_v26 = vmin.f32 %v4710_v22, %v4715_v46 }
 0xaa3   :  { %v4697_v13 = vmax.f32 %v4694_v40, %v4696_v10  ;;  %v4717_v28 = vmin.f32 %v4714_v11, %v4716_v26 }
 0xaa5   :  { %v4699_v16 = vmax.f32 %v4697_v13, %v4698_v35  ;;  %v4719_v2 = vmin.f32 %v4717_v28, %v4718_v39 }
 0xaa7   :  { %4700 = vmax.xlane.f32.xlu2 %v4699_v16  ;;  %4720 = vmin.xlane.f32.xlu0 %v4719_v2  ;;  %v11834_v21 = vpop.f32.mrf.mxu0  ;;  %v5199_v2 = vld [vmem:[#allocation22] sm:$0xff] }
 0xaa8   :  { %6705 = vmatmul.msk.f32.vlgmr.msrb.gmra.mxu2 %vm4688_vm7, %v4888_v56  ;;  %v5050_v32 = vmul.f32 %v11834_v21, %v11768_v0  ;;  %v4969_v39 = vmul.f32 %v11834_v21, %v11834_v21 }
 0xaaf   :  { %v11842_v5 = vpop.f32.mrf.mxu0 }
 0xab0   :  { %6706 = vmatmul.msk.f32.gmra.mxu2 %vm4688_vm7, %v4889_v19  ;;  %v5051_v58 = vmul.f32 %v11842_v5, %v11772_v43  ;;  %v4970_v16 = vmul.f32 %v11842_v5, %v11842_v5 }
 0xab7   :  { %v4674_v54 = vpop.f32.mrf.mxu0 }
 0xab8   :  { %6707 = vmatmul.msk.f32.gmra.mxu2 %vm4688_vm7, %v4890_v1  ;;  %v5052_v37 = vmul.f32 %v4674_v54, %v11776_v20  ;;  %v4971_v56 = vmul.f32 %v4674_v54, %v4674_v54 }
 0xabf   :  { %v4677_v44 = vpop.f32.mrf.mxu0 }
 0xac0   :  { %6708 = vmatmul.msk.f32.gmra.mxu2 %vm4688_vm7, %v4891_v12  ;;  %v5053_v46 = vmul.f32 %v4677_v44, %v11780_v24  ;;  %v4972_v19 = vmul.f32 %v4677_v44, %v4677_v44 }
 0xac7   :  { %v4680_v41 = vpop.f32.mrf.mxu0 }
 0xac8   :  { %6709 = vmatmul.msk.f32.gmra.mxu2 %vm4688_vm7, %v4892_v38  ;;  %v5054_v40 = vmul.f32 %v4680_v41, %v11784_v55  ;;  %v4973_v1 = vmul.f32 %v4680_v41, %v4680_v41 }
 0xacf   :  { %v4683_v22 = vpop.f32.mrf.mxu0 }
 0xad0   :  { %6710 = vmatmul.msk.f32.gmra.mxu2 %vm4688_vm7, %v4893_v8  ;;  %v5055_v10 = vmul.f32 %v4683_v22, %v11792_v63 }
 0xafb   :  { %v4773_v50 = vpop.f32.mrf.mxu2 }
 0xb03   :  { %v4776_v53 = vpop.f32.mrf.mxu2 }
 0xb0b   :  { %v4779_v27 = vpop.f32.mrf.mxu2 }
 0xb13   :  { %v4782_v31 = vpop.f32.mrf.mxu2 }
 0xb1a   :  { %v4701_v48 = vpop.xlane.xlu2 %4700  ;;  %v4721_v25 = vpop.xlane.xlu0 %4720 }
 0xb1b   :  { %v4785_v6 = vpop.f32.mrf.mxu2  ;;  %v4702_v60 = vrot.slane %v4701_v48, 4  ;;  %v4722_v7 = vrot.slane %v4721_v25, 4 }
 0xb1d   :  { %v4703_v42 = vmax.f32 %v4701_v48, %v4702_v60  ;;  %v4723_v33 = vmin.f32 %v4721_v25, %v4722_v7 }
 0xb1f   :  { %v4704_v52 = vrot.slane %v4703_v42, 2  ;;  %v4724_v18 = vrot.slane %v4723_v33, 2 }
 0xb21   :  { %v4705_v29 = vmax.f32 %v4703_v42, %v4704_v52  ;;  %v4725_v49 = vmin.f32 %v4723_v33, %v4724_v18 }
 0xb23   :  { %v4788_v4 = vpop.f32.mrf.mxu2  ;;  %v4706_v36 = vrot.slane %v4705_v29, 1  ;;  %v4726_v30 = vrot.slane %v4725_v49, 1 }
 0xb24   :  { %4805 = vmatpush.msra.mxu3 %v4788_v4 }
 0xb25   :  { %v4707_v61 = vmax.f32 %v4705_v29, %v4706_v36  ;;  %v4727_v9 = vmin.f32 %v4725_v49, %v4726_v30 }
 0xb26   :  { %4806 = vmatpush.msra.mxu3 %v4785_v6 }
 0xb27   :  { %6822 = vpush %v4707_v61 }
 0xb28   :  { %4807 = vmatpush.msra.mxu3 %v4782_v31  ;;  %6824 = vpush %v4727_v9 }
 0xb2a   :  { %4808 = vmatpush.msra.mxu3 %v4779_v27 }
 0xb2b   :  { %v4929_v57 = vpop.f32.mrf.mxu2 }
 0xb2c   :  { %4809 = vmatpush.msra.mxu3 %v4776_v53 }
 0xb2e   :  { %4810 = vmatpush.msra.mxu3 %v4773_v50 }
 0xb2f   :  { %6697 = vmatmul.msk.f32.vlgmr.msra.gmra.mxu3 %vm4791_vm1, %v11836_v23 }
 0xb30   :  { %4848 = vmatpush.msrb.mxu3 %v11762_v15 }
 0xb32   :  { %5089 = vmatpush.msra.mxu3 %v11762_v15 }
 0xb33   :  { %v4932_v17 = vpop.f32.mrf.mxu2 }
 0xb37   :  { %6698 = vmatmul.msk.f32.vlgmr.msrb.gmra.mxu3 %vm4688_vm7, %v11834_v21 }
 0xb3b   :  { %v4935_v45 = vpop.f32.mrf.mxu2 }
 0xb3f   :  { %6699 = vmatmul.msk.f32.gmra.mxu3 %vm4688_vm7, %v11842_v5 }
 0xb43   :  { %v4938_v34 = vpop.f32.mrf.mxu2 }
 0xb47   :  { %6700 = vmatmul.msk.f32.gmra.mxu3 %vm4688_vm7, %v4674_v54 }
 0xb4b   :  { %v4941_v14 = vpop.f32.mrf.mxu2 }
 0xb4f   :  { %6701 = vmatmul.msk.f32.gmra.mxu3 %vm4688_vm7, %v4677_v44 }
 0xb53   :  { %v4944_v47 = vpop.f32.mrf.mxu2 }
 0xb54   :  { %4957 = vmatpush.msra.mxu1 %v4944_v47 }
 0xb56   :  { %4958 = vmatpush.msra.mxu1 %v4941_v14 }
 0xb57   :  { %6702 = vmatmul.msk.f32.gmra.mxu3 %vm4688_vm7, %v4680_v41 }
 0xb58   :  { %4959 = vmatpush.msra.mxu1 %v4938_v34  ;;  %s6823_s9 = spop %6822 }
 0xb59   :  { %s6825_s15 = spop %6824  ;;  %p4729_p4 = scmp.gt.f32.partialorder %s6823_s9, 128.0 }
 0xb5a   :  { %4960 = vmatpush.msra.mxu1 %v4935_v45  ;;  %p4731_p5 = scmp.lt.f32.partialorder %s6825_s15, -0.5 }
 0xb5b   :  { %s4730_s26 = scalar_select %p4729_p4, 255.0, 1.0 }
 0xb5c   :  { %4961 = vmatpush.msra.mxu1 %v4932_v17  ;;  %s4732_s4 = scalar_select %p4731_p5, -1.0, 0.0 }
 0xb5e   :  { %4962 = vmatpush.msra.mxu1 %v4929_v57  ;;  %s4733_s17 = ssub.f32 %s4730_s26, %s4732_s4 }
 0xb5f   :  { %6703 = vmatmul.msk.f32.gmra.mxu3 %vm4688_vm7, %v4683_v22  ;;  %6711 = vmatmul.msk.f32.vlgmr.msra.gmra.mxu1 %vm4791_vm1, %v11836_v23 }
 0xb60   :  { %s4734_s18 = smul.f32 0.01, %s4733_s17 }
 0xb61   :  { %s4736_s27 = smul.f32 0.03, %s4733_s17 }
 0xb62   :  { %s11915_s29 = smul.f32 %s4734_s18, %s4734_s18 }
 0xb63   :  { %s11918_s5 = smul.f32 %s4736_s27, %s4736_s27 }
 0xb65   :  { %v5132_v49 = vstv %s11918_s5 }
 0xb67   :  { %6719 = vmatmul.msk.f32.vlgmr.msra.gmra.mxu3 %vm4688_vm7, %v5050_v32 }
 0xb6f   :  { %6720 = vmatmul.msk.f32.gmra.mxu3 %vm4688_vm7, %v5051_v58 }
 0xb77   :  { %6721 = vmatmul.msk.f32.gmra.mxu3 %vm4688_vm7, %v5052_v37 }
 0xb7f   :  { %6722 = vmatmul.msk.f32.gmra.mxu3 %vm4688_vm7, %v5053_v46 }
 0xb87   :  { %6723 = vmatmul.msk.f32.gmra.mxu3 %vm4688_vm7, %v5054_v40 }
 0xb8f   :  { %6724 = vmatmul.msk.f32.gmra.mxu3 %vm4688_vm7, %v5055_v10 }
 0xbb2   :  { %v11868_v11 = vpop.f32.mrf.mxu3 }
 0xbba   :  { %v4850_v26 = vpop.f32.mrf.mxu3 }
 0xbc2   :  { %v4853_v59 = vpop.f32.mrf.mxu3 }
 0xbca   :  { %v4856_v62 = vpop.f32.mrf.mxu3 }
 0xbd2   :  { %v4859_v13 = vpop.f32.mrf.mxu3 }
 0xbda   :  { %v4862_v35 = vpop.f32.mrf.mxu3 }
 0xbe2   :  { %v4865_v28 = vpop.f32.mrf.mxu3 }
 0xbe3   :  { %4878 = vmatpush.msrb.mxu0 %v4865_v28 }
 0xbe5   :  { %4879 = vmatpush.msrb.mxu0 %v4862_v35 }
 0xbe7   :  { %4880 = vmatpush.msrb.mxu0 %v4859_v13 }
 0xbe9   :  { %4881 = vmatpush.msrb.mxu0 %v4856_v62 }
 0xbea   :  { %v5091_v8 = vpop.f32.mrf.mxu3 }
 0xbeb   :  { %4882 = vmatpush.msrb.mxu0 %v4853_v59 }
 0xbed   :  { %4883 = vmatpush.msrb.mxu0 %v4850_v26 }
 0xbee   :  { %6704 = vmatmul.msk.f32.vlgmr.msrb.gmra.mxu0 %vm4791_vm1, %v11836_v23 }
 0xbef   :  { %5008 = vmatpush.msra.mxu0 %v11762_v15  ;;  %v4974_v15 = vmul.f32 %v4683_v22, %v4683_v22 }
 0xbf1   :  { %5285 = vmatpush.msrb.mxu0 %v5199_v2 }
 0xbf2   :  { %v5094_v53 = vpop.f32.mrf.mxu3 }
 0xbf6   :  { %6712 = vmatmul.msk.f32.vlgmr.msra.gmra.mxu0 %vm4688_vm7, %v4969_v39 }
 0xbfa   :  { %v5097_v31 = vpop.f32.mrf.mxu3 }
 0xbfe   :  { %6713 = vmatmul.msk.f32.gmra.mxu0 %vm4688_vm7, %v4970_v16 }
 0xc02   :  { %v5100_v25 = vpop.f32.mrf.mxu3 }
 0xc06   :  { %6714 = vmatmul.msk.f32.gmra.mxu0 %vm4688_vm7, %v4971_v56 }
 0xc0a   :  { %v5103_v7 = vpop.f32.mrf.mxu3 }
 0xc0e   :  { %6715 = vmatmul.msk.f32.gmra.mxu0 %vm4688_vm7, %v4972_v19 }
 0xc12   :  { %v5106_v42 = vpop.f32.mrf.mxu3 }
 0xc16   :  { %6716 = vmatmul.msk.f32.gmra.mxu0 %vm4688_vm7, %v4973_v1 }
 0xc1e   :  { %6717 = vmatmul.msk.f32.gmra.mxu0 %vm4688_vm7, %v4974_v15 }
 0xc26   :  { %6735 = vmatmul.msk.f32.vlgmr.msrb.gmra.mxu0 %vm4688_vm7, %v11834_v21 }
 0xc2e   :  { %6736 = vmatmul.msk.f32.gmra.mxu0 %vm4688_vm7, %v11842_v5 }
 0xc36   :  { %6737 = vmatmul.msk.f32.gmra.mxu0 %vm4688_vm7, %v4674_v54  ;;  %v5151_v54 = vmul.f32 2.0, %v11868_v11 }
 0xc3e   :  { %6738 = vmatmul.msk.f32.gmra.mxu0 %vm4688_vm7, %v4677_v44 }
 0xc46   :  { %6739 = vmatmul.msk.f32.gmra.mxu0 %vm4688_vm7, %v4680_v41 }
 0xc4e   :  { %6740 = vmatmul.msk.f32.gmra.mxu0 %vm4688_vm7, %v4683_v22 }
 0xc6b   :  { %v11891_v12 = vpop.f32.mrf.mxu0 }
 0xc6c   :  { %v5129_v9 = vmul.f32 %v11891_v12, %v11868_v11  ;;  %v5152_v41 = vmul.f32 %v5151_v54, %v11891_v12 }
 0xc73   :  { %v5010_v38 = vpop.f32.mrf.mxu0 }
 0xc7b   :  { %v5013_v50 = vpop.f32.mrf.mxu0 }
 0xc83   :  { %v5016_v27 = vpop.f32.mrf.mxu0 }
 0xc8b   :  { %v5019_v48 = vpop.f32.mrf.mxu0 }
 0xc93   :  { %v5022_v6 = vpop.f32.mrf.mxu0 }
 0xc9b   :  { %v5025_v60 = vpop.f32.mrf.mxu0 }
 0xc9c   :  { %5038 = vmatpush.msrb.mxu1 %v5025_v60  ;;  %v5198_v60 = vld [vmem:[#allocation21 + $0x10] sm:$0xff] }
 0xc9e   :  { %5039 = vmatpush.msrb.mxu1 %v5022_v6  ;;  %v5197_v6 = vld [vmem:[#allocation21 + $0x8] sm:$0xff] }
 0xca0   :  { %5040 = vmatpush.msrb.mxu1 %v5019_v48  ;;  %v5196_v48 = vld [vmem:[#allocation21] sm:$0xff] }
 0xca2   :  { %5041 = vmatpush.msrb.mxu1 %v5016_v27 }
 0xca3   :  { %v5287_v40 = vpop.f32.mrf.mxu0 }
 0xca4   :  { %5042 = vmatpush.msrb.mxu1 %v5013_v50 }
 0xca6   :  { %5043 = vmatpush.msrb.mxu1 %v5010_v38 }
 0xca7   :  { %6718 = vmatmul.msk.f32.vlgmr.msrb.gmra.mxu1 %vm4791_vm1, %v11836_v23 }
 0xca8   :  { %5119 = vmatpush.msra.mxu1 %v5106_v42 }
 0xcaa   :  { %5120 = vmatpush.msra.mxu1 %v5103_v7 }
 0xcab   :  { %v5290_v15 = vpop.f32.mrf.mxu0 }
 0xcac   :  { %5121 = vmatpush.msra.mxu1 %v5100_v25 }
 0xcae   :  { %5122 = vmatpush.msra.mxu1 %v5097_v31 }
 0xcb0   :  { %5123 = vmatpush.msra.mxu1 %v5094_v53 }
 0xcb2   :  { %5124 = vmatpush.msra.mxu1 %v5091_v8 }
 0xcb3   :  { %6725 = vmatmul.msk.f32.vlgmr.msra.gmra.mxu1 %vm4791_vm1, %v11836_v23  ;;  %v5293_v38 = vpop.f32.mrf.mxu0 }
 0xcb4   :  { %5215 = vmatpush.msrb.mxu1 %v5199_v2 }
 0xcbb   :  { %6726 = vmatmul.msk.f32.vlgmr.msrb.gmra.mxu1 %vm4688_vm7, %v11768_v0  ;;  %v5048_v0 = vmul.f32 %v11891_v12, %v11891_v12  ;;  %v5296_v50 = vpop.f32.mrf.mxu0 }
 0xcc3   :  { %6727 = vmatmul.msk.f32.gmra.mxu1 %vm4688_vm7, %v11772_v43  ;;  %v4967_v43 = vmul.f32 %v11868_v11, %v11868_v11  ;;  %v5299_v31 = vpop.f32.mrf.mxu0 }
 0xccb   :  { %6728 = vmatmul.msk.f32.gmra.mxu1 %vm4688_vm7, %v11776_v20  ;;  %v5156_v20 = vadd.f32 %v5048_v0, %v4967_v43  ;;  %v5302_v25 = vpop.f32.mrf.mxu0 }
 0xcd3   :  { %6729 = vmatmul.msk.f32.gmra.mxu1 %vm4688_vm7, %v11780_v24  ;;  %v4964_v24 = vpop.f32.mrf.mxu1 }
 0xcd4   :  { %v4968_v52 = vsub.f32 %v4964_v24, %v4967_v43 }
 0xcdb   :  { %6730 = vmatmul.msk.f32.gmra.mxu1 %vm4688_vm7, %v11784_v55  ;;  %v5153_v55 = vstv %s11915_s29 }
 0xcdc   :  { %v5154_v62 = vadd.f32 %v5153_v55, %v5152_v41 }
 0xce3   :  { %6731 = vmatmul.msk.f32.gmra.mxu1 %vm4688_vm7, %v11792_v63  ;;  %v5157_v63 = vadd.f32 %v5156_v20, %v5153_v55  ;;  %vm5845_vm7 = vcmask 15360  }
 0xce5   :  { %6956 = vrcp.f32 %v5157_v63  ;;  %vm5163_vm10 = vweird.f32 %v5157_v63  ;;  %v5169_v46 = vand.u32 2147483648, %v5157_v63  ;;  %v5167_v11 = vand.u32 2147483647, %v5157_v63 }
 0xce7   :  { %v5170_v28 = vor.u32 1.1754944e-38, %v5169_v46  ;;  %vm5168_vm15 = vcmp.eq.f32.partialorder %v5167_v11, 8.507059e+37 }
 0xceb   :  { %v6957_v4 = vpop.eup %6956 }
 0xcec   :  { %v5159_v30 = vmul.f32 %v6957_v4, %v5157_v63  ;;  %vm5164_vm8 = vweird.f32 %v6957_v4 }
 0xced   :  { %vm5165_vm14 = vmor %vm5163_vm10, %vm5164_vm8 }
 0xcee   :  { %v5160_v57 = vsub.f32 1.0, %v5159_v30 }
 0xcf0   :  { %v5161_v45 = vmul.f32 %v6957_v4, %v5160_v57 }
 0xcf2   :  { %v5162_v58 = vadd.f32 %v6957_v4, %v5161_v45 }
 0xcf4   :  { %v5166_v35 = vsel %vm5165_vm14, %v6957_v4, %v5162_v58 }
 0xcf5   :  { %v5171_v2 = vsel %vm5168_vm15, %v5170_v28, %v5166_v35  ;;  %vm5847_vm15 = vcmask 11264  }
 0xd24   :  { %v5045_v33 = vpop.f32.mrf.mxu1 }
 0xd25   :  { %v5049_v18 = vsub.f32 %v5045_v33, %v5048_v0 }
 0xd27   :  { %v5134_v29 = vadd.f32 %v5049_v18, %v4968_v52 }
 0xd29   :  { %v5135_v36 = vadd.f32 %v5134_v29, %v5132_v49 }
 0xd2b   :  { %6958 = vrcp.f32 %v5135_v36  ;;  %v5147_v34 = vand.u32 2147483648, %v5135_v36  ;;  %v5145_v47 = vand.u32 2147483647, %v5135_v36  ;;  %vm5141_vm0 = vweird.f32 %v5135_v36 }
 0xd2d   :  { %v5148_v37 = vor.u32 1.1754944e-38, %v5147_v34  ;;  %vm5146_vm11 = vcmp.eq.f32.partialorder %v5145_v47, 8.507059e+37 }
 0xd30   :  { %v5126_v61 = vpop.f32.mrf.mxu1 }
 0xd31   :  { %v6959_v21 = vpop.eup %6958  ;;  %v5130_v23 = vsub.f32 %v5126_v61, %v5129_v9 }
 0xd32   :  { %v5137_v17 = vmul.f32 %v6959_v21, %v5135_v36  ;;  %vm5142_vm3 = vweird.f32 %v6959_v21  ;;  %v11933_v36 = vld [vmem:[#allocation25] sm:$0xf] }
 0xd33   :  { %v5131_v44 = vmul.f32 2.0, %v5130_v23  ;;  %vm5143_vm9 = vmor %vm5141_vm0, %vm5142_vm3  ;;  %6744 = vmatpush.msk.msrb.mxu3 %vm5380_vm2, %v11933_v36 }
 0xd34   :  { %v5138_v5 = vsub.f32 1.0, %v5137_v17 }
 0xd35   :  { %v5133_v10 = vadd.f32 %v5132_v49, %v5131_v44  ;;  %6754 = vmatpush.msk.msra.mxu3 %vm5380_vm2, %v11933_v36 }
 0xd36   :  { %v5139_v14 = vmul.f32 %v6959_v21, %v5138_v5 }
 0xd38   :  { %v5217_v22 = vpop.f32.mrf.mxu1  ;;  %v5140_v32 = vadd.f32 %v6959_v21, %v5139_v14 }
 0xd3a   :  { %v5144_v26 = vsel %vm5143_vm9, %v6959_v21, %v5140_v32  ;;  %v11951_v21 = vld [vmem:[#allocation27] sm:$0xf] }
 0xd3b   :  { %v5149_v59 = vsel %vm5146_vm11, %v5148_v37, %v5144_v26 }
 0xd3c   :  { %v5150_v13 = vmul.f32 %v5149_v59, %v5133_v10 }
 0xd3e   :  { %v5185_v39 = vsel %vm5173_vm13, %v5150_v13, 0.0  ;;  %v5155_v16 = vmul.f32 %v5154_v62, %v5150_v13 }
 0xd3f   :  { %5186 = vadd.xlane.f32.xlu2 %v5185_v39 }
 0xd40   :  { %v5220_v56 = vpop.f32.mrf.mxu1  ;;  %v5172_v19 = vmul.f32 %v5171_v2, %v5155_v16 }
 0xd42   :  { %v5174_v1 = vsel %vm5173_vm13, %v5172_v19, 0.0 }
 0xd43   :  { %5175 = vadd.xlane.f32.xlu1 %v5174_v1 }
 0xd48   :  { %v5223_v12 = vpop.f32.mrf.mxu1 }
 0xd50   :  { %v5226_v8 = vpop.f32.mrf.mxu1 }
 0xd58   :  { %v5229_v53 = vpop.f32.mrf.mxu1 }
 0xd60   :  { %v5232_v27 = vpop.f32.mrf.mxu1 }
 0xd61   :  { %5254 = vmatpush.msra.mxu2 %v5232_v27 }
 0xd63   :  { %5255 = vmatpush.msra.mxu2 %v5229_v53 }
 0xd65   :  { %5256 = vmatpush.msra.mxu2 %v5226_v8 }
 0xd67   :  { %5257 = vmatpush.msra.mxu2 %v5223_v12 }
 0xd69   :  { %5258 = vmatpush.msra.mxu2 %v5220_v56 }
 0xd6b   :  { %5259 = vmatpush.msra.mxu2 %v5217_v22 }
 0xd6c   :  { %6732 = vmatmul.msk.f32.vlgmr.msra.gmra.mxu2 %vm4791_vm1, %v5196_v48 }
 0xd6d   :  { %5315 = vmatpush.msrb.mxu2 %v5302_v25 }
 0xd6f   :  { %5316 = vmatpush.msrb.mxu2 %v5299_v31 }
 0xd71   :  { %5317 = vmatpush.msrb.mxu2 %v5296_v50 }
 0xd73   :  { %5318 = vmatpush.msrb.mxu2 %v5293_v38 }
 0xd74   :  { %6733 = vmatmul.msk.f32.gmra.mxu2 %vm4791_vm1, %v5197_v6 }
 0xd75   :  { %5319 = vmatpush.msrb.mxu2 %v5290_v15  ;;  %v11986_v15 = vld [vmem:[#allocation24] sm:$0x3f] }
 0xd77   :  { %5320 = vmatpush.msrb.mxu2 %v5287_v40 }
 0xd7c   :  { %6734 = vmatmul.msk.f32.gmra.mxu2 %vm4791_vm1, %v5198_v60 }
 0xd84   :  { %6741 = vmatmul.msk.f32.vlgmr.msrb.gmra.mxu2 %vm4791_vm1, %v5196_v48 }
 0xd8c   :  { %6742 = vmatmul.msk.f32.gmra.mxu2 %vm4791_vm1, %v5197_v6 }
 0xd94   :  { %6743 = vmatmul.msk.f32.gmra.mxu2 %vm4791_vm1, %v5198_v60 }
 0xdb2   :  { %v5187_v7 = vpop.xlane.xlu2 %5186 }
 0xdb3   :  { %v5188_v42 = vrot.slane %v5187_v7, 4 }
 0xdb5   :  { %v5189_v0 = vadd.f32 %v5188_v42, %v5187_v7 }
 0xdb6   :  { %v5176_v43 = vpop.xlane.xlu1 %5175 }
 0xdb7   :  { %v5190_v20 = vrot.slane %v5189_v0, 2  ;;  %v5177_v24 = vrot.slane %v5176_v43, 4 }
 0xdb9   :  { %v5178_v55 = vadd.f32 %v5177_v24, %v5176_v43  ;;  %v5191_v63 = vadd.f32 %v5190_v20, %v5189_v0 }
 0xdbb   :  { %v5179_v33 = vrot.slane %v5178_v55, 2  ;;  %v5192_v18 = vrot.slane %v5191_v63, 1 }
 0xdbd   :  { %v5180_v52 = vadd.f32 %v5179_v33, %v5178_v55  ;;  %v5193_v4 = vadd.f32 %v5192_v18, %v5191_v63 }
 0xdbf   :  { %v5181_v29 = vrot.slane %v5180_v52, 1 }
 0xdc1   :  { %v5182_v49 = vadd.f32 %v5181_v29, %v5180_v52 }
 0xdc3   :  { %6826 = vpush %v5182_v49 }
 0xdc4   :  { %6828 = vpush %v5193_v4  ;;  %v5733_v4 = vld [vmem:[%s12145_s16] sm:$0xff] }
 0xdef   :  { %v11939_v30 = vpop.f32.mrf.mxu2 }
 0xdf0   :  { %6745 = vmatmul.msk.f32.vlgmr.msrb.gmra.mxu3 %vm5333_vm4, %v11939_v30  ;;  %v5334_v5 = vsel %vm5333_vm4, %v11939_v30, -inf  ;;  %v5489_v22 = vmul.f32 %v11939_v30, %v11939_v30 }
 0xdf1   :  { %6769 = vmatpush.msk.msrb.mxu3 %vm5380_vm2, %v11951_v21 }
 0xdf4   :  { %s6827_s6 = spop %6826 }
 0xdf5   :  { %s5184_s3 = smul.f32 0.16666667, %s6827_s6 }
 0xdf7   :  { %v6239_v61 = vstv %s5184_s3  ;;  %v11944_v9 = vpop.f32.mrf.mxu2 }
 0xdf8   :  { %v11947_v57 = vsel %vm6237_vm5, %v6239_v61, %v11764_v51  ;;  %6746 = vmatmul.msk.f32.gmra.mxu3 %vm5333_vm4, %v11944_v9  ;;  %v5335_v23 = vsel %vm5333_vm4, %v11944_v9, -inf  ;;  %v5349_v17 = vsel %vm5333_vm4, %v11944_v9, inf  ;;  %v5348_v51 = vsel %vm5333_vm4, %v11939_v30, inf  ;;  %v5734_v61 = vld [vmem:[%s12145_s16 + $0x8] sm:$0xf]  ;;  %s12037_s16 = spop %6828 }
 0xdf9   :  { %v5337_v54 = vmax.f32 %v5334_v5, %v5335_v23  ;;  %v5351_v34 = vmin.f32 %v5348_v51, %v5349_v17  ;;  %v5490_v32 = vmul.f32 %v11944_v9, %v11944_v9  ;;  %vm6242_vm5 = vcmp.eq.s32.totalorder %v11757_v3, 3  ;;  %s5195_s30 = smul.f32 0.16666667, %s12037_s16 }
 0xdff   :  { %v11963_v45 = vpop.f32.mrf.mxu2 }
 0xe00   :  { %6747 = vmatmul.msk.f32.gmra.mxu3 %vm5333_vm4, %v11963_v45  ;;  %v5336_v44 = vsel %vm5333_vm4, %v11963_v45, -inf  ;;  %v5350_v14 = vsel %vm5333_vm4, %v11963_v45, inf  ;;  %v5491_v58 = vmul.f32 %v11963_v45, %v11963_v45 }
 0xe01   :  { %v5338_v47 = vmax.f32 %v5337_v54, %v5336_v44  ;;  %v5352_v41 = vmin.f32 %v5351_v34, %v5350_v14  ;;  %v12042_v54 = vld [vmem:[%s12148_s19] sm:$0x3] }
 0xe03   :  { %5339 = vmax.xlane.f32.xlu0 %v5338_v47  ;;  %5353 = vmin.xlane.f32.xlu1 %v5352_v41 }
 0xe07   :  { %v5322_v38 = vpop.f32.mrf.mxu2 }
 0xe08   :  { %6755 = vmatmul.msk.f32.vlgmr.msra.gmra.mxu3 %vm5333_vm4, %v5489_v22  ;;  %v5549_v60 = vmul.f32 %v5322_v38, %v5322_v38  ;;  %v5609_v63 = vmul.f32 %v5322_v38, %v11939_v30 }
 0xe0f   :  { %v5325_v50 = vpop.f32.mrf.mxu2 }
 0xe10   :  { %6756 = vmatmul.msk.f32.gmra.mxu3 %vm5333_vm4, %v5490_v32  ;;  %v5550_v7 = vmul.f32 %v5325_v50, %v5325_v50  ;;  %v5610_v52 = vmul.f32 %v5325_v50, %v11944_v9 }
 0xe17   :  { %v5328_v27 = vpop.f32.mrf.mxu2 }
 0xe18   :  { %6757 = vmatmul.msk.f32.gmra.mxu3 %vm5333_vm4, %v5491_v58  ;;  %v5551_v42 = vmul.f32 %v5328_v27, %v5328_v27  ;;  %v5611_v29 = vmul.f32 %v5328_v27, %v11963_v45 }
 0xe20   :  { %6770 = vmatmul.msk.f32.vlgmr.msrb.gmra.mxu3 %vm5333_vm4, %v11939_v30 }
 0xe28   :  { %6771 = vmatmul.msk.f32.gmra.mxu3 %vm5333_vm4, %v11944_v9 }
 0xe30   :  { %6772 = vmatmul.msk.f32.gmra.mxu3 %vm5333_vm4, %v11963_v45 }
 0xe73   :  { %v5401_v37 = vpop.f32.mrf.mxu3 }
 0xe76   :  { %v5354_v46 = vpop.xlane.xlu1 %5353  ;;  %v5340_v40 = vpop.xlane.xlu0 %5339 }
 0xe77   :  { %v5355_v10 = vrot.slane %v5354_v46, 4  ;;  %v5341_v26 = vrot.slane %v5340_v40, 4 }
 0xe79   :  { %v5356_v11 = vmin.f32 %v5354_v46, %v5355_v10  ;;  %v5342_v59 = vmax.f32 %v5340_v40, %v5341_v26 }
 0xe7b   :  { %v5404_v62 = vpop.f32.mrf.mxu3  ;;  %v5357_v13 = vrot.slane %v5356_v11, 2  ;;  %v5343_v35 = vrot.slane %v5342_v59, 2 }
 0xe7d   :  { %v5344_v28 = vmax.f32 %v5342_v59, %v5343_v35  ;;  %v5358_v39 = vmin.f32 %v5356_v11, %v5357_v13 }
 0xe7f   :  { %v5345_v16 = vrot.slane %v5344_v28, 1  ;;  %v5359_v2 = vrot.slane %v5358_v39, 1 }
 0xe81   :  { %v5346_v56 = vmax.f32 %v5344_v28, %v5345_v16  ;;  %v5360_v19 = vmin.f32 %v5358_v39, %v5359_v2 }
 0xe83   :  { %v5407_v1 = vpop.f32.mrf.mxu3  ;;  %6830 = vpush %v5346_v56 }
 0xe84   :  { %5427 = vmatpush.msra.mxu1 %v5407_v1  ;;  %6832 = vpush %v5360_v19 }
 0xe86   :  { %5428 = vmatpush.msra.mxu1 %v5404_v62 }
 0xe88   :  { %5429 = vmatpush.msra.mxu1 %v5401_v37 }
 0xe89   :  { %6748 = vmatmul.msk.f32.vlgmr.msra.gmra.mxu1 %vm5410_vm12, %v11986_v15 }
 0xe8a   :  { %6749 = vmatpush.msk.msrb.mxu1 %vm5380_vm2, %v11933_v36 }
 0xe8b   :  { %v5518_v12 = vpop.f32.mrf.mxu3 }
 0xe91   :  { %6750 = vmatmul.msk.f32.vlgmr.msrb.gmra.mxu1 %vm5333_vm4, %v5322_v38 }
 0xe93   :  { %v5521_v8 = vpop.f32.mrf.mxu3 }
 0xe99   :  { %6751 = vmatmul.msk.f32.gmra.mxu1 %vm5333_vm4, %v5325_v50 }
 0xe9b   :  { %v5524_v53 = vpop.f32.mrf.mxu3 }
 0xe9c   :  { %5540 = vmatpush.msra.mxu0 %v5524_v53 }
 0xe9e   :  { %5541 = vmatpush.msra.mxu0 %v5521_v8 }
 0xea0   :  { %5542 = vmatpush.msra.mxu0 %v5518_v12 }
 0xea1   :  { %6752 = vmatmul.msk.f32.gmra.mxu1 %vm5333_vm4, %v5328_v27  ;;  %6758 = vmatmul.msk.f32.vlgmr.msra.gmra.mxu0 %vm5410_vm12, %v11986_v15 }
 0xea3   :  { %v5756_v23 = vpop.f32.mrf.mxu3 }
 0xeab   :  { %v5759_v5 = vpop.f32.mrf.mxu3 }
 0xeb3   :  { %v5762_v45 = vpop.f32.mrf.mxu3 }
 0xeb4   :  { %s6831_s21 = spop %6830 }
 0xeb5   :  { %s6833_s10 = spop %6832  ;;  %p5362_p6 = scmp.gt.f32.partialorder %s6831_s21, 128.0 }
 0xeb6   :  { %p5364_p7 = scmp.lt.f32.partialorder %s6833_s10, -0.5 }
 0xeb7   :  { %s5363_s7 = scalar_select %p5362_p6, 255.0, 1.0 }
 0xeb8   :  { %s5365_s28 = scalar_select %p5364_p7, -1.0, 0.0 }
 0xeba   :  { %s5366_s1 = ssub.f32 %s5363_s7, %s5365_s28 }
 0xebc   :  { %s5369_s0 = smul.f32 0.03, %s5366_s1 }
 0xebd   :  { %s5367_s19 = smul.f32 0.01, %s5366_s1 }
 0xebe   :  { %s12058_s12 = smul.f32 %s5369_s0, %s5369_s0 }
 0xebf   :  { %s12062_s22 = smul.f32 %s5367_s19, %s5367_s19 }
 0xec0   :  { %v5670_v22 = vstv %s12058_s12 }
 0xec1   :  { %v5691_v37 = vstv %s12062_s22 }
 0xf06   :  { %v11997_v31 = vpop.f32.mrf.mxu1 }
 0xf07   :  { %v5547_v44 = vmul.f32 %v11997_v31, %v11997_v31  ;;  %v5689_v16 = vmul.f32 2.0, %v11997_v31 }
 0xf0e   :  { %v5460_v48 = vpop.f32.mrf.mxu1 }
 0xf16   :  { %v5463_v25 = vpop.f32.mrf.mxu1 }
 0xf1e   :  { %v5466_v6 = vpop.f32.mrf.mxu1  ;;  %v5544_v49 = vpop.f32.mrf.mxu0 }
 0xf1f   :  { %5482 = vmatpush.msra.mxu2 %v5466_v6  ;;  %v5548_v14 = vsub.f32 %v5544_v49, %v5547_v44 }
 0xf21   :  { %5483 = vmatpush.msra.mxu2 %v5463_v25 }
 0xf23   :  { %5484 = vmatpush.msra.mxu2 %v5460_v48 }
 0xf24   :  { %6753 = vmatmul.msk.f32.vlgmr.msra.gmra.mxu2 %vm5410_vm12, %v11986_v15 }
 0xf25   :  { %6759 = vmatpush.msk.msrb.mxu2 %vm5380_vm2, %v11933_v36 }
 0xf27   :  { %6775 = vmatpush.msk.msra.mxu2 %vm5380_vm2, %v11951_v21 }
 0xf2c   :  { %6760 = vmatmul.msk.f32.vlgmr.msrb.gmra.mxu2 %vm5333_vm4, %v5549_v60 }
 0xf2d   :  { %6786 = vmatpush.msk.msrb.mxu2 %vm5886_vm6, %v12042_v54 }
 0xf34   :  { %6761 = vmatmul.msk.f32.gmra.mxu2 %vm5333_vm4, %v5550_v7 }
 0xf3c   :  { %6762 = vmatmul.msk.f32.gmra.mxu2 %vm5333_vm4, %v5551_v42 }
 0xf44   :  { %6776 = vmatmul.msk.f32.vlgmr.msra.gmra.mxu2 %vm5333_vm4, %v5322_v38 }
 0xf45   :  { %6801 = vmatpush.msk.msra.mxu2 %vm5886_vm6, %v12042_v54 }
 0xf4c   :  { %6777 = vmatmul.msk.f32.gmra.mxu2 %vm5333_vm4, %v5325_v50 }
 0xf54   :  { %6778 = vmatmul.msk.f32.gmra.mxu2 %vm5333_vm4, %v5328_v27 }
 0xfa7   :  { %v12011_v0 = vpop.f32.mrf.mxu2 }
 0xfa8   :  { %v5667_v35 = vmul.f32 %v12011_v0, %v11997_v31 }
 0xfaf   :  { %v5578_v43 = vpop.f32.mrf.mxu2 }
 0xfb7   :  { %v5581_v20 = vpop.f32.mrf.mxu2 }
 0xfbf   :  { %v5584_v24 = vpop.f32.mrf.mxu2 }
 0xfc0   :  { %5600 = vmatpush.msrb.mxu0 %v5584_v24 }
 0xfc2   :  { %5601 = vmatpush.msrb.mxu0 %v5581_v20 }
 0xfc4   :  { %5602 = vmatpush.msrb.mxu0 %v5578_v43 }
 0xfc5   :  { %6763 = vmatmul.msk.f32.vlgmr.msrb.gmra.mxu0 %vm5410_vm12, %v11986_v15 }
 0xfc6   :  { %6764 = vmatpush.msk.msra.mxu0 %vm5380_vm2, %v11933_v36  ;;  %v5607_v36 = vmul.f32 %v12011_v0, %v12011_v0 }
 0xfc7   :  { %v5811_v55 = vpop.f32.mrf.mxu2 }
 0xfc8   :  { %v5694_v32 = vadd.f32 %v5607_v36, %v5547_v44 }
 0xfca   :  { %v5695_v46 = vadd.f32 %v5694_v32, %v5691_v37 }
 0xfcc   :  { %v5705_v53 = vand.u32 2147483647, %v5695_v46  ;;  %v5707_v27 = vand.u32 2147483648, %v5695_v46  ;;  %vm5701_vm10 = vweird.f32 %v5695_v46 }
 0xfcd   :  { %6765 = vmatmul.msk.f32.vlgmr.msra.gmra.mxu0 %vm5333_vm4, %v5609_v63 }
 0xfce   :  { %vm5706_vm14 = vcmp.eq.f32.partialorder %v5705_v53, 8.507059e+37  ;;  %v5708_v42 = vor.u32 1.1754944e-38, %v5707_v27 }
 0xfcf   :  { %v5814_v33 = vpop.f32.mrf.mxu2 }
 0xfd5   :  { %6766 = vmatmul.msk.f32.gmra.mxu0 %vm5333_vm4, %v5610_v52 }
 0xfd7   :  { %v5817_v18 = vpop.f32.mrf.mxu2 }
 0xfd8   :  { %5833 = vmatpush.msrb.mxu0 %v5817_v18 }
 0xfda   :  { %5834 = vmatpush.msrb.mxu0 %v5814_v33 }
 0xfdc   :  { %5835 = vmatpush.msrb.mxu0 %v5811_v55 }
 0xfdd   :  { %6767 = vmatmul.msk.f32.gmra.mxu0 %vm5333_vm4, %v5611_v29  ;;  %vm5913_vm4 = vcmask 97280  }
 0xfde   :  { %6791 = vmatpush.msk.msra.mxu0 %vm5886_vm6, %v12042_v54 }
 0xfe5   :  { %6779 = vmatmul.msk.f32.vlgmr.msrb.gmra.mxu0 %vm5410_vm12, %v5733_v4 }
 0xfed   :  { %6780 = vmatmul.msk.f32.gmra.mxu0 %vm5410_vm12, %v5734_v61 }
0x1042   :  { %v5604_v30 = vpop.f32.mrf.mxu0 }
0x1043   :  { %v5608_v9 = vsub.f32 %v5604_v30, %v5607_v36 }
0x1045   :  { %v5672_v47 = vadd.f32 %v5608_v9, %v5548_v14 }
0x1047   :  { %v5673_v58 = vadd.f32 %v5672_v47, %v5670_v22 }
0x1049   :  { %6960 = vrcp.f32 %v5673_v58  ;;  %v5685_v56 = vand.u32 2147483648, %v5673_v58  ;;  %vm5679_vm3 = vweird.f32 %v5673_v58  ;;  %v5683_v1 = vand.u32 2147483647, %v5673_v58 }
0x104a   :  { %v5638_v21 = vpop.f32.mrf.mxu0  ;;  %6962 = vrcp.f32 %v5695_v46 }
0x104b   :  { %v5686_v50 = vor.u32 1.1754944e-38, %v5685_v56  ;;  %vm5684_vm9 = vcmp.eq.f32.partialorder %v5683_v1, 8.507059e+37 }
0x104f   :  { %v6961_v40 = vpop.eup %6960 }
0x1050   :  { %v5675_v10 = vmul.f32 %v6961_v40, %v5673_v58  ;;  %v6963_v26 = vpop.eup %6962  ;;  %vm5680_vm1 = vweird.f32 %v6961_v40 }
0x1051   :  { %v5697_v59 = vmul.f32 %v6963_v26, %v5695_v46  ;;  %vm5681_vm0 = vmor %vm5679_vm3, %vm5680_vm1  ;;  %vm5702_vm8 = vweird.f32 %v6963_v26 }
0x1052   :  { %v5641_v17 = vpop.f32.mrf.mxu0  ;;  %v5676_v11 = vsub.f32 1.0, %v5675_v10  ;;  %vm5703_vm11 = vmor %vm5701_vm10, %vm5702_vm8  ;;  %vm6252_vm10 = vcmp.eq.s32.totalorder %v11757_v3, 5 }
0x1053   :  { %v5698_v13 = vsub.f32 1.0, %v5697_v59 }
0x1054   :  { %v5677_v62 = vmul.f32 %v6961_v40, %v5676_v11 }
0x1055   :  { %v5699_v39 = vmul.f32 %v6963_v26, %v5698_v13 }
0x1056   :  { %v5678_v28 = vadd.f32 %v6961_v40, %v5677_v62 }
0x1057   :  { %v5700_v8 = vadd.f32 %v6963_v26, %v5699_v39 }
0x1058   :  { %v5682_v38 = vsel %vm5681_vm0, %v6961_v40, %v5678_v28 }
0x1059   :  { %v5687_v25 = vsel %vm5684_vm9, %v5686_v50, %v5682_v38  ;;  %v5704_v60 = vsel %vm5703_vm11, %v6963_v26, %v5700_v8  ;;  %vm6247_vm9 = vcmp.eq.s32.totalorder %v11757_v3, 4 }
0x105a   :  { %v5644_v51 = vpop.f32.mrf.mxu0  ;;  %v5709_v55 = vsel %vm5706_vm14, %v5708_v42, %v5704_v60  ;;  %vm6257_vm14 = vcmp.eq.s32.totalorder %v11757_v3, 6 }
0x105b   :  { %5660 = vmatpush.msra.mxu1 %v5644_v51 }
0x105d   :  { %5661 = vmatpush.msra.mxu1 %v5641_v17 }
0x105f   :  { %5662 = vmatpush.msra.mxu1 %v5638_v21 }
0x1060   :  { %6768 = vmatmul.msk.f32.vlgmr.msra.gmra.mxu1 %vm5410_vm12, %v11986_v15  ;;  %v5690_v15 = vmul.f32 %v5689_v16, %v12011_v0 }
0x1061   :  { %5784 = vmatpush.msrb.mxu1 %v5762_v45 }
0x1062   :  { %v12046_v34 = vpop.f32.mrf.mxu0  ;;  %v5692_v31 = vadd.f32 %v5691_v37, %v5690_v15  ;;  %v5843_v15 = vld [vmem:[#allocation28] sm:$0x3f] }
0x1063   :  { %5785 = vmatpush.msrb.mxu1 %v5759_v5  ;;  %6787 = vmatmul.msk.f32.vlgmr.msrb.gmra.mxu2 %vm5845_vm7, %v12046_v34 }
0x1065   :  { %5786 = vmatpush.msrb.mxu1 %v5756_v23 }
0x1067   :  { %6781 = vmatpush.msk.msra.mxu1 %vm5886_vm6, %v12042_v54 }
0x1068   :  { %6773 = vmatmul.msk.f32.vlgmr.msrb.gmra.mxu1 %vm5410_vm12, %v5733_v4 }
0x106a   :  { %v12060_v41 = vpop.f32.mrf.mxu0 }
0x106b   :  { %6788 = vmatmul.msk.f32.gmra.mxu2 %vm5845_vm7, %v12060_v41 }
0x1070   :  { %6774 = vmatmul.msk.f32.gmra.mxu1 %vm5410_vm12, %v5734_v61 }
0x10dd   :  { %v5664_v2 = vpop.f32.mrf.mxu1 }
0x10de   :  { %v5668_v19 = vsub.f32 %v5664_v2, %v5667_v35 }
0x10e0   :  { %v5669_v12 = vmul.f32 2.0, %v5668_v19 }
0x10e2   :  { %v5671_v48 = vadd.f32 %v5670_v22, %v5669_v12 }
0x10e4   :  { %v5688_v6 = vmul.f32 %v5687_v25, %v5671_v48  ;;  %v6048_v25 = vmul.f32 %v12046_v34, %v12046_v34 }
0x10e5   :  { %v5788_v7 = vpop.f32.mrf.mxu1 }
0x10e6   :  { %v5992_v0 = vmul.f32 %v5788_v7, %v5788_v7  ;;  %6782 = vmatmul.msk.f32.vlgmr.msra.gmra.mxu1 %vm5845_vm7, %v5788_v7  ;;  %v6104_v43 = vmul.f32 %v12046_v34, %v5788_v7  ;;  %v5722_v20 = vsel %vm5173_vm13, %v5688_v6, 0.0  ;;  %v5693_v24 = vmul.f32 %v5692_v31, %v5688_v6  ;;  %v5963_v21 = vpop.f32.mrf.mxu2 }
0x10e7   :  { %5723 = vadd.xlane.f32.xlu0 %v5722_v20  ;;  %v5846_v18 = vsel %vm5845_vm7, %v5788_v7, -inf  ;;  %v5859_v61 = vsel %vm5845_vm7, %v5788_v7, inf  ;;  %v6049_v31 = vmul.f32 %v12060_v41, %v12060_v41 }
0x10e8   :  { %v5710_v63 = vmul.f32 %v5709_v55, %v5693_v24  ;;  %6802 = vmatmul.msk.f32.vlgmr.msra.gmra.mxu2 %vm5845_vm7, %v6104_v43  ;;  %6792 = vmatmul.msk.f32.vlgmr.msra.gmra.mxu0 %vm5845_vm7, %v5992_v0 }
0x10ea   :  { %v5711_v33 = vsel %vm5173_vm13, %v5710_v63, 0.0 }
0x10eb   :  { %5712 = vadd.xlane.f32.xlu2 %v5711_v33 }
0x10ed   :  { %v5791_v52 = vpop.f32.mrf.mxu1 }
0x10ee   :  { %6783 = vmatmul.msk.f32.gmra.mxu1 %vm5845_vm7, %v5791_v52  ;;  %v6105_v29 = vmul.f32 %v12060_v41, %v5791_v52  ;;  %v5848_v49 = vsel %vm5847_vm15, %v5791_v52, -inf  ;;  %v5860_v4 = vsel %vm5847_vm15, %v5791_v52, inf  ;;  %v5993_v36 = vmul.f32 %v5791_v52, %v5791_v52  ;;  %v5966_v47 = vpop.f32.mrf.mxu2 }
0x10ef   :  { %v5849_v30 = vmax.f32 %v5846_v18, %v5848_v49  ;;  %v5861_v9 = vmin.f32 %v5859_v61, %v5860_v4  ;;  %vm6262_vm15 = vcmp.eq.s32.totalorder %v11757_v3, 7 }
0x10f0   :  { %6803 = vmatmul.msk.f32.gmra.mxu2 %vm5845_vm7, %v6105_v29  ;;  %6793 = vmatmul.msk.f32.gmra.mxu0 %vm5845_vm7, %v5993_v36 }
0x10f1   :  { %5850 = vmax.xlane.f32.xlu1 %v5849_v30 }
0x10f3   :  { %5862 = vmin.xlane.f32.xlu2 %v5861_v9 }
0x115a   :  { %v5724_v23 = vpop.xlane.xlu0 %5723 }
0x115b   :  { %v5725_v17 = vrot.slane %v5724_v23, 4 }
0x115d   :  { %v5726_v5 = vadd.f32 %v5725_v17, %v5724_v23 }
0x115e   :  { %v5713_v51 = vpop.xlane.xlu2 %5712 }
0x115f   :  { %v5727_v45 = vrot.slane %v5726_v5, 2  ;;  %v5714_v44 = vrot.slane %v5713_v51, 4 }
0x1161   :  { %v5715_v14 = vadd.f32 %v5714_v44, %v5713_v51  ;;  %v5728_v22 = vadd.f32 %v5727_v45, %v5726_v5 }
0x1163   :  { %v5716_v32 = vrot.slane %v5715_v14, 2  ;;  %v5907_v58 = vpop.f32.mrf.mxu1  ;;  %v5729_v26 = vrot.slane %v5728_v22, 1 }
0x1164   :  { %v5851_v37 = vpop.xlane.xlu1 %5850 }
0x1165   :  { %v5717_v46 = vadd.f32 %v5716_v32, %v5715_v14  ;;  %v5852_v40 = vrot.slane %v5851_v37, 4  ;;  %v6017_v10 = vpop.f32.mrf.mxu0  ;;  %v5730_v16 = vadd.f32 %v5729_v26, %v5728_v22 }
0x1166   :  { %v5863_v11 = vpop.xlane.xlu2 %5862 }
0x1167   :  { %v5718_v59 = vrot.slane %v5717_v46, 1  ;;  %v5853_v62 = vmax.f32 %v5851_v37, %v5852_v40  ;;  %v5864_v13 = vrot.slane %v5863_v11, 4 }
0x1169   :  { %v5719_v35 = vadd.f32 %v5718_v59, %v5717_v46  ;;  %v5854_v28 = vrot.slane %v5853_v62, 2  ;;  %v5865_v39 = vmin.f32 %v5863_v11, %v5864_v13 }
0x116b   :  { %6834 = vpush %v5719_v35  ;;  %v5910_v2 = vpop.f32.mrf.mxu1  ;;  %v6129_v56 = vpop.f32.mrf.mxu2  ;;  %v5866_v19 = vrot.slane %v5865_v39, 2  ;;  %v5855_v1 = vmax.f32 %v5853_v62, %v5854_v28 }
0x116c   :  { %6836 = vpush %v5730_v16  ;;  %6784 = vmatpush.msk.msra.mxu3 %vm5380_vm2, %v5910_v2 }
0x116d   :  { %v5867_v12 = vmin.f32 %v5865_v39, %v5866_v19  ;;  %v5856_v38 = vrot.slane %v5855_v1, 1  ;;  %v6020_v8 = vpop.f32.mrf.mxu0 }
0x116e   :  { %5935 = vmatpush.msra.mxu3 %v5907_v58  ;;  %6794 = vmatpush.msk.msrb.mxu1 %vm5380_vm2, %v6020_v8 }
0x116f   :  { %6785 = vmatmul.msk.f32.vlgmr.msra.gmra.mxu3 %vm5913_vm4, %v5843_v15  ;;  %v5857_v50 = vmax.f32 %v5855_v1, %v5856_v38  ;;  %v5868_v53 = vrot.slane %v5867_v12, 1 }
0x1170   :  { %6789 = vmatpush.msk.msrb.mxu3 %vm5380_vm2, %v5966_v47  ;;  %6041 = vmatpush.msrb.mxu1 %v6017_v10 }
0x1171   :  { %6838 = vpush %v5857_v50  ;;  %v5869_v27 = vmin.f32 %v5867_v12, %v5868_v53  ;;  %6795 = vmatmul.msk.f32.vlgmr.msrb.gmra.mxu1 %vm5913_vm4, %v5843_v15 }
0x1172   :  { %5987 = vmatpush.msrb.mxu3 %v5963_v21 }
0x1173   :  { %v6132_v48 = vpop.f32.mrf.mxu2  ;;  %6840 = vpush %v5869_v27 }
0x1174   :  { %6796 = vmatpush.msk.msra.mxu3 %vm5886_vm6, %v12042_v54  ;;  %6804 = vmatpush.msk.msrb.mxu0 %vm5380_vm2, %v6132_v48 }
0x1176   :  { %6153 = vmatpush.msrb.mxu0 %v6129_v56 }
0x1177   :  { %6790 = vmatmul.msk.f32.vlgmr.msrb.gmra.mxu3 %vm5913_vm4, %v5843_v15  ;;  %6805 = vmatmul.msk.f32.vlgmr.msrb.gmra.mxu0 %vm5913_vm4, %v5843_v15 }
0x117f   :  { %6797 = vmatmul.msk.f32.vlgmr.msra.gmra.mxu3 %vm5845_vm7, %v6048_v25 }
0x1187   :  { %6798 = vmatmul.msk.f32.gmra.mxu3 %vm5845_vm7, %v6049_v31 }
0x119c   :  { %s6835_s2 = spop %6834 }
0x119d   :  { %s5721_s9 = smul.f32 0.16666667, %s6835_s2  ;;  %s12106_s15 = spop %6836 }
0x119e   :  { %s5732_s8 = smul.f32 0.16666667, %s12106_s15 }
0x119f   :  { %v6244_v54 = vstv %s5721_s9 }
0x11a0   :  { %v12102_v6 = vsel %vm6242_vm5, %v6244_v54, %v11947_v57 }
0x11a2   :  { %s6839_s26 = spop %6838 }
0x11a3   :  { %p5871_p9 = scmp.gt.f32.partialorder %s6839_s26, 128.0 }
0x11a4   :  { %s6841_s4 = spop %6840 }
0x11a5   :  { %p5873_p8 = scmp.lt.f32.partialorder %s6841_s4, -0.5 }
0x11a6   :  { %s5872_s18 = scalar_select %p5871_p9, 255.0, 1.0 }
0x11a7   :  { %s5874_s17 = scalar_select %p5873_p8, -1.0, 0.0 }
0x11a9   :  { %s5875_s29 = ssub.f32 %s5872_s18, %s5874_s17 }
0x11ab   :  { %s5876_s27 = smul.f32 0.01, %s5875_s29 }
0x11ac   :  { %s5878_s6 = smul.f32 0.03, %s5875_s29 }
0x11ad   :  { %s12108_s5 = smul.f32 %s5876_s27, %s5876_s27 }
0x11ae   :  { %s5879_s3 = smul.f32 %s5878_s6, %s5878_s6 }
0x11af   :  { %v6182_v63 = vstv %s12108_s5 }
0x11b0   :  { %v6161_v4 = vstv %s5879_s3 }
0x11ee   :  { %v6043_v57 = vpop.f32.mrf.mxu1 }
0x11f2   :  { %v5937_v60 = vpop.f32.mrf.mxu3 }
0x11f3   :  { %v6180_v7 = vmul.f32 2.0, %v5937_v60  ;;  %v6046_v43 = vmul.f32 %v5937_v60, %v5937_v60 }
0x11f4   :  { %v6155_v9 = vpop.f32.mrf.mxu0 }
0x11f5   :  { %v6047_v18 = vsub.f32 %v6043_v57, %v6046_v43 }
0x11fa   :  { %v5989_v42 = vpop.f32.mrf.mxu3 }
0x11fb   :  { %v6181_v0 = vmul.f32 %v6180_v7, %v5989_v42  ;;  %v6158_v34 = vmul.f32 %v5989_v42, %v5937_v60  ;;  %v6102_v20 = vmul.f32 %v5989_v42, %v5989_v42  ;;  %v6226_v7 = vadd.s32 8, %v11757_v3 }
0x11fc   :  { %v6269_v42 = vstv %s5732_s8 }
0x11fd   :  { %v6185_v24 = vadd.f32 %v6102_v20, %v6046_v43  ;;  %v6159_v17 = vsub.f32 %v6155_v9, %v6158_v34  ;;  %v6183_v62 = vadd.f32 %v6182_v63, %v6181_v0  ;;  %vm6273_vm11 = vcmp.eq.s32.totalorder %v6226_v7, 9 }
0x11fe   :  { %v6254_v0 = vstv %s3019_s24 }
0x11ff   :  { %v6186_v33 = vadd.f32 %v6185_v24, %v6182_v63  ;;  %v6160_v44 = vmul.f32 2.0, %v6159_v17  ;;  %v6264_v63 = vstv %s5195_s30 }
0x1201   :  { %6964 = vrcp.f32 %v6186_v33  ;;  %v6162_v37 = vadd.f32 %v6161_v4, %v6160_v44  ;;  %v6198_v40 = vand.u32 2147483648, %v6186_v33  ;;  %vm6192_vm3 = vweird.f32 %v6186_v33 }
0x1202   :  { %v6073_v55 = vpop.f32.mrf.mxu3  ;;  %v6196_v26 = vand.u32 2147483647, %v6186_v33 }
0x1203   :  { %v6199_v35 = vor.u32 1.1754944e-38, %v6198_v40 }
0x1204   :  { %vm6197_vm8 = vcmp.eq.f32.partialorder %v6196_v26, 8.507059e+37 }
0x1207   :  { %v6965_v36 = vpop.eup %6964 }
0x1208   :  { %v6188_v61 = vmul.f32 %v6965_v36, %v6186_v33  ;;  %vm6193_vm6 = vweird.f32 %v6965_v36 }
0x1209   :  { %vm6194_vm0 = vmor %vm6192_vm3, %vm6193_vm6 }
0x120a   :  { %v6076_v41 = vpop.f32.mrf.mxu3  ;;  %v6189_v21 = vsub.f32 1.0, %v6188_v61 }
0x120b   :  { %6799 = vmatpush.msk.msra.mxu1 %vm5380_vm2, %v6076_v41 }
0x120c   :  { %v6190_v45 = vmul.f32 %v6965_v36, %v6189_v21 }
0x120d   :  { %6097 = vmatpush.msra.mxu1 %v6073_v55  ;;  %v6259_v55 = vstv %s4483_s11 }
0x120e   :  { %6800 = vmatmul.msk.f32.vlgmr.msra.gmra.mxu1 %vm5913_vm4, %v5843_v15  ;;  %v6191_v58 = vadd.f32 %v6965_v36, %v6190_v45 }
0x1210   :  { %v6195_v13 = vsel %vm6194_vm0, %v6965_v36, %v6191_v58 }
0x1211   :  { %v6200_v16 = vsel %vm6197_vm8, %v6199_v35, %v6195_v13 }
0x128b   :  { %v6099_v52 = vpop.f32.mrf.mxu1 }
0x128c   :  { %v6103_v29 = vsub.f32 %v6099_v52, %v6102_v20 }
0x128e   :  { %v6163_v49 = vadd.f32 %v6103_v29, %v6047_v18 }
0x1290   :  { %v6164_v30 = vadd.f32 %v6163_v49, %v6161_v4 }
0x1292   :  { %6966 = vrcp.f32 %v6164_v30  ;;  %v6176_v14 = vand.u32 2147483648, %v6164_v30  ;;  %v6174_v22 = vand.u32 2147483647, %v6164_v30  ;;  %vm6170_vm12 = vweird.f32 %v6164_v30 }
0x1294   :  { %v6177_v46 = vor.u32 1.1754944e-38, %v6176_v14  ;;  %vm6175_vm1 = vcmp.eq.f32.partialorder %v6174_v22, 8.507059e+37 }
0x1298   :  { %v6967_v23 = vpop.eup %6966 }
0x1299   :  { %v6166_v5 = vmul.f32 %v6967_v23, %v6164_v30  ;;  %vm6171_vm2 = vweird.f32 %v6967_v23 }
0x129a   :  { %vm6172_vm7 = vmor %vm6170_vm12, %vm6171_vm2 }
0x129b   :  { %v6167_v51 = vsub.f32 1.0, %v6166_v5 }
0x129d   :  { %v6168_v47 = vmul.f32 %v6967_v23, %v6167_v51 }
0x129f   :  { %v6169_v32 = vadd.f32 %v6967_v23, %v6168_v47 }
0x12a1   :  { %v6173_v10 = vsel %vm6172_vm7, %v6967_v23, %v6169_v32 }
0x12a2   :  { %v6178_v11 = vsel %vm6175_vm1, %v6177_v46, %v6173_v10 }
0x12a3   :  { %v6179_v59 = vmul.f32 %v6178_v11, %v6162_v37 }
0x12a5   :  { %v6213_v28 = vsel %vm5173_vm13, %v6179_v59, 0.0  ;;  %v6184_v39 = vmul.f32 %v6183_v62, %v6179_v59 }
0x12a6   :  { %6214 = vadd.xlane.f32.xlu1 %v6213_v28 }
0x12a7   :  { %v6201_v2 = vmul.f32 %v6200_v16, %v6184_v39 }
0x12a9   :  { %v6202_v56 = vsel %vm5173_vm13, %v6201_v2, 0.0  ;;  %vm6268_vm13 = vcmp.eq.s32.totalorder %v6226_v7, 8 }
0x12aa   :  { %6203 = vadd.xlane.f32.xlu0 %v6202_v56  ;;  %v6271_v43 = vsel %vm6268_vm13, %v6269_v42, 0.0 }
0x1319   :  { %v6215_v19 = vpop.xlane.xlu1 %6214 }
0x131a   :  { %v6216_v1 = vrot.slane %v6215_v19, 4 }
0x131c   :  { %v6217_v15 = vadd.f32 %v6216_v1, %v6215_v19 }
0x131d   :  { %v6204_v12 = vpop.xlane.xlu0 %6203 }
0x131e   :  { %v6218_v38 = vrot.slane %v6217_v15, 2  ;;  %v6205_v8 = vrot.slane %v6204_v12, 4 }
0x1320   :  { %v6206_v50 = vadd.f32 %v6205_v8, %v6204_v12  ;;  %v6219_v53 = vadd.f32 %v6218_v38, %v6217_v15 }
0x1322   :  { %v6207_v27 = vrot.slane %v6206_v50, 2  ;;  %v6220_v25 = vrot.slane %v6219_v53, 1 }
0x1324   :  { %v6208_v48 = vadd.f32 %v6207_v27, %v6206_v50  ;;  %v6221_v60 = vadd.f32 %v6220_v25, %v6219_v53 }
0x1326   :  { %v6209_v31 = vrot.slane %v6208_v48, 1 }
0x1328   :  { %v6210_v54 = vadd.f32 %v6209_v31, %v6208_v48 }
0x132a   :  { %6842 = vpush %v6210_v54 }
0x132b   :  { %6844 = vpush %v6221_v60 }
0x135b   :  { %s6843_s21 = spop %6842 }
0x135c   :  { %s6212_s10 = smul.f32 0.16666667, %s6843_s21  ;;  %s6845_s7 = spop %6844 }
0x135d   :  { %s6223_s28 = smul.f32 0.16666667, %s6845_s7 }
0x135e   :  { %v6249_v34 = vstv %s6212_s10 }
0x135f   :  { %v6250_v20 = vsel %vm6247_vm9, %v6249_v34, %v12102_v6  ;;  %v6274_v24 = vstv %s6223_s28 }
0x1360   :  { %v6255_v41 = vsel %vm6252_vm10, %v6254_v0, %v6250_v20  ;;  %v6276_v57 = vsel %vm6273_vm11, %v6274_v24, %v6271_v43 }
0x1361   :  { %v6260_v33 = vsel %vm6257_vm14, %v6259_v55, %v6255_v41  ;;  %6278 = vst [vmem:[%s12149_s20 + $0x8] sm:$0xff] %v6276_v57 }
0x1362   :  { %v6265_v52 = vsel %vm6262_vm15, %v6264_v63, %v6260_v33 }
0x1363   :  { %6277 = vst [vmem:[%s12149_s20] sm:$0xff] %v6265_v52 }
0x1364   :  { %6283 = vsyncpa [#allocation3], 1 }
0x1365   :  { %6284 = vsyncpa [#allocation5], 1 }
0x1366   :  { %6285 = vsyncpa [#allocation8], 1 }
0x1367   :  { %6286 = vsyncpa [#allocation11], 1 }
0x1368   :  { %6287 = vsyncpa [#allocation14], 1 }
0x1369   :  { %6288 = vsyncpa [#allocation17], 1 }
0x136a   :  { %6289 = vsyncpa [#allocation20], 1 }
0x136b   :  { %6290 = vsyncpa [#allocation23], 1 }
0x136c   :  { %6291 = vsyncpa [#allocation26], 1 }
0x136d   :  { %6292 = vsyncpa [#allocation29], 1 }

</bundles_post_ra>
